<compile_context>
chip_gen: v7x
topology: tpu7x:2x2x1
jax: 0.10.0
libtpu: 0.0.40
codegen_flags: <defaults>
</compile_context>

<pallas_src>
import functools

import jax
import jax.numpy as jnp
import numpy as np
from jax import lax
from jax.experimental import pallas as pl
from jax.experimental.pallas import tpu as pltpu

# ---- configuration consistent with the module ----
BS = 2                        # batch size
NUM_NODES = 8                 # nodes per graph
ELMO_DIM = 1024 * 3           # nn.Linear(1024*3, 256)
ELMO_OUT = 256
GNN_H_DIM = 2 * ELMO_OUT      # 512, forced by torch.cat((h, zeros), -1)
OUT_DIM = 8
NUM_RELS = 3
NUM_GCN_HIDDEN_LAYERS = 2
WEIGHT_DTYPE = jnp.bfloat16   # storage dtype of big weights / activations
GRAPHS_PER_BLOCK = 32         # graphs per grid step (32*8 = 256 rows -> fills MXU M)


# ---------------------------------------------------------------------------
# One fused kernel: elmo_fnn+ReLU -> num_layers x shared RGCNLayer -> readout
# Processes one block of `gb` graphs per grid step; weights stay VMEM-resident.
# ---------------------------------------------------------------------------
def _rgcn_fused_kernel(x_ref, adj_ref, ew_ref, eb_ref, wr_ref, br_ref,
                       wh_ref, bh_ref, wg_ref, bg_ref, wo_ref, bo_ref,
                       o_ref, *, num_layers, num_rels, gb, n):
    f32 = jnp.float32
    bf16 = jnp.bfloat16
    m = gb * n                     # rows in this graph block
    f = wh_ref.shape[0]            # GNN hidden width (512)
    e = ew_ref.shape[1]            # ELMo output width (256)

    # ---- graph-id masks built on the VPU (no extra DMA) ---------------------
    inv_n = 1.0 / n
    ridx = lax.broadcasted_iota(jnp.int32, (m, 1), 0).astype(f32)
    cidx = lax.broadcasted_iota(jnp.int32, (1, m), 1).astype(f32)
    row_gid = jnp.floor((ridx + 0.5) * inv_n)
    col_gid = jnp.floor((cidx + 0.5) * inv_n)
    block_mask = (row_gid == col_gid).astype(f32)                     # (m, m)

    # ---- block-diagonal adjacency expanded in-kernel from the compact band --
    # adj_ref[r]: (m, n), rows grouped by graph.  bd_r[p, q] =
    #   adj[g_p, r, i_p, q mod n] if graph(p) == graph(q) else 0.
    bd = [jnp.concatenate([adj_ref[r]] * gb, axis=-1) * block_mask
          for r in range(num_rels)]                                   # R x (m, m)

    # ---- ELMo fnn + ReLU: bf16 x bf16 -> f32 accumulate on the MXU ----------
    h_act = jnp.maximum(
        jnp.dot(x_ref[...], ew_ref[...], preferred_element_type=f32)
        + eb_ref[...], 0.0)                                           # (m, e) f32

    br = br_ref[...]               # (1, R*f)
    bh = bh_ref[...]               # (1, f)
    bg = bg_ref[...]               # (1, f)

    def gcn_layer(h_in, kh):
        # h_in holds the first `kh` features of the logical (m, f) state; the
        # remaining f - kh features are exactly zero, so every K contraction
        # truncates to kh with identical results (wg cat order is [update, h]).
        hb = h_in.astype(bf16)
        rel = jnp.dot(hb, wr_ref[:kh, :], preferred_element_type=f32) + br
        msg = jnp.zeros((m, f), f32)
        for r in range(num_rels):
            msg = msg + jnp.dot(bd[r], rel[:, r * f:(r + 1) * f],
                                preferred_element_type=f32)
        update = (msg + jnp.dot(hb, wh_ref[:kh, :], preferred_element_type=f32)
                  + bh)
        # gate = sigmoid([update, h] @ wg + bg), lane concat replaced by 2 dots
        gate = jax.nn.sigmoid(
            jnp.dot(update.astype(bf16), wg_ref[:f, :],
                    preferred_element_type=f32)
            + jnp.dot(hb, wg_ref[f:f + kh, :], preferred_element_type=f32)
            + bg)
        t = jnp.tanh(update)
        if kh < f:
            return jnp.concatenate(
                [gate[:, :kh] * t[:, :kh] + (1.0 - gate[:, :kh]) * h_in,
                 gate[:, kh:] * t[:, kh:]], axis=-1)                  # (m, f)
        return gate * t + (1.0 - gate) * h_in                         # (m, f)

    h = gcn_layer(h_act, e)            # layer 1: K = e (zero half skipped)
    for _ in range(num_layers - 1):
        h = gcn_layer(h, f)            # shared weights, VMEM-resident

    # ---- readout: per-graph mean as a pooling matmul -> fnn -> softmax ------
    gidx = lax.broadcasted_iota(jnp.int32, (gb, 1), 0).astype(f32)
    pool = (col_gid == gidx).astype(f32) * inv_n                      # (gb, m)
    hm = jnp.dot(pool, h, preferred_element_type=f32)                 # (gb, f)
    logits = (jnp.dot(hm, wo_ref[...], preferred_element_type=f32)
              + bo_ref[...])                                          # (gb, out)
    mx = jnp.max(logits, axis=-1, keepdims=True)
    ex = jnp.exp(logits - mx)
    o_ref[...] = ex / jnp.sum(ex, axis=-1, keepdims=True)


def rgcn_forward(params, h, b_norm_adj):
    bs, n, d = h.shape
    r = b_norm_adj.shape[1]
    f = params["wh"].shape[0]
    e = params["elmo_w"].shape[1]
    out_f = params["wo"].shape[1]

    gb = min(GRAPHS_PER_BLOCK, bs)           # graphs per grid step
    assert bs % gb == 0, "batch must be a multiple of the graph-block size"
    num_blocks = bs // gb
    m_b = gb * n                             # rows per grid step

    # Activations in bf16 (halves x DMA); adjacency in compact band form
    # adj_band[r, g*n + i, j] = b_norm_adj[g, r, i, j]  -- exactly the real
    # data, no O(m^2) block-diagonal is ever DMA'd.
    x2 = h.reshape(bs * n, d).astype(WEIGHT_DTYPE)
    adj_band = jnp.transpose(b_norm_adj, (1, 0, 2, 3)).reshape(r, bs * n, n)

    kern = functools.partial(_rgcn_fused_kernel,
                             num_layers=NUM_GCN_HIDDEN_LAYERS,
                             num_rels=r, gb=gb, n=n)
    const = lambda i: (0, 0)                 # weights: resident across the grid
    return pl.pallas_call(
        kern,
        out_shape=jax.ShapeDtypeStruct((bs, out_f), jnp.float32),
        grid_spec=pltpu.PrefetchScalarGridSpec(
            num_scalar_prefetch=0,
            grid=(num_blocks,),
            in_specs=[
                pl.BlockSpec((m_b, d), lambda i: (i, 0)),          # x (bf16)
                pl.BlockSpec((r, m_b, n), lambda i: (0, i, 0)),    # adj band
                pl.BlockSpec((d, e), const),                       # elmo_w (bf16)
                pl.BlockSpec((1, e), const),                       # elmo_b
                pl.BlockSpec((f, r * f), const),                   # wr (bf16, concat)
                pl.BlockSpec((1, r * f), const),                   # br (concat)
                pl.BlockSpec((f, f), const),                       # wh (bf16)
                pl.BlockSpec((1, f), const),                       # bh
                pl.BlockSpec((2 * f, f), const),                   # wg (bf16)
                pl.BlockSpec((1, f), const),                       # bg
                pl.BlockSpec((f, out_f), const),                   # wo (f32)
                pl.BlockSpec((1, out_f), const),                   # bo
            ],
            out_specs=pl.BlockSpec((gb, out_f), lambda i: (i, 0)),
        ),
        compiler_params=pltpu.CompilerParams(
            dimension_semantics=("parallel",),   # v7x: graph blocks across 2 TCs
            vmem_limit_bytes=32 << 20,
        ),
    )(x2, adj_band,
      params["elmo_w"], params["elmo_b"],
      params["wr"], params["br"],
      params["wh"], params["bh"],
      params["wg"], params["bg"],
      params["wo"], params["bo"])


# ---------------------------------------------------------------------------
# Pure-JAX reference (PyTorch RGCNLayer semantics, with the same bf16 weight /
# matmul-operand quantization the kernel's native-bf16 MXU path applies).
# ---------------------------------------------------------------------------
def rgcn_forward_ref(params, h, b_norm_adj):
    f32 = jnp.float32
    dot = functools.partial(jnp.matmul, precision=lax.Precision.HIGHEST)
    q = lambda a: a.astype(jnp.bfloat16).astype(f32)   # bf16 MXU operand rounding
    f = params["wh"].shape[0]
    r = b_norm_adj.shape[1]
    ew = params["elmo_w"].astype(f32)
    wr = params["wr"].astype(f32)
    wh = params["wh"].astype(f32)
    wg = params["wg"].astype(f32)

    h = jnp.maximum(dot(q(h), ew) + params["elmo_b"], 0.0)
    h = jnp.concatenate([h, jnp.zeros_like(h)], axis=-1)
    for _ in range(NUM_GCN_HIDDEN_LAYERS):
        hq = q(h)
        h_i = jnp.stack(
            [dot(hq, wr[:, k * f:(k + 1) * f]) + params["br"][0, k * f:(k + 1) * f]
             for k in range(r)], axis=1)                                # (B,R,N,f)
        msg = jnp.sum(jnp.matmul(b_norm_adj, h_i,
                                 precision=lax.Precision.HIGHEST), axis=1)
        update = msg + dot(hq, wh) + params["bh"]
        gate = jax.nn.sigmoid(
            dot(q(jnp.concatenate([update, h], axis=-1)), wg) + params["bg"])
        h = gate * jnp.tanh(update) + (1.0 - gate) * h
    hm = jnp.mean(h, axis=1)
    logits = dot(hm, params["wo"].astype(f32)) + params["bo"]
    return jax.nn.softmax(logits, axis=-1)


def _linear_params(key, in_f, out_f):
    """nn.Linear-style init; weight stored already transposed as (in, out)."""
    kw, kb = jax.random.split(key)
    bound = 1.0 / np.sqrt(in_f)
    w = jax.random.uniform(kw, (in_f, out_f), jnp.float32, -bound, bound)
    b = jax.random.uniform(kb, (out_f,), jnp.float32, -bound, bound)
    return w, b


def make_params(key):
    keys = jax.random.split(key, 4 + NUM_RELS)
    elmo_w, elmo_b = _linear_params(keys[0], ELMO_DIM, ELMO_OUT)
    wh, bh = _linear_params(keys[1], GNN_H_DIM, GNN_H_DIM)
    wg, bg = _linear_params(keys[2], 2 * GNN_H_DIM, GNN_H_DIM)  # cat order [update, h]
    wo, bo = _linear_params(keys[3], GNN_H_DIM, OUT_DIM)
    wrs, brs = [], []
    for k in range(NUM_RELS):
        w, b = _linear_params(keys[4 + k], GNN_H_DIM, GNN_H_DIM)
        wrs.append(w)
        brs.append(b)
    wd = WEIGHT_DTYPE
    return {
        # big weights stored bf16 (halves weight HBM reads); MXU accumulates f32
        "elmo_w": elmo_w.astype(wd), "elmo_b": elmo_b.reshape(1, -1),
        "wr": jnp.concatenate(wrs, axis=1).astype(wd),       # (F, R*F)
        "br": jnp.concatenate(brs, axis=0).reshape(1, -1),   # (1, R*F)
        "wh": wh.astype(wd), "bh": bh.reshape(1, -1),
        "wg": wg.astype(wd), "bg": bg.reshape(1, -1),
        "wo": wo, "bo": bo.reshape(1, -1),
    }


if __name__ == "__main__":
    key = jax.random.PRNGKey(0)
    k_h, k_adj, k_p = jax.random.split(key, 3)

    h_in = jax.random.normal(k_h, (BS, NUM_NODES, ELMO_DIM), jnp.float32)
    raw_adj = jax.random.uniform(k_adj, (BS, NUM_RELS, NUM_NODES, NUM_NODES),
                                 jnp.float32)
    b_norm_adj = raw_adj / jnp.sum(raw_adj, axis=-1, keepdims=True)

    params = make_params(k_p)

    fwd = jax.jit(rgcn_forward)
    out = jax.block_until_ready(fwd(params, h_in, b_norm_adj))
    ref = jax.block_until_ready(rgcn_forward_ref(params, h_in, b_norm_adj))

    assert out.shape == (BS, OUT_DIM)
    assert np.allclose(np.asarray(out), np.asarray(ref), rtol=1e-2, atol=1e-3), (
        "mismatch vs. reference")
    print("KERNEL_OK")
</pallas_src>

<mosaic_0001>
module attributes {stable_mosaic.version = 11 : i64} {
  func.func @_rgcn_fused_kernel(%arg0: i32, %arg1: memref<16x3072xbf16, #tpu.memory_space<vmem>>, %arg2: memref<3x16x8xf32, #tpu.memory_space<vmem>>, %arg3: memref<3072x256xbf16, #tpu.memory_space<vmem>>, %arg4: memref<1x256xf32, #tpu.memory_space<vmem>>, %arg5: memref<512x1536xbf16, #tpu.memory_space<vmem>>, %arg6: memref<1x1536xf32, #tpu.memory_space<vmem>>, %arg7: memref<512x512xbf16, #tpu.memory_space<vmem>>, %arg8: memref<1x512xf32, #tpu.memory_space<vmem>>, %arg9: memref<1024x512xbf16, #tpu.memory_space<vmem>>, %arg10: memref<1x512xf32, #tpu.memory_space<vmem>>, %arg11: memref<512x8xf32, #tpu.memory_space<vmem>>, %arg12: memref<1x8xf32, #tpu.memory_space<vmem>>, %arg13: memref<2x8xf32, #tpu.memory_space<vmem>>) attributes {dimension_semantics = [#tpu.dimension_semantics<parallel>], iteration_bounds = array<i64: 1>, scalar_prefetch = 0 : i64, scratch_operands = 0 : i64, tpu.core_type = #tpu.core_type<tc>, window_params = [{transform_indices = @transform_0, window_bounds = array<i64: 16, 3072>}, {transform_indices = @transform_1, window_bounds = array<i64: 3, 16, 8>}, {pipeline_mode = #tpu.pipeline_mode<synchronous>, transform_indices = @transform_2, window_bounds = array<i64: 3072, 256>}, {pipeline_mode = #tpu.pipeline_mode<synchronous>, transform_indices = @transform_3, window_bounds = array<i64: 1, 256>}, {pipeline_mode = #tpu.pipeline_mode<synchronous>, transform_indices = @transform_4, window_bounds = array<i64: 512, 1536>}, {pipeline_mode = #tpu.pipeline_mode<synchronous>, transform_indices = @transform_5, window_bounds = array<i64: 1, 1536>}, {pipeline_mode = #tpu.pipeline_mode<synchronous>, transform_indices = @transform_6, window_bounds = array<i64: 512, 512>}, {pipeline_mode = #tpu.pipeline_mode<synchronous>, transform_indices = @transform_7, window_bounds = array<i64: 1, 512>}, {pipeline_mode = #tpu.pipeline_mode<synchronous>, transform_indices = @transform_8, window_bounds = array<i64: 1024, 512>}, {pipeline_mode = #tpu.pipeline_mode<synchronous>, transform_indices = @transform_9, window_bounds = array<i64: 1, 512>}, {pipeline_mode = #tpu.pipeline_mode<synchronous>, transform_indices = @transform_10, window_bounds = array<i64: 512, 8>}, {pipeline_mode = #tpu.pipeline_mode<synchronous>, transform_indices = @transform_11, window_bounds = array<i64: 1, 8>}, {transform_indices = @transform_12, window_bounds = array<i64: 2, 8>}]} {
    %0 = tpu.iota {dimensions = array<i32: 0>} : vector<16x1xi32>
    %1 = arith.sitofp %0 : vector<16x1xi32> to vector<16x1xf32>
    %2 = tpu.iota {dimensions = array<i32: 1>} : vector<1x16xi32>
    %3 = arith.sitofp %2 : vector<1x16xi32> to vector<1x16xf32>
    %cst = arith.constant 5.000000e-01 : f32
    %4 = vector.broadcast %cst : f32 to vector<16x1xf32>
    %5 = arith.addf %1, %4 : vector<16x1xf32>
    %cst_0 = arith.constant 1.250000e-01 : f32
    %6 = vector.broadcast %cst_0 : f32 to vector<16x1xf32>
    %7 = arith.mulf %5, %6 : vector<16x1xf32>
    %8 = math.floor %7 : vector<16x1xf32>
    %cst_1 = arith.constant 5.000000e-01 : f32
    %9 = vector.broadcast %cst_1 : f32 to vector<1x16xf32>
    %10 = arith.addf %3, %9 : vector<1x16xf32>
    %cst_2 = arith.constant 1.250000e-01 : f32
    %11 = vector.broadcast %cst_2 : f32 to vector<1x16xf32>
    %12 = arith.mulf %10, %11 : vector<1x16xf32>
    %13 = math.floor %12 : vector<1x16xf32>
    %14 = vector.broadcast %8 : vector<16x1xf32> to vector<16x16xf32>
    %15 = vector.broadcast %13 : vector<1x16xf32> to vector<16x16xf32>
    %16 = arith.cmpf oeq, %14, %15 : vector<16x16xf32>
    %17 = arith.extui %16 : vector<16x16xi1> to vector<16x16xi32>
    %18 = arith.sitofp %17 : vector<16x16xi32> to vector<16x16xf32>
    %c0 = arith.constant 0 : index
    %c0_3 = arith.constant 0 : index
    %c0_4 = arith.constant 0 : index
    %19 = vector.load %arg2[%c0, %c0_3, %c0_4] : memref<3x16x8xf32, #tpu.memory_space<vmem>>, vector<1x16x8xf32>
    %20 = vector.shape_cast %19 : vector<1x16x8xf32> to vector<16x8xf32>
    %21 = tpu.concatenate %20, %20 in 1 : vector<16x8xf32>, vector<16x8xf32> -> vector<16x16xf32>
    %22 = arith.mulf %21, %18 : vector<16x16xf32>
    %c1 = arith.constant 1 : index
    %c0_5 = arith.constant 0 : index
    %c0_6 = arith.constant 0 : index
    %23 = vector.load %arg2[%c1, %c0_5, %c0_6] : memref<3x16x8xf32, #tpu.memory_space<vmem>>, vector<1x16x8xf32>
    %24 = vector.shape_cast %23 : vector<1x16x8xf32> to vector<16x8xf32>
    %25 = tpu.concatenate %24, %24 in 1 : vector<16x8xf32>, vector<16x8xf32> -> vector<16x16xf32>
    %26 = arith.mulf %25, %18 : vector<16x16xf32>
    %c2 = arith.constant 2 : index
    %c0_7 = arith.constant 0 : index
    %c0_8 = arith.constant 0 : index
    %27 = vector.load %arg2[%c2, %c0_7, %c0_8] : memref<3x16x8xf32, #tpu.memory_space<vmem>>, vector<1x16x8xf32>
    %28 = vector.shape_cast %27 : vector<1x16x8xf32> to vector<16x8xf32>
    %29 = tpu.concatenate %28, %28 in 1 : vector<16x8xf32>, vector<16x8xf32> -> vector<16x16xf32>
    %30 = arith.mulf %29, %18 : vector<16x16xf32>
    %c0_9 = arith.constant 0 : index
    %c0_10 = arith.constant 0 : index
    %31 = vector.load %arg1[%c0_9, %c0_10] : memref<16x3072xbf16, #tpu.memory_space<vmem>>, vector<16x3072xbf16>
    %c0_11 = arith.constant 0 : index
    %c0_12 = arith.constant 0 : index
    %32 = vector.load %arg3[%c0_11, %c0_12] : memref<3072x256xbf16, #tpu.memory_space<vmem>>, vector<3072x256xbf16>
    %cst_13 = arith.constant dense<0.000000e+00> : vector<16x256xf32>
    %33 = tpu.matmul %31, %32, %cst_13 {dimension_numbers = #tpu.dot_dimension_numbers<[1], [0], [0], [1], [0, 0, 1, 1], [], []>} : vector<16x3072xbf16>, vector<3072x256xbf16>, vector<16x256xf32> -> vector<16x256xf32>
    %c0_14 = arith.constant 0 : index
    %c0_15 = arith.constant 0 : index
    %34 = vector.load %arg4[%c0_14, %c0_15] : memref<1x256xf32, #tpu.memory_space<vmem>>, vector<1x256xf32>
    %35 = vector.broadcast %34 : vector<1x256xf32> to vector<16x256xf32>
    %36 = arith.addf %33, %35 : vector<16x256xf32>
    %cst_16 = arith.constant 0.000000e+00 : f32
    %37 = vector.broadcast %cst_16 : f32 to vector<16x256xf32>
    %38 = arith.maximumf %36, %37 : vector<16x256xf32>
    %c0_17 = arith.constant 0 : index
    %c0_18 = arith.constant 0 : index
    %39 = vector.load %arg6[%c0_17, %c0_18] : memref<1x1536xf32, #tpu.memory_space<vmem>>, vector<1x1536xf32>
    %c0_19 = arith.constant 0 : index
    %c0_20 = arith.constant 0 : index
    %40 = vector.load %arg8[%c0_19, %c0_20] : memref<1x512xf32, #tpu.memory_space<vmem>>, vector<1x512xf32>
    %c0_21 = arith.constant 0 : index
    %c0_22 = arith.constant 0 : index
    %41 = vector.load %arg10[%c0_21, %c0_22] : memref<1x512xf32, #tpu.memory_space<vmem>>, vector<1x512xf32>
    %42 = arith.truncf %38 : vector<16x256xf32> to vector<16x256xbf16>
    %c0_23 = arith.constant 0 : index
    %c0_24 = arith.constant 0 : index
    %43 = vector.load %arg5[%c0_23, %c0_24] : memref<512x1536xbf16, #tpu.memory_space<vmem>>, vector<256x1536xbf16>
    %cst_25 = arith.constant dense<0.000000e+00> : vector<16x1536xf32>
    %44 = tpu.matmul %42, %43, %cst_25 {dimension_numbers = #tpu.dot_dimension_numbers<[1], [0], [0], [1], [0, 0, 1, 1], [], []>} : vector<16x256xbf16>, vector<256x1536xbf16>, vector<16x1536xf32> -> vector<16x1536xf32>
    %45 = vector.broadcast %39 : vector<1x1536xf32> to vector<16x1536xf32>
    %46 = arith.addf %44, %45 : vector<16x1536xf32>
    %cst_26 = arith.constant 0.000000e+00 : f32
    %47 = vector.broadcast %cst_26 : f32 to vector<16x512xf32>
    %48 = vector.extract_strided_slice %46 {offsets = [0, 0], sizes = [16, 512], strides = [1, 1]} : vector<16x1536xf32> to vector<16x512xf32>
    %cst_27 = arith.constant dense<0.000000e+00> : vector<16x512xf32>
    %49 = tpu.matmul %22, %48, %cst_27 {dimension_numbers = #tpu.dot_dimension_numbers<[1], [0], [0], [1], [0, 0, 1, 1], [], []>} : vector<16x16xf32>, vector<16x512xf32>, vector<16x512xf32> -> vector<16x512xf32>
    %50 = arith.addf %47, %49 : vector<16x512xf32>
    %51 = vector.extract_strided_slice %46 {offsets = [0, 512], sizes = [16, 512], strides = [1, 1]} : vector<16x1536xf32> to vector<16x512xf32>
    %cst_28 = arith.constant dense<0.000000e+00> : vector<16x512xf32>
    %52 = tpu.matmul %26, %51, %cst_28 {dimension_numbers = #tpu.dot_dimension_numbers<[1], [0], [0], [1], [0, 0, 1, 1], [], []>} : vector<16x16xf32>, vector<16x512xf32>, vector<16x512xf32> -> vector<16x512xf32>
    %53 = arith.addf %50, %52 : vector<16x512xf32>
    %54 = vector.extract_strided_slice %46 {offsets = [0, 1024], sizes = [16, 512], strides = [1, 1]} : vector<16x1536xf32> to vector<16x512xf32>
    %cst_29 = arith.constant dense<0.000000e+00> : vector<16x512xf32>
    %55 = tpu.matmul %30, %54, %cst_29 {dimension_numbers = #tpu.dot_dimension_numbers<[1], [0], [0], [1], [0, 0, 1, 1], [], []>} : vector<16x16xf32>, vector<16x512xf32>, vector<16x512xf32> -> vector<16x512xf32>
    %56 = arith.addf %53, %55 : vector<16x512xf32>
    %c0_30 = arith.constant 0 : index
    %c0_31 = arith.constant 0 : index
    %57 = vector.load %arg7[%c0_30, %c0_31] : memref<512x512xbf16, #tpu.memory_space<vmem>>, vector<256x512xbf16>
    %cst_32 = arith.constant dense<0.000000e+00> : vector<16x512xf32>
    %58 = tpu.matmul %42, %57, %cst_32 {dimension_numbers = #tpu.dot_dimension_numbers<[1], [0], [0], [1], [0, 0, 1, 1], [], []>} : vector<16x256xbf16>, vector<256x512xbf16>, vector<16x512xf32> -> vector<16x512xf32>
    %59 = arith.addf %56, %58 : vector<16x512xf32>
    %60 = vector.broadcast %40 : vector<1x512xf32> to vector<16x512xf32>
    %61 = arith.addf %59, %60 : vector<16x512xf32>
    %62 = arith.truncf %61 : vector<16x512xf32> to vector<16x512xbf16>
    %c0_33 = arith.constant 0 : index
    %c0_34 = arith.constant 0 : index
    %63 = vector.load %arg9[%c0_33, %c0_34] : memref<1024x512xbf16, #tpu.memory_space<vmem>>, vector<512x512xbf16>
    %cst_35 = arith.constant dense<0.000000e+00> : vector<16x512xf32>
    %64 = tpu.matmul %62, %63, %cst_35 {dimension_numbers = #tpu.dot_dimension_numbers<[1], [0], [0], [1], [0, 0, 1, 1], [], []>} : vector<16x512xbf16>, vector<512x512xbf16>, vector<16x512xf32> -> vector<16x512xf32>
    %c512 = arith.constant 512 : index
    %c0_36 = arith.constant 0 : index
    %65 = vector.load %arg9[%c512, %c0_36] : memref<1024x512xbf16, #tpu.memory_space<vmem>>, vector<256x512xbf16>
    %cst_37 = arith.constant dense<0.000000e+00> : vector<16x512xf32>
    %66 = tpu.matmul %42, %65, %cst_37 {dimension_numbers = #tpu.dot_dimension_numbers<[1], [0], [0], [1], [0, 0, 1, 1], [], []>} : vector<16x256xbf16>, vector<256x512xbf16>, vector<16x512xf32> -> vector<16x512xf32>
    %67 = arith.addf %64, %66 : vector<16x512xf32>
    %68 = vector.broadcast %41 : vector<1x512xf32> to vector<16x512xf32>
    %69 = arith.addf %67, %68 : vector<16x512xf32>
    %70 = arith.negf %69 : vector<16x512xf32>
    %71 = math.exp %70 : vector<16x512xf32>
    %cst_38 = arith.constant 1.000000e+00 : f32
    %72 = vector.broadcast %cst_38 : f32 to vector<16x512xf32>
    %73 = arith.addf %72, %71 : vector<16x512xf32>
    %74 = arith.divf %72, %73 : vector<16x512xf32>
    %75 = math.tanh %61 : vector<16x512xf32>
    %76 = vector.extract_strided_slice %74 {offsets = [0, 0], sizes = [16, 256], strides = [1, 1]} : vector<16x512xf32> to vector<16x256xf32>
    %77 = vector.extract_strided_slice %75 {offsets = [0, 0], sizes = [16, 256], strides = [1, 1]} : vector<16x512xf32> to vector<16x256xf32>
    %78 = arith.mulf %76, %77 : vector<16x256xf32>
    %79 = vector.extract_strided_slice %74 {offsets = [0, 0], sizes = [16, 256], strides = [1, 1]} : vector<16x512xf32> to vector<16x256xf32>
    %cst_39 = arith.constant 1.000000e+00 : f32
    %80 = vector.broadcast %cst_39 : f32 to vector<16x256xf32>
    %81 = arith.subf %80, %79 : vector<16x256xf32>
    %82 = arith.mulf %81, %38 : vector<16x256xf32>
    %83 = arith.addf %78, %82 : vector<16x256xf32>
    %84 = vector.extract_strided_slice %74 {offsets = [0, 256], sizes = [16, 256], strides = [1, 1]} : vector<16x512xf32> to vector<16x256xf32>
    %85 = vector.extract_strided_slice %75 {offsets = [0, 256], sizes = [16, 256], strides = [1, 1]} : vector<16x512xf32> to vector<16x256xf32>
    %86 = arith.mulf %84, %85 : vector<16x256xf32>
    %87 = tpu.concatenate %83, %86 in 1 : vector<16x256xf32>, vector<16x256xf32> -> vector<16x512xf32>
    %88 = arith.truncf %87 : vector<16x512xf32> to vector<16x512xbf16>
    %c0_40 = arith.constant 0 : index
    %c0_41 = arith.constant 0 : index
    %89 = vector.load %arg5[%c0_40, %c0_41] : memref<512x1536xbf16, #tpu.memory_space<vmem>>, vector<512x1536xbf16>
    %cst_42 = arith.constant dense<0.000000e+00> : vector<16x1536xf32>
    %90 = tpu.matmul %88, %89, %cst_42 {dimension_numbers = #tpu.dot_dimension_numbers<[1], [0], [0], [1], [0, 0, 1, 1], [], []>} : vector<16x512xbf16>, vector<512x1536xbf16>, vector<16x1536xf32> -> vector<16x1536xf32>
    %91 = vector.broadcast %39 : vector<1x1536xf32> to vector<16x1536xf32>
    %92 = arith.addf %90, %91 : vector<16x1536xf32>
    %cst_43 = arith.constant 0.000000e+00 : f32
    %93 = vector.broadcast %cst_43 : f32 to vector<16x512xf32>
    %94 = vector.extract_strided_slice %92 {offsets = [0, 0], sizes = [16, 512], strides = [1, 1]} : vector<16x1536xf32> to vector<16x512xf32>
    %cst_44 = arith.constant dense<0.000000e+00> : vector<16x512xf32>
    %95 = tpu.matmul %22, %94, %cst_44 {dimension_numbers = #tpu.dot_dimension_numbers<[1], [0], [0], [1], [0, 0, 1, 1], [], []>} : vector<16x16xf32>, vector<16x512xf32>, vector<16x512xf32> -> vector<16x512xf32>
    %96 = arith.addf %93, %95 : vector<16x512xf32>
    %97 = vector.extract_strided_slice %92 {offsets = [0, 512], sizes = [16, 512], strides = [1, 1]} : vector<16x1536xf32> to vector<16x512xf32>
    %cst_45 = arith.constant dense<0.000000e+00> : vector<16x512xf32>
    %98 = tpu.matmul %26, %97, %cst_45 {dimension_numbers = #tpu.dot_dimension_numbers<[1], [0], [0], [1], [0, 0, 1, 1], [], []>} : vector<16x16xf32>, vector<16x512xf32>, vector<16x512xf32> -> vector<16x512xf32>
    %99 = arith.addf %96, %98 : vector<16x512xf32>
    %100 = vector.extract_strided_slice %92 {offsets = [0, 1024], sizes = [16, 512], strides = [1, 1]} : vector<16x1536xf32> to vector<16x512xf32>
    %cst_46 = arith.constant dense<0.000000e+00> : vector<16x512xf32>
    %101 = tpu.matmul %30, %100, %cst_46 {dimension_numbers = #tpu.dot_dimension_numbers<[1], [0], [0], [1], [0, 0, 1, 1], [], []>} : vector<16x16xf32>, vector<16x512xf32>, vector<16x512xf32> -> vector<16x512xf32>
    %102 = arith.addf %99, %101 : vector<16x512xf32>
    %c0_47 = arith.constant 0 : index
    %c0_48 = arith.constant 0 : index
    %103 = vector.load %arg7[%c0_47, %c0_48] : memref<512x512xbf16, #tpu.memory_space<vmem>>, vector<512x512xbf16>
    %cst_49 = arith.constant dense<0.000000e+00> : vector<16x512xf32>
    %104 = tpu.matmul %88, %103, %cst_49 {dimension_numbers = #tpu.dot_dimension_numbers<[1], [0], [0], [1], [0, 0, 1, 1], [], []>} : vector<16x512xbf16>, vector<512x512xbf16>, vector<16x512xf32> -> vector<16x512xf32>
    %105 = arith.addf %102, %104 : vector<16x512xf32>
    %106 = vector.broadcast %40 : vector<1x512xf32> to vector<16x512xf32>
    %107 = arith.addf %105, %106 : vector<16x512xf32>
    %108 = arith.truncf %107 : vector<16x512xf32> to vector<16x512xbf16>
    %c0_50 = arith.constant 0 : index
    %c0_51 = arith.constant 0 : index
    %109 = vector.load %arg9[%c0_50, %c0_51] : memref<1024x512xbf16, #tpu.memory_space<vmem>>, vector<512x512xbf16>
    %cst_52 = arith.constant dense<0.000000e+00> : vector<16x512xf32>
    %110 = tpu.matmul %108, %109, %cst_52 {dimension_numbers = #tpu.dot_dimension_numbers<[1], [0], [0], [1], [0, 0, 1, 1], [], []>} : vector<16x512xbf16>, vector<512x512xbf16>, vector<16x512xf32> -> vector<16x512xf32>
    %c512_53 = arith.constant 512 : index
    %c0_54 = arith.constant 0 : index
    %111 = vector.load %arg9[%c512_53, %c0_54] : memref<1024x512xbf16, #tpu.memory_space<vmem>>, vector<512x512xbf16>
    %cst_55 = arith.constant dense<0.000000e+00> : vector<16x512xf32>
    %112 = tpu.matmul %88, %111, %cst_55 {dimension_numbers = #tpu.dot_dimension_numbers<[1], [0], [0], [1], [0, 0, 1, 1], [], []>} : vector<16x512xbf16>, vector<512x512xbf16>, vector<16x512xf32> -> vector<16x512xf32>
    %113 = arith.addf %110, %112 : vector<16x512xf32>
    %114 = vector.broadcast %41 : vector<1x512xf32> to vector<16x512xf32>
    %115 = arith.addf %113, %114 : vector<16x512xf32>
    %116 = arith.negf %115 : vector<16x512xf32>
    %117 = math.exp %116 : vector<16x512xf32>
    %cst_56 = arith.constant 1.000000e+00 : f32
    %118 = vector.broadcast %cst_56 : f32 to vector<16x512xf32>
    %119 = arith.addf %118, %117 : vector<16x512xf32>
    %120 = arith.divf %118, %119 : vector<16x512xf32>
    %121 = math.tanh %107 : vector<16x512xf32>
    %122 = arith.mulf %120, %121 : vector<16x512xf32>
    %cst_57 = arith.constant 1.000000e+00 : f32
    %123 = vector.broadcast %cst_57 : f32 to vector<16x512xf32>
    %124 = arith.subf %123, %120 : vector<16x512xf32>
    %125 = arith.mulf %124, %87 : vector<16x512xf32>
    %126 = arith.addf %122, %125 : vector<16x512xf32>
    %127 = tpu.iota {dimensions = array<i32: 0>} : vector<2x1xi32>
    %128 = arith.sitofp %127 : vector<2x1xi32> to vector<2x1xf32>
    %129 = vector.broadcast %13 : vector<1x16xf32> to vector<2x16xf32>
    %130 = vector.broadcast %128 : vector<2x1xf32> to vector<2x16xf32>
    %131 = arith.cmpf oeq, %129, %130 : vector<2x16xf32>
    %132 = arith.extui %131 : vector<2x16xi1> to vector<2x16xi32>
    %133 = arith.sitofp %132 : vector<2x16xi32> to vector<2x16xf32>
    %cst_58 = arith.constant 1.250000e-01 : f32
    %134 = vector.broadcast %cst_58 : f32 to vector<2x16xf32>
    %135 = arith.mulf %133, %134 : vector<2x16xf32>
    %cst_59 = arith.constant dense<0.000000e+00> : vector<2x512xf32>
    %136 = tpu.matmul %135, %126, %cst_59 {dimension_numbers = #tpu.dot_dimension_numbers<[1], [0], [0], [1], [0, 0, 1, 1], [], []>} : vector<2x16xf32>, vector<16x512xf32>, vector<2x512xf32> -> vector<2x512xf32>
    %c0_60 = arith.constant 0 : index
    %c0_61 = arith.constant 0 : index
    %137 = vector.load %arg11[%c0_60, %c0_61] : memref<512x8xf32, #tpu.memory_space<vmem>>, vector<512x8xf32>
    %cst_62 = arith.constant dense<0.000000e+00> : vector<2x8xf32>
    %138 = tpu.matmul %136, %137, %cst_62 {dimension_numbers = #tpu.dot_dimension_numbers<[1], [0], [0], [1], [0, 0, 1, 1], [], []>} : vector<2x512xf32>, vector<512x8xf32>, vector<2x8xf32> -> vector<2x8xf32>
    %c0_63 = arith.constant 0 : index
    %c0_64 = arith.constant 0 : index
    %139 = vector.load %arg12[%c0_63, %c0_64] : memref<1x8xf32, #tpu.memory_space<vmem>>, vector<1x8xf32>
    %140 = vector.broadcast %139 : vector<1x8xf32> to vector<2x8xf32>
    %141 = arith.addf %138, %140 : vector<2x8xf32>
    %cst_65 = arith.constant dense<0xFF800000> : vector<2xf32>
    %142 = vector.multi_reduction <maximumf>, %141, %cst_65 [1] : vector<2x8xf32> to vector<2xf32>
    %143 = vector.shape_cast %142 : vector<2xf32> to vector<2x1xf32>
    %144 = vector.broadcast %143 : vector<2x1xf32> to vector<2x8xf32>
    %145 = arith.subf %141, %144 : vector<2x8xf32>
    %146 = math.exp %145 : vector<2x8xf32>
    %cst_66 = arith.constant dense<0.000000e+00> : vector<2xf32>
    %147 = vector.multi_reduction <add>, %146, %cst_66 [1] : vector<2x8xf32> to vector<2xf32>
    %148 = vector.shape_cast %147 : vector<2xf32> to vector<2x1xf32>
    %149 = vector.broadcast %148 : vector<2x1xf32> to vector<2x8xf32>
    %150 = arith.divf %146, %149 : vector<2x8xf32>
    %c0_67 = arith.constant 0 : index
    %c0_68 = arith.constant 0 : index
    %151 = vector.load %arg13[%c0_67, %c0_68] : memref<2x8xf32, #tpu.memory_space<vmem>>, vector<2x8xf32>
    tpu.vector_store %arg13[%c0_67, %c0_68], %150 {strides = array<i32>} : memref<2x8xf32, #tpu.memory_space<vmem>>, vector<2x8xf32>,
    return
  }
  func.func @transform_0(%arg0: i32) -> (i32, i32) {
    %c0_i32 = arith.constant 0 : i32
    %c0_i32_0 = arith.constant 0 : i32
    return %arg0, %c0_i32 : i32, i32
  }
  func.func @transform_1(%arg0: i32) -> (i32, i32, i32) {
    %c0_i32 = arith.constant 0 : i32
    %c0_i32_0 = arith.constant 0 : i32
    %c0_i32_1 = arith.constant 0 : i32
    return %c0_i32, %arg0, %c0_i32_0 : i32, i32, i32
  }
  func.func @transform_2(%arg0: i32) -> (i32, i32) {
    %c0_i32 = arith.constant 0 : i32
    %c0_i32_0 = arith.constant 0 : i32
    %c0_i32_1 = arith.constant 0 : i32
    return %c0_i32, %c0_i32_0 : i32, i32
  }
  func.func @transform_3(%arg0: i32) -> (i32, i32) {
    %c0_i32 = arith.constant 0 : i32
    %c0_i32_0 = arith.constant 0 : i32
    %c0_i32_1 = arith.constant 0 : i32
    return %c0_i32, %c0_i32_0 : i32, i32
  }
  func.func @transform_4(%arg0: i32) -> (i32, i32) {
    %c0_i32 = arith.constant 0 : i32
    %c0_i32_0 = arith.constant 0 : i32
    %c0_i32_1 = arith.constant 0 : i32
    return %c0_i32, %c0_i32_0 : i32, i32
  }
  func.func @transform_5(%arg0: i32) -> (i32, i32) {
    %c0_i32 = arith.constant 0 : i32
    %c0_i32_0 = arith.constant 0 : i32
    %c0_i32_1 = arith.constant 0 : i32
    return %c0_i32, %c0_i32_0 : i32, i32
  }
  func.func @transform_6(%arg0: i32) -> (i32, i32) {
    %c0_i32 = arith.constant 0 : i32
    %c0_i32_0 = arith.constant 0 : i32
    %c0_i32_1 = arith.constant 0 : i32
    return %c0_i32, %c0_i32_0 : i32, i32
  }
  func.func @transform_7(%arg0: i32) -> (i32, i32) {
    %c0_i32 = arith.constant 0 : i32
    %c0_i32_0 = arith.constant 0 : i32
    %c0_i32_1 = arith.constant 0 : i32
    return %c0_i32, %c0_i32_0 : i32, i32
  }
  func.func @transform_8(%arg0: i32) -> (i32, i32) {
    %c0_i32 = arith.constant 0 : i32
    %c0_i32_0 = arith.constant 0 : i32
    %c0_i32_1 = arith.constant 0 : i32
    return %c0_i32, %c0_i32_0 : i32, i32
  }
  func.func @transform_9(%arg0: i32) -> (i32, i32) {
    %c0_i32 = arith.constant 0 : i32
    %c0_i32_0 = arith.constant 0 : i32
    %c0_i32_1 = arith.constant 0 : i32
    return %c0_i32, %c0_i32_0 : i32, i32
  }
  func.func @transform_10(%arg0: i32) -> (i32, i32) {
    %c0_i32 = arith.constant 0 : i32
    %c0_i32_0 = arith.constant 0 : i32
    %c0_i32_1 = arith.constant 0 : i32
    return %c0_i32, %c0_i32_0 : i32, i32
  }
  func.func @transform_11(%arg0: i32) -> (i32, i32) {
    %c0_i32 = arith.constant 0 : i32
    %c0_i32_0 = arith.constant 0 : i32
    %c0_i32_1 = arith.constant 0 : i32
    return %c0_i32, %c0_i32_0 : i32, i32
  }
  func.func @transform_12(%arg0: i32) -> (i32, i32) {
    %c0_i32 = arith.constant 0 : i32
    %c0_i32_0 = arith.constant 0 : i32
    return %arg0, %c0_i32 : i32, i32
  }
}

</mosaic_0001>

<bundles_post_ra>
// kernel: rgcn_forward.1
= control target key start
LH: loop header
LB: loop body
LE: loop exit
PB: predicated region body
PF: predicated region fallthrough
CT: control target
= control target key end

     0   :  { %17 = vsyncpa [#allocation3], 0  ;;  %s18910_s0 = inlined_call_operand.vmem [shape: bf16[16,3072], index: 0, kind: input, shape index: {}]   ;;  %s18911_s1 = inlined_call_operand.vmem [shape: f32[3,16,8], index: 1, kind: input, shape index: {}]   ;;  %s18912_s2 = inlined_call_operand.hbm [shape: bf16[3072,256], index: 2, kind: input, shape index: {}]   ;;  %s18913_s3 = inlined_call_operand.hbm [shape: f32[1,256], index: 3, kind: input, shape index: {}]   ;;  %s18914_s4 = inlined_call_operand.hbm [shape: bf16[512,1536], index: 4, kind: input, shape index: {}]   ;;  %s18915_s5 = inlined_call_operand.hbm [shape: f32[1,1536], index: 5, kind: input, shape index: {}]   ;;  %s18916_s6 = inlined_call_operand.hbm [shape: bf16[512,512], index: 6, kind: input, shape index: {}]   ;;  %s18917_s7 = inlined_call_operand.hbm [shape: f32[1,512], index: 7, kind: input, shape index: {}]   ;;  %s18918_s8 = inlined_call_operand.hbm [shape: bf16[1024,512], index: 8, kind: input, shape index: {}]   ;;  %s18919_s9 = inlined_call_operand.hbm [shape: f32[1,512], index: 9, kind: input, shape index: {}]   ;;  %s18920_s10 = inlined_call_operand.vmem [shape: f32[512,8], index: 10, kind: input, shape index: {}]   ;;  %s18921_s11 = inlined_call_operand.hbm [shape: f32[1,8], index: 11, kind: input, shape index: {}]   ;;  %s18922_s12 = inlined_call_operand.hbm [shape: f32[2,8], index: 12, kind: output, shape index: {}]  }
   0x1   :  { %18 = vsyncpa [#allocation6], 0 }
   0x2   :  { %19 = vsyncpa [#allocation9], 0 }
   0x3   :  { %20 = vsyncpa [#allocation12], 0 }
   0x4   :  { %21 = vsyncpa [#allocation15], 0 }
   0x5   :  { %22 = vsyncpa [#allocation4], 0  ;;  %s17646_s21 = smov [#allocation5]   ;;  %s17647_s23 = smov [#allocation8]  }
   0x6   :  { %s45_s22 = sshll.u32 %s17646_s21, 4  ;;  %s67_s24 = sshll.u32 %s17647_s23, 4  ;;  %s46_s22 = int_to_ptr.vmem [resolvable:$true] %s45_s22  ;;  %s68_s24 = int_to_ptr.vmem [resolvable:$true] %s67_s24 }
   0x7   :  { %s17414_s27 = scalar_lea.hbm %s18913_s3, 32 }
   0x8   :  { %p17415_p0 = scmp.ne.s32.totalorder %s18913_s3, %s17414_s27  ;;  %p17418_p1 = scmp.lt.u32.totalorder %s17414_s27, %s18913_s3 }
   0xa   :  { %p17420_p2 = pnand %p17418_p1, %p17415_p0 }
   0xc   :  { %17423 = shalt.err (!%p17420_p2)
}
   0xd   :  { %s17424_s14 = scalar_lea.vmem %s46_s22, 32  ;;  %p17429_p4 = scmp.lt.s32.totalorder %s46_s22, %s46_s22 }
   0xe   :  { %p17425_p3 = scmp.ne.s32.totalorder %s46_s22, %s17424_s14  ;;  %p17430_p5 = scmp.lt.s32.totalorder %s17424_s14, %s17424_s14 }
  0x10   :  { %p17431_p6 = por %p17430_p5, %p17429_p4 }
  0x12   :  { %p17432_p7 = pnand %p17431_p6, %p17425_p3 }
  0x14   :  { %17435 = shalt.err (!%p17432_p7)
}
  0x15   :  { %48 = dma.hbm_to_vmem [thread:$0]  %s18913_s3, 32, %s46_s22, [#allocation6]  }
  0x16   :  { %s17436_s19 = scalar_lea.hbm %s18915_s5, 192 }
  0x17   :  { %p17437_p8 = scmp.ne.s32.totalorder %s18915_s5, %s17436_s19  ;;  %p17440_p9 = scmp.lt.u32.totalorder %s17436_s19, %s18915_s5 }
  0x19   :  { %p17442_p10 = pnand %p17440_p9, %p17437_p8 }
  0x1b   :  { %17445 = shalt.err (!%p17442_p10)
}
  0x1c   :  { %s17446_s26 = scalar_lea.vmem %s68_s24, 192  ;;  %p17451_p12 = scmp.lt.s32.totalorder %s68_s24, %s68_s24 }
  0x1d   :  { %p17447_p11 = scmp.ne.s32.totalorder %s68_s24, %s17446_s26  ;;  %p17452_p13 = scmp.lt.s32.totalorder %s17446_s26, %s17446_s26 }
  0x1f   :  { %p17453_p0 = por %p17452_p13, %p17451_p12 }
  0x21   :  { %p17454_p1 = pnand %p17453_p0, %p17447_p11 }
  0x23   :  { %17457 = shalt.err (!%p17454_p1)
}
  0x24   :  { %70 = dma.hbm_to_vmem [thread:$0]  %s18915_s5, 192, %s68_s24, [#allocation9]  }
  0x25   :  { %s17648_s27 = smov [#allocation11]   ;;  %s17649_s29 = smov [#allocation14]  }
  0x26   :  { %s89_s28 = sshll.u32 %s17648_s27, 4  ;;  %s111_s30 = sshll.u32 %s17649_s29, 4  ;;  %s90_s28 = int_to_ptr.vmem [resolvable:$true] %s89_s28  ;;  %s112_s30 = int_to_ptr.vmem [resolvable:$true] %s111_s30 }
  0x27   :  { %s17458_s15 = scalar_lea.hbm %s18917_s7, 64 }
  0x28   :  { %p17459_p2 = scmp.ne.s32.totalorder %s18917_s7, %s17458_s15  ;;  %p17462_p3 = scmp.lt.u32.totalorder %s17458_s15, %s18917_s7 }
  0x2a   :  { %p17464_p4 = pnand %p17462_p3, %p17459_p2 }
  0x2c   :  { %17467 = shalt.err (!%p17464_p4)
}
  0x2d   :  { %s17468_s5 = scalar_lea.vmem %s90_s28, 64  ;;  %p17473_p6 = scmp.lt.s32.totalorder %s90_s28, %s90_s28 }
  0x2e   :  { %p17469_p5 = scmp.ne.s32.totalorder %s90_s28, %s17468_s5  ;;  %p17474_p7 = scmp.lt.s32.totalorder %s17468_s5, %s17468_s5 }
  0x30   :  { %p17475_p8 = por %p17474_p7, %p17473_p6 }
  0x32   :  { %p17476_p9 = pnand %p17475_p8, %p17469_p5 }
  0x34   :  { %17479 = shalt.err (!%p17476_p9)
}
  0x35   :  { %92 = dma.hbm_to_vmem [thread:$0]  %s18917_s7, 64, %s90_s28, [#allocation12]  }
  0x36   :  { %s17480_s25 = scalar_lea.hbm %s18919_s9, 64 }
  0x37   :  { %p17481_p10 = scmp.ne.s32.totalorder %s18919_s9, %s17480_s25  ;;  %p17484_p11 = scmp.lt.u32.totalorder %s17480_s25, %s18919_s9 }
  0x39   :  { %p17486_p12 = pnand %p17484_p11, %p17481_p10 }
  0x3b   :  { %17489 = shalt.err (!%p17486_p12)
}
  0x3c   :  { %s17490_s29 = scalar_lea.vmem %s112_s30, 64  ;;  %p17495_p0 = scmp.lt.s32.totalorder %s112_s30, %s112_s30 }
  0x3d   :  { %p17491_p13 = scmp.ne.s32.totalorder %s112_s30, %s17490_s29  ;;  %p17496_p1 = scmp.lt.s32.totalorder %s17490_s29, %s17490_s29 }
  0x3f   :  { %p17497_p2 = por %p17496_p1, %p17495_p0 }
  0x41   :  { %p17498_p3 = pnand %p17497_p2, %p17491_p13 }
  0x43   :  { %17501 = shalt.err (!%p17498_p3)
}
  0x44   :  { %114 = dma.hbm_to_vmem [thread:$0]  %s18919_s9, 64, %s112_s30, [#allocation15]  }
  0x45   :  { %s17650_s13 = smov [#allocation2]   ;;  %s17502_s17 = scalar_lea.hbm %s18912_s2, 49152 }
  0x46   :  { %s32_s14 = sshll.u32 %s17650_s13, 4  ;;  %p17503_p4 = scmp.ne.s32.totalorder %s18912_s2, %s17502_s17  ;;  %s33_s14 = int_to_ptr.vmem [resolvable:$true] %s32_s14 }
  0x47   :  { %p17506_p5 = scmp.lt.u32.totalorder %s17502_s17, %s18912_s2 }
  0x49   :  { %p17508_p6 = pnand %p17506_p5, %p17503_p4 }
  0x4b   :  { %17511 = shalt.err (!%p17508_p6)
}
  0x4c   :  { %s17512_s20 = scalar_lea.vmem %s33_s14, 49152  ;;  %p17517_p8 = scmp.lt.s32.totalorder %s33_s14, %s33_s14 }
  0x4d   :  { %p17513_p7 = scmp.ne.s32.totalorder %s33_s14, %s17512_s20  ;;  %p17518_p9 = scmp.lt.s32.totalorder %s17512_s20, %s17512_s20 }
  0x4f   :  { %p17519_p10 = por %p17518_p9, %p17517_p8 }
  0x51   :  { %p17520_p11 = pnand %p17519_p10, %p17513_p7 }
  0x53   :  { %17523 = shalt.err (!%p17520_p11)
}
  0x54   :  { %s17651_s9 = smov 128   ;;  %s17652_s30 = smov 8  }
  0x55   :  { %38 = dma.hbm_to_vmem [thread:$0]  %s18912_s2, 49152, %s33_s14, [#allocation3], %s17651_s9, %s17651_s9, %s17652_s30  }
  0x56   :  { %s17653_s25 = smov [#allocation7]   ;;  %s17524_s27 = scalar_lea.hbm %s18914_s4, 49152 }
  0x57   :  { %s54_s26 = sshll.u32 %s17653_s25, 4  ;;  %p17525_p12 = scmp.ne.s32.totalorder %s18914_s4, %s17524_s27  ;;  %s55_s26 = int_to_ptr.vmem [resolvable:$true] %s54_s26 }
  0x58   :  { %p17528_p13 = scmp.lt.u32.totalorder %s17524_s27, %s18914_s4 }
  0x5a   :  { %p17530_p0 = pnand %p17528_p13, %p17525_p12 }
  0x5c   :  { %17533 = shalt.err (!%p17530_p0)
}
  0x5d   :  { %s17534_s15 = scalar_lea.vmem %s55_s26, 49152  ;;  %p17539_p2 = scmp.lt.s32.totalorder %s55_s26, %s55_s26 }
  0x5e   :  { %p17535_p1 = scmp.ne.s32.totalorder %s55_s26, %s17534_s15  ;;  %p17540_p3 = scmp.lt.s32.totalorder %s17534_s15, %s17534_s15 }
  0x60   :  { %p17541_p4 = por %p17540_p3, %p17539_p2 }
  0x62   :  { %p17542_p5 = pnand %p17541_p4, %p17535_p1 }
  0x64   :  { %17545 = shalt.err (!%p17542_p5)
}
  0x65   :  { %s17654_s2 = smov 768   ;;  %s17655_s14 = smov 48  }
  0x66   :  { %60 = dma.hbm_to_vmem [thread:$0]  %s18914_s4, 49152, %s55_s26, [#allocation6], %s17654_s2, %s17654_s2, %s17655_s14  }
  0x67   :  { %s17656_s18 = smov [#allocation10]   ;;  %s17546_s20 = scalar_lea.hbm %s18916_s6, 16384 }
  0x68   :  { %s76_s19 = sshll.u32 %s17656_s18, 4  ;;  %p17547_p6 = scmp.ne.s32.totalorder %s18916_s6, %s17546_s20  ;;  %s77_s19 = int_to_ptr.vmem [resolvable:$true] %s76_s19 }
  0x69   :  { %p17550_p7 = scmp.lt.u32.totalorder %s17546_s20, %s18916_s6 }
  0x6b   :  { %p17552_p8 = pnand %p17550_p7, %p17547_p6 }
  0x6d   :  { %17555 = shalt.err (!%p17552_p8)
}
  0x6e   :  { %s17556_s3 = scalar_lea.vmem %s77_s19, 16384  ;;  %p17561_p10 = scmp.lt.s32.totalorder %s77_s19, %s77_s19 }
  0x6f   :  { %p17557_p9 = scmp.ne.s32.totalorder %s77_s19, %s17556_s3  ;;  %p17562_p11 = scmp.lt.s32.totalorder %s17556_s3, %s17556_s3 }
  0x71   :  { %p17563_p12 = por %p17562_p11, %p17561_p10 }
  0x73   :  { %p17564_p13 = pnand %p17563_p12, %p17557_p9 }
  0x75   :  { %17567 = shalt.err (!%p17564_p13)
}
  0x76   :  { %s17657_s4 = smov 256   ;;  %s17658_s26 = smov 16  }
  0x77   :  { %82 = dma.hbm_to_vmem [thread:$0]  %s18916_s6, 16384, %s77_s19, [#allocation9], %s17657_s4, %s17657_s4, %s17658_s26  }
  0x78   :  { %s17659_s29 = smov [#allocation13]   ;;  %s17660_s28 = smov [#allocation16]  }
  0x79   :  { %s98_s7 = sshll.u32 %s17659_s29, 4  ;;  %s123_s13 = sshll.u32 %s17660_s28, 4  ;;  %s99_s7 = int_to_ptr.vmem [resolvable:$true] %s98_s7  ;;  %s124_s13 = int_to_ptr.vmem [resolvable:$true] %s123_s13 }
  0x7a   :  { %s17568_s14 = scalar_lea.hbm %s18918_s8, 32768 }
  0x7b   :  { %p17569_p0 = scmp.ne.s32.totalorder %s18918_s8, %s17568_s14  ;;  %p17572_p1 = scmp.lt.u32.totalorder %s17568_s14, %s18918_s8 }
  0x7d   :  { %p17574_p2 = pnand %p17572_p1, %p17569_p0 }
  0x7f   :  { %17577 = shalt.err (!%p17574_p2)
}
  0x80   :  { %s17578_s6 = scalar_lea.vmem %s99_s7, 32768  ;;  %p17583_p4 = scmp.lt.s32.totalorder %s99_s7, %s99_s7 }
  0x81   :  { %p17579_p3 = scmp.ne.s32.totalorder %s99_s7, %s17578_s6  ;;  %p17584_p5 = scmp.lt.s32.totalorder %s17578_s6, %s17578_s6 }
  0x83   :  { %p17585_p6 = por %p17584_p5, %p17583_p4 }
  0x85   :  { %p17586_p7 = pnand %p17585_p6, %p17579_p3 }
  0x87   :  { %17589 = shalt.err (!%p17586_p7)
}
  0x88   :  { %104 = dma.hbm_to_vmem [thread:$0]  %s18918_s8, 32768, %s99_s7, [#allocation12], %s17657_s4, %s17657_s4, %s17658_s26  }
  0x89   :  { %s17590_s21 = scalar_lea.hbm %s18921_s11, 16 }
  0x8a   :  { %p17591_p8 = scmp.ne.s32.totalorder %s18921_s11, %s17590_s21  ;;  %p17594_p9 = scmp.lt.u32.totalorder %s17590_s21, %s18921_s11 }
  0x8c   :  { %p17596_p10 = pnand %p17594_p9, %p17591_p8 }
  0x8e   :  { %17599 = shalt.err (!%p17596_p10)
}
  0x8f   :  { %s17600_s27 = scalar_lea.vmem %s124_s13, 16  ;;  %s17604_s29 = scalar_lea.vmem %s124_s13, 32 }
  0x90   :  { %p17601_p11 = scmp.ne.s32.totalorder %s124_s13, %s17600_s27  ;;  %p17605_p12 = scmp.lt.s32.totalorder %s124_s13, %s124_s13 }
  0x91   :  { %p17606_p13 = scmp.lt.s32.totalorder %s17604_s29, %s17600_s27 }
  0x93   :  { %p17607_p0 = por %p17606_p13, %p17605_p12 }
  0x95   :  { %p17608_p1 = pnand %p17607_p0, %p17601_p11 }
  0x97   :  { %17611 = shalt.err (!%p17608_p1)
}
  0x98   :  { %126 = dma.hbm_to_vmem [thread:$0]  %s18921_s11, 16, %s124_s13, [#allocation15]  }
  0x99   :  { %17634 = dma.done.wait [#allocation3], 49152  }
  0x9a   :  { %17635 = vsyncadd [#allocation3], 4294918144 }
  0x9b   :  { %17636 = dma.done.wait [#allocation6], 49184  }
  0x9c   :  { %17637 = vsyncadd [#allocation6], 4294918112 }
  0x9d   :  { %17638 = dma.done.wait [#allocation9], 16576  }
  0x9e   :  { %17639 = vsyncadd [#allocation9], 4294950720 }
  0x9f   :  { %17640 = dma.done.wait [#allocation12], 32832  }
  0xa0   :  { %17641 = vsyncadd [#allocation12], 4294934464 }
  0xa1   :  { %17642 = dma.done.wait [#allocation15], 80  }
  0xa2   :  { %17643 = vsyncadd [#allocation15], 4294967216  ;;  %v14978_v0 = vld [vmem:[#allocation2 + $0x4] ss:$8 sps:$4 sm:$0xff]   ;;  %v14980_v1 = vld [vmem:[#allocation2] ss:$8 sps:$4 sm:$0xff]  }
  0xa3   :  { %2682 = vmatprep.subr.bf16.mxu0 %v14978_v0  ;;  %v14981_v2 = vld [vmem:[#allocation2 + $0x14] ss:$8 sps:$4 sm:$0xff]   ;;  %v14983_v3 = vld [vmem:[#allocation2 + $0x10] ss:$8 sps:$4 sm:$0xff]   ;;  %v14984_v4 = vld [vmem:[#allocation2 + $0x24] ss:$8 sps:$4 sm:$0xff]  }
  0xa4   :  { %2683 = vmatpush1.bf16.msra.mxu0 %v14980_v1  ;;  %v14986_v5 = vld [vmem:[#allocation2 + $0x20] ss:$8 sps:$4 sm:$0xff]   ;;  %v14987_v6 = vld [vmem:[#allocation2 + $0x34] ss:$8 sps:$4 sm:$0xff]   ;;  %v14989_v7 = vld [vmem:[#allocation2 + $0x30] ss:$8 sps:$4 sm:$0xff]  }
  0xa5   :  { %2684 = vmatprep.subr.bf16.mxu0 %v14981_v2  ;;  %v14990_v8 = vld [vmem:[#allocation2 + $0x44] ss:$8 sps:$4 sm:$0xff]   ;;  %v14992_v9 = vld [vmem:[#allocation2 + $0x40] ss:$8 sps:$4 sm:$0xff]   ;;  %v14993_v10 = vld [vmem:[#allocation2 + $0x54] ss:$8 sps:$4 sm:$0xff]  }
  0xa6   :  { %v14995_v11 = vld [vmem:[#allocation2 + $0x50] ss:$8 sps:$4 sm:$0xff]   ;;  %v14996_v12 = vld [vmem:[#allocation2 + $0x64] ss:$8 sps:$4 sm:$0xff]   ;;  %v14998_v16 = vld [vmem:[#allocation2 + $0x60] ss:$8 sps:$4 sm:$0xff]  }
  0xa7   :  { %v222_v13 = vld [vmem:[%s18910_s0] sm:$0xff]  ;;  %v14999_v17 = vld [vmem:[#allocation2 + $0x74] ss:$8 sps:$4 sm:$0xff]   ;;  %v15001_v18 = vld [vmem:[#allocation2 + $0x70] ss:$8 sps:$4 sm:$0xff]   ;;  %vm187_vm2 = vcmask 64512  }
  0xa8   :  { %2685 = vmatpush1.bf16.msra.mxu0 %v14983_v3  ;;  %v234_v14 = vld [vmem:[%s18910_s0 + $0x60] sm:$0xff]  ;;  %v15005_v21 = vld [vmem:[#allocation2 + $0x94] ss:$8 sps:$4 sm:$0xff]   ;;  %v15007_v22 = vld [vmem:[#allocation2 + $0x90] ss:$8 sps:$4 sm:$0xff]   ;;  %vm4680_vm4 = vcmask 130048  }
  0xa9   :  { %2686 = vmatprep.subr.bf16.mxu0 %v14984_v4  ;;  %v13056_v15 = vcombine.high %v222_v13, %v234_v14  ;;  %v15002_v19 = vld [vmem:[#allocation2 + $0x84] ss:$8 sps:$4 sm:$0xff]   ;;  %v15004_v20 = vld [vmem:[#allocation2 + $0x80] ss:$8 sps:$4 sm:$0xff]   ;;  %v15011_v25 = vld [vmem:[#allocation2 + $0xb4] ss:$8 sps:$4 sm:$0xff]   ;;  %v13055_v38 = vcombine.low %v222_v13, %v234_v14 }
  0xaa   :  { %v15008_v23 = vld [vmem:[#allocation2 + $0xa4] ss:$8 sps:$4 sm:$0xff]   ;;  %v15010_v24 = vld [vmem:[#allocation2 + $0xa0] ss:$8 sps:$4 sm:$0xff]   ;;  %v15013_v26 = vld [vmem:[#allocation2 + $0xb0] ss:$8 sps:$4 sm:$0xff]  }
  0xab   :  { %2714 = vmatprep.mubr.bf16.mxu0 %v13056_v15  ;;  %v15014_v27 = vld [vmem:[#allocation2 + $0xc4] ss:$8 sps:$4 sm:$0xff]   ;;  %v15016_v28 = vld [vmem:[#allocation2 + $0xc0] ss:$8 sps:$4 sm:$0xff]   ;;  %v15017_v29 = vld [vmem:[#allocation2 + $0xd4] ss:$8 sps:$4 sm:$0xff]  }
  0xac   :  { %2687 = vmatpush1.bf16.msra.mxu0 %v14986_v5  ;;  %v15019_v30 = vld [vmem:[#allocation2 + $0xd0] ss:$8 sps:$4 sm:$0xff]   ;;  %v15020_v31 = vld [vmem:[#allocation2 + $0xe4] ss:$8 sps:$4 sm:$0xff]   ;;  %v15022_v32 = vld [vmem:[#allocation2 + $0xe0] ss:$8 sps:$4 sm:$0xff]  }
  0xad   :  { %2688 = vmatprep.subr.bf16.mxu0 %v14987_v6  ;;  %v15023_v33 = vld [vmem:[#allocation2 + $0xf4] ss:$8 sps:$4 sm:$0xff]   ;;  %v15025_v34 = vld [vmem:[#allocation2 + $0xf0] ss:$8 sps:$4 sm:$0xff]   ;;  %v15028_v35 = vld [vmem:[#allocation2 + $0x104] ss:$8 sps:$4 sm:$0xff]  }
  0xae   :  { %v17846_v36 = vld [vmem:[%s18910_s0 + $0x8] sm:$0xff]  ;;  %v15031_v41 = vld [vmem:[#allocation2 + $0x114] ss:$8 sps:$4 sm:$0xff]   ;;  %v15029_v42 = vld [vmem:[#allocation2 + $0x110] ss:$8 sps:$4 sm:$0xff]   ;;  %vm13017_vm5 = vcmask 58368  }
  0xaf   :  { %v17851_v37 = vld [vmem:[%s18910_s0 + $0x68] sm:$0xff]  ;;  %v15037_v45 = vld [vmem:[#allocation2 + $0x134] ss:$8 sps:$4 sm:$0xff]   ;;  %v15035_v46 = vld [vmem:[#allocation2 + $0x130] ss:$8 sps:$4 sm:$0xff]  }
  0xb0   :  { %2689 = vmatpush1.bf16.msra.mxu0 %v14989_v7  ;;  %v15026_v39 = vld [vmem:[#allocation2 + $0x100] ss:$8 sps:$4 sm:$0xff]   ;;  %v13058_v40 = vcombine.high %v17846_v36, %v17851_v37  ;;  %v15034_v43 = vld [vmem:[#allocation2 + $0x124] ss:$8 sps:$4 sm:$0xff]   ;;  %v15043_v49 = vld [vmem:[#allocation2 + $0x154] ss:$8 sps:$4 sm:$0xff]  }
  0xb1   :  { %2690 = vmatprep.subr.bf16.mxu0 %v14990_v8  ;;  %v15032_v44 = vld [vmem:[#allocation2 + $0x120] ss:$8 sps:$4 sm:$0xff]   ;;  %v15040_v47 = vld [vmem:[#allocation2 + $0x144] ss:$8 sps:$4 sm:$0xff]   ;;  %v15041_v50 = vld [vmem:[#allocation2 + $0x150] ss:$8 sps:$4 sm:$0xff]  }
  0xb2   :  { %v15038_v48 = vld [vmem:[#allocation2 + $0x140] ss:$8 sps:$4 sm:$0xff]   ;;  %v15046_v51 = vld [vmem:[#allocation2 + $0x164] ss:$8 sps:$4 sm:$0xff]   ;;  %v15049_v53 = vld [vmem:[#allocation2 + $0x174] ss:$8 sps:$4 sm:$0xff]  }
  0xb3   :  { %v15044_v52 = vld [vmem:[#allocation2 + $0x160] ss:$8 sps:$4 sm:$0xff]   ;;  %v15047_v54 = vld [vmem:[#allocation2 + $0x170] ss:$8 sps:$4 sm:$0xff]   ;;  %v15052_v55 = vld [vmem:[#allocation2 + $0x184] ss:$8 sps:$4 sm:$0xff]  }
  0xb4   :  { %2691 = vmatpush1.bf16.msra.mxu0 %v14992_v9  ;;  %v15050_v56 = vld [vmem:[#allocation2 + $0x180] ss:$8 sps:$4 sm:$0xff]   ;;  %v15055_v57 = vld [vmem:[#allocation2 + $0x194] ss:$8 sps:$4 sm:$0xff]   ;;  %v15053_v58 = vld [vmem:[#allocation2 + $0x190] ss:$8 sps:$4 sm:$0xff]  }
  0xb5   :  { %2692 = vmatprep.subr.bf16.mxu0 %v14993_v10  ;;  %v15058_v59 = vld [vmem:[#allocation2 + $0x1a4] ss:$8 sps:$4 sm:$0xff]   ;;  %v15056_v60 = vld [vmem:[#allocation2 + $0x1a0] ss:$8 sps:$4 sm:$0xff]   ;;  %v15061_v61 = vld [vmem:[#allocation2 + $0x1b4] ss:$8 sps:$4 sm:$0xff]   ;;  %v13057_v10 = vcombine.low %v17846_v36, %v17851_v37 }
  0xb6   :  { %v15059_v62 = vld [vmem:[#allocation2 + $0x1b0] ss:$8 sps:$4 sm:$0xff]   ;;  %v15064_v63 = vld [vmem:[#allocation2 + $0x1c4] ss:$8 sps:$4 sm:$0xff]   ;;  %v15062_v0 = vld [vmem:[#allocation2 + $0x1c0] ss:$8 sps:$4 sm:$0xff]  }
  0xb7   :  { %v15067_v1 = vld [vmem:[#allocation2 + $0x1d4] ss:$8 sps:$4 sm:$0xff]   ;;  %v15065_v2 = vld [vmem:[#allocation2 + $0x1d0] ss:$8 sps:$4 sm:$0xff]   ;;  %v15070_v3 = vld [vmem:[#allocation2 + $0x1e4] ss:$8 sps:$4 sm:$0xff]  }
  0xb8   :  { %2693 = vmatpush1.bf16.msra.mxu0 %v14995_v11  ;;  %v15068_v4 = vld [vmem:[#allocation2 + $0x1e0] ss:$8 sps:$4 sm:$0xff]   ;;  %v15073_v5 = vld [vmem:[#allocation2 + $0x1f4] ss:$8 sps:$4 sm:$0xff]   ;;  %v15071_v6 = vld [vmem:[#allocation2 + $0x1f0] ss:$8 sps:$4 sm:$0xff]  }
  0xb9   :  { %2694 = vmatprep.subr.bf16.mxu0 %v14996_v12  ;;  %v15076_v7 = vld [vmem:[#allocation2 + $0x204] ss:$8 sps:$4 sm:$0xff]   ;;  %v17858_v8 = vld [vmem:[%s18910_s0 + $0x10] sm:$0xff]  ;;  %v15074_v11 = vld [vmem:[#allocation2 + $0x200] ss:$8 sps:$4 sm:$0xff]  }
  0xba   :  { %v17863_v9 = vld [vmem:[%s18910_s0 + $0x70] sm:$0xff]  ;;  %v15082_v15 = vld [vmem:[#allocation2 + $0x224] ss:$8 sps:$4 sm:$0xff]   ;;  %v15110_v36 = vld [vmem:[#allocation2 + $0x2c0] ss:$8 sps:$4 sm:$0xff]  }
  0xbb   :  { %v13060_v12 = vcombine.high %v17858_v8, %v17863_v9  ;;  %v15079_v13 = vld [vmem:[#allocation2 + $0x214] ss:$8 sps:$4 sm:$0xff]   ;;  %v15077_v14 = vld [vmem:[#allocation2 + $0x210] ss:$8 sps:$4 sm:$0xff]  }
  0xbc   :  { %2695 = vmatpush1.bf16.msra.mxu0 %v14998_v16  ;;  %v15080_v16 = vld [vmem:[#allocation2 + $0x220] ss:$8 sps:$4 sm:$0xff]   ;;  %v15115_v37 = vld [vmem:[#allocation2 + $0x2d4] ss:$8 sps:$4 sm:$0xff]  }
  0xbd   :  { %2696 = vmatprep.subr.bf16.mxu0 %v14999_v17  ;;  %v15085_v17 = vld [vmem:[#allocation2 + $0x234] ss:$8 sps:$4 sm:$0xff]  }
  0xc0   :  { %2697 = vmatpush1.bf16.msra.mxu0 %v15001_v18  ;;  %v15083_v18 = vld [vmem:[#allocation2 + $0x230] ss:$8 sps:$4 sm:$0xff]  }
  0xc1   :  { %2698 = vmatprep.subr.bf16.mxu0 %v15002_v19  ;;  %v15088_v19 = vld [vmem:[#allocation2 + $0x244] ss:$8 sps:$4 sm:$0xff]  }
  0xc4   :  { %2699 = vmatpush1.bf16.msra.mxu0 %v15004_v20  ;;  %v15086_v20 = vld [vmem:[#allocation2 + $0x240] ss:$8 sps:$4 sm:$0xff]  }
  0xc5   :  { %2700 = vmatprep.subr.bf16.mxu0 %v15005_v21  ;;  %v15091_v21 = vld [vmem:[#allocation2 + $0x254] ss:$8 sps:$4 sm:$0xff]  }
  0xc8   :  { %2701 = vmatpush1.bf16.msra.mxu0 %v15007_v22  ;;  %v15089_v22 = vld [vmem:[#allocation2 + $0x250] ss:$8 sps:$4 sm:$0xff]  }
  0xc9   :  { %2702 = vmatprep.subr.bf16.mxu0 %v15008_v23  ;;  %v15094_v23 = vld [vmem:[#allocation2 + $0x264] ss:$8 sps:$4 sm:$0xff]  }
  0xcc   :  { %2703 = vmatpush1.bf16.msra.mxu0 %v15010_v24  ;;  %v15092_v24 = vld [vmem:[#allocation2 + $0x260] ss:$8 sps:$4 sm:$0xff]  }
  0xcd   :  { %2704 = vmatprep.subr.bf16.mxu0 %v15011_v25  ;;  %v15097_v25 = vld [vmem:[#allocation2 + $0x274] ss:$8 sps:$4 sm:$0xff]  }
  0xd0   :  { %2705 = vmatpush1.bf16.msra.mxu0 %v15013_v26  ;;  %v15095_v26 = vld [vmem:[#allocation2 + $0x270] ss:$8 sps:$4 sm:$0xff]  }
  0xd1   :  { %2706 = vmatprep.subr.bf16.mxu0 %v15014_v27  ;;  %v15100_v27 = vld [vmem:[#allocation2 + $0x284] ss:$8 sps:$4 sm:$0xff]  }
  0xd4   :  { %2707 = vmatpush1.bf16.msra.mxu0 %v15016_v28  ;;  %v15098_v28 = vld [vmem:[#allocation2 + $0x280] ss:$8 sps:$4 sm:$0xff]  }
  0xd5   :  { %2708 = vmatprep.subr.bf16.mxu0 %v15017_v29  ;;  %v15103_v29 = vld [vmem:[#allocation2 + $0x294] ss:$8 sps:$4 sm:$0xff]  }
  0xd8   :  { %2709 = vmatpush1.bf16.msra.mxu0 %v15019_v30  ;;  %v15101_v30 = vld [vmem:[#allocation2 + $0x290] ss:$8 sps:$4 sm:$0xff]  }
  0xd9   :  { %2710 = vmatprep.subr.bf16.mxu0 %v15020_v31  ;;  %v15106_v31 = vld [vmem:[#allocation2 + $0x2a4] ss:$8 sps:$4 sm:$0xff]  }
  0xdc   :  { %2711 = vmatpush1.bf16.msra.mxu0 %v15022_v32  ;;  %v15104_v32 = vld [vmem:[#allocation2 + $0x2a0] ss:$8 sps:$4 sm:$0xff]  }
  0xdd   :  { %2712 = vmatprep.subr.bf16.mxu0 %v15023_v33  ;;  %v15109_v33 = vld [vmem:[#allocation2 + $0x2b4] ss:$8 sps:$4 sm:$0xff]  }
  0xe0   :  { %2713 = vmatpush1.bf16.msra.mxu0 %v15025_v34  ;;  %v15107_v34 = vld [vmem:[#allocation2 + $0x2b0] ss:$8 sps:$4 sm:$0xff]  }
  0xe1   :  { %2725 = vmatprep.subr.bf16.mxu0 %v15028_v35  ;;  %v15112_v35 = vld [vmem:[#allocation2 + $0x2c4] ss:$8 sps:$4 sm:$0xff]  }
  0xe3   :  { %2715 = vmatmul.mubr.bf16.vlgmr.msra.gmra.mrb[0].mxu0 %v13055_v38  ;;  %v15113_v38 = vld [vmem:[#allocation2 + $0x2d0] ss:$8 sps:$4 sm:$0xff]  }
  0xe4   :  { %2726 = vmatpush1.bf16.msra.mxu0 %v15026_v39  ;;  %2757 = vmatprep.mubr.bf16.mxu0 %v13058_v40  ;;  %v15118_v39 = vld [vmem:[#allocation2 + $0x2e4] ss:$8 sps:$4 sm:$0xff]   ;;  %v15116_v40 = vld [vmem:[#allocation2 + $0x2e0] ss:$8 sps:$4 sm:$0xff]  }
  0xe5   :  { %2727 = vmatprep.subr.bf16.mxu0 %v15031_v41  ;;  %v15121_v41 = vld [vmem:[#allocation2 + $0x2f4] ss:$8 sps:$4 sm:$0xff]  }
  0xe8   :  { %2728 = vmatpush1.bf16.msra.mxu0 %v15029_v42  ;;  %v15119_v42 = vld [vmem:[#allocation2 + $0x2f0] ss:$8 sps:$4 sm:$0xff]  }
  0xe9   :  { %2729 = vmatprep.subr.bf16.mxu0 %v15034_v43  ;;  %v15124_v43 = vld [vmem:[#allocation2 + $0x304] ss:$8 sps:$4 sm:$0xff]  }
  0xec   :  { %2730 = vmatpush1.bf16.msra.mxu0 %v15032_v44  ;;  %v17872_v44 = vld [vmem:[%s18910_s0 + $0x18] sm:$0xff] }
  0xed   :  { %2731 = vmatprep.subr.bf16.mxu0 %v15037_v45  ;;  %v17877_v45 = vld [vmem:[%s18910_s0 + $0x78] sm:$0xff] }
  0xf0   :  { %2732 = vmatpush1.bf16.msra.mxu0 %v15035_v46  ;;  %v13059_v46 = vcombine.low %v17858_v8, %v17863_v9  ;;  %v15158_v8 = vld [vmem:[#allocation2 + $0x3c0] ss:$8 sps:$4 sm:$0xff]   ;;  %v15163_v9 = vld [vmem:[#allocation2 + $0x3d4] ss:$8 sps:$4 sm:$0xff]  }
  0xf1   :  { %2733 = vmatprep.subr.bf16.mxu0 %v15040_v47  ;;  %v15122_v47 = vld [vmem:[#allocation2 + $0x300] ss:$8 sps:$4 sm:$0xff]  }
  0xf4   :  { %2734 = vmatpush1.bf16.msra.mxu0 %v15038_v48  ;;  %v13062_v48 = vcombine.high %v17872_v44, %v17877_v45 }
  0xf5   :  { %2735 = vmatprep.subr.bf16.mxu0 %v15043_v49  ;;  %v15127_v49 = vld [vmem:[#allocation2 + $0x314] ss:$8 sps:$4 sm:$0xff]  }
  0xf8   :  { %2736 = vmatpush1.bf16.msra.mxu0 %v15041_v50  ;;  %v15125_v50 = vld [vmem:[#allocation2 + $0x310] ss:$8 sps:$4 sm:$0xff]  }
  0xf9   :  { %2737 = vmatprep.subr.bf16.mxu0 %v15046_v51  ;;  %v15130_v51 = vld [vmem:[#allocation2 + $0x324] ss:$8 sps:$4 sm:$0xff]  }
  0xfc   :  { %2738 = vmatpush1.bf16.msra.mxu0 %v15044_v52  ;;  %v15128_v52 = vld [vmem:[#allocation2 + $0x320] ss:$8 sps:$4 sm:$0xff]  }
  0xfd   :  { %2739 = vmatprep.subr.bf16.mxu0 %v15049_v53  ;;  %v15133_v53 = vld [vmem:[#allocation2 + $0x334] ss:$8 sps:$4 sm:$0xff]  }
 0x100   :  { %2740 = vmatpush1.bf16.msra.mxu0 %v15047_v54  ;;  %v15131_v54 = vld [vmem:[#allocation2 + $0x330] ss:$8 sps:$4 sm:$0xff]  }
 0x101   :  { %2741 = vmatprep.subr.bf16.mxu0 %v15052_v55  ;;  %v15136_v55 = vld [vmem:[#allocation2 + $0x344] ss:$8 sps:$4 sm:$0xff]  }
 0x104   :  { %2742 = vmatpush1.bf16.msra.mxu0 %v15050_v56  ;;  %v15134_v56 = vld [vmem:[#allocation2 + $0x340] ss:$8 sps:$4 sm:$0xff]  }
 0x105   :  { %2743 = vmatprep.subr.bf16.mxu0 %v15055_v57  ;;  %v15139_v57 = vld [vmem:[#allocation2 + $0x354] ss:$8 sps:$4 sm:$0xff]  }
 0x108   :  { %2744 = vmatpush1.bf16.msra.mxu0 %v15053_v58  ;;  %v15137_v58 = vld [vmem:[#allocation2 + $0x350] ss:$8 sps:$4 sm:$0xff]  }
 0x109   :  { %2745 = vmatprep.subr.bf16.mxu0 %v15058_v59  ;;  %v15142_v59 = vld [vmem:[#allocation2 + $0x364] ss:$8 sps:$4 sm:$0xff]  }
 0x10c   :  { %2746 = vmatpush1.bf16.msra.mxu0 %v15056_v60  ;;  %v15140_v60 = vld [vmem:[#allocation2 + $0x360] ss:$8 sps:$4 sm:$0xff]  }
 0x10d   :  { %2747 = vmatprep.subr.bf16.mxu0 %v15061_v61  ;;  %v15145_v61 = vld [vmem:[#allocation2 + $0x374] ss:$8 sps:$4 sm:$0xff]  }
 0x110   :  { %2748 = vmatpush1.bf16.msra.mxu0 %v15059_v62  ;;  %v15143_v62 = vld [vmem:[#allocation2 + $0x370] ss:$8 sps:$4 sm:$0xff]  }
 0x111   :  { %2749 = vmatprep.subr.bf16.mxu0 %v15064_v63  ;;  %v15148_v63 = vld [vmem:[#allocation2 + $0x384] ss:$8 sps:$4 sm:$0xff]  }
 0x114   :  { %2750 = vmatpush1.bf16.msra.mxu0 %v15062_v0  ;;  %v15146_v0 = vld [vmem:[#allocation2 + $0x380] ss:$8 sps:$4 sm:$0xff]  }
 0x115   :  { %2751 = vmatprep.subr.bf16.mxu0 %v15067_v1  ;;  %v15151_v1 = vld [vmem:[#allocation2 + $0x394] ss:$8 sps:$4 sm:$0xff]  }
 0x118   :  { %2752 = vmatpush1.bf16.msra.mxu0 %v15065_v2  ;;  %v15149_v2 = vld [vmem:[#allocation2 + $0x390] ss:$8 sps:$4 sm:$0xff]  }
 0x119   :  { %2753 = vmatprep.subr.bf16.mxu0 %v15070_v3  ;;  %v15154_v3 = vld [vmem:[#allocation2 + $0x3a4] ss:$8 sps:$4 sm:$0xff]  }
 0x11c   :  { %2754 = vmatpush1.bf16.msra.mxu0 %v15068_v4  ;;  %v15152_v4 = vld [vmem:[#allocation2 + $0x3a0] ss:$8 sps:$4 sm:$0xff]  }
 0x11d   :  { %2755 = vmatprep.subr.bf16.mxu0 %v15073_v5  ;;  %v15157_v5 = vld [vmem:[#allocation2 + $0x3b4] ss:$8 sps:$4 sm:$0xff]  }
 0x120   :  { %2756 = vmatpush1.bf16.msra.mxu0 %v15071_v6  ;;  %v15155_v6 = vld [vmem:[#allocation2 + $0x3b0] ss:$8 sps:$4 sm:$0xff]  }
 0x121   :  { %2768 = vmatprep.subr.bf16.mxu0 %v15076_v7  ;;  %v15160_v7 = vld [vmem:[#allocation2 + $0x3c4] ss:$8 sps:$4 sm:$0xff]  }
 0x123   :  { %2758 = vmatmul.mubr.bf16.vlgmr.msra.gmra.mrb[0].mxu0 %v13057_v10  ;;  %v15161_v10 = vld [vmem:[#allocation2 + $0x3d0] ss:$8 sps:$4 sm:$0xff]  }
 0x124   :  { %2769 = vmatpush1.bf16.msra.mxu0 %v15074_v11  ;;  %2800 = vmatprep.mubr.bf16.mxu0 %v13060_v12  ;;  %v15166_v11 = vld [vmem:[#allocation2 + $0x3e4] ss:$8 sps:$4 sm:$0xff]   ;;  %v15164_v12 = vld [vmem:[#allocation2 + $0x3e0] ss:$8 sps:$4 sm:$0xff]  }
 0x125   :  { %2770 = vmatprep.subr.bf16.mxu0 %v15079_v13  ;;  %v15169_v13 = vld [vmem:[#allocation2 + $0x3f4] ss:$8 sps:$4 sm:$0xff]  }
 0x128   :  { %2771 = vmatpush1.bf16.msra.mxu0 %v15077_v14  ;;  %v15167_v14 = vld [vmem:[#allocation2 + $0x3f0] ss:$8 sps:$4 sm:$0xff]  }
 0x129   :  { %2772 = vmatprep.subr.bf16.mxu0 %v15082_v15  ;;  %v15172_v15 = vld [vmem:[#allocation2 + $0x404] ss:$8 sps:$4 sm:$0xff]  }
 0x12c   :  { %2773 = vmatpush1.bf16.msra.mxu0 %v15080_v16  ;;  %v17886_v16 = vld [vmem:[%s18910_s0 + $0x20] sm:$0xff] }
 0x12d   :  { %2774 = vmatprep.subr.bf16.mxu0 %v15085_v17  ;;  %v17891_v17 = vld [vmem:[%s18910_s0 + $0x80] sm:$0xff] }
 0x130   :  { %2775 = vmatpush1.bf16.msra.mxu0 %v15083_v18  ;;  %v13061_v18 = vcombine.low %v17872_v44, %v17877_v45  ;;  %v15206_v44 = vld [vmem:[#allocation2 + $0x4c0] ss:$8 sps:$4 sm:$0xff]   ;;  %v15211_v45 = vld [vmem:[#allocation2 + $0x4d4] ss:$8 sps:$4 sm:$0xff]  }
 0x131   :  { %2776 = vmatprep.subr.bf16.mxu0 %v15088_v19  ;;  %v15170_v19 = vld [vmem:[#allocation2 + $0x400] ss:$8 sps:$4 sm:$0xff]  }
 0x134   :  { %2777 = vmatpush1.bf16.msra.mxu0 %v15086_v20  ;;  %v13064_v20 = vcombine.high %v17886_v16, %v17891_v17 }
 0x135   :  { %2778 = vmatprep.subr.bf16.mxu0 %v15091_v21  ;;  %v15175_v21 = vld [vmem:[#allocation2 + $0x414] ss:$8 sps:$4 sm:$0xff]  }
 0x138   :  { %2779 = vmatpush1.bf16.msra.mxu0 %v15089_v22  ;;  %v15173_v22 = vld [vmem:[#allocation2 + $0x410] ss:$8 sps:$4 sm:$0xff]  }
 0x139   :  { %2780 = vmatprep.subr.bf16.mxu0 %v15094_v23  ;;  %v15178_v23 = vld [vmem:[#allocation2 + $0x424] ss:$8 sps:$4 sm:$0xff]  }
 0x13c   :  { %2781 = vmatpush1.bf16.msra.mxu0 %v15092_v24  ;;  %v15176_v24 = vld [vmem:[#allocation2 + $0x420] ss:$8 sps:$4 sm:$0xff]  }
 0x13d   :  { %2782 = vmatprep.subr.bf16.mxu0 %v15097_v25  ;;  %v15181_v25 = vld [vmem:[#allocation2 + $0x434] ss:$8 sps:$4 sm:$0xff]  }
 0x140   :  { %2783 = vmatpush1.bf16.msra.mxu0 %v15095_v26  ;;  %v15179_v26 = vld [vmem:[#allocation2 + $0x430] ss:$8 sps:$4 sm:$0xff]  }
 0x141   :  { %2784 = vmatprep.subr.bf16.mxu0 %v15100_v27  ;;  %v15184_v27 = vld [vmem:[#allocation2 + $0x444] ss:$8 sps:$4 sm:$0xff]  }
 0x144   :  { %2785 = vmatpush1.bf16.msra.mxu0 %v15098_v28  ;;  %v15182_v28 = vld [vmem:[#allocation2 + $0x440] ss:$8 sps:$4 sm:$0xff]  }
 0x145   :  { %2786 = vmatprep.subr.bf16.mxu0 %v15103_v29  ;;  %v15187_v29 = vld [vmem:[#allocation2 + $0x454] ss:$8 sps:$4 sm:$0xff]  }
 0x148   :  { %2787 = vmatpush1.bf16.msra.mxu0 %v15101_v30  ;;  %v15185_v30 = vld [vmem:[#allocation2 + $0x450] ss:$8 sps:$4 sm:$0xff]  }
 0x149   :  { %2788 = vmatprep.subr.bf16.mxu0 %v15106_v31  ;;  %v15190_v31 = vld [vmem:[#allocation2 + $0x464] ss:$8 sps:$4 sm:$0xff]  }
 0x14c   :  { %2789 = vmatpush1.bf16.msra.mxu0 %v15104_v32  ;;  %v15188_v32 = vld [vmem:[#allocation2 + $0x460] ss:$8 sps:$4 sm:$0xff]  }
 0x14d   :  { %2790 = vmatprep.subr.bf16.mxu0 %v15109_v33  ;;  %v15193_v33 = vld [vmem:[#allocation2 + $0x474] ss:$8 sps:$4 sm:$0xff]  }
 0x150   :  { %2791 = vmatpush1.bf16.msra.mxu0 %v15107_v34  ;;  %v15191_v34 = vld [vmem:[#allocation2 + $0x470] ss:$8 sps:$4 sm:$0xff]  }
 0x151   :  { %2792 = vmatprep.subr.bf16.mxu0 %v15112_v35  ;;  %v15196_v35 = vld [vmem:[#allocation2 + $0x484] ss:$8 sps:$4 sm:$0xff]  }
 0x154   :  { %2793 = vmatpush1.bf16.msra.mxu0 %v15110_v36  ;;  %v15194_v36 = vld [vmem:[#allocation2 + $0x480] ss:$8 sps:$4 sm:$0xff]  }
 0x155   :  { %2794 = vmatprep.subr.bf16.mxu0 %v15115_v37  ;;  %v15199_v37 = vld [vmem:[#allocation2 + $0x494] ss:$8 sps:$4 sm:$0xff]  }
 0x158   :  { %2795 = vmatpush1.bf16.msra.mxu0 %v15113_v38  ;;  %v15197_v38 = vld [vmem:[#allocation2 + $0x490] ss:$8 sps:$4 sm:$0xff]  }
 0x159   :  { %2796 = vmatprep.subr.bf16.mxu0 %v15118_v39  ;;  %v15202_v39 = vld [vmem:[#allocation2 + $0x4a4] ss:$8 sps:$4 sm:$0xff]  }
 0x15c   :  { %2797 = vmatpush1.bf16.msra.mxu0 %v15116_v40  ;;  %v15200_v40 = vld [vmem:[#allocation2 + $0x4a0] ss:$8 sps:$4 sm:$0xff]  }
 0x15d   :  { %2798 = vmatprep.subr.bf16.mxu0 %v15121_v41  ;;  %v15205_v41 = vld [vmem:[#allocation2 + $0x4b4] ss:$8 sps:$4 sm:$0xff]  }
 0x160   :  { %2799 = vmatpush1.bf16.msra.mxu0 %v15119_v42  ;;  %v15203_v42 = vld [vmem:[#allocation2 + $0x4b0] ss:$8 sps:$4 sm:$0xff]  }
 0x161   :  { %2811 = vmatprep.subr.bf16.mxu0 %v15124_v43  ;;  %v15208_v43 = vld [vmem:[#allocation2 + $0x4c4] ss:$8 sps:$4 sm:$0xff]  }
 0x163   :  { %2801 = vmatmul.mubr.bf16.vlgmr.msra.gmra.mrb[0].mxu0 %v13059_v46  ;;  %v15209_v46 = vld [vmem:[#allocation2 + $0x4d0] ss:$8 sps:$4 sm:$0xff]  }
 0x164   :  { %2812 = vmatpush1.bf16.msra.mxu0 %v15122_v47  ;;  %2843 = vmatprep.mubr.bf16.mxu0 %v13062_v48  ;;  %v15214_v47 = vld [vmem:[#allocation2 + $0x4e4] ss:$8 sps:$4 sm:$0xff]   ;;  %v15212_v48 = vld [vmem:[#allocation2 + $0x4e0] ss:$8 sps:$4 sm:$0xff]  }
 0x165   :  { %2813 = vmatprep.subr.bf16.mxu0 %v15127_v49  ;;  %v15217_v49 = vld [vmem:[#allocation2 + $0x4f4] ss:$8 sps:$4 sm:$0xff]  }
 0x168   :  { %2814 = vmatpush1.bf16.msra.mxu0 %v15125_v50  ;;  %v15215_v50 = vld [vmem:[#allocation2 + $0x4f0] ss:$8 sps:$4 sm:$0xff]  }
 0x169   :  { %2815 = vmatprep.subr.bf16.mxu0 %v15130_v51  ;;  %v15220_v51 = vld [vmem:[#allocation2 + $0x504] ss:$8 sps:$4 sm:$0xff]  }
 0x16c   :  { %2816 = vmatpush1.bf16.msra.mxu0 %v15128_v52  ;;  %v17900_v52 = vld [vmem:[%s18910_s0 + $0x28] sm:$0xff] }
 0x16d   :  { %2817 = vmatprep.subr.bf16.mxu0 %v15133_v53  ;;  %v17905_v53 = vld [vmem:[%s18910_s0 + $0x88] sm:$0xff] }
 0x170   :  { %2818 = vmatpush1.bf16.msra.mxu0 %v15131_v54  ;;  %v13063_v54 = vcombine.low %v17886_v16, %v17891_v17  ;;  %v15254_v16 = vld [vmem:[#allocation2 + $0x5c0] ss:$8 sps:$4 sm:$0xff]   ;;  %v15259_v17 = vld [vmem:[#allocation2 + $0x5d4] ss:$8 sps:$4 sm:$0xff]  }
 0x171   :  { %2819 = vmatprep.subr.bf16.mxu0 %v15136_v55  ;;  %v15218_v55 = vld [vmem:[#allocation2 + $0x500] ss:$8 sps:$4 sm:$0xff]  }
 0x174   :  { %2820 = vmatpush1.bf16.msra.mxu0 %v15134_v56  ;;  %v13066_v56 = vcombine.high %v17900_v52, %v17905_v53 }
 0x175   :  { %2821 = vmatprep.subr.bf16.mxu0 %v15139_v57  ;;  %v15223_v57 = vld [vmem:[#allocation2 + $0x514] ss:$8 sps:$4 sm:$0xff]  }
 0x178   :  { %2822 = vmatpush1.bf16.msra.mxu0 %v15137_v58  ;;  %v15221_v58 = vld [vmem:[#allocation2 + $0x510] ss:$8 sps:$4 sm:$0xff]  }
 0x179   :  { %2823 = vmatprep.subr.bf16.mxu0 %v15142_v59  ;;  %v15226_v59 = vld [vmem:[#allocation2 + $0x524] ss:$8 sps:$4 sm:$0xff]  }
 0x17c   :  { %2824 = vmatpush1.bf16.msra.mxu0 %v15140_v60  ;;  %v15224_v60 = vld [vmem:[#allocation2 + $0x520] ss:$8 sps:$4 sm:$0xff]  }
 0x17d   :  { %2825 = vmatprep.subr.bf16.mxu0 %v15145_v61  ;;  %v15229_v61 = vld [vmem:[#allocation2 + $0x534] ss:$8 sps:$4 sm:$0xff]  }
 0x180   :  { %2826 = vmatpush1.bf16.msra.mxu0 %v15143_v62  ;;  %v15227_v62 = vld [vmem:[#allocation2 + $0x530] ss:$8 sps:$4 sm:$0xff]  }
 0x181   :  { %2827 = vmatprep.subr.bf16.mxu0 %v15148_v63  ;;  %v15232_v63 = vld [vmem:[#allocation2 + $0x544] ss:$8 sps:$4 sm:$0xff]  }
 0x184   :  { %2828 = vmatpush1.bf16.msra.mxu0 %v15146_v0  ;;  %v15230_v0 = vld [vmem:[#allocation2 + $0x540] ss:$8 sps:$4 sm:$0xff]  }
 0x185   :  { %2829 = vmatprep.subr.bf16.mxu0 %v15151_v1  ;;  %v15235_v1 = vld [vmem:[#allocation2 + $0x554] ss:$8 sps:$4 sm:$0xff]  }
 0x188   :  { %2830 = vmatpush1.bf16.msra.mxu0 %v15149_v2  ;;  %v15233_v2 = vld [vmem:[#allocation2 + $0x550] ss:$8 sps:$4 sm:$0xff]  }
 0x189   :  { %2831 = vmatprep.subr.bf16.mxu0 %v15154_v3  ;;  %v15238_v3 = vld [vmem:[#allocation2 + $0x564] ss:$8 sps:$4 sm:$0xff]  }
 0x18c   :  { %2832 = vmatpush1.bf16.msra.mxu0 %v15152_v4  ;;  %v15236_v4 = vld [vmem:[#allocation2 + $0x560] ss:$8 sps:$4 sm:$0xff]  }
 0x18d   :  { %2833 = vmatprep.subr.bf16.mxu0 %v15157_v5  ;;  %v15241_v5 = vld [vmem:[#allocation2 + $0x574] ss:$8 sps:$4 sm:$0xff]  }
 0x190   :  { %2834 = vmatpush1.bf16.msra.mxu0 %v15155_v6  ;;  %v15239_v6 = vld [vmem:[#allocation2 + $0x570] ss:$8 sps:$4 sm:$0xff]  }
 0x191   :  { %2835 = vmatprep.subr.bf16.mxu0 %v15160_v7  ;;  %v15244_v7 = vld [vmem:[#allocation2 + $0x584] ss:$8 sps:$4 sm:$0xff]  }
 0x194   :  { %2836 = vmatpush1.bf16.msra.mxu0 %v15158_v8  ;;  %v15242_v8 = vld [vmem:[#allocation2 + $0x580] ss:$8 sps:$4 sm:$0xff]  }
 0x195   :  { %2837 = vmatprep.subr.bf16.mxu0 %v15163_v9  ;;  %v15247_v9 = vld [vmem:[#allocation2 + $0x594] ss:$8 sps:$4 sm:$0xff]  }
 0x198   :  { %2838 = vmatpush1.bf16.msra.mxu0 %v15161_v10  ;;  %v15245_v10 = vld [vmem:[#allocation2 + $0x590] ss:$8 sps:$4 sm:$0xff]  }
 0x199   :  { %2839 = vmatprep.subr.bf16.mxu0 %v15166_v11  ;;  %v15250_v11 = vld [vmem:[#allocation2 + $0x5a4] ss:$8 sps:$4 sm:$0xff]  }
 0x19c   :  { %2840 = vmatpush1.bf16.msra.mxu0 %v15164_v12  ;;  %v15248_v12 = vld [vmem:[#allocation2 + $0x5a0] ss:$8 sps:$4 sm:$0xff]  }
 0x19d   :  { %2841 = vmatprep.subr.bf16.mxu0 %v15169_v13  ;;  %v15253_v13 = vld [vmem:[#allocation2 + $0x5b4] ss:$8 sps:$4 sm:$0xff]  }
 0x1a0   :  { %2842 = vmatpush1.bf16.msra.mxu0 %v15167_v14  ;;  %v15251_v14 = vld [vmem:[#allocation2 + $0x5b0] ss:$8 sps:$4 sm:$0xff]  }
 0x1a1   :  { %2854 = vmatprep.subr.bf16.mxu0 %v15172_v15  ;;  %v15256_v15 = vld [vmem:[#allocation2 + $0x5c4] ss:$8 sps:$4 sm:$0xff]  }
 0x1a3   :  { %2844 = vmatmul.mubr.bf16.vlgmr.msra.gmra.mrb[0].mxu0 %v13061_v18  ;;  %v15257_v18 = vld [vmem:[#allocation2 + $0x5d0] ss:$8 sps:$4 sm:$0xff]  }
 0x1a4   :  { %2855 = vmatpush1.bf16.msra.mxu0 %v15170_v19  ;;  %2886 = vmatprep.mubr.bf16.mxu0 %v13064_v20  ;;  %v15262_v19 = vld [vmem:[#allocation2 + $0x5e4] ss:$8 sps:$4 sm:$0xff]   ;;  %v15260_v20 = vld [vmem:[#allocation2 + $0x5e0] ss:$8 sps:$4 sm:$0xff]  }
 0x1a5   :  { %2856 = vmatprep.subr.bf16.mxu0 %v15175_v21  ;;  %v15265_v21 = vld [vmem:[#allocation2 + $0x5f4] ss:$8 sps:$4 sm:$0xff]  }
 0x1a8   :  { %2857 = vmatpush1.bf16.msra.mxu0 %v15173_v22  ;;  %v15263_v22 = vld [vmem:[#allocation2 + $0x5f0] ss:$8 sps:$4 sm:$0xff]  }
 0x1a9   :  { %2858 = vmatprep.subr.bf16.mxu0 %v15178_v23  ;;  %v15268_v23 = vld [vmem:[#allocation2 + $0x604] ss:$8 sps:$4 sm:$0xff]  }
 0x1ac   :  { %2859 = vmatpush1.bf16.msra.mxu0 %v15176_v24  ;;  %v17914_v24 = vld [vmem:[%s18910_s0 + $0x30] sm:$0xff] }
 0x1ad   :  { %2860 = vmatprep.subr.bf16.mxu0 %v15181_v25  ;;  %v17919_v25 = vld [vmem:[%s18910_s0 + $0x90] sm:$0xff] }
 0x1b0   :  { %2861 = vmatpush1.bf16.msra.mxu0 %v15179_v26  ;;  %v13065_v26 = vcombine.low %v17900_v52, %v17905_v53  ;;  %v15302_v52 = vld [vmem:[#allocation2 + $0x6c0] ss:$8 sps:$4 sm:$0xff]   ;;  %v15307_v53 = vld [vmem:[#allocation2 + $0x6d4] ss:$8 sps:$4 sm:$0xff]  }
 0x1b1   :  { %2862 = vmatprep.subr.bf16.mxu0 %v15184_v27  ;;  %v15266_v27 = vld [vmem:[#allocation2 + $0x600] ss:$8 sps:$4 sm:$0xff]  }
 0x1b4   :  { %2863 = vmatpush1.bf16.msra.mxu0 %v15182_v28  ;;  %v13068_v28 = vcombine.high %v17914_v24, %v17919_v25 }
 0x1b5   :  { %2864 = vmatprep.subr.bf16.mxu0 %v15187_v29  ;;  %v15271_v29 = vld [vmem:[#allocation2 + $0x614] ss:$8 sps:$4 sm:$0xff]  }
 0x1b8   :  { %2865 = vmatpush1.bf16.msra.mxu0 %v15185_v30  ;;  %v15269_v30 = vld [vmem:[#allocation2 + $0x610] ss:$8 sps:$4 sm:$0xff]  }
 0x1b9   :  { %2866 = vmatprep.subr.bf16.mxu0 %v15190_v31  ;;  %v15274_v31 = vld [vmem:[#allocation2 + $0x624] ss:$8 sps:$4 sm:$0xff]  }
 0x1bc   :  { %2867 = vmatpush1.bf16.msra.mxu0 %v15188_v32  ;;  %v15272_v32 = vld [vmem:[#allocation2 + $0x620] ss:$8 sps:$4 sm:$0xff]  }
 0x1bd   :  { %2868 = vmatprep.subr.bf16.mxu0 %v15193_v33  ;;  %v15277_v33 = vld [vmem:[#allocation2 + $0x634] ss:$8 sps:$4 sm:$0xff]  }
 0x1c0   :  { %2869 = vmatpush1.bf16.msra.mxu0 %v15191_v34  ;;  %v15275_v34 = vld [vmem:[#allocation2 + $0x630] ss:$8 sps:$4 sm:$0xff]  }
 0x1c1   :  { %2870 = vmatprep.subr.bf16.mxu0 %v15196_v35  ;;  %v15280_v35 = vld [vmem:[#allocation2 + $0x644] ss:$8 sps:$4 sm:$0xff]  }
 0x1c4   :  { %2871 = vmatpush1.bf16.msra.mxu0 %v15194_v36  ;;  %v15278_v36 = vld [vmem:[#allocation2 + $0x640] ss:$8 sps:$4 sm:$0xff]  }
 0x1c5   :  { %2872 = vmatprep.subr.bf16.mxu0 %v15199_v37  ;;  %v15283_v37 = vld [vmem:[#allocation2 + $0x654] ss:$8 sps:$4 sm:$0xff]  }
 0x1c8   :  { %2873 = vmatpush1.bf16.msra.mxu0 %v15197_v38  ;;  %v15281_v38 = vld [vmem:[#allocation2 + $0x650] ss:$8 sps:$4 sm:$0xff]  }
 0x1c9   :  { %2874 = vmatprep.subr.bf16.mxu0 %v15202_v39  ;;  %v15286_v39 = vld [vmem:[#allocation2 + $0x664] ss:$8 sps:$4 sm:$0xff]  }
 0x1cc   :  { %2875 = vmatpush1.bf16.msra.mxu0 %v15200_v40  ;;  %v15284_v40 = vld [vmem:[#allocation2 + $0x660] ss:$8 sps:$4 sm:$0xff]  }
 0x1cd   :  { %2876 = vmatprep.subr.bf16.mxu0 %v15205_v41  ;;  %v15289_v41 = vld [vmem:[#allocation2 + $0x674] ss:$8 sps:$4 sm:$0xff]  }
 0x1d0   :  { %2877 = vmatpush1.bf16.msra.mxu0 %v15203_v42  ;;  %v15287_v42 = vld [vmem:[#allocation2 + $0x670] ss:$8 sps:$4 sm:$0xff]  }
 0x1d1   :  { %2878 = vmatprep.subr.bf16.mxu0 %v15208_v43  ;;  %v15292_v43 = vld [vmem:[#allocation2 + $0x684] ss:$8 sps:$4 sm:$0xff]  }
 0x1d4   :  { %2879 = vmatpush1.bf16.msra.mxu0 %v15206_v44  ;;  %v15290_v44 = vld [vmem:[#allocation2 + $0x680] ss:$8 sps:$4 sm:$0xff]  }
 0x1d5   :  { %2880 = vmatprep.subr.bf16.mxu0 %v15211_v45  ;;  %v15295_v45 = vld [vmem:[#allocation2 + $0x694] ss:$8 sps:$4 sm:$0xff]  }
 0x1d8   :  { %2881 = vmatpush1.bf16.msra.mxu0 %v15209_v46  ;;  %v15293_v46 = vld [vmem:[#allocation2 + $0x690] ss:$8 sps:$4 sm:$0xff]  }
 0x1d9   :  { %2882 = vmatprep.subr.bf16.mxu0 %v15214_v47  ;;  %v15298_v47 = vld [vmem:[#allocation2 + $0x6a4] ss:$8 sps:$4 sm:$0xff]  }
 0x1dc   :  { %2883 = vmatpush1.bf16.msra.mxu0 %v15212_v48  ;;  %v15296_v48 = vld [vmem:[#allocation2 + $0x6a0] ss:$8 sps:$4 sm:$0xff]  }
 0x1dd   :  { %2884 = vmatprep.subr.bf16.mxu0 %v15217_v49  ;;  %v15301_v49 = vld [vmem:[#allocation2 + $0x6b4] ss:$8 sps:$4 sm:$0xff]  }
 0x1e0   :  { %2885 = vmatpush1.bf16.msra.mxu0 %v15215_v50  ;;  %v15299_v50 = vld [vmem:[#allocation2 + $0x6b0] ss:$8 sps:$4 sm:$0xff]  }
 0x1e1   :  { %2897 = vmatprep.subr.bf16.mxu0 %v15220_v51  ;;  %v15304_v51 = vld [vmem:[#allocation2 + $0x6c4] ss:$8 sps:$4 sm:$0xff]  }
 0x1e3   :  { %2887 = vmatmul.mubr.bf16.vlgmr.msra.gmra.mrb[0].mxu0 %v13063_v54  ;;  %v15305_v54 = vld [vmem:[#allocation2 + $0x6d0] ss:$8 sps:$4 sm:$0xff]  }
 0x1e4   :  { %2898 = vmatpush1.bf16.msra.mxu0 %v15218_v55  ;;  %2929 = vmatprep.mubr.bf16.mxu0 %v13066_v56  ;;  %v15310_v55 = vld [vmem:[#allocation2 + $0x6e4] ss:$8 sps:$4 sm:$0xff]   ;;  %v15308_v56 = vld [vmem:[#allocation2 + $0x6e0] ss:$8 sps:$4 sm:$0xff]  }
 0x1e5   :  { %2899 = vmatprep.subr.bf16.mxu0 %v15223_v57  ;;  %v15313_v57 = vld [vmem:[#allocation2 + $0x6f4] ss:$8 sps:$4 sm:$0xff]  }
 0x1e8   :  { %2900 = vmatpush1.bf16.msra.mxu0 %v15221_v58  ;;  %v15311_v58 = vld [vmem:[#allocation2 + $0x6f0] ss:$8 sps:$4 sm:$0xff]  }
 0x1e9   :  { %2901 = vmatprep.subr.bf16.mxu0 %v15226_v59  ;;  %v15316_v59 = vld [vmem:[#allocation2 + $0x704] ss:$8 sps:$4 sm:$0xff]  }
 0x1ec   :  { %2902 = vmatpush1.bf16.msra.mxu0 %v15224_v60  ;;  %v17928_v60 = vld [vmem:[%s18910_s0 + $0x38] sm:$0xff] }
 0x1ed   :  { %2903 = vmatprep.subr.bf16.mxu0 %v15229_v61  ;;  %v17933_v61 = vld [vmem:[%s18910_s0 + $0x98] sm:$0xff] }
 0x1f0   :  { %2904 = vmatpush1.bf16.msra.mxu0 %v15227_v62  ;;  %v13067_v62 = vcombine.low %v17914_v24, %v17919_v25  ;;  %v15350_v24 = vld [vmem:[#allocation2 + $0x7c0] ss:$8 sps:$4 sm:$0xff]   ;;  %v15355_v25 = vld [vmem:[#allocation2 + $0x7d4] ss:$8 sps:$4 sm:$0xff]  }
 0x1f1   :  { %2905 = vmatprep.subr.bf16.mxu0 %v15232_v63  ;;  %v15314_v63 = vld [vmem:[#allocation2 + $0x700] ss:$8 sps:$4 sm:$0xff]  }
 0x1f4   :  { %2906 = vmatpush1.bf16.msra.mxu0 %v15230_v0  ;;  %v13070_v0 = vcombine.high %v17928_v60, %v17933_v61 }
 0x1f5   :  { %2907 = vmatprep.subr.bf16.mxu0 %v15235_v1  ;;  %v15319_v1 = vld [vmem:[#allocation2 + $0x714] ss:$8 sps:$4 sm:$0xff]  }
 0x1f8   :  { %2908 = vmatpush1.bf16.msra.mxu0 %v15233_v2  ;;  %v15317_v2 = vld [vmem:[#allocation2 + $0x710] ss:$8 sps:$4 sm:$0xff]  }
 0x1f9   :  { %2909 = vmatprep.subr.bf16.mxu0 %v15238_v3  ;;  %v15322_v3 = vld [vmem:[#allocation2 + $0x724] ss:$8 sps:$4 sm:$0xff]  }
 0x1fc   :  { %2910 = vmatpush1.bf16.msra.mxu0 %v15236_v4  ;;  %v15320_v4 = vld [vmem:[#allocation2 + $0x720] ss:$8 sps:$4 sm:$0xff]  }
 0x1fd   :  { %2911 = vmatprep.subr.bf16.mxu0 %v15241_v5  ;;  %v15325_v5 = vld [vmem:[#allocation2 + $0x734] ss:$8 sps:$4 sm:$0xff]  }
 0x200   :  { %2912 = vmatpush1.bf16.msra.mxu0 %v15239_v6  ;;  %v15323_v6 = vld [vmem:[#allocation2 + $0x730] ss:$8 sps:$4 sm:$0xff]  }
 0x201   :  { %2913 = vmatprep.subr.bf16.mxu0 %v15244_v7  ;;  %v15328_v7 = vld [vmem:[#allocation2 + $0x744] ss:$8 sps:$4 sm:$0xff]  }
 0x204   :  { %2914 = vmatpush1.bf16.msra.mxu0 %v15242_v8  ;;  %v15326_v8 = vld [vmem:[#allocation2 + $0x740] ss:$8 sps:$4 sm:$0xff]  }
 0x205   :  { %2915 = vmatprep.subr.bf16.mxu0 %v15247_v9  ;;  %v15331_v9 = vld [vmem:[#allocation2 + $0x754] ss:$8 sps:$4 sm:$0xff]  }
 0x208   :  { %2916 = vmatpush1.bf16.msra.mxu0 %v15245_v10  ;;  %v15329_v10 = vld [vmem:[#allocation2 + $0x750] ss:$8 sps:$4 sm:$0xff]  }
 0x209   :  { %2917 = vmatprep.subr.bf16.mxu0 %v15250_v11  ;;  %v15334_v11 = vld [vmem:[#allocation2 + $0x764] ss:$8 sps:$4 sm:$0xff]  }
 0x20c   :  { %2918 = vmatpush1.bf16.msra.mxu0 %v15248_v12  ;;  %v15332_v12 = vld [vmem:[#allocation2 + $0x760] ss:$8 sps:$4 sm:$0xff]  }
 0x20d   :  { %2919 = vmatprep.subr.bf16.mxu0 %v15253_v13  ;;  %v15337_v13 = vld [vmem:[#allocation2 + $0x774] ss:$8 sps:$4 sm:$0xff]  }
 0x210   :  { %2920 = vmatpush1.bf16.msra.mxu0 %v15251_v14  ;;  %v15335_v14 = vld [vmem:[#allocation2 + $0x770] ss:$8 sps:$4 sm:$0xff]  }
 0x211   :  { %2921 = vmatprep.subr.bf16.mxu0 %v15256_v15  ;;  %v15340_v15 = vld [vmem:[#allocation2 + $0x784] ss:$8 sps:$4 sm:$0xff]  }
 0x214   :  { %2922 = vmatpush1.bf16.msra.mxu0 %v15254_v16  ;;  %v15338_v16 = vld [vmem:[#allocation2 + $0x780] ss:$8 sps:$4 sm:$0xff]  }
 0x215   :  { %2923 = vmatprep.subr.bf16.mxu0 %v15259_v17  ;;  %v15343_v17 = vld [vmem:[#allocation2 + $0x794] ss:$8 sps:$4 sm:$0xff]  }
 0x218   :  { %2924 = vmatpush1.bf16.msra.mxu0 %v15257_v18  ;;  %v15341_v18 = vld [vmem:[#allocation2 + $0x790] ss:$8 sps:$4 sm:$0xff]  }
 0x219   :  { %2925 = vmatprep.subr.bf16.mxu0 %v15262_v19  ;;  %v15346_v19 = vld [vmem:[#allocation2 + $0x7a4] ss:$8 sps:$4 sm:$0xff]  }
 0x21c   :  { %2926 = vmatpush1.bf16.msra.mxu0 %v15260_v20  ;;  %v15344_v20 = vld [vmem:[#allocation2 + $0x7a0] ss:$8 sps:$4 sm:$0xff]  }
 0x21d   :  { %2927 = vmatprep.subr.bf16.mxu0 %v15265_v21  ;;  %v15349_v21 = vld [vmem:[#allocation2 + $0x7b4] ss:$8 sps:$4 sm:$0xff]  }
 0x220   :  { %2928 = vmatpush1.bf16.msra.mxu0 %v15263_v22  ;;  %v15347_v22 = vld [vmem:[#allocation2 + $0x7b0] ss:$8 sps:$4 sm:$0xff]  }
 0x221   :  { %2940 = vmatprep.subr.bf16.mxu0 %v15268_v23  ;;  %v15352_v23 = vld [vmem:[#allocation2 + $0x7c4] ss:$8 sps:$4 sm:$0xff]  }
 0x223   :  { %2930 = vmatmul.mubr.bf16.vlgmr.msra.gmra.mrb[0].mxu0 %v13065_v26  ;;  %v15353_v26 = vld [vmem:[#allocation2 + $0x7d0] ss:$8 sps:$4 sm:$0xff]  }
 0x224   :  { %2941 = vmatpush1.bf16.msra.mxu0 %v15266_v27  ;;  %2972 = vmatprep.mubr.bf16.mxu0 %v13068_v28  ;;  %v15358_v27 = vld [vmem:[#allocation2 + $0x7e4] ss:$8 sps:$4 sm:$0xff]   ;;  %v15356_v28 = vld [vmem:[#allocation2 + $0x7e0] ss:$8 sps:$4 sm:$0xff]  }
 0x225   :  { %2942 = vmatprep.subr.bf16.mxu0 %v15271_v29  ;;  %v15361_v29 = vld [vmem:[#allocation2 + $0x7f4] ss:$8 sps:$4 sm:$0xff]  }
 0x228   :  { %2943 = vmatpush1.bf16.msra.mxu0 %v15269_v30  ;;  %v15359_v30 = vld [vmem:[#allocation2 + $0x7f0] ss:$8 sps:$4 sm:$0xff]  }
 0x229   :  { %2944 = vmatprep.subr.bf16.mxu0 %v15274_v31  ;;  %v15364_v31 = vld [vmem:[#allocation2 + $0x804] ss:$8 sps:$4 sm:$0xff]  }
 0x22c   :  { %2945 = vmatpush1.bf16.msra.mxu0 %v15272_v32  ;;  %v17942_v32 = vld [vmem:[%s18910_s0 + $0x40] sm:$0xff] }
 0x22d   :  { %2946 = vmatprep.subr.bf16.mxu0 %v15277_v33  ;;  %v17947_v33 = vld [vmem:[%s18910_s0 + $0xa0] sm:$0xff] }
 0x230   :  { %2947 = vmatpush1.bf16.msra.mxu0 %v15275_v34  ;;  %v13069_v34 = vcombine.low %v17928_v60, %v17933_v61  ;;  %v15398_v60 = vld [vmem:[#allocation2 + $0x8c0] ss:$8 sps:$4 sm:$0xff]   ;;  %v15403_v61 = vld [vmem:[#allocation2 + $0x8d4] ss:$8 sps:$4 sm:$0xff]  }
 0x231   :  { %2948 = vmatprep.subr.bf16.mxu0 %v15280_v35  ;;  %v15362_v35 = vld [vmem:[#allocation2 + $0x800] ss:$8 sps:$4 sm:$0xff]  }
 0x234   :  { %2949 = vmatpush1.bf16.msra.mxu0 %v15278_v36  ;;  %v13072_v36 = vcombine.high %v17942_v32, %v17947_v33 }
 0x235   :  { %2950 = vmatprep.subr.bf16.mxu0 %v15283_v37  ;;  %v15367_v37 = vld [vmem:[#allocation2 + $0x814] ss:$8 sps:$4 sm:$0xff]  }
 0x238   :  { %2951 = vmatpush1.bf16.msra.mxu0 %v15281_v38  ;;  %v15365_v38 = vld [vmem:[#allocation2 + $0x810] ss:$8 sps:$4 sm:$0xff]  }
 0x239   :  { %2952 = vmatprep.subr.bf16.mxu0 %v15286_v39  ;;  %v15370_v39 = vld [vmem:[#allocation2 + $0x824] ss:$8 sps:$4 sm:$0xff]  }
 0x23c   :  { %2953 = vmatpush1.bf16.msra.mxu0 %v15284_v40  ;;  %v15368_v40 = vld [vmem:[#allocation2 + $0x820] ss:$8 sps:$4 sm:$0xff]  }
 0x23d   :  { %2954 = vmatprep.subr.bf16.mxu0 %v15289_v41  ;;  %v15373_v41 = vld [vmem:[#allocation2 + $0x834] ss:$8 sps:$4 sm:$0xff]  }
 0x240   :  { %2955 = vmatpush1.bf16.msra.mxu0 %v15287_v42  ;;  %v15371_v42 = vld [vmem:[#allocation2 + $0x830] ss:$8 sps:$4 sm:$0xff]  }
 0x241   :  { %2956 = vmatprep.subr.bf16.mxu0 %v15292_v43  ;;  %v15376_v43 = vld [vmem:[#allocation2 + $0x844] ss:$8 sps:$4 sm:$0xff]  }
 0x244   :  { %2957 = vmatpush1.bf16.msra.mxu0 %v15290_v44  ;;  %v15374_v44 = vld [vmem:[#allocation2 + $0x840] ss:$8 sps:$4 sm:$0xff]  }
 0x245   :  { %2958 = vmatprep.subr.bf16.mxu0 %v15295_v45  ;;  %v15379_v45 = vld [vmem:[#allocation2 + $0x854] ss:$8 sps:$4 sm:$0xff]  }
 0x248   :  { %2959 = vmatpush1.bf16.msra.mxu0 %v15293_v46  ;;  %v15377_v46 = vld [vmem:[#allocation2 + $0x850] ss:$8 sps:$4 sm:$0xff]  }
 0x249   :  { %2960 = vmatprep.subr.bf16.mxu0 %v15298_v47  ;;  %v15382_v47 = vld [vmem:[#allocation2 + $0x864] ss:$8 sps:$4 sm:$0xff]  }
 0x24c   :  { %2961 = vmatpush1.bf16.msra.mxu0 %v15296_v48  ;;  %v15380_v48 = vld [vmem:[#allocation2 + $0x860] ss:$8 sps:$4 sm:$0xff]  }
 0x24d   :  { %2962 = vmatprep.subr.bf16.mxu0 %v15301_v49  ;;  %v15385_v49 = vld [vmem:[#allocation2 + $0x874] ss:$8 sps:$4 sm:$0xff]  }
 0x250   :  { %2963 = vmatpush1.bf16.msra.mxu0 %v15299_v50  ;;  %v15383_v50 = vld [vmem:[#allocation2 + $0x870] ss:$8 sps:$4 sm:$0xff]  }
 0x251   :  { %2964 = vmatprep.subr.bf16.mxu0 %v15304_v51  ;;  %v15388_v51 = vld [vmem:[#allocation2 + $0x884] ss:$8 sps:$4 sm:$0xff]  }
 0x254   :  { %2965 = vmatpush1.bf16.msra.mxu0 %v15302_v52  ;;  %v15386_v52 = vld [vmem:[#allocation2 + $0x880] ss:$8 sps:$4 sm:$0xff]  }
 0x255   :  { %2966 = vmatprep.subr.bf16.mxu0 %v15307_v53  ;;  %v15391_v53 = vld [vmem:[#allocation2 + $0x894] ss:$8 sps:$4 sm:$0xff]  }
 0x258   :  { %2967 = vmatpush1.bf16.msra.mxu0 %v15305_v54  ;;  %v15389_v54 = vld [vmem:[#allocation2 + $0x890] ss:$8 sps:$4 sm:$0xff]  }
 0x259   :  { %2968 = vmatprep.subr.bf16.mxu0 %v15310_v55  ;;  %v15394_v55 = vld [vmem:[#allocation2 + $0x8a4] ss:$8 sps:$4 sm:$0xff]  }
 0x25c   :  { %2969 = vmatpush1.bf16.msra.mxu0 %v15308_v56  ;;  %v15392_v56 = vld [vmem:[#allocation2 + $0x8a0] ss:$8 sps:$4 sm:$0xff]  }
 0x25d   :  { %2970 = vmatprep.subr.bf16.mxu0 %v15313_v57  ;;  %v15397_v57 = vld [vmem:[#allocation2 + $0x8b4] ss:$8 sps:$4 sm:$0xff]  }
 0x260   :  { %2971 = vmatpush1.bf16.msra.mxu0 %v15311_v58  ;;  %v15395_v58 = vld [vmem:[#allocation2 + $0x8b0] ss:$8 sps:$4 sm:$0xff]  }
 0x261   :  { %2983 = vmatprep.subr.bf16.mxu0 %v15316_v59  ;;  %v15400_v59 = vld [vmem:[#allocation2 + $0x8c4] ss:$8 sps:$4 sm:$0xff]  }
 0x263   :  { %2973 = vmatmul.mubr.bf16.vlgmr.msra.gmra.mrb[0].mxu0 %v13067_v62  ;;  %v15401_v62 = vld [vmem:[#allocation2 + $0x8d0] ss:$8 sps:$4 sm:$0xff]  }
 0x264   :  { %2984 = vmatpush1.bf16.msra.mxu0 %v15314_v63  ;;  %3015 = vmatprep.mubr.bf16.mxu0 %v13070_v0  ;;  %v15406_v63 = vld [vmem:[#allocation2 + $0x8e4] ss:$8 sps:$4 sm:$0xff]   ;;  %v15404_v0 = vld [vmem:[#allocation2 + $0x8e0] ss:$8 sps:$4 sm:$0xff]  }
 0x265   :  { %2985 = vmatprep.subr.bf16.mxu0 %v15319_v1  ;;  %v15409_v1 = vld [vmem:[#allocation2 + $0x8f4] ss:$8 sps:$4 sm:$0xff]  }
 0x268   :  { %2986 = vmatpush1.bf16.msra.mxu0 %v15317_v2  ;;  %v15407_v2 = vld [vmem:[#allocation2 + $0x8f0] ss:$8 sps:$4 sm:$0xff]  }
 0x269   :  { %2987 = vmatprep.subr.bf16.mxu0 %v15322_v3  ;;  %v15412_v3 = vld [vmem:[#allocation2 + $0x904] ss:$8 sps:$4 sm:$0xff]  }
 0x26c   :  { %2988 = vmatpush1.bf16.msra.mxu0 %v15320_v4  ;;  %v17956_v4 = vld [vmem:[%s18910_s0 + $0x48] sm:$0xff] }
 0x26d   :  { %2989 = vmatprep.subr.bf16.mxu0 %v15325_v5  ;;  %v17961_v5 = vld [vmem:[%s18910_s0 + $0xa8] sm:$0xff] }
 0x270   :  { %2990 = vmatpush1.bf16.msra.mxu0 %v15323_v6  ;;  %v13071_v6 = vcombine.low %v17942_v32, %v17947_v33  ;;  %v15446_v32 = vld [vmem:[#allocation2 + $0x9c0] ss:$8 sps:$4 sm:$0xff]   ;;  %v15451_v33 = vld [vmem:[#allocation2 + $0x9d4] ss:$8 sps:$4 sm:$0xff]  }
 0x271   :  { %2991 = vmatprep.subr.bf16.mxu0 %v15328_v7  ;;  %v15410_v7 = vld [vmem:[#allocation2 + $0x900] ss:$8 sps:$4 sm:$0xff]  }
 0x274   :  { %2992 = vmatpush1.bf16.msra.mxu0 %v15326_v8  ;;  %v13074_v8 = vcombine.high %v17956_v4, %v17961_v5 }
 0x275   :  { %2993 = vmatprep.subr.bf16.mxu0 %v15331_v9  ;;  %v15415_v9 = vld [vmem:[#allocation2 + $0x914] ss:$8 sps:$4 sm:$0xff]  }
 0x278   :  { %2994 = vmatpush1.bf16.msra.mxu0 %v15329_v10  ;;  %v15413_v10 = vld [vmem:[#allocation2 + $0x910] ss:$8 sps:$4 sm:$0xff]  }
 0x279   :  { %2995 = vmatprep.subr.bf16.mxu0 %v15334_v11  ;;  %v15418_v11 = vld [vmem:[#allocation2 + $0x924] ss:$8 sps:$4 sm:$0xff]  }
 0x27c   :  { %2996 = vmatpush1.bf16.msra.mxu0 %v15332_v12  ;;  %v15416_v12 = vld [vmem:[#allocation2 + $0x920] ss:$8 sps:$4 sm:$0xff]  }
 0x27d   :  { %2997 = vmatprep.subr.bf16.mxu0 %v15337_v13  ;;  %v15421_v13 = vld [vmem:[#allocation2 + $0x934] ss:$8 sps:$4 sm:$0xff]  }
 0x280   :  { %2998 = vmatpush1.bf16.msra.mxu0 %v15335_v14  ;;  %v15419_v14 = vld [vmem:[#allocation2 + $0x930] ss:$8 sps:$4 sm:$0xff]  }
 0x281   :  { %2999 = vmatprep.subr.bf16.mxu0 %v15340_v15  ;;  %v15424_v15 = vld [vmem:[#allocation2 + $0x944] ss:$8 sps:$4 sm:$0xff]  }
 0x284   :  { %3000 = vmatpush1.bf16.msra.mxu0 %v15338_v16  ;;  %v15422_v16 = vld [vmem:[#allocation2 + $0x940] ss:$8 sps:$4 sm:$0xff]  }
 0x285   :  { %3001 = vmatprep.subr.bf16.mxu0 %v15343_v17  ;;  %v15427_v17 = vld [vmem:[#allocation2 + $0x954] ss:$8 sps:$4 sm:$0xff]  }
 0x288   :  { %3002 = vmatpush1.bf16.msra.mxu0 %v15341_v18  ;;  %v15425_v18 = vld [vmem:[#allocation2 + $0x950] ss:$8 sps:$4 sm:$0xff]  }
 0x289   :  { %3003 = vmatprep.subr.bf16.mxu0 %v15346_v19  ;;  %v15430_v19 = vld [vmem:[#allocation2 + $0x964] ss:$8 sps:$4 sm:$0xff]  }
 0x28c   :  { %3004 = vmatpush1.bf16.msra.mxu0 %v15344_v20  ;;  %v15428_v20 = vld [vmem:[#allocation2 + $0x960] ss:$8 sps:$4 sm:$0xff]  }
 0x28d   :  { %3005 = vmatprep.subr.bf16.mxu0 %v15349_v21  ;;  %v15433_v21 = vld [vmem:[#allocation2 + $0x974] ss:$8 sps:$4 sm:$0xff]  }
 0x290   :  { %3006 = vmatpush1.bf16.msra.mxu0 %v15347_v22  ;;  %v15431_v22 = vld [vmem:[#allocation2 + $0x970] ss:$8 sps:$4 sm:$0xff]  }
 0x291   :  { %3007 = vmatprep.subr.bf16.mxu0 %v15352_v23  ;;  %v15436_v23 = vld [vmem:[#allocation2 + $0x984] ss:$8 sps:$4 sm:$0xff]  }
 0x294   :  { %3008 = vmatpush1.bf16.msra.mxu0 %v15350_v24  ;;  %v15434_v24 = vld [vmem:[#allocation2 + $0x980] ss:$8 sps:$4 sm:$0xff]  }
 0x295   :  { %3009 = vmatprep.subr.bf16.mxu0 %v15355_v25  ;;  %v15439_v25 = vld [vmem:[#allocation2 + $0x994] ss:$8 sps:$4 sm:$0xff]  }
 0x298   :  { %3010 = vmatpush1.bf16.msra.mxu0 %v15353_v26  ;;  %v15437_v26 = vld [vmem:[#allocation2 + $0x990] ss:$8 sps:$4 sm:$0xff]  }
 0x299   :  { %3011 = vmatprep.subr.bf16.mxu0 %v15358_v27  ;;  %v15442_v27 = vld [vmem:[#allocation2 + $0x9a4] ss:$8 sps:$4 sm:$0xff]  }
 0x29c   :  { %3012 = vmatpush1.bf16.msra.mxu0 %v15356_v28  ;;  %v15440_v28 = vld [vmem:[#allocation2 + $0x9a0] ss:$8 sps:$4 sm:$0xff]  }
 0x29d   :  { %3013 = vmatprep.subr.bf16.mxu0 %v15361_v29  ;;  %v15445_v29 = vld [vmem:[#allocation2 + $0x9b4] ss:$8 sps:$4 sm:$0xff]  }
 0x2a0   :  { %3014 = vmatpush1.bf16.msra.mxu0 %v15359_v30  ;;  %v15443_v30 = vld [vmem:[#allocation2 + $0x9b0] ss:$8 sps:$4 sm:$0xff]  }
 0x2a1   :  { %3026 = vmatprep.subr.bf16.mxu0 %v15364_v31  ;;  %v15448_v31 = vld [vmem:[#allocation2 + $0x9c4] ss:$8 sps:$4 sm:$0xff]  }
 0x2a3   :  { %3016 = vmatmul.mubr.bf16.vlgmr.msra.gmra.mrb[0].mxu0 %v13069_v34  ;;  %v15449_v34 = vld [vmem:[#allocation2 + $0x9d0] ss:$8 sps:$4 sm:$0xff]  }
 0x2a4   :  { %3027 = vmatpush1.bf16.msra.mxu0 %v15362_v35  ;;  %3058 = vmatprep.mubr.bf16.mxu0 %v13072_v36  ;;  %v15454_v35 = vld [vmem:[#allocation2 + $0x9e4] ss:$8 sps:$4 sm:$0xff]   ;;  %v15452_v36 = vld [vmem:[#allocation2 + $0x9e0] ss:$8 sps:$4 sm:$0xff]  }
 0x2a5   :  { %3028 = vmatprep.subr.bf16.mxu0 %v15367_v37  ;;  %v15457_v37 = vld [vmem:[#allocation2 + $0x9f4] ss:$8 sps:$4 sm:$0xff]  }
 0x2a8   :  { %3029 = vmatpush1.bf16.msra.mxu0 %v15365_v38  ;;  %v15455_v38 = vld [vmem:[#allocation2 + $0x9f0] ss:$8 sps:$4 sm:$0xff]  }
 0x2a9   :  { %3030 = vmatprep.subr.bf16.mxu0 %v15370_v39  ;;  %v15460_v39 = vld [vmem:[#allocation2 + $0xa04] ss:$8 sps:$4 sm:$0xff]  }
 0x2ac   :  { %3031 = vmatpush1.bf16.msra.mxu0 %v15368_v40  ;;  %v17970_v40 = vld [vmem:[%s18910_s0 + $0x50] sm:$0xff] }
 0x2ad   :  { %3032 = vmatprep.subr.bf16.mxu0 %v15373_v41  ;;  %v17975_v41 = vld [vmem:[%s18910_s0 + $0xb0] sm:$0xff] }
 0x2b0   :  { %3033 = vmatpush1.bf16.msra.mxu0 %v15371_v42  ;;  %v13073_v42 = vcombine.low %v17956_v4, %v17961_v5  ;;  %v15572_v4 = vld [vmem:[#allocation7 + $0x244] ss:$48 sps:$4 sm:$0xff]  }
 0x2b1   :  { %3034 = vmatprep.subr.bf16.mxu0 %v15376_v43  ;;  %v15458_v43 = vld [vmem:[#allocation2 + $0xa00] ss:$8 sps:$4 sm:$0xff]  }
 0x2b2   :  { %v15476_v5 = vld [vmem:[#allocation2 + $0xa60] ss:$8 sps:$4 sm:$0xff]  }
 0x2b4   :  { %3035 = vmatpush1.bf16.msra.mxu0 %v15374_v44  ;;  %v13076_v44 = vcombine.high %v17970_v40, %v17975_v41 }
 0x2b5   :  { %3036 = vmatprep.subr.bf16.mxu0 %v15379_v45  ;;  %v15463_v45 = vld [vmem:[#allocation2 + $0xa14] ss:$8 sps:$4 sm:$0xff]  }
 0x2b8   :  { %3037 = vmatpush1.bf16.msra.mxu0 %v15377_v46  ;;  %v15554_v46 = vld [vmem:[#allocation7 + $0x4] ss:$48 sps:$4 sm:$0xff]  }
 0x2b9   :  { %3038 = vmatprep.subr.bf16.mxu0 %v15382_v47  ;;  %v15556_v47 = vld [vmem:[#allocation7] ss:$48 sps:$4 sm:$0xff]   ;;  %4422 = vmatprep.subr.bf16.mxu1 %v15554_v46 }
 0x2ba   :  { %4423 = vmatpush1.bf16.msra.mxu1 %v15556_v47  ;;  %v15511_v47 = vld [vmem:[#allocation2 + $0xb14] ss:$8 sps:$4 sm:$0xff]  }
 0x2bc   :  { %3039 = vmatpush1.bf16.msra.mxu0 %v15380_v48  ;;  %v15557_v48 = vld [vmem:[#allocation7 + $0x64] ss:$48 sps:$4 sm:$0xff]  }
 0x2bd   :  { %3040 = vmatprep.subr.bf16.mxu0 %v15385_v49  ;;  %v15461_v49 = vld [vmem:[#allocation2 + $0xa10] ss:$8 sps:$4 sm:$0xff]   ;;  %4424 = vmatprep.subr.bf16.mxu1 %v15557_v48 }
 0x2be   :  { %v15509_v48 = vld [vmem:[#allocation2 + $0xb10] ss:$8 sps:$4 sm:$0xff]  }
 0x2c0   :  { %3041 = vmatpush1.bf16.msra.mxu0 %v15383_v50  ;;  %v15466_v50 = vld [vmem:[#allocation2 + $0xa24] ss:$8 sps:$4 sm:$0xff]  }
 0x2c1   :  { %3042 = vmatprep.subr.bf16.mxu0 %v15388_v51  ;;  %v15559_v51 = vld [vmem:[#allocation7 + $0x60] ss:$48 sps:$4 sm:$0xff]  }
 0x2c2   :  { %4425 = vmatpush1.bf16.msra.mxu1 %v15559_v51  ;;  %v15517_v51 = vld [vmem:[#allocation2 + $0xb34] ss:$8 sps:$4 sm:$0xff]  }
 0x2c4   :  { %3043 = vmatpush1.bf16.msra.mxu0 %v15386_v52  ;;  %v15560_v52 = vld [vmem:[#allocation7 + $0xc4] ss:$48 sps:$4 sm:$0xff]  }
 0x2c5   :  { %3044 = vmatprep.subr.bf16.mxu0 %v15391_v53  ;;  %v15464_v53 = vld [vmem:[#allocation2 + $0xa20] ss:$8 sps:$4 sm:$0xff]   ;;  %4426 = vmatprep.subr.bf16.mxu1 %v15560_v52  ;;  %v15515_v52 = vld [vmem:[#allocation2 + $0xb30] ss:$8 sps:$4 sm:$0xff]  }
 0x2c8   :  { %3045 = vmatpush1.bf16.msra.mxu0 %v15389_v54  ;;  %v15469_v54 = vld [vmem:[#allocation2 + $0xa34] ss:$8 sps:$4 sm:$0xff]  }
 0x2c9   :  { %3046 = vmatprep.subr.bf16.mxu0 %v15394_v55  ;;  %v15562_v55 = vld [vmem:[#allocation7 + $0xc0] ss:$48 sps:$4 sm:$0xff]  }
 0x2ca   :  { %4427 = vmatpush1.bf16.msra.mxu1 %v15562_v55  ;;  %v15526_v55 = vld [vmem:[#allocation2 + $0xb64] ss:$8 sps:$4 sm:$0xff]  }
 0x2cc   :  { %3047 = vmatpush1.bf16.msra.mxu0 %v15392_v56  ;;  %v15563_v56 = vld [vmem:[#allocation7 + $0x124] ss:$48 sps:$4 sm:$0xff]  }
 0x2cd   :  { %3048 = vmatprep.subr.bf16.mxu0 %v15397_v57  ;;  %v15467_v57 = vld [vmem:[#allocation2 + $0xa30] ss:$8 sps:$4 sm:$0xff]   ;;  %4428 = vmatprep.subr.bf16.mxu1 %v15563_v56  ;;  %v15524_v56 = vld [vmem:[#allocation2 + $0xb60] ss:$8 sps:$4 sm:$0xff]  }
 0x2d0   :  { %3049 = vmatpush1.bf16.msra.mxu0 %v15395_v58  ;;  %v15472_v58 = vld [vmem:[#allocation2 + $0xa44] ss:$8 sps:$4 sm:$0xff]  }
 0x2d1   :  { %3050 = vmatprep.subr.bf16.mxu0 %v15400_v59  ;;  %v15565_v59 = vld [vmem:[#allocation7 + $0x120] ss:$48 sps:$4 sm:$0xff]  }
 0x2d2   :  { %4429 = vmatpush1.bf16.msra.mxu1 %v15565_v59  ;;  %v15532_v59 = vld [vmem:[#allocation2 + $0xb84] ss:$8 sps:$4 sm:$0xff]  }
 0x2d4   :  { %3051 = vmatpush1.bf16.msra.mxu0 %v15398_v60  ;;  %v15566_v60 = vld [vmem:[#allocation7 + $0x184] ss:$48 sps:$4 sm:$0xff]  }
 0x2d5   :  { %3052 = vmatprep.subr.bf16.mxu0 %v15403_v61  ;;  %v15470_v61 = vld [vmem:[#allocation2 + $0xa40] ss:$8 sps:$4 sm:$0xff]   ;;  %4430 = vmatprep.subr.bf16.mxu1 %v15566_v60 }
 0x2d6   :  { %v15530_v60 = vld [vmem:[#allocation2 + $0xb80] ss:$8 sps:$4 sm:$0xff]  }
 0x2d8   :  { %3053 = vmatpush1.bf16.msra.mxu0 %v15401_v62  ;;  %v15475_v62 = vld [vmem:[#allocation2 + $0xa54] ss:$8 sps:$4 sm:$0xff]  }
 0x2d9   :  { %3054 = vmatprep.subr.bf16.mxu0 %v15406_v63  ;;  %v15568_v63 = vld [vmem:[#allocation7 + $0x180] ss:$48 sps:$4 sm:$0xff]  }
 0x2da   :  { %4431 = vmatpush1.bf16.msra.mxu1 %v15568_v63  ;;  %v15538_v63 = vld [vmem:[#allocation2 + $0xba4] ss:$8 sps:$4 sm:$0xff]  }
 0x2dc   :  { %3055 = vmatpush1.bf16.msra.mxu0 %v15404_v0  ;;  %v15569_v0 = vld [vmem:[#allocation7 + $0x1e4] ss:$48 sps:$4 sm:$0xff]  }
 0x2dd   :  { %3056 = vmatprep.subr.bf16.mxu0 %v15409_v1  ;;  %v15473_v1 = vld [vmem:[#allocation2 + $0xa50] ss:$8 sps:$4 sm:$0xff]   ;;  %4432 = vmatprep.subr.bf16.mxu1 %v15569_v0  ;;  %v15536_v0 = vld [vmem:[#allocation2 + $0xba0] ss:$8 sps:$4 sm:$0xff]  }
 0x2e0   :  { %3057 = vmatpush1.bf16.msra.mxu0 %v15407_v2  ;;  %v15478_v2 = vld [vmem:[#allocation2 + $0xa64] ss:$8 sps:$4 sm:$0xff]  }
 0x2e1   :  { %3069 = vmatprep.subr.bf16.mxu0 %v15412_v3  ;;  %v15571_v3 = vld [vmem:[#allocation7 + $0x1e0] ss:$48 sps:$4 sm:$0xff]  }
 0x2e2   :  { %4433 = vmatpush1.bf16.msra.mxu1 %v15571_v3  ;;  %v15544_v3 = vld [vmem:[#allocation2 + $0xbc4] ss:$8 sps:$4 sm:$0xff]  }
 0x2e3   :  { %3059 = vmatmul.mubr.bf16.vlgmr.msra.gmra.mrb[0].mxu0 %v13071_v6  ;;  %v15481_v6 = vld [vmem:[#allocation2 + $0xa74] ss:$8 sps:$4 sm:$0xff]   ;;  %4434 = vmatprep.subr.bf16.mxu1 %v15572_v4  ;;  %v15542_v4 = vld [vmem:[#allocation2 + $0xbc0] ss:$8 sps:$4 sm:$0xff]  }
 0x2e4   :  { %3070 = vmatpush1.bf16.msra.mxu0 %v15410_v7  ;;  %3101 = vmatprep.mubr.bf16.mxu0 %v13074_v8  ;;  %v15574_v7 = vld [vmem:[#allocation7 + $0x240] ss:$48 sps:$4 sm:$0xff]   ;;  %v15575_v8 = vld [vmem:[#allocation7 + $0x2a4] ss:$48 sps:$4 sm:$0xff]  }
 0x2e5   :  { %3071 = vmatprep.subr.bf16.mxu0 %v15415_v9  ;;  %v15479_v9 = vld [vmem:[#allocation2 + $0xa70] ss:$8 sps:$4 sm:$0xff]  }
 0x2e6   :  { %4435 = vmatpush1.bf16.msra.mxu1 %v15574_v7  ;;  %v15550_v7 = vld [vmem:[#allocation2 + $0xbe4] ss:$8 sps:$4 sm:$0xff]  }
 0x2e7   :  { %4436 = vmatprep.subr.bf16.mxu1 %v15575_v8  ;;  %v15548_v8 = vld [vmem:[#allocation2 + $0xbe0] ss:$8 sps:$4 sm:$0xff]  }
 0x2e8   :  { %3072 = vmatpush1.bf16.msra.mxu0 %v15413_v10  ;;  %v15484_v10 = vld [vmem:[#allocation2 + $0xa84] ss:$8 sps:$4 sm:$0xff]  }
 0x2e9   :  { %3073 = vmatprep.subr.bf16.mxu0 %v15418_v11  ;;  %v15577_v11 = vld [vmem:[#allocation7 + $0x2a0] ss:$48 sps:$4 sm:$0xff]  }
 0x2ea   :  { %4437 = vmatpush1.bf16.msra.mxu1 %v15577_v11 }
 0x2ec   :  { %3074 = vmatpush1.bf16.msra.mxu0 %v15416_v12  ;;  %v15578_v12 = vld [vmem:[#allocation7 + $0x304] ss:$48 sps:$4 sm:$0xff]  }
 0x2ed   :  { %3075 = vmatprep.subr.bf16.mxu0 %v15421_v13  ;;  %v15482_v13 = vld [vmem:[#allocation2 + $0xa80] ss:$8 sps:$4 sm:$0xff]   ;;  %4438 = vmatprep.subr.bf16.mxu1 %v15578_v12 }
 0x2ee   :  { %v15596_v12 = vld [vmem:[#allocation7 + $0x544] ss:$48 sps:$4 sm:$0xff]  }
 0x2f0   :  { %3076 = vmatpush1.bf16.msra.mxu0 %v15419_v14  ;;  %v15487_v14 = vld [vmem:[#allocation2 + $0xa94] ss:$8 sps:$4 sm:$0xff]  }
 0x2f1   :  { %3077 = vmatprep.subr.bf16.mxu0 %v15424_v15  ;;  %v15580_v15 = vld [vmem:[#allocation7 + $0x300] ss:$48 sps:$4 sm:$0xff]  }
 0x2f2   :  { %4439 = vmatpush1.bf16.msra.mxu1 %v15580_v15  ;;  %v15601_v15 = vld [vmem:[#allocation7 + $0x5a0] ss:$48 sps:$4 sm:$0xff]  }
 0x2f4   :  { %3078 = vmatpush1.bf16.msra.mxu0 %v15422_v16  ;;  %v15581_v16 = vld [vmem:[#allocation7 + $0x364] ss:$48 sps:$4 sm:$0xff]  }
 0x2f5   :  { %3079 = vmatprep.subr.bf16.mxu0 %v15427_v17  ;;  %v15485_v17 = vld [vmem:[#allocation2 + $0xa90] ss:$8 sps:$4 sm:$0xff]   ;;  %4440 = vmatprep.subr.bf16.mxu1 %v15581_v16 }
 0x2f6   :  { %v15604_v16 = vld [vmem:[#allocation7 + $0xc] ss:$48 sps:$4 sm:$0xff]  }
 0x2f8   :  { %3080 = vmatpush1.bf16.msra.mxu0 %v15425_v18  ;;  %v15490_v18 = vld [vmem:[#allocation2 + $0xaa4] ss:$8 sps:$4 sm:$0xff]  }
 0x2f9   :  { %3081 = vmatprep.subr.bf16.mxu0 %v15430_v19  ;;  %v15583_v19 = vld [vmem:[#allocation7 + $0x360] ss:$48 sps:$4 sm:$0xff]  }
 0x2fa   :  { %4441 = vmatpush1.bf16.msra.mxu1 %v15583_v19 }
 0x2fc   :  { %3082 = vmatpush1.bf16.msra.mxu0 %v15428_v20  ;;  %v15584_v20 = vld [vmem:[#allocation7 + $0x3c4] ss:$48 sps:$4 sm:$0xff]  }
 0x2fd   :  { %3083 = vmatprep.subr.bf16.mxu0 %v15433_v21  ;;  %v15488_v21 = vld [vmem:[#allocation2 + $0xaa0] ss:$8 sps:$4 sm:$0xff]   ;;  %4442 = vmatprep.subr.bf16.mxu1 %v15584_v20 }
 0x2fe   :  { %v630_v20 = vld [vmem:[#allocation5] sm:$0x3] }
 0x300   :  { %3084 = vmatpush1.bf16.msra.mxu0 %v15431_v22  ;;  %v15493_v22 = vld [vmem:[#allocation2 + $0xab4] ss:$8 sps:$4 sm:$0xff]  }
 0x301   :  { %3085 = vmatprep.subr.bf16.mxu0 %v15436_v23  ;;  %v15586_v23 = vld [vmem:[#allocation7 + $0x3c0] ss:$48 sps:$4 sm:$0xff]  }
 0x302   :  { %4443 = vmatpush1.bf16.msra.mxu1 %v15586_v23 }
 0x304   :  { %3086 = vmatpush1.bf16.msra.mxu0 %v15434_v24  ;;  %v15587_v24 = vld [vmem:[#allocation7 + $0x424] ss:$48 sps:$4 sm:$0xff]  }
 0x305   :  { %3087 = vmatprep.subr.bf16.mxu0 %v15439_v25  ;;  %v15491_v25 = vld [vmem:[#allocation2 + $0xab0] ss:$8 sps:$4 sm:$0xff]   ;;  %4444 = vmatprep.subr.bf16.mxu1 %v15587_v24 }
 0x308   :  { %3088 = vmatpush1.bf16.msra.mxu0 %v15437_v26  ;;  %v15496_v26 = vld [vmem:[#allocation2 + $0xac4] ss:$8 sps:$4 sm:$0xff]  }
 0x309   :  { %3089 = vmatprep.subr.bf16.mxu0 %v15442_v27  ;;  %v15589_v27 = vld [vmem:[#allocation7 + $0x420] ss:$48 sps:$4 sm:$0xff]  }
 0x30a   :  { %4445 = vmatpush1.bf16.msra.mxu1 %v15589_v27 }
 0x30c   :  { %3090 = vmatpush1.bf16.msra.mxu0 %v15440_v28  ;;  %v15590_v28 = vld [vmem:[#allocation7 + $0x484] ss:$48 sps:$4 sm:$0xff]  }
 0x30d   :  { %3091 = vmatprep.subr.bf16.mxu0 %v15445_v29  ;;  %v15494_v29 = vld [vmem:[#allocation2 + $0xac0] ss:$8 sps:$4 sm:$0xff]   ;;  %4446 = vmatprep.subr.bf16.mxu1 %v15590_v28 }
 0x310   :  { %3092 = vmatpush1.bf16.msra.mxu0 %v15443_v30  ;;  %v15499_v30 = vld [vmem:[#allocation2 + $0xad4] ss:$8 sps:$4 sm:$0xff]  }
 0x311   :  { %3093 = vmatprep.subr.bf16.mxu0 %v15448_v31  ;;  %v15592_v31 = vld [vmem:[#allocation7 + $0x480] ss:$48 sps:$4 sm:$0xff]  }
 0x312   :  { %4447 = vmatpush1.bf16.msra.mxu1 %v15592_v31 }
 0x314   :  { %3094 = vmatpush1.bf16.msra.mxu0 %v15446_v32  ;;  %v15593_v32 = vld [vmem:[#allocation7 + $0x4e4] ss:$48 sps:$4 sm:$0xff]  }
 0x315   :  { %3095 = vmatprep.subr.bf16.mxu0 %v15451_v33  ;;  %v15497_v33 = vld [vmem:[#allocation2 + $0xad0] ss:$8 sps:$4 sm:$0xff]   ;;  %4448 = vmatprep.subr.bf16.mxu1 %v15593_v32 }
 0x318   :  { %3096 = vmatpush1.bf16.msra.mxu0 %v15449_v34  ;;  %v15502_v34 = vld [vmem:[#allocation2 + $0xae4] ss:$8 sps:$4 sm:$0xff]  }
 0x319   :  { %3097 = vmatprep.subr.bf16.mxu0 %v15454_v35  ;;  %v15595_v35 = vld [vmem:[#allocation7 + $0x4e0] ss:$48 sps:$4 sm:$0xff]  }
 0x31a   :  { %4449 = vmatpush1.bf16.msra.mxu1 %v15595_v35 }
 0x31b   :  { %4450 = vmatprep.subr.bf16.mxu1 %v15596_v12  ;;  %v15659_v12 = vld [vmem:[#allocation7 + $0x130] ss:$48 sps:$4 sm:$0xff]  }
 0x31c   :  { %3098 = vmatpush1.bf16.msra.mxu0 %v15452_v36  ;;  %v15500_v36 = vld [vmem:[#allocation2 + $0xae0] ss:$8 sps:$4 sm:$0xff]  }
 0x31d   :  { %3099 = vmatprep.subr.bf16.mxu0 %v15457_v37  ;;  %v15505_v37 = vld [vmem:[#allocation2 + $0xaf4] ss:$8 sps:$4 sm:$0xff]  }
 0x320   :  { %3100 = vmatpush1.bf16.msra.mxu0 %v15455_v38  ;;  %v15503_v38 = vld [vmem:[#allocation2 + $0xaf0] ss:$8 sps:$4 sm:$0xff]  }
 0x321   :  { %3112 = vmatprep.subr.bf16.mxu0 %v15460_v39  ;;  %v15508_v39 = vld [vmem:[#allocation2 + $0xb04] ss:$8 sps:$4 sm:$0xff]  }
 0x323   :  { %3102 = vmatmul.mubr.bf16.vlgmr.msra.gmra.mrb[0].mxu0 %v13073_v42  ;;  %v17984_v42 = vld [vmem:[%s18910_s0 + $0x58] sm:$0xff] }
 0x324   :  { %3113 = vmatpush1.bf16.msra.mxu0 %v15458_v43  ;;  %3144 = vmatprep.mubr.bf16.mxu0 %v13076_v44  ;;  %v17989_v43 = vld [vmem:[%s18910_s0 + $0xb8] sm:$0xff]  ;;  %v13075_v44 = vcombine.low %v17970_v40, %v17975_v41  ;;  %v15520_v40 = vld [vmem:[#allocation2 + $0xb44] ss:$8 sps:$4 sm:$0xff]   ;;  %v15518_v41 = vld [vmem:[#allocation2 + $0xb40] ss:$8 sps:$4 sm:$0xff]  }
 0x325   :  { %3114 = vmatprep.subr.bf16.mxu0 %v15463_v45  ;;  %v15506_v45 = vld [vmem:[#allocation2 + $0xb00] ss:$8 sps:$4 sm:$0xff]   ;;  %v13078_v46 = vcombine.high %v17984_v42, %v17989_v43  ;;  %v13077_v11 = vcombine.low %v17984_v42, %v17989_v43 }
 0x326   :  { %v15605_v42 = vld [vmem:[#allocation7 + $0x68] ss:$48 sps:$4 sm:$0xff]   ;;  %v15610_v43 = vld [vmem:[#allocation7 + $0xcc] ss:$48 sps:$4 sm:$0xff]  }
 0x328   :  { %3115 = vmatpush1.bf16.msra.mxu0 %v15461_v49  ;;  %v15514_v49 = vld [vmem:[#allocation2 + $0xb24] ss:$8 sps:$4 sm:$0xff]  }
 0x329   :  { %3116 = vmatprep.subr.bf16.mxu0 %v15466_v50  ;;  %v15512_v50 = vld [vmem:[#allocation2 + $0xb20] ss:$8 sps:$4 sm:$0xff]  }
 0x32c   :  { %3117 = vmatpush1.bf16.msra.mxu0 %v15464_v53  ;;  %v15523_v53 = vld [vmem:[#allocation2 + $0xb54] ss:$8 sps:$4 sm:$0xff]  }
 0x32d   :  { %3118 = vmatprep.subr.bf16.mxu0 %v15469_v54  ;;  %v15521_v54 = vld [vmem:[#allocation2 + $0xb50] ss:$8 sps:$4 sm:$0xff]  }
 0x330   :  { %3119 = vmatpush1.bf16.msra.mxu0 %v15467_v57  ;;  %v15529_v57 = vld [vmem:[#allocation2 + $0xb74] ss:$8 sps:$4 sm:$0xff]  }
 0x331   :  { %3120 = vmatprep.subr.bf16.mxu0 %v15472_v58  ;;  %v15527_v58 = vld [vmem:[#allocation2 + $0xb70] ss:$8 sps:$4 sm:$0xff]  }
 0x334   :  { %3121 = vmatpush1.bf16.msra.mxu0 %v15470_v61  ;;  %v15535_v61 = vld [vmem:[#allocation2 + $0xb94] ss:$8 sps:$4 sm:$0xff]  }
 0x335   :  { %3122 = vmatprep.subr.bf16.mxu0 %v15475_v62  ;;  %v15533_v62 = vld [vmem:[#allocation2 + $0xb90] ss:$8 sps:$4 sm:$0xff]  }
 0x338   :  { %3123 = vmatpush1.bf16.msra.mxu0 %v15473_v1  ;;  %v15541_v1 = vld [vmem:[#allocation2 + $0xbb4] ss:$8 sps:$4 sm:$0xff]  }
 0x339   :  { %3124 = vmatprep.subr.bf16.mxu0 %v15478_v2  ;;  %v15539_v2 = vld [vmem:[#allocation2 + $0xbb0] ss:$8 sps:$4 sm:$0xff]  }
 0x33c   :  { %3125 = vmatpush1.bf16.msra.mxu0 %v15476_v5  ;;  %v15547_v5 = vld [vmem:[#allocation2 + $0xbd4] ss:$8 sps:$4 sm:$0xff]  }
 0x33d   :  { %3126 = vmatprep.subr.bf16.mxu0 %v15481_v6  ;;  %v15545_v6 = vld [vmem:[#allocation2 + $0xbd0] ss:$8 sps:$4 sm:$0xff]  }
 0x340   :  { %3127 = vmatpush1.bf16.msra.mxu0 %v15479_v9  ;;  %v15553_v9 = vld [vmem:[#allocation2 + $0xbf4] ss:$8 sps:$4 sm:$0xff]  }
 0x341   :  { %3128 = vmatprep.subr.bf16.mxu0 %v15484_v10  ;;  %v15551_v10 = vld [vmem:[#allocation2 + $0xbf0] ss:$8 sps:$4 sm:$0xff]  }
 0x344   :  { %3129 = vmatpush1.bf16.msra.mxu0 %v15482_v13  ;;  %v15598_v13 = vld [vmem:[#allocation7 + $0x540] ss:$48 sps:$4 sm:$0xff]  }
 0x345   :  { %3130 = vmatprep.subr.bf16.mxu0 %v15487_v14  ;;  %4451 = vmatpush1.bf16.msra.mxu1 %v15598_v13  ;;  %v15599_v14 = vld [vmem:[#allocation7 + $0x5a4] ss:$48 sps:$4 sm:$0xff]  }
 0x346   :  { %4452 = vmatprep.subr.bf16.mxu1 %v15599_v14  ;;  %v15664_v13 = vld [vmem:[#allocation7 + $0x194] ss:$48 sps:$4 sm:$0xff]   ;;  %v15662_v14 = vld [vmem:[#allocation7 + $0x190] ss:$48 sps:$4 sm:$0xff]  }
 0x348   :  { %3131 = vmatpush1.bf16.msra.mxu0 %v15485_v17  ;;  %v154_v17 = vlaneseq }
 0x349   :  { %3132 = vmatprep.subr.bf16.mxu0 %v15490_v18  ;;  %4453 = vmatpush1.bf16.msra.mxu1 %v15601_v15  ;;  %v15667_v15 = vld [vmem:[#allocation7 + $0x1f4] ss:$48 sps:$4 sm:$0xff]  }
 0x34a   :  { %4465 = vmatprep.subr.bf16.mxu1 %v15604_v16  ;;  %v17998_v18 = vshrl.u32 %v154_v17, 7  ;;  %v15665_v16 = vld [vmem:[#allocation7 + $0x1f0] ss:$48 sps:$4 sm:$0xff]  }
 0x34c   :  { %3133 = vmatpush1.bf16.msra.mxu0 %v15488_v21  ;;  %v18001_v19 = vsub.s32 1, %v17998_v18  ;;  %v18004_v21 = vsub.s32 0, %v17998_v18 }
 0x34d   :  { %3134 = vmatprep.subr.bf16.mxu0 %v15493_v22 }
 0x34e   :  { %v639_v22 = vrot.slane %v630_v20, %v18001_v19  ;;  %v635_v23 = vrot.slane %v630_v20, %v18004_v21  ;;  %v15670_v20 = vld [vmem:[#allocation7 + $0x254] ss:$48 sps:$4 sm:$0xff]  }
 0x350   :  { %3135 = vmatpush1.bf16.msra.mxu0 %v15491_v25 }
 0x351   :  { %3136 = vmatprep.subr.bf16.mxu0 %v15496_v26 }
 0x354   :  { %3137 = vmatpush1.bf16.msra.mxu0 %v15494_v29 }
 0x355   :  { %3138 = vmatprep.subr.bf16.mxu0 %v15499_v30 }
 0x358   :  { %3139 = vmatpush1.bf16.msra.mxu0 %v15497_v33 }
 0x359   :  { %3140 = vmatprep.subr.bf16.mxu0 %v15502_v34 }
 0x35c   :  { %3141 = vmatpush1.bf16.msra.mxu0 %v15500_v36 }
 0x35d   :  { %3142 = vmatprep.subr.bf16.mxu0 %v15505_v37  ;;  %v15602_v37 = vld [vmem:[#allocation7 + $0x8] ss:$48 sps:$4 sm:$0xff]  }
 0x360   :  { %3143 = vmatpush1.bf16.msra.mxu0 %v15503_v38 }
 0x361   :  { %3155 = vmatprep.subr.bf16.mxu0 %v15508_v39  ;;  %v15607_v39 = vld [vmem:[#allocation7 + $0x6c] ss:$48 sps:$4 sm:$0xff]  }
 0x363   :  { %3145 = vmatmul.mubr.bf16.vlgmr.msra.gmra.mrb[0].mxu0 %v13075_v44  ;;  %v15608_v44 = vld [vmem:[#allocation7 + $0xc8] ss:$48 sps:$4 sm:$0xff]  }
 0x364   :  { %3156 = vmatpush1.bf16.msra.mxu0 %v15506_v45  ;;  %3187 = vmatprep.mubr.bf16.mxu0 %v13078_v46  ;;  %v15613_v45 = vld [vmem:[#allocation7 + $0x12c] ss:$48 sps:$4 sm:$0xff]   ;;  %v15611_v46 = vld [vmem:[#allocation7 + $0x128] ss:$48 sps:$4 sm:$0xff]  }
 0x365   :  { %3157 = vmatprep.subr.bf16.mxu0 %v15511_v47  ;;  %v15616_v47 = vld [vmem:[#allocation7 + $0x18c] ss:$48 sps:$4 sm:$0xff]  }
 0x368   :  { %3158 = vmatpush1.bf16.msra.mxu0 %v15509_v48  ;;  %v15614_v48 = vld [vmem:[#allocation7 + $0x188] ss:$48 sps:$4 sm:$0xff]  }
 0x369   :  { %3159 = vmatprep.subr.bf16.mxu0 %v15514_v49  ;;  %v15619_v49 = vld [vmem:[#allocation7 + $0x1ec] ss:$48 sps:$4 sm:$0xff]  }
 0x36c   :  { %3160 = vmatpush1.bf16.msra.mxu0 %v15512_v50  ;;  %v15617_v50 = vld [vmem:[#allocation7 + $0x1e8] ss:$48 sps:$4 sm:$0xff]  }
 0x36d   :  { %3161 = vmatprep.subr.bf16.mxu0 %v15517_v51  ;;  %v15622_v51 = vld [vmem:[#allocation7 + $0x24c] ss:$48 sps:$4 sm:$0xff]  }
 0x370   :  { %3162 = vmatpush1.bf16.msra.mxu0 %v15515_v52  ;;  %v15620_v52 = vld [vmem:[#allocation7 + $0x248] ss:$48 sps:$4 sm:$0xff]  }
 0x371   :  { %3163 = vmatprep.subr.bf16.mxu0 %v15520_v40  ;;  %v15625_v40 = vld [vmem:[#allocation7 + $0x2ac] ss:$48 sps:$4 sm:$0xff]  }
 0x374   :  { %3164 = vmatpush1.bf16.msra.mxu0 %v15518_v41  ;;  %v15623_v41 = vld [vmem:[#allocation7 + $0x2a8] ss:$48 sps:$4 sm:$0xff]  }
 0x375   :  { %3165 = vmatprep.subr.bf16.mxu0 %v15523_v53  ;;  %v15628_v53 = vld [vmem:[#allocation7 + $0x30c] ss:$48 sps:$4 sm:$0xff]  }
 0x378   :  { %3166 = vmatpush1.bf16.msra.mxu0 %v15521_v54  ;;  %v15626_v54 = vld [vmem:[#allocation7 + $0x308] ss:$48 sps:$4 sm:$0xff]  }
 0x379   :  { %3167 = vmatprep.subr.bf16.mxu0 %v15526_v55  ;;  %v15631_v55 = vld [vmem:[#allocation7 + $0x36c] ss:$48 sps:$4 sm:$0xff]  }
 0x37c   :  { %3168 = vmatpush1.bf16.msra.mxu0 %v15524_v56  ;;  %v15629_v56 = vld [vmem:[#allocation7 + $0x368] ss:$48 sps:$4 sm:$0xff]  }
 0x37d   :  { %3169 = vmatprep.subr.bf16.mxu0 %v15529_v57  ;;  %v15634_v57 = vld [vmem:[#allocation7 + $0x3cc] ss:$48 sps:$4 sm:$0xff]  }
 0x380   :  { %3170 = vmatpush1.bf16.msra.mxu0 %v15527_v58  ;;  %v15632_v58 = vld [vmem:[#allocation7 + $0x3c8] ss:$48 sps:$4 sm:$0xff]  }
 0x381   :  { %3171 = vmatprep.subr.bf16.mxu0 %v15532_v59  ;;  %v15637_v59 = vld [vmem:[#allocation7 + $0x42c] ss:$48 sps:$4 sm:$0xff]  }
 0x384   :  { %3172 = vmatpush1.bf16.msra.mxu0 %v15530_v60  ;;  %v15635_v60 = vld [vmem:[#allocation7 + $0x428] ss:$48 sps:$4 sm:$0xff]  }
 0x385   :  { %3173 = vmatprep.subr.bf16.mxu0 %v15535_v61  ;;  %v15640_v61 = vld [vmem:[#allocation7 + $0x48c] ss:$48 sps:$4 sm:$0xff]  }
 0x388   :  { %3174 = vmatpush1.bf16.msra.mxu0 %v15533_v62  ;;  %v15638_v62 = vld [vmem:[#allocation7 + $0x488] ss:$48 sps:$4 sm:$0xff]  }
 0x389   :  { %3175 = vmatprep.subr.bf16.mxu0 %v15538_v63  ;;  %v15643_v63 = vld [vmem:[#allocation7 + $0x4ec] ss:$48 sps:$4 sm:$0xff]  }
 0x38c   :  { %3176 = vmatpush1.bf16.msra.mxu0 %v15536_v0  ;;  %v15641_v0 = vld [vmem:[#allocation7 + $0x4e8] ss:$48 sps:$4 sm:$0xff]  }
 0x38d   :  { %3177 = vmatprep.subr.bf16.mxu0 %v15541_v1  ;;  %v15646_v1 = vld [vmem:[#allocation7 + $0x54c] ss:$48 sps:$4 sm:$0xff]  }
 0x390   :  { %3178 = vmatpush1.bf16.msra.mxu0 %v15539_v2  ;;  %v15644_v2 = vld [vmem:[#allocation7 + $0x548] ss:$48 sps:$4 sm:$0xff]  }
 0x391   :  { %3179 = vmatprep.subr.bf16.mxu0 %v15544_v3  ;;  %v15649_v3 = vld [vmem:[#allocation7 + $0x5ac] ss:$48 sps:$4 sm:$0xff]  }
 0x394   :  { %3180 = vmatpush1.bf16.msra.mxu0 %v15542_v4  ;;  %v15647_v4 = vld [vmem:[#allocation7 + $0x5a8] ss:$48 sps:$4 sm:$0xff]  }
 0x395   :  { %3181 = vmatprep.subr.bf16.mxu0 %v15547_v5  ;;  %v15652_v5 = vld [vmem:[#allocation7 + $0x14] ss:$48 sps:$4 sm:$0xff]  }
 0x398   :  { %3182 = vmatpush1.bf16.msra.mxu0 %v15545_v6  ;;  %v15650_v6 = vld [vmem:[#allocation7 + $0x10] ss:$48 sps:$4 sm:$0xff]  }
 0x399   :  { %3183 = vmatprep.subr.bf16.mxu0 %v15550_v7  ;;  %v15655_v7 = vld [vmem:[#allocation7 + $0x74] ss:$48 sps:$4 sm:$0xff]  }
 0x39c   :  { %3184 = vmatpush1.bf16.msra.mxu0 %v15548_v8  ;;  %v15653_v8 = vld [vmem:[#allocation7 + $0x70] ss:$48 sps:$4 sm:$0xff]  }
 0x39d   :  { %3185 = vmatprep.subr.bf16.mxu0 %v15553_v9  ;;  %v15658_v9 = vld [vmem:[#allocation7 + $0xd4] ss:$48 sps:$4 sm:$0xff]  }
 0x3a0   :  { %3186 = vmatpush1.bf16.msra.mxu0 %v15551_v10  ;;  %v15656_v10 = vld [vmem:[#allocation7 + $0xd0] ss:$48 sps:$4 sm:$0xff]  }
 0x3a3   :  { %3188 = vmatmul.mubr.bf16.vlgmr.msra.gmra.mrb[0].mxu0 %v13077_v11  ;;  %v15661_v11 = vld [vmem:[#allocation7 + $0x134] ss:$48 sps:$4 sm:$0xff]  }
 0x476   :  { %v3189_v24 = vpop.f32.mrb[0].mxu0 }
 0x477   :  { %v3191_v25 = vpop.f32.mrb[1].mxu0  ;;  %v18010_v28 = vadd.f32 %v3189_v24, %v635_v23  ;;  %v15671_v24 = vld [vmem:[#allocation7 + $0x2b0] ss:$48 sps:$4 sm:$0xff]  }
 0x478   :  { %v18008_v26 = vadd.f32 %v3191_v25, %v639_v22  ;;  %v3193_v27 = vpop.f32.mrb[2].mxu0  ;;  %v15676_v25 = vld [vmem:[#allocation7 + $0x314] ss:$48 sps:$4 sm:$0xff]  }
 0x479   :  { %v18012_v29 = vadd.f32 %v3193_v27, %v635_v23  ;;  %v3195_v30 = vpop.f32.mrb[3].mxu0  ;;  %v3198_v35 = vmax.f32 %v18010_v28, 0.0  ;;  %v15673_v23 = vld [vmem:[#allocation7 + $0x2b4] ss:$48 sps:$4 sm:$0xff]   ;;  %v15674_v27 = vld [vmem:[#allocation7 + $0x310] ss:$48 sps:$4 sm:$0xff]  }
 0x47a   :  { %v18014_v31 = vadd.f32 %v3195_v30, %v639_v22  ;;  %v3199_v33 = vmax.f32 %v18008_v26, 0.0  ;;  %v15668_v22 = vld [vmem:[#allocation7 + $0x250] ss:$48 sps:$4 sm:$0xff]   ;;  %v15679_v30 = vld [vmem:[#allocation7 + $0x374] ss:$48 sps:$4 sm:$0xff]  }
 0x47b   :  { %v3200_v32 = vmax.f32 %v18012_v29, 0.0  ;;  %v16330_v29 = vld [vmem:[#allocation7 + $0x664] ss:$48 sps:$4 sm:$0xff]  }
 0x47c   :  { %v3201_v34 = vmax.f32 %v18014_v31, 0.0  ;;  %v16328_v31 = vld [vmem:[#allocation7 + $0x660] ss:$48 sps:$4 sm:$0xff]  }
 0x47d   :  { %v18030_v38 = vpack.c.bf16 %v3200_v32, %v3198_v35 }
 0x47e   :  { %v18024_v36 = vpack.c.bf16 %v3201_v34, %v3199_v33 }
 0x480   :  { %4454 = vmatprep.mubr.bf16.mxu1 %v18024_v36 }
 0x481   :  { %4455 = vmatmul.mubr.bf16.vlgmr.msra.gmra.mrb[0].mxu1 %v18030_v38 }
 0x482   :  { %4466 = vmatpush1.bf16.msra.mxu1 %v15602_v37  ;;  %4497 = vmatprep.mubr.bf16.mxu1 %v18024_v36  ;;  %v15677_v37 = vld [vmem:[#allocation7 + $0x370] ss:$48 sps:$4 sm:$0xff]  }
 0x483   :  { %4467 = vmatprep.subr.bf16.mxu1 %v15607_v39  ;;  %v15682_v39 = vld [vmem:[#allocation7 + $0x3d4] ss:$48 sps:$4 sm:$0xff]  }
 0x486   :  { %4468 = vmatpush1.bf16.msra.mxu1 %v15605_v42  ;;  %v15680_v42 = vld [vmem:[#allocation7 + $0x3d0] ss:$48 sps:$4 sm:$0xff]  }
 0x487   :  { %4469 = vmatprep.subr.bf16.mxu1 %v15610_v43  ;;  %v15685_v43 = vld [vmem:[#allocation7 + $0x434] ss:$48 sps:$4 sm:$0xff]  }
 0x48a   :  { %4470 = vmatpush1.bf16.msra.mxu1 %v15608_v44  ;;  %v15683_v44 = vld [vmem:[#allocation7 + $0x430] ss:$48 sps:$4 sm:$0xff]  }
 0x48b   :  { %4471 = vmatprep.subr.bf16.mxu1 %v15613_v45  ;;  %v15688_v45 = vld [vmem:[#allocation7 + $0x494] ss:$48 sps:$4 sm:$0xff]  }
 0x48e   :  { %4472 = vmatpush1.bf16.msra.mxu1 %v15611_v46  ;;  %v15686_v46 = vld [vmem:[#allocation7 + $0x490] ss:$48 sps:$4 sm:$0xff]  }
 0x48f   :  { %4473 = vmatprep.subr.bf16.mxu1 %v15616_v47  ;;  %v15691_v47 = vld [vmem:[#allocation7 + $0x4f4] ss:$48 sps:$4 sm:$0xff]  }
 0x492   :  { %4474 = vmatpush1.bf16.msra.mxu1 %v15614_v48  ;;  %v15689_v48 = vld [vmem:[#allocation7 + $0x4f0] ss:$48 sps:$4 sm:$0xff]  }
 0x493   :  { %4475 = vmatprep.subr.bf16.mxu1 %v15619_v49  ;;  %v15694_v49 = vld [vmem:[#allocation7 + $0x554] ss:$48 sps:$4 sm:$0xff]  }
 0x496   :  { %4476 = vmatpush1.bf16.msra.mxu1 %v15617_v50  ;;  %v15692_v50 = vld [vmem:[#allocation7 + $0x550] ss:$48 sps:$4 sm:$0xff]  }
 0x497   :  { %4477 = vmatprep.subr.bf16.mxu1 %v15622_v51  ;;  %v15697_v51 = vld [vmem:[#allocation7 + $0x5b4] ss:$48 sps:$4 sm:$0xff]  }
 0x49a   :  { %4478 = vmatpush1.bf16.msra.mxu1 %v15620_v52  ;;  %v15695_v52 = vld [vmem:[#allocation7 + $0x5b0] ss:$48 sps:$4 sm:$0xff]  }
 0x49b   :  { %4479 = vmatprep.subr.bf16.mxu1 %v15625_v40  ;;  %v15700_v40 = vld [vmem:[#allocation7 + $0x1c] ss:$48 sps:$4 sm:$0xff]  }
 0x49e   :  { %4480 = vmatpush1.bf16.msra.mxu1 %v15623_v41  ;;  %v15698_v41 = vld [vmem:[#allocation7 + $0x18] ss:$48 sps:$4 sm:$0xff]  }
 0x49f   :  { %4481 = vmatprep.subr.bf16.mxu1 %v15628_v53  ;;  %v15703_v53 = vld [vmem:[#allocation7 + $0x7c] ss:$48 sps:$4 sm:$0xff]  }
 0x4a2   :  { %4482 = vmatpush1.bf16.msra.mxu1 %v15626_v54  ;;  %v15701_v54 = vld [vmem:[#allocation7 + $0x78] ss:$48 sps:$4 sm:$0xff]  }
 0x4a3   :  { %4483 = vmatprep.subr.bf16.mxu1 %v15631_v55  ;;  %v15706_v55 = vld [vmem:[#allocation7 + $0xdc] ss:$48 sps:$4 sm:$0xff]  }
 0x4a6   :  { %4484 = vmatpush1.bf16.msra.mxu1 %v15629_v56  ;;  %v15704_v56 = vld [vmem:[#allocation7 + $0xd8] ss:$48 sps:$4 sm:$0xff]  }
 0x4a7   :  { %4485 = vmatprep.subr.bf16.mxu1 %v15634_v57  ;;  %v15709_v57 = vld [vmem:[#allocation7 + $0x13c] ss:$48 sps:$4 sm:$0xff]  }
 0x4aa   :  { %4486 = vmatpush1.bf16.msra.mxu1 %v15632_v58  ;;  %v15707_v58 = vld [vmem:[#allocation7 + $0x138] ss:$48 sps:$4 sm:$0xff]  }
 0x4ab   :  { %4487 = vmatprep.subr.bf16.mxu1 %v15637_v59  ;;  %v15712_v59 = vld [vmem:[#allocation7 + $0x19c] ss:$48 sps:$4 sm:$0xff]  }
 0x4ae   :  { %4488 = vmatpush1.bf16.msra.mxu1 %v15635_v60  ;;  %v15710_v60 = vld [vmem:[#allocation7 + $0x198] ss:$48 sps:$4 sm:$0xff]  }
 0x4af   :  { %4489 = vmatprep.subr.bf16.mxu1 %v15640_v61  ;;  %v15715_v61 = vld [vmem:[#allocation7 + $0x1fc] ss:$48 sps:$4 sm:$0xff]  }
 0x4b2   :  { %4490 = vmatpush1.bf16.msra.mxu1 %v15638_v62  ;;  %v15713_v62 = vld [vmem:[#allocation7 + $0x1f8] ss:$48 sps:$4 sm:$0xff]  }
 0x4b3   :  { %4491 = vmatprep.subr.bf16.mxu1 %v15643_v63  ;;  %v15718_v63 = vld [vmem:[#allocation7 + $0x25c] ss:$48 sps:$4 sm:$0xff]  }
 0x4b6   :  { %4492 = vmatpush1.bf16.msra.mxu1 %v15641_v0  ;;  %v15716_v0 = vld [vmem:[#allocation7 + $0x258] ss:$48 sps:$4 sm:$0xff]  }
 0x4b7   :  { %4493 = vmatprep.subr.bf16.mxu1 %v15646_v1  ;;  %v15721_v1 = vld [vmem:[#allocation7 + $0x2bc] ss:$48 sps:$4 sm:$0xff]  }
 0x4ba   :  { %4494 = vmatpush1.bf16.msra.mxu1 %v15644_v2  ;;  %v15719_v2 = vld [vmem:[#allocation7 + $0x2b8] ss:$48 sps:$4 sm:$0xff]  }
 0x4bb   :  { %4495 = vmatprep.subr.bf16.mxu1 %v15649_v3  ;;  %v15724_v3 = vld [vmem:[#allocation7 + $0x31c] ss:$48 sps:$4 sm:$0xff]  }
 0x4be   :  { %4496 = vmatpush1.bf16.msra.mxu1 %v15647_v4  ;;  %v15722_v4 = vld [vmem:[#allocation7 + $0x318] ss:$48 sps:$4 sm:$0xff]  }
 0x4bf   :  { %4508 = vmatprep.subr.bf16.mxu1 %v15652_v5  ;;  %v15727_v5 = vld [vmem:[#allocation7 + $0x37c] ss:$48 sps:$4 sm:$0xff]  }
 0x4c1   :  { %4498 = vmatmul.mubr.bf16.vlgmr.msra.gmra.mrb[4].mxu1 %v18030_v38 }
 0x4c2   :  { %4509 = vmatpush1.bf16.msra.mxu1 %v15650_v6  ;;  %4540 = vmatprep.mubr.bf16.mxu1 %v18024_v36  ;;  %v18042_v6 = vld [vmem:[%s18911_s1 + $0x10] sm:$0xff] }
 0x4c3   :  { %4510 = vmatprep.subr.bf16.mxu1 %v15655_v7  ;;  %v15725_v7 = vld [vmem:[#allocation7 + $0x378] ss:$48 sps:$4 sm:$0xff]   ;;  %197 = vrot.lane.b32.xlu0 %v18042_v6, %s17652_s30 }
 0x4c6   :  { %4511 = vmatpush1.bf16.msra.mxu1 %v15653_v8  ;;  %v15730_v8 = vld [vmem:[#allocation7 + $0x3dc] ss:$48 sps:$4 sm:$0xff]  }
 0x4c7   :  { %4512 = vmatprep.subr.bf16.mxu1 %v15658_v9  ;;  %v18049_v9 = vld [vmem:[%s18911_s1 + $0x18] sm:$0xff] }
 0x4c8   :  { %199 = vrot.lane.b32.xlu0 %v18049_v9, %s17652_s30 }
 0x4ca   :  { %4513 = vmatpush1.bf16.msra.mxu1 %v15656_v10  ;;  %v15728_v10 = vld [vmem:[#allocation7 + $0x3d8] ss:$48 sps:$4 sm:$0xff]  }
 0x4cb   :  { %4514 = vmatprep.subr.bf16.mxu1 %v15661_v11  ;;  %v15733_v11 = vld [vmem:[#allocation7 + $0x43c] ss:$48 sps:$4 sm:$0xff]  }
 0x4ce   :  { %4515 = vmatpush1.bf16.msra.mxu1 %v15659_v12  ;;  %v15731_v12 = vld [vmem:[#allocation7 + $0x438] ss:$48 sps:$4 sm:$0xff]  }
 0x4cf   :  { %4516 = vmatprep.subr.bf16.mxu1 %v15664_v13  ;;  %v15736_v13 = vld [vmem:[#allocation7 + $0x49c] ss:$48 sps:$4 sm:$0xff]  }
 0x4d2   :  { %4517 = vmatpush1.bf16.msra.mxu1 %v15662_v14  ;;  %v15734_v14 = vld [vmem:[#allocation7 + $0x498] ss:$48 sps:$4 sm:$0xff]  }
 0x4d3   :  { %4518 = vmatprep.subr.bf16.mxu1 %v15667_v15  ;;  %v15739_v15 = vld [vmem:[#allocation7 + $0x4fc] ss:$48 sps:$4 sm:$0xff]  }
 0x4d6   :  { %4519 = vmatpush1.bf16.msra.mxu1 %v15665_v16  ;;  %v18056_v16 = vld [vmem:[%s18911_s1] sm:$0xff] }
 0x4d7   :  { %4520 = vmatprep.subr.bf16.mxu1 %v15670_v20  ;;  %v15737_v20 = vld [vmem:[#allocation7 + $0x4f8] ss:$48 sps:$4 sm:$0xff]   ;;  %181 = vrot.lane.b32.xlu1 %v18056_v16, %s17652_s30 }
 0x4da   :  { %4521 = vmatpush1.bf16.msra.mxu1 %v15668_v22  ;;  %v15742_v22 = vld [vmem:[#allocation7 + $0x55c] ss:$48 sps:$4 sm:$0xff]  }
 0x4db   :  { %4522 = vmatprep.subr.bf16.mxu1 %v15673_v23  ;;  %v15740_v23 = vld [vmem:[#allocation7 + $0x558] ss:$48 sps:$4 sm:$0xff]  }
 0x4de   :  { %4523 = vmatpush1.bf16.msra.mxu1 %v15671_v24  ;;  %v15745_v24 = vld [vmem:[#allocation7 + $0x5bc] ss:$48 sps:$4 sm:$0xff]  }
 0x4df   :  { %4524 = vmatprep.subr.bf16.mxu1 %v15676_v25  ;;  %v15743_v25 = vld [vmem:[#allocation7 + $0x5b8] ss:$48 sps:$4 sm:$0xff]  }
 0x4e2   :  { %4525 = vmatpush1.bf16.msra.mxu1 %v15674_v27  ;;  %v15748_v27 = vld [vmem:[#allocation7 + $0x24] ss:$48 sps:$4 sm:$0xff]  }
 0x4e3   :  { %4526 = vmatprep.subr.bf16.mxu1 %v15679_v30  ;;  %v15746_v30 = vld [vmem:[#allocation7 + $0x20] ss:$48 sps:$4 sm:$0xff]  }
 0x4e6   :  { %4527 = vmatpush1.bf16.msra.mxu1 %v15677_v37  ;;  %v15751_v37 = vld [vmem:[#allocation7 + $0x84] ss:$48 sps:$4 sm:$0xff]  }
 0x4e7   :  { %4528 = vmatprep.subr.bf16.mxu1 %v15682_v39  ;;  %v15749_v39 = vld [vmem:[#allocation7 + $0x80] ss:$48 sps:$4 sm:$0xff]  }
 0x4ea   :  { %4529 = vmatpush1.bf16.msra.mxu1 %v15680_v42  ;;  %v15754_v42 = vld [vmem:[#allocation7 + $0xe4] ss:$48 sps:$4 sm:$0xff]  }
 0x4eb   :  { %4530 = vmatprep.subr.bf16.mxu1 %v15685_v43  ;;  %v15752_v43 = vld [vmem:[#allocation7 + $0xe0] ss:$48 sps:$4 sm:$0xff]  }
 0x4ee   :  { %4531 = vmatpush1.bf16.msra.mxu1 %v15683_v44  ;;  %v15757_v44 = vld [vmem:[#allocation7 + $0x144] ss:$48 sps:$4 sm:$0xff]  }
 0x4ef   :  { %4532 = vmatprep.subr.bf16.mxu1 %v15688_v45  ;;  %v15755_v45 = vld [vmem:[#allocation7 + $0x140] ss:$48 sps:$4 sm:$0xff]  }
 0x4f2   :  { %4533 = vmatpush1.bf16.msra.mxu1 %v15686_v46  ;;  %v15760_v46 = vld [vmem:[#allocation7 + $0x1a4] ss:$48 sps:$4 sm:$0xff]  }
 0x4f3   :  { %4534 = vmatprep.subr.bf16.mxu1 %v15691_v47  ;;  %v15758_v47 = vld [vmem:[#allocation7 + $0x1a0] ss:$48 sps:$4 sm:$0xff]  }
 0x4f6   :  { %4535 = vmatpush1.bf16.msra.mxu1 %v15689_v48  ;;  %v15763_v48 = vld [vmem:[#allocation7 + $0x204] ss:$48 sps:$4 sm:$0xff]  }
 0x4f7   :  { %4536 = vmatprep.subr.bf16.mxu1 %v15694_v49  ;;  %v18062_v49 = vld [vmem:[#allocation8] sm:$0xff] }
 0x4fa   :  { %4537 = vmatpush1.bf16.msra.mxu1 %v15692_v50  ;;  %v15761_v50 = vld [vmem:[#allocation7 + $0x200] ss:$48 sps:$4 sm:$0xff]  }
 0x4fb   :  { %4538 = vmatprep.subr.bf16.mxu1 %v15697_v51  ;;  %v18066_v51 = vrot.slane %v18062_v49, %v18004_v21 }
 0x4fe   :  { %4539 = vmatpush1.bf16.msra.mxu1 %v15695_v52  ;;  %v15766_v52 = vld [vmem:[#allocation7 + $0x264] ss:$48 sps:$4 sm:$0xff]  }
 0x4ff   :  { %4551 = vmatprep.subr.bf16.mxu1 %v15700_v40 }
 0x501   :  { %4541 = vmatmul.mubr.bf16.vlgmr.msra.gmra.mrb[8].mxu1 %v18030_v38 }
 0x502   :  { %4552 = vmatpush1.bf16.msra.mxu1 %v15698_v41  ;;  %4583 = vmatprep.mubr.bf16.mxu1 %v18024_v36  ;;  %v18070_v41 = vrot.slane %v18062_v49, %v18001_v19 }
 0x503   :  { %4553 = vmatprep.subr.bf16.mxu1 %v15703_v53 }
 0x506   :  { %4554 = vmatpush1.bf16.msra.mxu1 %v15701_v54 }
 0x507   :  { %4555 = vmatprep.subr.bf16.mxu1 %v15706_v55  ;;  %v15764_v55 = vld [vmem:[#allocation7 + $0x260] ss:$48 sps:$4 sm:$0xff]  }
 0x50a   :  { %4556 = vmatpush1.bf16.msra.mxu1 %v15704_v56 }
 0x50b   :  { %4557 = vmatprep.subr.bf16.mxu1 %v15709_v57 }
 0x50e   :  { %4558 = vmatpush1.bf16.msra.mxu1 %v15707_v58 }
 0x50f   :  { %4559 = vmatprep.subr.bf16.mxu1 %v15712_v59  ;;  %v15769_v59 = vld [vmem:[#allocation7 + $0x2c4] ss:$48 sps:$4 sm:$0xff]  }
 0x512   :  { %4560 = vmatpush1.bf16.msra.mxu1 %v15710_v60 }
 0x513   :  { %4561 = vmatprep.subr.bf16.mxu1 %v15715_v61 }
 0x516   :  { %4562 = vmatpush1.bf16.msra.mxu1 %v15713_v62 }
 0x517   :  { %4563 = vmatprep.subr.bf16.mxu1 %v15718_v63 }
 0x51a   :  { %4564 = vmatpush1.bf16.msra.mxu1 %v15716_v0  ;;  %v15767_v0 = vld [vmem:[#allocation7 + $0x2c0] ss:$48 sps:$4 sm:$0xff]  }
 0x51b   :  { %4565 = vmatprep.subr.bf16.mxu1 %v15721_v1  ;;  %v15772_v1 = vld [vmem:[#allocation7 + $0x324] ss:$48 sps:$4 sm:$0xff]  }
 0x51e   :  { %4566 = vmatpush1.bf16.msra.mxu1 %v15719_v2  ;;  %v18091_v2 = vld [vmem:[%s18911_s1 + $0x8] sm:$0xff] }
 0x51f   :  { %4567 = vmatprep.subr.bf16.mxu1 %v15724_v3  ;;  %v18096_v3 = vld [vmem:[%s18911_s1 + $0x20] sm:$0xff]  ;;  %183 = vrot.lane.b32.xlu1 %v18091_v2, %s17652_s30 }
 0x520   :  { %212 = vrot.lane.b32.xlu0 %v18096_v3, %s17652_s30 }
 0x522   :  { %4568 = vmatpush1.bf16.msra.mxu1 %v15722_v4  ;;  %v15770_v4 = vld [vmem:[#allocation7 + $0x320] ss:$48 sps:$4 sm:$0xff]  }
 0x523   :  { %4569 = vmatprep.subr.bf16.mxu1 %v15727_v5  ;;  %v15775_v5 = vld [vmem:[#allocation7 + $0x384] ss:$48 sps:$4 sm:$0xff]  }
 0x526   :  { %4570 = vmatpush1.bf16.msra.mxu1 %v15725_v7  ;;  %v18105_v7 = vld [vmem:[%s18911_s1 + $0x28] sm:$0xff] }
 0x527   :  { %4571 = vmatprep.subr.bf16.mxu1 %v15730_v8  ;;  %v15773_v8 = vld [vmem:[#allocation7 + $0x380] ss:$48 sps:$4 sm:$0xff]   ;;  %214 = vrot.lane.b32.xlu1 %v18105_v7, %s17652_s30 }
 0x52a   :  { %4572 = vmatpush1.bf16.msra.mxu1 %v15728_v10  ;;  %v15778_v10 = vld [vmem:[#allocation7 + $0x3e4] ss:$48 sps:$4 sm:$0xff]  }
 0x52b   :  { %4573 = vmatprep.subr.bf16.mxu1 %v15733_v11  ;;  %v15776_v11 = vld [vmem:[#allocation7 + $0x3e0] ss:$48 sps:$4 sm:$0xff]  }
 0x52e   :  { %4574 = vmatpush1.bf16.msra.mxu1 %v15731_v12  ;;  %v15781_v12 = vld [vmem:[#allocation7 + $0x444] ss:$48 sps:$4 sm:$0xff]  }
 0x52f   :  { %4575 = vmatprep.subr.bf16.mxu1 %v15736_v13  ;;  %v15779_v13 = vld [vmem:[#allocation7 + $0x440] ss:$48 sps:$4 sm:$0xff]  }
 0x532   :  { %4576 = vmatpush1.bf16.msra.mxu1 %v15734_v14  ;;  %v15784_v14 = vld [vmem:[#allocation7 + $0x4a4] ss:$48 sps:$4 sm:$0xff]  }
 0x533   :  { %4577 = vmatprep.subr.bf16.mxu1 %v15739_v15  ;;  %v15782_v15 = vld [vmem:[#allocation7 + $0x4a0] ss:$48 sps:$4 sm:$0xff]  }
 0x536   :  { %4578 = vmatpush1.bf16.msra.mxu1 %v15737_v20  ;;  %v15787_v20 = vld [vmem:[#allocation7 + $0x504] ss:$48 sps:$4 sm:$0xff]  }
 0x537   :  { %4579 = vmatprep.subr.bf16.mxu1 %v15742_v22  ;;  %v15785_v22 = vld [vmem:[#allocation7 + $0x500] ss:$48 sps:$4 sm:$0xff]  }
 0x53a   :  { %4580 = vmatpush1.bf16.msra.mxu1 %v15740_v23  ;;  %v15790_v23 = vld [vmem:[#allocation7 + $0x564] ss:$48 sps:$4 sm:$0xff]  }
 0x53b   :  { %4581 = vmatprep.subr.bf16.mxu1 %v15745_v24  ;;  %v15788_v24 = vld [vmem:[#allocation7 + $0x560] ss:$48 sps:$4 sm:$0xff]  }
 0x53e   :  { %4582 = vmatpush1.bf16.msra.mxu1 %v15743_v25  ;;  %v15793_v25 = vld [vmem:[#allocation7 + $0x5c4] ss:$48 sps:$4 sm:$0xff]  }
 0x53f   :  { %4594 = vmatprep.subr.bf16.mxu1 %v15748_v27  ;;  %v15791_v27 = vld [vmem:[#allocation7 + $0x5c0] ss:$48 sps:$4 sm:$0xff]  }
 0x541   :  { %4584 = vmatmul.mubr.bf16.vlgmr.msra.gmra.mrb[12].mxu1 %v18030_v38 }
 0x542   :  { %4595 = vmatpush1.bf16.msra.mxu1 %v15746_v30  ;;  %4626 = vmatprep.mubr.bf16.mxu1 %v18024_v36  ;;  %v15796_v30 = vld [vmem:[#allocation7 + $0x2c] ss:$48 sps:$4 sm:$0xff]  }
 0x543   :  { %4596 = vmatprep.subr.bf16.mxu1 %v15751_v37  ;;  %v15794_v37 = vld [vmem:[#allocation7 + $0x28] ss:$48 sps:$4 sm:$0xff]  }
 0x546   :  { %4597 = vmatpush1.bf16.msra.mxu1 %v15749_v39  ;;  %v15799_v39 = vld [vmem:[#allocation7 + $0x8c] ss:$48 sps:$4 sm:$0xff]  }
 0x547   :  { %4598 = vmatprep.subr.bf16.mxu1 %v15754_v42  ;;  %v15797_v42 = vld [vmem:[#allocation7 + $0x88] ss:$48 sps:$4 sm:$0xff]  }
 0x54a   :  { %4599 = vmatpush1.bf16.msra.mxu1 %v15752_v43  ;;  %v15802_v43 = vld [vmem:[#allocation7 + $0xec] ss:$48 sps:$4 sm:$0xff]  }
 0x54b   :  { %4600 = vmatprep.subr.bf16.mxu1 %v15757_v44  ;;  %v15800_v44 = vld [vmem:[#allocation7 + $0xe8] ss:$48 sps:$4 sm:$0xff]  }
 0x54e   :  { %4601 = vmatpush1.bf16.msra.mxu1 %v15755_v45  ;;  %v15805_v45 = vld [vmem:[#allocation7 + $0x14c] ss:$48 sps:$4 sm:$0xff]  }
 0x54f   :  { %4602 = vmatprep.subr.bf16.mxu1 %v15760_v46  ;;  %v15803_v46 = vld [vmem:[#allocation7 + $0x148] ss:$48 sps:$4 sm:$0xff]  }
 0x552   :  { %4603 = vmatpush1.bf16.msra.mxu1 %v15758_v47  ;;  %v160_v47 = vand.u32 127, %v154_v17 }
 0x553   :  { %4604 = vmatprep.subr.bf16.mxu1 %v15763_v48  ;;  %v15808_v48 = vld [vmem:[#allocation7 + $0x1ac] ss:$48 sps:$4 sm:$0xff]  }
 0x554   :  { %v4456_v40 = vpop.f32.mrb[0].mxu1 }
 0x555   :  { %v4458_v53 = vpop.f32.mrb[1].mxu1  ;;  %v18073_v56 = vadd.f32 %v4456_v40, %v18066_v51 }
 0x556   :  { %4605 = vmatpush1.bf16.msra.mxu1 %v15761_v50  ;;  %v4460_v54 = vpop.f32.mrb[2].mxu1  ;;  %v18079_v60 = vadd.f32 %v4458_v53, %v18070_v41  ;;  %v161_v50 = vcvt.s32.f32 %v160_v47  ;;  %v18113_v53 = vsub.s32 2, %v17998_v18  ;;  %v15827_v47 = vld [vmem:[#allocation7 + $0x448] ss:$48 sps:$4 sm:$0xff]  }
 0x557   :  { %v18076_v57 = vadd.f32 %v4460_v54, %v18066_v51  ;;  %v4462_v58 = vpop.f32.mrb[3].mxu1  ;;  %4606 = vmatprep.subr.bf16.mxu1 %v15766_v52  ;;  %v15806_v52 = vld [vmem:[#allocation7 + $0x1a8] ss:$48 sps:$4 sm:$0xff]   ;;  %v15811_v54 = vld [vmem:[#allocation7 + $0x20c] ss:$48 sps:$4 sm:$0xff]  }
 0x558   :  { %v18082_v61 = vadd.f32 %v4462_v58, %v18070_v41  ;;  %v168_v40 = vadd.f32 0.5, %v161_v50  ;;  %v18120_v17 = vrot.slane %v18062_v49, %v18113_v53  ;;  %v15830_v50 = vld [vmem:[#allocation7 + $0x4a8] ss:$48 sps:$4 sm:$0xff]  }
 0x559   :  { %v14675_v62 = vpack.c.bf16 %v18076_v57, %v18073_v56  ;;  %v3203_v57 = vld [vmem:[#allocation8 + $0x8] sm:$0xf] }
 0x55a   :  { %v14673_v63 = vpack.c.bf16 %v18082_v61, %v18079_v60  ;;  %4607 = vmatpush1.bf16.msra.mxu1 %v15764_v55  ;;  %v18116_v55 = vsub.s32 3, %v17998_v18  ;;  %v169_v58 = vmul.f32 0.125, %v168_v40  ;;  %v15833_v40 = vld [vmem:[#allocation7 + $0x508] ss:$48 sps:$4 sm:$0xff]   ;;  %v18242_v61 = vrot.slane %v3203_v57, %v18004_v21 }
 0x55b   :  { %4608 = vmatprep.subr.bf16.mxu1 %v15769_v59  ;;  %v15809_v59 = vld [vmem:[#allocation7 + $0x208] ss:$48 sps:$4 sm:$0xff]  }
 0x55e   :  { %4609 = vmatpush1.bf16.msra.mxu1 %v15767_v0  ;;  %v15814_v0 = vld [vmem:[#allocation7 + $0x26c] ss:$48 sps:$4 sm:$0xff]  }
 0x55f   :  { %4610 = vmatprep.subr.bf16.mxu1 %v15772_v1  ;;  %v157_v1 = vcvt.s32.f32 %v17998_v18 }
 0x562   :  { %4611 = vmatpush1.bf16.msra.mxu1 %v15770_v4  ;;  %v18123_v4 = vfloor.f32 %v169_v58  ;;  %v15836_v58 = vld [vmem:[#allocation7 + $0x568] ss:$48 sps:$4 sm:$0xff]  }
 0x563   :  { %4612 = vmatprep.subr.bf16.mxu1 %v15775_v5 }
 0x564   :  { %vm18130_vm0 = vcmp.eq.f32.partialorder %v18123_v4, %v157_v1 }
 0x566   :  { %4613 = vmatpush1.bf16.msra.mxu1 %v15773_v8  ;;  %v18127_v8 = vrot.slane %v18062_v49, %v18116_v55 }
 0x567   :  { %4614 = vmatprep.subr.bf16.mxu1 %v15778_v10 }
 0x56a   :  { %4615 = vmatpush1.bf16.msra.mxu1 %v15776_v11  ;;  %v12806_v11 = vld [vmem:[%s18920_s10] sm:$0xff] }
 0x56b   :  { %4616 = vmatprep.subr.bf16.mxu1 %v15781_v12 }
 0x56e   :  { %4617 = vmatpush1.bf16.msra.mxu1 %v15779_v13  ;;  %v15812_v13 = vld [vmem:[#allocation7 + $0x268] ss:$48 sps:$4 sm:$0xff]  }
 0x56f   :  { %4618 = vmatprep.subr.bf16.mxu1 %v15784_v14 }
 0x572   :  { %4619 = vmatpush1.bf16.msra.mxu1 %v15782_v15 }
 0x573   :  { %4620 = vmatprep.subr.bf16.mxu1 %v15787_v20 }
 0x576   :  { %4621 = vmatpush1.bf16.msra.mxu1 %v15785_v22  ;;  %v15817_v22 = vld [vmem:[#allocation7 + $0x2cc] ss:$48 sps:$4 sm:$0xff]  }
 0x577   :  { %4622 = vmatprep.subr.bf16.mxu1 %v15790_v23 }
 0x57a   :  { %4623 = vmatpush1.bf16.msra.mxu1 %v15788_v24 }
 0x57b   :  { %4624 = vmatprep.subr.bf16.mxu1 %v15793_v25 }
 0x57e   :  { %4625 = vmatpush1.bf16.msra.mxu1 %v15791_v27 }
 0x57f   :  { %4637 = vmatprep.subr.bf16.mxu1 %v15796_v30  ;;  %v15815_v30 = vld [vmem:[#allocation7 + $0x2c8] ss:$48 sps:$4 sm:$0xff]  }
 0x581   :  { %4627 = vmatmul.mubr.bf16.vlgmr.msra.gmra.mrb[16].mxu1 %v18030_v38 }
 0x582   :  { %4638 = vmatpush1.bf16.msra.mxu1 %v15794_v37  ;;  %4669 = vmatprep.mubr.bf16.mxu1 %v18024_v36  ;;  %v15820_v37 = vld [vmem:[#allocation7 + $0x32c] ss:$48 sps:$4 sm:$0xff]  }
 0x583   :  { %4639 = vmatprep.subr.bf16.mxu1 %v15799_v39  ;;  %v15818_v39 = vld [vmem:[#allocation7 + $0x328] ss:$48 sps:$4 sm:$0xff]  }
 0x586   :  { %4640 = vmatpush1.bf16.msra.mxu1 %v15797_v42  ;;  %v15823_v42 = vld [vmem:[#allocation7 + $0x38c] ss:$48 sps:$4 sm:$0xff]  }
 0x587   :  { %4641 = vmatprep.subr.bf16.mxu1 %v15802_v43  ;;  %v15821_v43 = vld [vmem:[#allocation7 + $0x388] ss:$48 sps:$4 sm:$0xff]  }
 0x58a   :  { %4642 = vmatpush1.bf16.msra.mxu1 %v15800_v44  ;;  %v15826_v44 = vld [vmem:[#allocation7 + $0x3ec] ss:$48 sps:$4 sm:$0xff]  }
 0x58b   :  { %4643 = vmatprep.subr.bf16.mxu1 %v15805_v45  ;;  %v15824_v45 = vld [vmem:[#allocation7 + $0x3e8] ss:$48 sps:$4 sm:$0xff]  }
 0x58e   :  { %4644 = vmatpush1.bf16.msra.mxu1 %v15803_v46  ;;  %v15829_v46 = vld [vmem:[#allocation7 + $0x44c] ss:$48 sps:$4 sm:$0xff]  }
 0x58f   :  { %4645 = vmatprep.subr.bf16.mxu1 %v15808_v48  ;;  %v15832_v48 = vld [vmem:[#allocation7 + $0x4ac] ss:$48 sps:$4 sm:$0xff]  }
 0x592   :  { %4646 = vmatpush1.bf16.msra.mxu1 %v15806_v52  ;;  %v15835_v52 = vld [vmem:[#allocation7 + $0x50c] ss:$48 sps:$4 sm:$0xff]  }
 0x593   :  { %4647 = vmatprep.subr.bf16.mxu1 %v15811_v54  ;;  %v15838_v54 = vld [vmem:[#allocation7 + $0x56c] ss:$48 sps:$4 sm:$0xff]  }
 0x594   :  { %v4499_v5 = vpop.f32.mrb[4].mxu1 }
 0x595   :  { %v4501_v10 = vpop.f32.mrb[5].mxu1  ;;  %v18135_v14 = vadd.f32 %v4499_v5, %v18120_v17  ;;  %v17661_v5 = vmov 0.0  }
 0x596   :  { %v4503_v12 = vpop.f32.mrb[6].mxu1  ;;  %4648 = vmatpush1.bf16.msra.mxu1 %v15809_v59  ;;  %v18141_v23 = vadd.f32 %v4501_v10, %v18127_v8  ;;  %v15841_v59 = vld [vmem:[#allocation7 + $0x5cc] ss:$48 sps:$4 sm:$0xff]   ;;  %v156_v10 = vadd.s32 8, %v17998_v18 }
 0x597   :  { %v18138_v15 = vadd.f32 %v4503_v12, %v18120_v17  ;;  %v4505_v20 = vpop.f32.mrb[7].mxu1  ;;  %4649 = vmatprep.subr.bf16.mxu1 %v15814_v0  ;;  %v15839_v0 = vld [vmem:[#allocation7 + $0x5c8] ss:$48 sps:$4 sm:$0xff]   ;;  %v162_v12 = vadd.f32 0.5, %v157_v1 }
 0x598   :  { %v18144_v24 = vadd.f32 %v4505_v20, %v18127_v8 }
 0x599   :  { %v14679_v25 = vpack.c.bf16 %v18138_v15, %v18135_v14  ;;  %v164_v20 = vmul.f32 0.125, %v162_v12 }
 0x59a   :  { %v14677_v27 = vpack.c.bf16 %v18144_v24, %v18141_v23  ;;  %4650 = vmatpush1.bf16.msra.mxu1 %v15812_v13  ;;  %v158_v13 = vcvt.s32.f32 %v156_v10 }
 0x59b   :  { %4651 = vmatprep.subr.bf16.mxu1 %v15817_v22 }
 0x59c   :  { %v163_v22 = vadd.f32 0.5, %v158_v13 }
 0x59e   :  { %4652 = vmatpush1.bf16.msra.mxu1 %v15815_v30  ;;  %v3420_v30 = vsub.s32 4, %v17998_v18 }
 0x59f   :  { %4653 = vmatprep.subr.bf16.mxu1 %v15820_v37  ;;  %v3424_v37 = vsub.s32 5, %v17998_v18 }
 0x5a2   :  { %4654 = vmatpush1.bf16.msra.mxu1 %v15818_v39  ;;  %v166_v39 = vfloor.f32 %v164_v20 }
 0x5a3   :  { %4655 = vmatprep.subr.bf16.mxu1 %v15823_v42  ;;  %v165_v42 = vmul.f32 0.125, %v163_v22 }
 0x5a4   :  { %vm171_vm1 = vcmp.eq.f32.partialorder %v166_v39, %v18123_v4 }
 0x5a5   :  { %v167_v1 = vfloor.f32 %v165_v42 }
 0x5a6   :  { %4656 = vmatpush1.bf16.msra.mxu1 %v15821_v43  ;;  %v18156_v43 = vrot.slane %v18062_v49, %v3420_v30 }
 0x5a7   :  { %4657 = vmatprep.subr.bf16.mxu1 %v15826_v44  ;;  %vm172_vm3 = vcmp.eq.f32.partialorder %v167_v1, %v18123_v4  ;;  %v3428_v4 = vsub.s32 6, %v17998_v18 }
 0x5a8   :  { %v18176_v22 = vsel %vm172_vm3, 1.0, %v17661_v5 }
 0x5a9   :  { %v18192_v39 = vrot.slane %v18062_v49, %v3428_v4 }
 0x5aa   :  { %4658 = vmatpush1.bf16.msra.mxu1 %v15824_v45  ;;  %v18159_v45 = vrot.slane %v18062_v49, %v3424_v37  ;;  %v3432_v37 = vsub.s32 7, %v17998_v18 }
 0x5ab   :  { %4659 = vmatprep.subr.bf16.mxu1 %v15829_v46  ;;  %v198_v46 = vpop.permute.xlu0 %197 }
 0x5ac   :  { %v203_v10 = vsel %vm187_vm2, %v18042_v6, %v198_v46  ;;  %v18195_v42 = vrot.slane %v18062_v49, %v3432_v37  ;;  %v182_v49 = vpop.permute.xlu1 %181 }
 0x5ae   :  { %4660 = vmatpush1.bf16.msra.mxu1 %v15827_v47 }
 0x5af   :  { %4661 = vmatprep.subr.bf16.mxu1 %v15832_v48  ;;  %v200_v13 = vpop.permute.xlu0 %199 }
 0x5b0   :  { %v204_v30 = vsel %vm187_vm2, %v18049_v9, %v200_v13 }
 0x5b1   :  { %v18183_v6 = vmul.f32 %v18176_v22, %v204_v30 }
 0x5b2   :  { %4662 = vmatpush1.bf16.msra.mxu1 %v15830_v50 }
 0x5b3   :  { %4663 = vmatprep.subr.bf16.mxu1 %v15835_v52  ;;  %v213_v15 = vpop.permute.xlu0 %212 }
 0x5b6   :  { %4664 = vmatpush1.bf16.msra.mxu1 %v15833_v40 }
 0x5b7   :  { %4665 = vmatprep.subr.bf16.mxu1 %v15838_v54 }
 0x5ba   :  { %4666 = vmatpush1.bf16.msra.mxu1 %v15836_v58 }
 0x5bb   :  { %4667 = vmatprep.subr.bf16.mxu1 %v15841_v59 }
 0x5be   :  { %4668 = vmatpush1.bf16.msra.mxu1 %v15839_v0  ;;  %v18167_v0 = vsel %vm171_vm1, 1.0, %v17661_v5 }
 0x5bf   :  { %v18173_v20 = vmul.f32 %v18167_v0, %v203_v10 }
 0x5c1   :  { %4670 = vmatmul.mubr.bf16.vlgmr.msra.gmra.mrb[20].mxu1 %v18030_v38 }
 0x5c2   :  { %4751 = vmatprep.mubr.f32.mxu1 %v17661_v5 }
 0x5d4   :  { %v4542_v44 = vpop.f32.mrb[8].mxu1 }
 0x5d5   :  { %v4544_v47 = vpop.f32.mrb[9].mxu1  ;;  %v4543_v50 = vadd.f32 %v4542_v44, %v18156_v43 }
 0x5d6   :  { %v4546_v48 = vpop.f32.mrb[10].mxu1  ;;  %v4545_v54 = vadd.f32 %v4544_v47, %v18159_v45 }
 0x5d7   :  { %v4547_v52 = vadd.f32 %v4546_v48, %v18156_v43  ;;  %v4548_v40 = vpop.f32.mrb[11].mxu1 }
 0x5d8   :  { %v4549_v58 = vadd.f32 %v4548_v40, %v18159_v45 }
 0x5d9   :  { %v14667_v59 = vpack.c.bf16 %v4547_v52, %v4543_v50 }
 0x5da   :  { %v14665_v12 = vpack.c.bf16 %v4549_v58, %v4545_v54  ;;  %v188_v54 = vsel %vm187_vm2, %v18056_v16, %v182_v49  ;;  %v184_v58 = vpop.permute.xlu1 %183  ;;  %v15842_v49 = vld [vmem:[#allocation10] ss:$16 sps:$4 sm:$0xff]  }
 0x5db   :  { %v18218_v60 = vmul.f32 %v18167_v0, %v188_v54  ;;  %v189_v56 = vsel %vm187_vm2, %v18091_v2, %v184_v58  ;;  %v15847_v54 = vld [vmem:[#allocation10 + $0x24] ss:$16 sps:$4 sm:$0xff]   ;;  %v15845_v58 = vld [vmem:[#allocation10 + $0x20] ss:$16 sps:$4 sm:$0xff]  }
 0x5dc   :  { %14666 = vmatprep.subr.bf16.mxu1 %v14665_v12  ;;  %v18226_v16 = vmul.f32 %v18176_v22, %v189_v56  ;;  %v218_v12 = vsel %vm187_vm2, %v18096_v3, %v213_v15  ;;  %v18268_v3 = vrot.slane %v3203_v57, %v18113_v53  ;;  %v15850_v56 = vld [vmem:[#allocation10 + $0x44] ss:$16 sps:$4 sm:$0xff]   ;;  %v15854_v15 = vld [vmem:[#allocation10 + $0x80] ss:$16 sps:$4 sm:$0xff]  }
 0x5dd   :  { %14668 = vmatpush1.bf16.msra.mxu1 %v14667_v59  ;;  %v18254_v4 = vmul.f32 %v18167_v0, %v218_v12  ;;  %v15868_v12 = vld [vmem:[#allocation10 + $0x104] ss:$16 sps:$4 sm:$0xff]  }
 0x5de   :  { %v215_v30 = vpop.permute.xlu1 %214 }
 0x5df   :  { %v219_v37 = vsel %vm187_vm2, %v18105_v7, %v215_v30  ;;  %v15871_v30 = vld [vmem:[#allocation10 + $0x124] ss:$16 sps:$4 sm:$0xff]  }
 0x5e0   :  { %13655 = vmatmul.mubr.msk.f32.vlgmr.msra.gmra.mrb[24].mxu1 %vm4680_vm4, %v18173_v20 }
 0x5e1   :  { %4757 = vmatprep.mubr.f32.mxu1 %v17661_v5 }
 0x5e4   :  { %13656 = vmatmul.mubr.msk.f32.gmra.mrb[26].mxu1 %vm4680_vm4, %v18183_v6 }
 0x5e5   :  { %4828 = vmatprep.mubr.f32.mxu1 %v17661_v5 }
 0x614   :  { %v4585_v9 = vpop.f32.mrb[12].mxu1 }
 0x615   :  { %v4587_v44 = vpop.f32.mrb[13].mxu1  ;;  %v4586_v47 = vadd.f32 %v4585_v9, %v18192_v39  ;;  %v18261_v9 = vmul.f32 %v18176_v22, %v219_v37  ;;  %v15869_v37 = vld [vmem:[#allocation10 + $0x120] ss:$16 sps:$4 sm:$0xff]  }
 0x616   :  { %v4589_v46 = vpop.f32.mrb[14].mxu1  ;;  %v4588_v50 = vadd.f32 %v4587_v44, %v18195_v42  ;;  %v18271_v44 = vrot.slane %v3203_v57, %v18116_v55 }
 0x617   :  { %v4590_v48 = vadd.f32 %v4589_v46, %v18192_v39  ;;  %v4591_v1 = vpop.f32.mrb[15].mxu1 }
 0x618   :  { %v4592_v52 = vadd.f32 %v4591_v1, %v18195_v42 }
 0x619   :  { %v14671_v40 = vpack.c.bf16 %v4590_v48, %v4586_v47 }
 0x61a   :  { %v14669_v18 = vpack.c.bf16 %v4592_v52, %v4588_v50 }
 0x61c   :  { %14670 = vmatprep.subr.bf16.mxu1 %v14669_v18  ;;  %v15844_v18 = vld [vmem:[#allocation10 + $0x4] ss:$16 sps:$4 sm:$0xff]  }
 0x61d   :  { %14672 = vmatpush1.bf16.msra.mxu1 %v14671_v40 }
 0x61e   :  { %14674 = vmatprep.subr.bf16.mxu1 %v14673_v63  ;;  %v18245_v63 = vrot.slane %v3203_v57, %v18001_v19  ;;  %v15848_v57 = vld [vmem:[#allocation10 + $0x40] ss:$16 sps:$4 sm:$0xff]  }
 0x620   :  { %13657 = vmatmul.mubr.msk.f32.vlgmr.msra.gmra.mrb[28].mxu1 %vm4680_vm4, %v18173_v20 }
 0x621   :  { %14676 = vmatpush1.bf16.msra.mxu1 %v14675_v62  ;;  %4834 = vmatprep.mubr.f32.mxu1 %v17661_v5 }
 0x622   :  { %14678 = vmatprep.subr.bf16.mxu1 %v14677_v27 }
 0x624   :  { %13658 = vmatmul.mubr.msk.f32.gmra.mrb[30].mxu1 %vm4680_vm4, %v18183_v6 }
 0x625   :  { %4911 = vmatprep.mubr.f32.mxu1 %v17661_v5 }
 0x628   :  { %13659 = vmatmul.mubr.msk.f32.vlgmr.msra.gmra.mrb[24].mxu1 %vm4680_vm4, %v18218_v60 }
 0x629   :  { %14680 = vmatpush1.bf16.msra.mxu1 %v14679_v25  ;;  %4917 = vmatprep.mubr.f32.mxu1 %v17661_v5 }
 0x62c   :  { %13660 = vmatmul.mubr.msk.f32.gmra.mrb[26].mxu1 %vm4680_vm4, %v18226_v16 }
 0x62d   :  { %4988 = vmatprep.mubr.f32.mxu1 %v17661_v5 }
 0x630   :  { %13661 = vmatmul.mubr.msk.f32.vlgmr.msra.gmra.mrb[28].mxu1 %vm4680_vm4, %v18218_v60 }
 0x631   :  { %4994 = vmatprep.mubr.f32.mxu1 %v17661_v5 }
 0x634   :  { %13662 = vmatmul.mubr.msk.f32.gmra.mrb[30].mxu1 %vm4680_vm4, %v18226_v16 }
 0x635   :  { %5071 = vmatprep.mubr.f32.mxu1 %v17661_v5 }
 0x654   :  { %v4628_v62 = vpop.f32.mrb[16].mxu1 }
 0x655   :  { %v4630_v2 = vpop.f32.mrb[17].mxu1  ;;  %v4629_v23 = vadd.f32 %v4628_v62, %v18242_v61  ;;  %v15853_v62 = vld [vmem:[#allocation10 + $0x64] ss:$16 sps:$4 sm:$0xff]  }
 0x656   :  { %v4632_v14 = vpop.f32.mrb[18].mxu1  ;;  %v4631_v27 = vadd.f32 %v4630_v2, %v18245_v63  ;;  %v15851_v2 = vld [vmem:[#allocation10 + $0x60] ss:$16 sps:$4 sm:$0xff]  }
 0x657   :  { %v4633_v24 = vadd.f32 %v4632_v14, %v18242_v61  ;;  %v4634_v25 = vpop.f32.mrb[19].mxu1  ;;  %v15856_v14 = vld [vmem:[#allocation10 + $0x84] ss:$16 sps:$4 sm:$0xff]  }
 0x658   :  { %v4635_v59 = vadd.f32 %v4634_v25, %v18245_v63  ;;  %v15862_v25 = vld [vmem:[#allocation10 + $0xc4] ss:$16 sps:$4 sm:$0xff]  }
 0x659   :  { %v14683_v10 = vpack.c.bf16 %v4633_v24, %v4629_v23  ;;  %v15859_v23 = vld [vmem:[#allocation10 + $0xa4] ss:$16 sps:$4 sm:$0xff]   ;;  %v15857_v24 = vld [vmem:[#allocation10 + $0xa0] ss:$16 sps:$4 sm:$0xff]  }
 0x65a   :  { %v14681_v13 = vpack.c.bf16 %v4635_v59, %v4631_v27  ;;  %v15860_v27 = vld [vmem:[#allocation10 + $0xc0] ss:$16 sps:$4 sm:$0xff]   ;;  %v15865_v59 = vld [vmem:[#allocation10 + $0xe4] ss:$16 sps:$4 sm:$0xff]  }
 0x65c   :  { %14682 = vmatprep.subr.bf16.mxu1 %v14681_v13  ;;  %v15866_v13 = vld [vmem:[#allocation10 + $0x100] ss:$16 sps:$4 sm:$0xff]  }
 0x65d   :  { %14684 = vmatpush1.bf16.msra.mxu1 %v14683_v10  ;;  %v15863_v10 = vld [vmem:[#allocation10 + $0xe0] ss:$16 sps:$4 sm:$0xff]  }
 0x660   :  { %13663 = vmatmul.mubr.msk.f32.vlgmr.msra.gmra.mrb[24].mxu1 %vm4680_vm4, %v18254_v4 }
 0x661   :  { %5077 = vmatprep.mubr.f32.mxu1 %v17661_v5 }
 0x664   :  { %13664 = vmatmul.mubr.msk.f32.gmra.mrb[26].mxu1 %vm4680_vm4, %v18261_v9 }
 0x665   :  { %5148 = vmatprep.mubr.f32.mxu1 %v17661_v5 }
 0x694   :  { %v4671_v0 = vpop.f32.mrb[20].mxu1 }
 0x695   :  { %v4673_v7 = vpop.f32.mrb[21].mxu1  ;;  %v4672_v47 = vadd.f32 %v4671_v0, %v18268_v3  ;;  %v15874_v0 = vld [vmem:[#allocation10 + $0x144] ss:$16 sps:$4 sm:$0xff]  }
 0x696   :  { %v4675_v46 = vpop.f32.mrb[22].mxu1  ;;  %v4674_v1 = vadd.f32 %v4673_v7, %v18271_v44  ;;  %v15872_v7 = vld [vmem:[#allocation10 + $0x140] ss:$16 sps:$4 sm:$0xff]  }
 0x697   :  { %v4676_v22 = vadd.f32 %v4675_v46, %v18268_v3  ;;  %v4677_v48 = vpop.f32.mrb[23].mxu1  ;;  %v15877_v46 = vld [vmem:[#allocation10 + $0x164] ss:$16 sps:$4 sm:$0xff]  }
 0x698   :  { %v4678_v50 = vadd.f32 %v4677_v48, %v18271_v44  ;;  %v15878_v48 = vld [vmem:[#allocation10 + $0x180] ss:$16 sps:$4 sm:$0xff]  }
 0x699   :  { %v14687_v52 = vpack.c.bf16 %v4676_v22, %v4672_v47  ;;  %v15875_v47 = vld [vmem:[#allocation10 + $0x160] ss:$16 sps:$4 sm:$0xff]   ;;  %v15880_v22 = vld [vmem:[#allocation10 + $0x184] ss:$16 sps:$4 sm:$0xff]  }
 0x69a   :  { %v14685_v40 = vpack.c.bf16 %v4678_v50, %v4674_v1  ;;  %v15883_v1 = vld [vmem:[#allocation10 + $0x1a4] ss:$16 sps:$4 sm:$0xff]   ;;  %v15881_v50 = vld [vmem:[#allocation10 + $0x1a0] ss:$16 sps:$4 sm:$0xff]  }
 0x69c   :  { %14686 = vmatprep.subr.bf16.mxu1 %v14685_v40  ;;  %v15884_v40 = vld [vmem:[#allocation10 + $0x1c0] ss:$16 sps:$4 sm:$0xff]  }
 0x69d   :  { %14688 = vmatpush1.bf16.msra.mxu1 %v14687_v52  ;;  %v15886_v52 = vld [vmem:[#allocation10 + $0x1c4] ss:$16 sps:$4 sm:$0xff]  }
 0x69e   :  { %5553 = vmatprep.subr.bf16.mxu1 %v15844_v18  ;;  %v15889_v18 = vld [vmem:[#allocation10 + $0x1e4] ss:$16 sps:$4 sm:$0xff]  }
 0x6a0   :  { %13665 = vmatmul.mubr.msk.f32.vlgmr.msra.gmra.mrb[28].mxu1 %vm4680_vm4, %v18254_v4 }
 0x6a1   :  { %5554 = vmatpush1.bf16.msra.mxu1 %v15842_v49  ;;  %5154 = vmatprep.mubr.f32.mxu1 %v17661_v5  ;;  %v15887_v49 = vld [vmem:[#allocation10 + $0x1e0] ss:$16 sps:$4 sm:$0xff]  }
 0x6a2   :  { %5555 = vmatprep.subr.bf16.mxu1 %v15847_v54  ;;  %v15892_v54 = vld [vmem:[#allocation10 + $0xc] ss:$16 sps:$4 sm:$0xff]  }
 0x6a4   :  { %13666 = vmatmul.mubr.msk.f32.gmra.mrb[30].mxu1 %vm4680_vm4, %v18261_v9 }
 0x6a5   :  { %5556 = vmatpush1.bf16.msra.mxu1 %v15845_v58  ;;  %5585 = vmatprep.mubr.bf16.mxu1 %v18024_v36  ;;  %v15890_v58 = vld [vmem:[#allocation10 + $0x8] ss:$16 sps:$4 sm:$0xff]  }
 0x6a6   :  { %5557 = vmatprep.subr.bf16.mxu1 %v15850_v56  ;;  %v15895_v56 = vld [vmem:[#allocation10 + $0x2c] ss:$16 sps:$4 sm:$0xff]  }
 0x6a9   :  { %5558 = vmatpush1.bf16.msra.mxu1 %v15848_v57  ;;  %v15893_v57 = vld [vmem:[#allocation10 + $0x28] ss:$16 sps:$4 sm:$0xff]  }
 0x6aa   :  { %5559 = vmatprep.subr.bf16.mxu1 %v15853_v62  ;;  %v15898_v62 = vld [vmem:[#allocation10 + $0x4c] ss:$16 sps:$4 sm:$0xff]  }
 0x6ad   :  { %5560 = vmatpush1.bf16.msra.mxu1 %v15851_v2  ;;  %v15896_v2 = vld [vmem:[#allocation10 + $0x48] ss:$16 sps:$4 sm:$0xff]  }
 0x6ae   :  { %5561 = vmatprep.subr.bf16.mxu1 %v15856_v14  ;;  %v15901_v14 = vld [vmem:[#allocation10 + $0x6c] ss:$16 sps:$4 sm:$0xff]  }
 0x6b1   :  { %5562 = vmatpush1.bf16.msra.mxu1 %v15854_v15  ;;  %v15899_v15 = vld [vmem:[#allocation10 + $0x68] ss:$16 sps:$4 sm:$0xff]  }
 0x6b2   :  { %5563 = vmatprep.subr.bf16.mxu1 %v15859_v23  ;;  %v15904_v23 = vld [vmem:[#allocation10 + $0x8c] ss:$16 sps:$4 sm:$0xff]  }
 0x6b5   :  { %5564 = vmatpush1.bf16.msra.mxu1 %v15857_v24  ;;  %v15902_v24 = vld [vmem:[#allocation10 + $0x88] ss:$16 sps:$4 sm:$0xff]  }
 0x6b6   :  { %5565 = vmatprep.subr.bf16.mxu1 %v15862_v25  ;;  %v15907_v25 = vld [vmem:[#allocation10 + $0xac] ss:$16 sps:$4 sm:$0xff]  }
 0x6b9   :  { %5566 = vmatpush1.bf16.msra.mxu1 %v15860_v27  ;;  %v15905_v27 = vld [vmem:[#allocation10 + $0xa8] ss:$16 sps:$4 sm:$0xff]  }
 0x6ba   :  { %5567 = vmatprep.subr.bf16.mxu1 %v15865_v59  ;;  %v15910_v59 = vld [vmem:[#allocation10 + $0xcc] ss:$16 sps:$4 sm:$0xff]  }
 0x6bd   :  { %5568 = vmatpush1.bf16.msra.mxu1 %v15863_v10  ;;  %v15908_v10 = vld [vmem:[#allocation10 + $0xc8] ss:$16 sps:$4 sm:$0xff]  }
 0x6be   :  { %5569 = vmatprep.subr.bf16.mxu1 %v15868_v12  ;;  %v15913_v12 = vld [vmem:[#allocation10 + $0xec] ss:$16 sps:$4 sm:$0xff]  }
 0x6c1   :  { %5570 = vmatpush1.bf16.msra.mxu1 %v15866_v13  ;;  %v15911_v13 = vld [vmem:[#allocation10 + $0xe8] ss:$16 sps:$4 sm:$0xff]  }
 0x6c2   :  { %5571 = vmatprep.subr.bf16.mxu1 %v15871_v30  ;;  %v15916_v30 = vld [vmem:[#allocation10 + $0x10c] ss:$16 sps:$4 sm:$0xff]  }
 0x6c5   :  { %5572 = vmatpush1.bf16.msra.mxu1 %v15869_v37  ;;  %v15914_v37 = vld [vmem:[#allocation10 + $0x108] ss:$16 sps:$4 sm:$0xff]  }
 0x6c6   :  { %5573 = vmatprep.subr.bf16.mxu1 %v15874_v0  ;;  %v15919_v0 = vld [vmem:[#allocation10 + $0x12c] ss:$16 sps:$4 sm:$0xff]  }
 0x6c9   :  { %5574 = vmatpush1.bf16.msra.mxu1 %v15872_v7  ;;  %v15917_v7 = vld [vmem:[#allocation10 + $0x128] ss:$16 sps:$4 sm:$0xff]  }
 0x6ca   :  { %5575 = vmatprep.subr.bf16.mxu1 %v15877_v46  ;;  %v15922_v46 = vld [vmem:[#allocation10 + $0x14c] ss:$16 sps:$4 sm:$0xff]  }
 0x6cd   :  { %5576 = vmatpush1.bf16.msra.mxu1 %v15875_v47  ;;  %v15920_v47 = vld [vmem:[#allocation10 + $0x148] ss:$16 sps:$4 sm:$0xff]  }
 0x6ce   :  { %5577 = vmatprep.subr.bf16.mxu1 %v15880_v22  ;;  %v15925_v22 = vld [vmem:[#allocation10 + $0x16c] ss:$16 sps:$4 sm:$0xff]  }
 0x6d1   :  { %5578 = vmatpush1.bf16.msra.mxu1 %v15878_v48  ;;  %v15923_v48 = vld [vmem:[#allocation10 + $0x168] ss:$16 sps:$4 sm:$0xff]  }
 0x6d2   :  { %5579 = vmatprep.subr.bf16.mxu1 %v15883_v1  ;;  %v15928_v1 = vld [vmem:[#allocation10 + $0x18c] ss:$16 sps:$4 sm:$0xff]  }
 0x6d5   :  { %5580 = vmatpush1.bf16.msra.mxu1 %v15881_v50  ;;  %v15926_v50 = vld [vmem:[#allocation10 + $0x188] ss:$16 sps:$4 sm:$0xff]  }
 0x6d6   :  { %5581 = vmatprep.subr.bf16.mxu1 %v15886_v52  ;;  %v15931_v52 = vld [vmem:[#allocation10 + $0x1ac] ss:$16 sps:$4 sm:$0xff]  }
 0x6d9   :  { %5582 = vmatpush1.bf16.msra.mxu1 %v15884_v40  ;;  %v15929_v40 = vld [vmem:[#allocation10 + $0x1a8] ss:$16 sps:$4 sm:$0xff]  }
 0x6da   :  { %5583 = vmatprep.subr.bf16.mxu1 %v15889_v18  ;;  %v15934_v18 = vld [vmem:[#allocation10 + $0x1cc] ss:$16 sps:$4 sm:$0xff]  }
 0x6dd   :  { %5584 = vmatpush1.bf16.msra.mxu1 %v15887_v49  ;;  %v15932_v49 = vld [vmem:[#allocation10 + $0x1c8] ss:$16 sps:$4 sm:$0xff]  }
 0x6de   :  { %5596 = vmatprep.subr.bf16.mxu1 %v15892_v54  ;;  %v15937_v54 = vld [vmem:[#allocation10 + $0x1ec] ss:$16 sps:$4 sm:$0xff]  }
 0x6e0   :  { %5586 = vmatmul.mubr.bf16.vlgmr.msra.gmra.mrb[32].mxu1 %v18030_v38 }
 0x6e1   :  { %5597 = vmatpush1.bf16.msra.mxu1 %v15890_v58  ;;  %5628 = vmatprep.mubr.bf16.mxu1 %v18024_v36  ;;  %v15935_v58 = vld [vmem:[#allocation10 + $0x1e8] ss:$16 sps:$4 sm:$0xff]  }
 0x6e2   :  { %5598 = vmatprep.subr.bf16.mxu1 %v15895_v56  ;;  %v15940_v56 = vld [vmem:[#allocation13 + $0x404] ss:$16 sps:$4 sm:$0xff]  }
 0x6e5   :  { %5599 = vmatpush1.bf16.msra.mxu1 %v15893_v57  ;;  %v15938_v57 = vld [vmem:[#allocation13 + $0x400] ss:$16 sps:$4 sm:$0xff]  }
 0x6e6   :  { %5600 = vmatprep.subr.bf16.mxu1 %v15898_v62  ;;  %v15943_v62 = vld [vmem:[#allocation13 + $0x424] ss:$16 sps:$4 sm:$0xff]  }
 0x6e9   :  { %5601 = vmatpush1.bf16.msra.mxu1 %v15896_v2  ;;  %v15941_v2 = vld [vmem:[#allocation13 + $0x420] ss:$16 sps:$4 sm:$0xff]  }
 0x6ea   :  { %5602 = vmatprep.subr.bf16.mxu1 %v15901_v14  ;;  %v15946_v14 = vld [vmem:[#allocation13 + $0x444] ss:$16 sps:$4 sm:$0xff]  }
 0x6ed   :  { %5603 = vmatpush1.bf16.msra.mxu1 %v15899_v15  ;;  %v15944_v15 = vld [vmem:[#allocation13 + $0x440] ss:$16 sps:$4 sm:$0xff]  }
 0x6ee   :  { %5604 = vmatprep.subr.bf16.mxu1 %v15904_v23  ;;  %v15949_v23 = vld [vmem:[#allocation13 + $0x464] ss:$16 sps:$4 sm:$0xff]  }
 0x6f1   :  { %5605 = vmatpush1.bf16.msra.mxu1 %v15902_v24  ;;  %v15947_v24 = vld [vmem:[#allocation13 + $0x460] ss:$16 sps:$4 sm:$0xff]  }
 0x6f2   :  { %5606 = vmatprep.subr.bf16.mxu1 %v15907_v25  ;;  %v15952_v25 = vld [vmem:[#allocation13 + $0x484] ss:$16 sps:$4 sm:$0xff]  }
 0x6f5   :  { %5607 = vmatpush1.bf16.msra.mxu1 %v15905_v27  ;;  %v15950_v27 = vld [vmem:[#allocation13 + $0x480] ss:$16 sps:$4 sm:$0xff]  }
 0x6f6   :  { %5608 = vmatprep.subr.bf16.mxu1 %v15910_v59  ;;  %v15955_v59 = vld [vmem:[#allocation13 + $0x4a4] ss:$16 sps:$4 sm:$0xff]  }
 0x6f9   :  { %5609 = vmatpush1.bf16.msra.mxu1 %v15908_v10  ;;  %v15953_v10 = vld [vmem:[#allocation13 + $0x4a0] ss:$16 sps:$4 sm:$0xff]  }
 0x6fa   :  { %5610 = vmatprep.subr.bf16.mxu1 %v15913_v12  ;;  %v15958_v12 = vld [vmem:[#allocation13 + $0x4c4] ss:$16 sps:$4 sm:$0xff]  }
 0x6fd   :  { %5611 = vmatpush1.bf16.msra.mxu1 %v15911_v13 }
 0x6fe   :  { %5612 = vmatprep.subr.bf16.mxu1 %v15916_v30 }
 0x701   :  { %5613 = vmatpush1.bf16.msra.mxu1 %v15914_v37  ;;  %v15956_v37 = vld [vmem:[#allocation13 + $0x4c0] ss:$16 sps:$4 sm:$0xff]  }
 0x702   :  { %5614 = vmatprep.subr.bf16.mxu1 %v15919_v0  ;;  %v15961_v0 = vld [vmem:[#allocation13 + $0x4e4] ss:$16 sps:$4 sm:$0xff]  }
 0x705   :  { %5615 = vmatpush1.bf16.msra.mxu1 %v15917_v7 }
 0x706   :  { %5616 = vmatprep.subr.bf16.mxu1 %v15922_v46 }
 0x709   :  { %5617 = vmatpush1.bf16.msra.mxu1 %v15920_v47  ;;  %v15959_v47 = vld [vmem:[#allocation13 + $0x4e0] ss:$16 sps:$4 sm:$0xff]  }
 0x70a   :  { %5618 = vmatprep.subr.bf16.mxu1 %v15925_v22  ;;  %v15964_v22 = vld [vmem:[#allocation13 + $0x504] ss:$16 sps:$4 sm:$0xff]  }
 0x70d   :  { %5619 = vmatpush1.bf16.msra.mxu1 %v15923_v48  ;;  %v15962_v48 = vld [vmem:[#allocation13 + $0x500] ss:$16 sps:$4 sm:$0xff]  }
 0x70e   :  { %5620 = vmatprep.subr.bf16.mxu1 %v15928_v1  ;;  %v15967_v1 = vld [vmem:[#allocation13 + $0x524] ss:$16 sps:$4 sm:$0xff]  }
 0x711   :  { %5621 = vmatpush1.bf16.msra.mxu1 %v15926_v50  ;;  %v15965_v50 = vld [vmem:[#allocation13 + $0x520] ss:$16 sps:$4 sm:$0xff]  }
 0x712   :  { %5622 = vmatprep.subr.bf16.mxu1 %v15931_v52  ;;  %v15970_v52 = vld [vmem:[#allocation13 + $0x544] ss:$16 sps:$4 sm:$0xff]  }
 0x715   :  { %5623 = vmatpush1.bf16.msra.mxu1 %v15929_v40  ;;  %v15968_v40 = vld [vmem:[#allocation13 + $0x540] ss:$16 sps:$4 sm:$0xff]  }
 0x716   :  { %5624 = vmatprep.subr.bf16.mxu1 %v15934_v18  ;;  %v15973_v18 = vld [vmem:[#allocation13 + $0x564] ss:$16 sps:$4 sm:$0xff]  }
 0x719   :  { %5625 = vmatpush1.bf16.msra.mxu1 %v15932_v49  ;;  %v15971_v49 = vld [vmem:[#allocation13 + $0x560] ss:$16 sps:$4 sm:$0xff]  }
 0x71a   :  { %5626 = vmatprep.subr.bf16.mxu1 %v15937_v54  ;;  %v15976_v54 = vld [vmem:[#allocation13 + $0x584] ss:$16 sps:$4 sm:$0xff]  }
 0x71d   :  { %5627 = vmatpush1.bf16.msra.mxu1 %v15935_v58  ;;  %v15974_v58 = vld [vmem:[#allocation13 + $0x580] ss:$16 sps:$4 sm:$0xff]  }
 0x71e   :  { %6192 = vmatprep.subr.bf16.mxu1 %v15940_v56  ;;  %v15979_v56 = vld [vmem:[#allocation13 + $0x5a4] ss:$16 sps:$4 sm:$0xff]  }
 0x720   :  { %5629 = vmatmul.mubr.bf16.vlgmr.msra.gmra.mrb[36].mxu1 %v18030_v38 }
 0x721   :  { %6193 = vmatpush1.bf16.msra.mxu1 %v15938_v57  ;;  %6224 = vmatprep.mubr.bf16.mxu1 %v18024_v36  ;;  %v15977_v57 = vld [vmem:[#allocation13 + $0x5a0] ss:$16 sps:$4 sm:$0xff]  }
 0x722   :  { %6194 = vmatprep.subr.bf16.mxu1 %v15943_v62  ;;  %v15982_v62 = vld [vmem:[#allocation13 + $0x5c4] ss:$16 sps:$4 sm:$0xff]  }
 0x725   :  { %6195 = vmatpush1.bf16.msra.mxu1 %v15941_v2  ;;  %v15980_v2 = vld [vmem:[#allocation13 + $0x5c0] ss:$16 sps:$4 sm:$0xff]  }
 0x726   :  { %6196 = vmatprep.subr.bf16.mxu1 %v15946_v14  ;;  %v15985_v14 = vld [vmem:[#allocation13 + $0x5e4] ss:$16 sps:$4 sm:$0xff]  }
 0x729   :  { %6197 = vmatpush1.bf16.msra.mxu1 %v15944_v15  ;;  %v15983_v15 = vld [vmem:[#allocation13 + $0x5e0] ss:$16 sps:$4 sm:$0xff]  }
 0x72a   :  { %6198 = vmatprep.subr.bf16.mxu1 %v15949_v23  ;;  %v15988_v23 = vld [vmem:[#allocation13 + $0x40c] ss:$16 sps:$4 sm:$0xff]  }
 0x72d   :  { %6199 = vmatpush1.bf16.msra.mxu1 %v15947_v24  ;;  %v15986_v24 = vld [vmem:[#allocation13 + $0x408] ss:$16 sps:$4 sm:$0xff]  }
 0x72e   :  { %6200 = vmatprep.subr.bf16.mxu1 %v15952_v25  ;;  %v15991_v25 = vld [vmem:[#allocation13 + $0x42c] ss:$16 sps:$4 sm:$0xff]  }
 0x731   :  { %6201 = vmatpush1.bf16.msra.mxu1 %v15950_v27  ;;  %v15989_v27 = vld [vmem:[#allocation13 + $0x428] ss:$16 sps:$4 sm:$0xff]  }
 0x732   :  { %6202 = vmatprep.subr.bf16.mxu1 %v15955_v59  ;;  %v15994_v59 = vld [vmem:[#allocation13 + $0x44c] ss:$16 sps:$4 sm:$0xff]  }
 0x733   :  { %v18287_v13 = vpop.f32.mrb[24].mxu1 }
 0x734   :  { %v18289_v30 = vpop.f32.mrb[25].mxu1 }
 0x735   :  { %6203 = vmatpush1.bf16.msra.mxu1 %v15953_v10  ;;  %v15992_v10 = vld [vmem:[#allocation13 + $0x448] ss:$16 sps:$4 sm:$0xff]  }
 0x736   :  { %6204 = vmatprep.subr.bf16.mxu1 %v15958_v12  ;;  %v15997_v12 = vld [vmem:[#allocation13 + $0x46c] ss:$16 sps:$4 sm:$0xff]  }
 0x737   :  { %v18291_v7 = vpop.f32.mrb[26].mxu1 }
 0x738   :  { %v18293_v46 = vpop.f32.mrb[27].mxu1 }
 0x739   :  { %6205 = vmatpush1.bf16.msra.mxu1 %v15956_v37  ;;  %v15995_v37 = vld [vmem:[#allocation13 + $0x468] ss:$16 sps:$4 sm:$0xff]  }
 0x73a   :  { %6206 = vmatprep.subr.bf16.mxu1 %v15961_v0  ;;  %v16000_v0 = vld [vmem:[#allocation13 + $0x48c] ss:$16 sps:$4 sm:$0xff]  }
 0x73d   :  { %6207 = vmatpush1.bf16.msra.mxu1 %v15959_v47  ;;  %v15998_v47 = vld [vmem:[#allocation13 + $0x488] ss:$16 sps:$4 sm:$0xff]  }
 0x73e   :  { %6208 = vmatprep.subr.bf16.mxu1 %v15964_v22  ;;  %v16003_v22 = vld [vmem:[#allocation13 + $0x4ac] ss:$16 sps:$4 sm:$0xff]  }
 0x741   :  { %6209 = vmatpush1.bf16.msra.mxu1 %v15962_v48  ;;  %v16001_v48 = vld [vmem:[#allocation13 + $0x4a8] ss:$16 sps:$4 sm:$0xff]  }
 0x742   :  { %6210 = vmatprep.subr.bf16.mxu1 %v15967_v1  ;;  %v16006_v1 = vld [vmem:[#allocation13 + $0x4cc] ss:$16 sps:$4 sm:$0xff]  }
 0x745   :  { %6211 = vmatpush1.bf16.msra.mxu1 %v15965_v50 }
 0x746   :  { %6212 = vmatprep.subr.bf16.mxu1 %v15970_v52  ;;  %v16004_v52 = vld [vmem:[#allocation13 + $0x4c8] ss:$16 sps:$4 sm:$0xff]  }
 0x749   :  { %6213 = vmatpush1.bf16.msra.mxu1 %v15968_v40  ;;  %v16009_v40 = vld [vmem:[#allocation13 + $0x4ec] ss:$16 sps:$4 sm:$0xff]  }
 0x74a   :  { %6214 = vmatprep.subr.bf16.mxu1 %v15973_v18 }
 0x74d   :  { %6215 = vmatpush1.bf16.msra.mxu1 %v15971_v49 }
 0x74e   :  { %6216 = vmatprep.subr.bf16.mxu1 %v15976_v54  ;;  %v16007_v54 = vld [vmem:[#allocation13 + $0x4e8] ss:$16 sps:$4 sm:$0xff]  }
 0x751   :  { %6217 = vmatpush1.bf16.msra.mxu1 %v15974_v58  ;;  %v16012_v58 = vld [vmem:[#allocation13 + $0x50c] ss:$16 sps:$4 sm:$0xff]  }
 0x752   :  { %6218 = vmatprep.subr.bf16.mxu1 %v15979_v56  ;;  %v16010_v56 = vld [vmem:[#allocation13 + $0x508] ss:$16 sps:$4 sm:$0xff]  }
 0x755   :  { %6219 = vmatpush1.bf16.msra.mxu1 %v15977_v57  ;;  %v16015_v57 = vld [vmem:[#allocation13 + $0x52c] ss:$16 sps:$4 sm:$0xff]  }
 0x756   :  { %6220 = vmatprep.subr.bf16.mxu1 %v15982_v62  ;;  %v16013_v62 = vld [vmem:[#allocation13 + $0x528] ss:$16 sps:$4 sm:$0xff]  }
 0x759   :  { %6221 = vmatpush1.bf16.msra.mxu1 %v15980_v2  ;;  %v16018_v2 = vld [vmem:[#allocation13 + $0x54c] ss:$16 sps:$4 sm:$0xff]  }
 0x75a   :  { %6222 = vmatprep.subr.bf16.mxu1 %v15985_v14  ;;  %v16016_v14 = vld [vmem:[#allocation13 + $0x548] ss:$16 sps:$4 sm:$0xff]  }
 0x75d   :  { %6223 = vmatpush1.bf16.msra.mxu1 %v15983_v15  ;;  %v16021_v15 = vld [vmem:[#allocation13 + $0x56c] ss:$16 sps:$4 sm:$0xff]  }
 0x75e   :  { %6235 = vmatprep.subr.bf16.mxu1 %v15988_v23  ;;  %v16019_v23 = vld [vmem:[#allocation13 + $0x568] ss:$16 sps:$4 sm:$0xff]  }
 0x760   :  { %6225 = vmatmul.mubr.bf16.vlgmr.msra.gmra.mrb[40].mxu1 %v18030_v38 }
 0x761   :  { %6236 = vmatpush1.bf16.msra.mxu1 %v15986_v24  ;;  %6267 = vmatprep.mubr.bf16.mxu1 %v18024_v36  ;;  %v16024_v24 = vld [vmem:[#allocation13 + $0x58c] ss:$16 sps:$4 sm:$0xff]  }
 0x762   :  { %6237 = vmatprep.subr.bf16.mxu1 %v15991_v25  ;;  %v16022_v25 = vld [vmem:[#allocation13 + $0x588] ss:$16 sps:$4 sm:$0xff]  }
 0x765   :  { %6238 = vmatpush1.bf16.msra.mxu1 %v15989_v27  ;;  %v16027_v27 = vld [vmem:[#allocation13 + $0x5ac] ss:$16 sps:$4 sm:$0xff]  }
 0x766   :  { %6239 = vmatprep.subr.bf16.mxu1 %v15994_v59  ;;  %v16025_v59 = vld [vmem:[#allocation13 + $0x5a8] ss:$16 sps:$4 sm:$0xff]  }
 0x769   :  { %6240 = vmatpush1.bf16.msra.mxu1 %v15992_v10  ;;  %v16030_v10 = vld [vmem:[#allocation13 + $0x5cc] ss:$16 sps:$4 sm:$0xff]  }
 0x76a   :  { %6241 = vmatprep.subr.bf16.mxu1 %v15997_v12  ;;  %v16028_v12 = vld [vmem:[#allocation13 + $0x5c8] ss:$16 sps:$4 sm:$0xff]  }
 0x76d   :  { %6242 = vmatpush1.bf16.msra.mxu1 %v15995_v37  ;;  %v16033_v37 = vld [vmem:[#allocation13 + $0x5ec] ss:$16 sps:$4 sm:$0xff]  }
 0x76e   :  { %6243 = vmatprep.subr.bf16.mxu1 %v16000_v0  ;;  %v16031_v0 = vld [vmem:[#allocation13 + $0x5e8] ss:$16 sps:$4 sm:$0xff]  }
 0x771   :  { %6244 = vmatpush1.bf16.msra.mxu1 %v15998_v47  ;;  %v16036_v47 = vld [vmem:[#allocation13 + $0x4] ss:$16 sps:$4 sm:$0xff]  }
 0x772   :  { %6245 = vmatprep.subr.bf16.mxu1 %v16003_v22  ;;  %v16034_v22 = vld [vmem:[#allocation13] ss:$16 sps:$4 sm:$0xff]  }
 0x773   :  { %v18297_v36 = vpop.f32.mrb[28].mxu1 }
 0x774   :  { %v18299_v50 = vpop.f32.mrb[29].mxu1 }
 0x775   :  { %6246 = vmatpush1.bf16.msra.mxu1 %v16001_v48  ;;  %v16039_v48 = vld [vmem:[#allocation13 + $0x24] ss:$16 sps:$4 sm:$0xff]  }
 0x776   :  { %6247 = vmatprep.subr.bf16.mxu1 %v16006_v1  ;;  %v16037_v1 = vld [vmem:[#allocation13 + $0x20] ss:$16 sps:$4 sm:$0xff]  }
 0x777   :  { %v18301_v18 = vpop.f32.mrb[30].mxu1 }
 0x778   :  { %v18303_v49 = vpop.f32.mrb[31].mxu1 }
 0x779   :  { %6248 = vmatpush1.bf16.msra.mxu1 %v16004_v52  ;;  %v16042_v52 = vld [vmem:[#allocation13 + $0x44] ss:$16 sps:$4 sm:$0xff]  }
 0x77a   :  { %6249 = vmatprep.subr.bf16.mxu1 %v16009_v40  ;;  %v16040_v40 = vld [vmem:[#allocation13 + $0x40] ss:$16 sps:$4 sm:$0xff]  }
 0x77d   :  { %6250 = vmatpush1.bf16.msra.mxu1 %v16007_v54  ;;  %v16045_v54 = vld [vmem:[#allocation13 + $0x64] ss:$16 sps:$4 sm:$0xff]  }
 0x77e   :  { %6251 = vmatprep.subr.bf16.mxu1 %v16012_v58  ;;  %v16043_v58 = vld [vmem:[#allocation13 + $0x60] ss:$16 sps:$4 sm:$0xff]  }
 0x781   :  { %6252 = vmatpush1.bf16.msra.mxu1 %v16010_v56  ;;  %v16048_v56 = vld [vmem:[#allocation13 + $0x84] ss:$16 sps:$4 sm:$0xff]  }
 0x782   :  { %6253 = vmatprep.subr.bf16.mxu1 %v16015_v57  ;;  %v16046_v57 = vld [vmem:[#allocation13 + $0x80] ss:$16 sps:$4 sm:$0xff]  }
 0x785   :  { %6254 = vmatpush1.bf16.msra.mxu1 %v16013_v62  ;;  %v16051_v62 = vld [vmem:[#allocation13 + $0xa4] ss:$16 sps:$4 sm:$0xff]  }
 0x786   :  { %6255 = vmatprep.subr.bf16.mxu1 %v16018_v2  ;;  %v18306_v2 = vld [vmem:[#allocation11] sm:$0xf] }
 0x789   :  { %6256 = vmatpush1.bf16.msra.mxu1 %v16016_v14  ;;  %v16054_v14 = vld [vmem:[#allocation13 + $0xc4] ss:$16 sps:$4 sm:$0xff]  }
 0x78a   :  { %6257 = vmatprep.subr.bf16.mxu1 %v16021_v15 }
 0x78d   :  { %6258 = vmatpush1.bf16.msra.mxu1 %v16019_v23 }
 0x78e   :  { %6259 = vmatprep.subr.bf16.mxu1 %v16024_v24  ;;  %v18311_v24 = vrot.slane %v18306_v2, %v18004_v21 }
 0x791   :  { %6260 = vmatpush1.bf16.msra.mxu1 %v16022_v25 }
 0x792   :  { %6261 = vmatprep.subr.bf16.mxu1 %v16027_v27 }
 0x795   :  { %6262 = vmatpush1.bf16.msra.mxu1 %v16025_v59  ;;  %v18316_v59 = vrot.slane %v18306_v2, %v18001_v19 }
 0x796   :  { %6263 = vmatprep.subr.bf16.mxu1 %v16030_v10 }
 0x799   :  { %6264 = vmatpush1.bf16.msra.mxu1 %v16028_v12  ;;  %v16052_v12 = vld [vmem:[#allocation13 + $0xc0] ss:$16 sps:$4 sm:$0xff]  }
 0x79a   :  { %6265 = vmatprep.subr.bf16.mxu1 %v16033_v37 }
 0x79d   :  { %6266 = vmatpush1.bf16.msra.mxu1 %v16031_v0 }
 0x79e   :  { %6918 = vmatprep.subr.bf16.mxu1 %v16036_v47  ;;  %v16057_v47 = vld [vmem:[#allocation13 + $0xe4] ss:$16 sps:$4 sm:$0xff]  }
 0x7a0   :  { %6268 = vmatmul.mubr.bf16.vlgmr.msra.gmra.mrb[44].mxu1 %v18030_v38  ;;  %v16049_v38 = vld [vmem:[#allocation13 + $0xa0] ss:$16 sps:$4 sm:$0xff]  }
 0x7a1   :  { %6919 = vmatpush1.bf16.msra.mxu1 %v16034_v22 }
 0x7a2   :  { %6920 = vmatprep.subr.bf16.mxu1 %v16039_v48 }
 0x7a5   :  { %6921 = vmatpush1.bf16.msra.mxu1 %v16037_v1 }
 0x7a6   :  { %6922 = vmatprep.subr.bf16.mxu1 %v16042_v52  ;;  %v16055_v52 = vld [vmem:[#allocation13 + $0xe0] ss:$16 sps:$4 sm:$0xff]  }
 0x7a9   :  { %6923 = vmatpush1.bf16.msra.mxu1 %v16040_v40 }
 0x7aa   :  { %6924 = vmatprep.subr.bf16.mxu1 %v16045_v54  ;;  %v16058_v54 = vld [vmem:[#allocation13 + $0x100] ss:$16 sps:$4 sm:$0xff]  }
 0x7ad   :  { %6925 = vmatpush1.bf16.msra.mxu1 %v16043_v58  ;;  %v16063_v58 = vld [vmem:[#allocation13 + $0x124] ss:$16 sps:$4 sm:$0xff]  }
 0x7ae   :  { %6926 = vmatprep.subr.bf16.mxu1 %v16048_v56  ;;  %v16061_v56 = vld [vmem:[#allocation13 + $0x120] ss:$16 sps:$4 sm:$0xff]  }
 0x7b1   :  { %6927 = vmatpush1.bf16.msra.mxu1 %v16046_v57  ;;  %v16066_v57 = vld [vmem:[#allocation13 + $0x144] ss:$16 sps:$4 sm:$0xff]  }
 0x7b2   :  { %6928 = vmatprep.subr.bf16.mxu1 %v16051_v62  ;;  %v16064_v62 = vld [vmem:[#allocation13 + $0x140] ss:$16 sps:$4 sm:$0xff]  }
 0x7b3   :  { %v5587_v15 = vpop.f32.mrb[32].mxu1 }
 0x7b4   :  { %v5639_v23 = vadd.f32 %v5587_v15, %v18287_v13  ;;  %v5589_v25 = vpop.f32.mrb[33].mxu1  ;;  %v16072_v15 = vld [vmem:[#allocation13 + $0x184] ss:$16 sps:$4 sm:$0xff]  }
 0x7b5   :  { %v5640_v27 = vadd.f32 %v5589_v25, %v18289_v30  ;;  %v5591_v10 = vpop.f32.mrb[34].mxu1  ;;  %6929 = vmatpush1.bf16.msra.mxu1 %v16049_v38  ;;  %v16069_v38 = vld [vmem:[#allocation13 + $0x164] ss:$16 sps:$4 sm:$0xff]  }
 0x7b6   :  { %v5643_v37 = vadd.f32 %v5591_v10, %v18291_v7  ;;  %v5593_v0 = vpop.f32.mrb[35].mxu1  ;;  %6930 = vmatprep.subr.bf16.mxu1 %v16054_v14  ;;  %v18321_v22 = vadd.f32 %v18311_v24, %v5639_v23  ;;  %v16067_v14 = vld [vmem:[#allocation13 + $0x160] ss:$16 sps:$4 sm:$0xff]   ;;  %v16075_v25 = vld [vmem:[#allocation13 + $0x1a4] ss:$16 sps:$4 sm:$0xff]  }
 0x7b7   :  { %v5644_v13 = vadd.f32 %v5593_v0, %v18293_v46  ;;  %v18327_v30 = vadd.f32 %v18316_v59, %v5640_v27  ;;  %v16060_v46 = vld [vmem:[#allocation13 + $0x104] ss:$16 sps:$4 sm:$0xff]   ;;  %v16070_v23 = vld [vmem:[#allocation13 + $0x180] ss:$16 sps:$4 sm:$0xff]  }
 0x7b8   :  { %v18324_v48 = vadd.f32 %v18311_v24, %v5643_v37  ;;  %v16073_v27 = vld [vmem:[#allocation13 + $0x1a0] ss:$16 sps:$4 sm:$0xff]   ;;  %v16078_v10 = vld [vmem:[#allocation13 + $0x1c4] ss:$16 sps:$4 sm:$0xff]  }
 0x7b9   :  { %v18330_v1 = vadd.f32 %v18316_v59, %v5644_v13  ;;  %6931 = vmatpush1.bf16.msra.mxu1 %v16052_v12  ;;  %v16076_v12 = vld [vmem:[#allocation13 + $0x1c0] ss:$16 sps:$4 sm:$0xff]   ;;  %v16081_v37 = vld [vmem:[#allocation13 + $0x1e4] ss:$16 sps:$4 sm:$0xff]  }
 0x7ba   :  { %v18334_v7 = vpack.c.bf16 %v18324_v48, %v18321_v22  ;;  %6932 = vmatprep.subr.bf16.mxu1 %v16057_v47  ;;  %v16079_v0 = vld [vmem:[#allocation13 + $0x1e0] ss:$16 sps:$4 sm:$0xff]   ;;  %v16084_v47 = vld [vmem:[#allocation13 + $0x204] ss:$16 sps:$4 sm:$0xff]  }
 0x7bb   :  { %v18338_v40 = vpack.c.bf16 %v18330_v1, %v18327_v30  ;;  %v16082_v13 = vld [vmem:[#allocation13 + $0x200] ss:$16 sps:$4 sm:$0xff]  }
 0x7bd   :  { %6933 = vmatpush1.bf16.msra.mxu1 %v16055_v52  ;;  %6950 = vmatprep.mubr.bf16.mxu1 %v18338_v40  ;;  %v16087_v52 = vld [vmem:[#allocation13 + $0x224] ss:$16 sps:$4 sm:$0xff]  }
 0x7be   :  { %6934 = vmatprep.subr.bf16.mxu1 %v16060_v46  ;;  %v16085_v46 = vld [vmem:[#allocation13 + $0x220] ss:$16 sps:$4 sm:$0xff]  }
 0x7c1   :  { %6935 = vmatpush1.bf16.msra.mxu1 %v16058_v54  ;;  %v16090_v54 = vld [vmem:[#allocation13 + $0x244] ss:$16 sps:$4 sm:$0xff]  }
 0x7c2   :  { %6936 = vmatprep.subr.bf16.mxu1 %v16063_v58  ;;  %v16088_v58 = vld [vmem:[#allocation13 + $0x240] ss:$16 sps:$4 sm:$0xff]  }
 0x7c5   :  { %6937 = vmatpush1.bf16.msra.mxu1 %v16061_v56  ;;  %v16093_v56 = vld [vmem:[#allocation13 + $0x264] ss:$16 sps:$4 sm:$0xff]  }
 0x7c6   :  { %6938 = vmatprep.subr.bf16.mxu1 %v16066_v57  ;;  %v16091_v57 = vld [vmem:[#allocation13 + $0x260] ss:$16 sps:$4 sm:$0xff]  }
 0x7c9   :  { %6939 = vmatpush1.bf16.msra.mxu1 %v16064_v62  ;;  %v16096_v62 = vld [vmem:[#allocation13 + $0x284] ss:$16 sps:$4 sm:$0xff]  }
 0x7ca   :  { %6940 = vmatprep.subr.bf16.mxu1 %v16069_v38  ;;  %v16094_v38 = vld [vmem:[#allocation13 + $0x280] ss:$16 sps:$4 sm:$0xff]  }
 0x7cd   :  { %6941 = vmatpush1.bf16.msra.mxu1 %v16067_v14  ;;  %v16099_v14 = vld [vmem:[#allocation13 + $0x2a4] ss:$16 sps:$4 sm:$0xff]  }
 0x7ce   :  { %6942 = vmatprep.subr.bf16.mxu1 %v16072_v15  ;;  %v16097_v15 = vld [vmem:[#allocation13 + $0x2a0] ss:$16 sps:$4 sm:$0xff]  }
 0x7d1   :  { %6943 = vmatpush1.bf16.msra.mxu1 %v16070_v23  ;;  %v16102_v23 = vld [vmem:[#allocation13 + $0x2c4] ss:$16 sps:$4 sm:$0xff]  }
 0x7d2   :  { %6944 = vmatprep.subr.bf16.mxu1 %v16075_v25 }
 0x7d5   :  { %6945 = vmatpush1.bf16.msra.mxu1 %v16073_v27 }
 0x7d6   :  { %6946 = vmatprep.subr.bf16.mxu1 %v16078_v10  ;;  %v18345_v10 = vrot.slane %v18306_v2, %v18113_v53 }
 0x7d9   :  { %6947 = vmatpush1.bf16.msra.mxu1 %v16076_v12 }
 0x7da   :  { %6948 = vmatprep.subr.bf16.mxu1 %v16081_v37 }
 0x7dd   :  { %6949 = vmatpush1.bf16.msra.mxu1 %v16079_v0  ;;  %v18350_v0 = vrot.slane %v18306_v2, %v18116_v55 }
 0x7de   :  { %6961 = vmatprep.subr.bf16.mxu1 %v16084_v47 }
 0x7e0   :  { %6951 = vmatmul.mubr.bf16.vlgmr.msra.gmra.mrb[40].mxu1 %v18334_v7 }
 0x7e1   :  { %6962 = vmatpush1.bf16.msra.mxu1 %v16082_v13  ;;  %v16100_v13 = vld [vmem:[#allocation13 + $0x2c0] ss:$16 sps:$4 sm:$0xff]  }
 0x7e2   :  { %6963 = vmatprep.subr.bf16.mxu1 %v16087_v52 }
 0x7e5   :  { %6964 = vmatpush1.bf16.msra.mxu1 %v16085_v46 }
 0x7e6   :  { %6965 = vmatprep.subr.bf16.mxu1 %v16090_v54  ;;  %v16105_v54 = vld [vmem:[#allocation13 + $0x2e4] ss:$16 sps:$4 sm:$0xff]  }
 0x7e9   :  { %6966 = vmatpush1.bf16.msra.mxu1 %v16088_v58 }
 0x7ea   :  { %6967 = vmatprep.subr.bf16.mxu1 %v16093_v56 }
 0x7ed   :  { %6968 = vmatpush1.bf16.msra.mxu1 %v16091_v57  ;;  %v16103_v57 = vld [vmem:[#allocation13 + $0x2e0] ss:$16 sps:$4 sm:$0xff]  }
 0x7ee   :  { %6969 = vmatprep.subr.bf16.mxu1 %v16096_v62 }
 0x7f1   :  { %6970 = vmatpush1.bf16.msra.mxu1 %v16094_v38  ;;  %v16106_v38 = vld [vmem:[#allocation13 + $0x300] ss:$16 sps:$4 sm:$0xff]  }
 0x7f2   :  { %6971 = vmatprep.subr.bf16.mxu1 %v16099_v14  ;;  %v16111_v14 = vld [vmem:[#allocation13 + $0x324] ss:$16 sps:$4 sm:$0xff]  }
 0x7f3   :  { %v5630_v25 = vpop.f32.mrb[36].mxu1 }
 0x7f4   :  { %v5641_v27 = vadd.f32 %v5630_v25, %v18297_v36  ;;  %v5632_v12 = vpop.f32.mrb[37].mxu1  ;;  %v16112_v25 = vld [vmem:[#allocation13 + $0x340] ss:$16 sps:$4 sm:$0xff]  }
 0x7f5   :  { %v5642_v37 = vadd.f32 %v5632_v12, %v18299_v50  ;;  %v5634_v47 = vpop.f32.mrb[38].mxu1  ;;  %6972 = vmatpush1.bf16.msra.mxu1 %v16097_v15  ;;  %v16109_v15 = vld [vmem:[#allocation13 + $0x320] ss:$16 sps:$4 sm:$0xff]  }
 0x7f6   :  { %v5645_v52 = vadd.f32 %v5634_v47, %v18301_v18  ;;  %v5636_v46 = vpop.f32.mrb[39].mxu1  ;;  %6973 = vmatprep.subr.bf16.mxu1 %v16102_v23  ;;  %v18355_v58 = vadd.f32 %v18345_v10, %v5641_v27  ;;  %v16114_v23 = vld [vmem:[#allocation13 + $0x344] ss:$16 sps:$4 sm:$0xff]   ;;  %v16115_v12 = vld [vmem:[#allocation13 + $0x360] ss:$16 sps:$4 sm:$0xff]  }
 0x7f7   :  { %v5646_v36 = vadd.f32 %v5636_v46, %v18303_v49  ;;  %v18361_v50 = vadd.f32 %v18350_v0, %v5642_v37  ;;  %v16108_v49 = vld [vmem:[#allocation13 + $0x304] ss:$16 sps:$4 sm:$0xff]   ;;  %v16118_v47 = vld [vmem:[#allocation13 + $0x380] ss:$16 sps:$4 sm:$0xff]  }
 0x7f8   :  { %v18358_v56 = vadd.f32 %v18345_v10, %v5645_v52  ;;  %v16117_v27 = vld [vmem:[#allocation13 + $0x364] ss:$16 sps:$4 sm:$0xff]   ;;  %v16121_v52 = vld [vmem:[#allocation13 + $0x3a0] ss:$16 sps:$4 sm:$0xff]  }
 0x7f9   :  { %v18364_v2 = vadd.f32 %v18350_v0, %v5646_v36  ;;  %6974 = vmatpush1.bf16.msra.mxu1 %v16100_v13  ;;  %v16120_v37 = vld [vmem:[#allocation13 + $0x384] ss:$16 sps:$4 sm:$0xff]  }
 0x7fa   :  { %v18368_v18 = vpack.c.bf16 %v18358_v56, %v18355_v58  ;;  %6975 = vmatprep.subr.bf16.mxu1 %v16105_v54  ;;  %v16123_v13 = vld [vmem:[#allocation13 + $0x3a4] ss:$16 sps:$4 sm:$0xff]   ;;  %v16124_v54 = vld [vmem:[#allocation13 + $0x3c0] ss:$16 sps:$4 sm:$0xff]  }
 0x7fb   :  { %v18372_v62 = vpack.c.bf16 %v18364_v2, %v18361_v50  ;;  %v16126_v46 = vld [vmem:[#allocation13 + $0x3c4] ss:$16 sps:$4 sm:$0xff]  }
 0x7fc   :  { %v16129_v36 = vld [vmem:[#allocation13 + $0x3e4] ss:$16 sps:$4 sm:$0xff]  }
 0x7fd   :  { %6976 = vmatpush1.bf16.msra.mxu1 %v16103_v57  ;;  %6993 = vmatprep.mubr.bf16.mxu1 %v18372_v62  ;;  %v16127_v57 = vld [vmem:[#allocation13 + $0x3e0] ss:$16 sps:$4 sm:$0xff]  }
 0x7fe   :  { %6977 = vmatprep.subr.bf16.mxu1 %v16108_v49  ;;  %v16132_v49 = vld [vmem:[#allocation13 + $0xc] ss:$16 sps:$4 sm:$0xff]  }
 0x801   :  { %6978 = vmatpush1.bf16.msra.mxu1 %v16106_v38  ;;  %v16130_v38 = vld [vmem:[#allocation13 + $0x8] ss:$16 sps:$4 sm:$0xff]  }
 0x802   :  { %6979 = vmatprep.subr.bf16.mxu1 %v16111_v14  ;;  %v16135_v14 = vld [vmem:[#allocation13 + $0x2c] ss:$16 sps:$4 sm:$0xff]  }
 0x805   :  { %6980 = vmatpush1.bf16.msra.mxu1 %v16109_v15  ;;  %v16226_v15 = vld [vmem:[#allocation7] ss:$48 sps:$4 sm:$0xff]  }
 0x806   :  { %6981 = vmatprep.subr.bf16.mxu1 %v16114_v23  ;;  %v16228_v23 = vld [vmem:[#allocation7 + $0x4] ss:$48 sps:$4 sm:$0xff]  }
 0x807   :  { %9503 = vmatprep.subr.bf16.mxu0 %v16228_v23  ;;  %v16145_v23 = vld [vmem:[#allocation13 + $0xa8] ss:$16 sps:$4 sm:$0xff]  }
 0x808   :  { %9504 = vmatpush1.bf16.msra.mxu0 %v16226_v15  ;;  %v16250_v15 = vld [vmem:[#allocation7 + $0x180] ss:$48 sps:$4 sm:$0xff]  }
 0x809   :  { %6982 = vmatpush1.bf16.msra.mxu1 %v16112_v25  ;;  %v16133_v25 = vld [vmem:[#allocation13 + $0x28] ss:$16 sps:$4 sm:$0xff]  }
 0x80a   :  { %6983 = vmatprep.subr.bf16.mxu1 %v16117_v27  ;;  %v16234_v27 = vld [vmem:[#allocation7 + $0x64] ss:$48 sps:$4 sm:$0xff]  }
 0x80b   :  { %9505 = vmatprep.subr.bf16.mxu0 %v16234_v27  ;;  %v16150_v27 = vld [vmem:[#allocation13 + $0xcc] ss:$16 sps:$4 sm:$0xff]  }
 0x80d   :  { %6984 = vmatpush1.bf16.msra.mxu1 %v16115_v12  ;;  %v16138_v12 = vld [vmem:[#allocation13 + $0x4c] ss:$16 sps:$4 sm:$0xff]  }
 0x80e   :  { %6985 = vmatprep.subr.bf16.mxu1 %v16120_v37  ;;  %v16232_v37 = vld [vmem:[#allocation7 + $0x60] ss:$48 sps:$4 sm:$0xff]  }
 0x80f   :  { %9506 = vmatpush1.bf16.msra.mxu0 %v16232_v37  ;;  %v16148_v37 = vld [vmem:[#allocation13 + $0xc8] ss:$16 sps:$4 sm:$0xff]  }
 0x811   :  { %6986 = vmatpush1.bf16.msra.mxu1 %v16118_v47  ;;  %v16136_v47 = vld [vmem:[#allocation13 + $0x48] ss:$16 sps:$4 sm:$0xff]  }
 0x812   :  { %6987 = vmatprep.subr.bf16.mxu1 %v16123_v13  ;;  %v16240_v13 = vld [vmem:[#allocation7 + $0xc4] ss:$48 sps:$4 sm:$0xff]  }
 0x813   :  { %9507 = vmatprep.subr.bf16.mxu0 %v16240_v13  ;;  %v16151_v13 = vld [vmem:[#allocation13 + $0xe8] ss:$16 sps:$4 sm:$0xff]  }
 0x815   :  { %6988 = vmatpush1.bf16.msra.mxu1 %v16121_v52  ;;  %v16141_v52 = vld [vmem:[#allocation13 + $0x6c] ss:$16 sps:$4 sm:$0xff]  }
 0x816   :  { %6989 = vmatprep.subr.bf16.mxu1 %v16126_v46  ;;  %v16238_v46 = vld [vmem:[#allocation7 + $0xc0] ss:$48 sps:$4 sm:$0xff]  }
 0x817   :  { %9508 = vmatpush1.bf16.msra.mxu0 %v16238_v46  ;;  %v16154_v46 = vld [vmem:[#allocation13 + $0x108] ss:$16 sps:$4 sm:$0xff]  }
 0x819   :  { %6990 = vmatpush1.bf16.msra.mxu1 %v16124_v54  ;;  %v16139_v54 = vld [vmem:[#allocation13 + $0x68] ss:$16 sps:$4 sm:$0xff]  }
 0x81a   :  { %6991 = vmatprep.subr.bf16.mxu1 %v16129_v36  ;;  %v16246_v36 = vld [vmem:[#allocation7 + $0x124] ss:$48 sps:$4 sm:$0xff]  }
 0x81b   :  { %9509 = vmatprep.subr.bf16.mxu0 %v16246_v36  ;;  %v16157_v36 = vld [vmem:[#allocation13 + $0x128] ss:$16 sps:$4 sm:$0xff]  }
 0x81d   :  { %6992 = vmatpush1.bf16.msra.mxu1 %v16127_v57  ;;  %v16244_v57 = vld [vmem:[#allocation7 + $0x120] ss:$48 sps:$4 sm:$0xff]  }
 0x81e   :  { %7004 = vmatprep.subr.bf16.mxu1 %v16132_v49  ;;  %v16142_v49 = vld [vmem:[#allocation13 + $0x88] ss:$16 sps:$4 sm:$0xff]   ;;  %9510 = vmatpush1.bf16.msra.mxu0 %v16244_v57 }
 0x81f   :  { %v16160_v57 = vld [vmem:[#allocation13 + $0x148] ss:$16 sps:$4 sm:$0xff]  }
 0x820   :  { %6994 = vmatmul.mubr.bf16.vlgmr.msra.gmra.mrb[40].mxu1 %v18368_v18 }
 0x821   :  { %7005 = vmatpush1.bf16.msra.mxu1 %v16130_v38  ;;  %7036 = vmatprep.mubr.bf16.mxu1 %v18338_v40  ;;  %v16144_v40 = vld [vmem:[#allocation13 + $0x8c] ss:$16 sps:$4 sm:$0xff]   ;;  %v16252_v38 = vld [vmem:[#allocation7 + $0x184] ss:$48 sps:$4 sm:$0xff]  }
 0x822   :  { %7006 = vmatprep.subr.bf16.mxu1 %v16135_v14  ;;  %v16147_v14 = vld [vmem:[#allocation13 + $0xac] ss:$16 sps:$4 sm:$0xff]   ;;  %9511 = vmatprep.subr.bf16.mxu0 %v16252_v38  ;;  %v16163_v38 = vld [vmem:[#allocation13 + $0x168] ss:$16 sps:$4 sm:$0xff]  }
 0x823   :  { %9512 = vmatpush1.bf16.msra.mxu0 %v16250_v15  ;;  %v16166_v15 = vld [vmem:[#allocation13 + $0x188] ss:$16 sps:$4 sm:$0xff]  }
 0x825   :  { %7007 = vmatpush1.bf16.msra.mxu1 %v16133_v25  ;;  %v16258_v25 = vld [vmem:[#allocation7 + $0x1e4] ss:$48 sps:$4 sm:$0xff]  }
 0x826   :  { %7008 = vmatprep.subr.bf16.mxu1 %v16138_v12  ;;  %v16256_v12 = vld [vmem:[#allocation7 + $0x1e0] ss:$48 sps:$4 sm:$0xff]   ;;  %9513 = vmatprep.subr.bf16.mxu0 %v16258_v25  ;;  %v16169_v25 = vld [vmem:[#allocation13 + $0x1a8] ss:$16 sps:$4 sm:$0xff]  }
 0x827   :  { %9514 = vmatpush1.bf16.msra.mxu0 %v16256_v12  ;;  %v16172_v12 = vld [vmem:[#allocation13 + $0x1c8] ss:$16 sps:$4 sm:$0xff]  }
 0x829   :  { %7009 = vmatpush1.bf16.msra.mxu1 %v16136_v47  ;;  %v16153_v47 = vld [vmem:[#allocation13 + $0xec] ss:$16 sps:$4 sm:$0xff]  }
 0x82a   :  { %7010 = vmatprep.subr.bf16.mxu1 %v16141_v52  ;;  %v16156_v52 = vld [vmem:[#allocation13 + $0x10c] ss:$16 sps:$4 sm:$0xff]  }
 0x82d   :  { %7011 = vmatpush1.bf16.msra.mxu1 %v16139_v54  ;;  %v16159_v54 = vld [vmem:[#allocation13 + $0x12c] ss:$16 sps:$4 sm:$0xff]  }
 0x82e   :  { %7012 = vmatprep.subr.bf16.mxu1 %v16144_v40  ;;  %v16162_v40 = vld [vmem:[#allocation13 + $0x14c] ss:$16 sps:$4 sm:$0xff]  }
 0x831   :  { %7013 = vmatpush1.bf16.msra.mxu1 %v16142_v49  ;;  %v16165_v49 = vld [vmem:[#allocation13 + $0x16c] ss:$16 sps:$4 sm:$0xff]  }
 0x832   :  { %7014 = vmatprep.subr.bf16.mxu1 %v16147_v14  ;;  %v16168_v14 = vld [vmem:[#allocation13 + $0x18c] ss:$16 sps:$4 sm:$0xff]  }
 0x835   :  { %7015 = vmatpush1.bf16.msra.mxu1 %v16145_v23  ;;  %v16171_v23 = vld [vmem:[#allocation13 + $0x1ac] ss:$16 sps:$4 sm:$0xff]  }
 0x836   :  { %7016 = vmatprep.subr.bf16.mxu1 %v16150_v27  ;;  %v16174_v27 = vld [vmem:[#allocation13 + $0x1cc] ss:$16 sps:$4 sm:$0xff]  }
 0x839   :  { %7017 = vmatpush1.bf16.msra.mxu1 %v16148_v37  ;;  %v16177_v37 = vld [vmem:[#allocation13 + $0x1ec] ss:$16 sps:$4 sm:$0xff]  }
 0x83a   :  { %7018 = vmatprep.subr.bf16.mxu1 %v16153_v47  ;;  %v16175_v47 = vld [vmem:[#allocation13 + $0x1e8] ss:$16 sps:$4 sm:$0xff]  }
 0x83d   :  { %7019 = vmatpush1.bf16.msra.mxu1 %v16151_v13  ;;  %v16180_v13 = vld [vmem:[#allocation13 + $0x20c] ss:$16 sps:$4 sm:$0xff]  }
 0x83e   :  { %7020 = vmatprep.subr.bf16.mxu1 %v16156_v52  ;;  %v16178_v52 = vld [vmem:[#allocation13 + $0x208] ss:$16 sps:$4 sm:$0xff]  }
 0x841   :  { %7021 = vmatpush1.bf16.msra.mxu1 %v16154_v46  ;;  %v16183_v46 = vld [vmem:[#allocation13 + $0x22c] ss:$16 sps:$4 sm:$0xff]  }
 0x842   :  { %7022 = vmatprep.subr.bf16.mxu1 %v16159_v54  ;;  %v16181_v54 = vld [vmem:[#allocation13 + $0x228] ss:$16 sps:$4 sm:$0xff]  }
 0x845   :  { %7023 = vmatpush1.bf16.msra.mxu1 %v16157_v36  ;;  %v16186_v36 = vld [vmem:[#allocation13 + $0x24c] ss:$16 sps:$4 sm:$0xff]  }
 0x846   :  { %7024 = vmatprep.subr.bf16.mxu1 %v16162_v40  ;;  %v16184_v40 = vld [vmem:[#allocation13 + $0x248] ss:$16 sps:$4 sm:$0xff]  }
 0x849   :  { %7025 = vmatpush1.bf16.msra.mxu1 %v16160_v57  ;;  %v16189_v57 = vld [vmem:[#allocation13 + $0x26c] ss:$16 sps:$4 sm:$0xff]  }
 0x84a   :  { %7026 = vmatprep.subr.bf16.mxu1 %v16165_v49  ;;  %v16187_v49 = vld [vmem:[#allocation13 + $0x268] ss:$16 sps:$4 sm:$0xff]  }
 0x84d   :  { %7027 = vmatpush1.bf16.msra.mxu1 %v16163_v38  ;;  %v16192_v38 = vld [vmem:[#allocation13 + $0x28c] ss:$16 sps:$4 sm:$0xff]  }
 0x84e   :  { %7028 = vmatprep.subr.bf16.mxu1 %v16168_v14  ;;  %v16190_v14 = vld [vmem:[#allocation13 + $0x288] ss:$16 sps:$4 sm:$0xff]  }
 0x851   :  { %7029 = vmatpush1.bf16.msra.mxu1 %v16166_v15  ;;  %v16195_v15 = vld [vmem:[#allocation13 + $0x2ac] ss:$16 sps:$4 sm:$0xff]  }
 0x852   :  { %7030 = vmatprep.subr.bf16.mxu1 %v16171_v23  ;;  %v16198_v23 = vld [vmem:[#allocation13 + $0x2cc] ss:$16 sps:$4 sm:$0xff]  }
 0x855   :  { %7031 = vmatpush1.bf16.msra.mxu1 %v16169_v25  ;;  %v16262_v25 = vld [vmem:[#allocation7 + $0x240] ss:$48 sps:$4 sm:$0xff]  }
 0x856   :  { %7032 = vmatprep.subr.bf16.mxu1 %v16174_v27  ;;  %v16196_v27 = vld [vmem:[#allocation13 + $0x2c8] ss:$16 sps:$4 sm:$0xff]  }
 0x859   :  { %7033 = vmatpush1.bf16.msra.mxu1 %v16172_v12  ;;  %v16201_v12 = vld [vmem:[#allocation13 + $0x2ec] ss:$16 sps:$4 sm:$0xff]  }
 0x85a   :  { %7034 = vmatprep.subr.bf16.mxu1 %v16177_v37  ;;  %v16270_v37 = vld [vmem:[#allocation7 + $0x2a4] ss:$48 sps:$4 sm:$0xff]  }
 0x85d   :  { %7035 = vmatpush1.bf16.msra.mxu1 %v16175_v47  ;;  %v16268_v47 = vld [vmem:[#allocation7 + $0x2a0] ss:$48 sps:$4 sm:$0xff]  }
 0x85e   :  { %7047 = vmatprep.subr.bf16.mxu1 %v16180_v13  ;;  %v16199_v13 = vld [vmem:[#allocation13 + $0x2e8] ss:$16 sps:$4 sm:$0xff]  }
 0x860   :  { %7037 = vmatmul.mubr.bf16.vlgmr.msra.gmra.mrb[44].mxu1 %v18334_v7  ;;  %v16193_v7 = vld [vmem:[#allocation13 + $0x2a8] ss:$16 sps:$4 sm:$0xff]  }
 0x861   :  { %7048 = vmatpush1.bf16.msra.mxu1 %v16178_v52  ;;  %7079 = vmatprep.mubr.bf16.mxu1 %v18372_v62  ;;  %v16264_v62 = vld [vmem:[#allocation7 + $0x244] ss:$48 sps:$4 sm:$0xff]   ;;  %v16204_v52 = vld [vmem:[#allocation13 + $0x30c] ss:$16 sps:$4 sm:$0xff]  }
 0x862   :  { %7049 = vmatprep.subr.bf16.mxu1 %v16183_v46  ;;  %9515 = vmatprep.subr.bf16.mxu0 %v16264_v62  ;;  %v16276_v46 = vld [vmem:[#allocation7 + $0x304] ss:$48 sps:$4 sm:$0xff]   ;;  %v16213_v62 = vld [vmem:[#allocation13 + $0x36c] ss:$16 sps:$4 sm:$0xff]  }
 0x863   :  { %9516 = vmatpush1.bf16.msra.mxu0 %v16262_v25  ;;  %v16294_v25 = vld [vmem:[#allocation7 + $0x424] ss:$48 sps:$4 sm:$0xff]  }
 0x864   :  { %9517 = vmatprep.subr.bf16.mxu0 %v16270_v37  ;;  %v16216_v37 = vld [vmem:[#allocation13 + $0x38c] ss:$16 sps:$4 sm:$0xff]  }
 0x865   :  { %7050 = vmatpush1.bf16.msra.mxu1 %v16181_v54  ;;  %v16274_v54 = vld [vmem:[#allocation7 + $0x300] ss:$48 sps:$4 sm:$0xff]  }
 0x866   :  { %7051 = vmatprep.subr.bf16.mxu1 %v16186_v36  ;;  %v16202_v36 = vld [vmem:[#allocation13 + $0x308] ss:$16 sps:$4 sm:$0xff]  }
 0x867   :  { %9518 = vmatpush1.bf16.msra.mxu0 %v16268_v47  ;;  %v16300_v47 = vld [vmem:[#allocation7 + $0x484] ss:$48 sps:$4 sm:$0xff]  }
 0x868   :  { %9519 = vmatprep.subr.bf16.mxu0 %v16276_v46  ;;  %v16219_v46 = vld [vmem:[#allocation13 + $0x3ac] ss:$16 sps:$4 sm:$0xff]  }
 0x869   :  { %7052 = vmatpush1.bf16.msra.mxu1 %v16184_v40  ;;  %v16207_v40 = vld [vmem:[#allocation13 + $0x32c] ss:$16 sps:$4 sm:$0xff]  }
 0x86a   :  { %7053 = vmatprep.subr.bf16.mxu1 %v16189_v57  ;;  %v16282_v57 = vld [vmem:[#allocation7 + $0x364] ss:$48 sps:$4 sm:$0xff]  }
 0x86b   :  { %9520 = vmatpush1.bf16.msra.mxu0 %v16274_v54  ;;  %v16306_v54 = vld [vmem:[#allocation7 + $0x4e4] ss:$48 sps:$4 sm:$0xff]  }
 0x86c   :  { %9521 = vmatprep.subr.bf16.mxu0 %v16282_v57  ;;  %v16222_v57 = vld [vmem:[#allocation13 + $0x3cc] ss:$16 sps:$4 sm:$0xff]  }
 0x86d   :  { %7054 = vmatpush1.bf16.msra.mxu1 %v16187_v49  ;;  %v16280_v49 = vld [vmem:[#allocation7 + $0x360] ss:$48 sps:$4 sm:$0xff]  }
 0x86e   :  { %7055 = vmatprep.subr.bf16.mxu1 %v16192_v38  ;;  %v16205_v38 = vld [vmem:[#allocation13 + $0x328] ss:$16 sps:$4 sm:$0xff]  }
 0x86f   :  { %9522 = vmatpush1.bf16.msra.mxu0 %v16280_v49  ;;  %v16312_v49 = vld [vmem:[#allocation7 + $0x544] ss:$48 sps:$4 sm:$0xff]  }
 0x871   :  { %7056 = vmatpush1.bf16.msra.mxu1 %v16190_v14  ;;  %v16210_v14 = vld [vmem:[#allocation13 + $0x34c] ss:$16 sps:$4 sm:$0xff]  }
 0x872   :  { %7057 = vmatprep.subr.bf16.mxu1 %v16195_v15  ;;  %v16288_v15 = vld [vmem:[#allocation7 + $0x3c4] ss:$48 sps:$4 sm:$0xff]  }
 0x873   :  { %9523 = vmatprep.subr.bf16.mxu0 %v16288_v15  ;;  %v16225_v15 = vld [vmem:[#allocation13 + $0x3ec] ss:$16 sps:$4 sm:$0xff]  }
 0x875   :  { %7058 = vmatpush1.bf16.msra.mxu1 %v16193_v7  ;;  %v16286_v7 = vld [vmem:[#allocation7 + $0x3c0] ss:$48 sps:$4 sm:$0xff]  }
 0x876   :  { %7059 = vmatprep.subr.bf16.mxu1 %v16198_v23  ;;  %v16208_v23 = vld [vmem:[#allocation13 + $0x348] ss:$16 sps:$4 sm:$0xff]   ;;  %9524 = vmatpush1.bf16.msra.mxu0 %v16286_v7  ;;  %v16318_v7 = vld [vmem:[#allocation7 + $0x5a4] ss:$48 sps:$4 sm:$0xff]  }
 0x877   :  { %9525 = vmatprep.subr.bf16.mxu0 %v16294_v25  ;;  %v16231_v25 = vld [vmem:[#allocation7 + $0x14] ss:$48 sps:$4 sm:$0xff]  }
 0x879   :  { %7060 = vmatpush1.bf16.msra.mxu1 %v16196_v27  ;;  %v16292_v27 = vld [vmem:[#allocation7 + $0x420] ss:$48 sps:$4 sm:$0xff]  }
 0x87a   :  { %7061 = vmatprep.subr.bf16.mxu1 %v16201_v12  ;;  %v16211_v12 = vld [vmem:[#allocation13 + $0x368] ss:$16 sps:$4 sm:$0xff]   ;;  %9526 = vmatpush1.bf16.msra.mxu0 %v16292_v27  ;;  %v16324_v27 = vld [vmem:[#allocation7 + $0x604] ss:$48 sps:$4 sm:$0xff]  }
 0x87b   :  { %9527 = vmatprep.subr.bf16.mxu0 %v16300_v47  ;;  %v16235_v47 = vld [vmem:[#allocation7 + $0x70] ss:$48 sps:$4 sm:$0xff]  }
 0x87d   :  { %7062 = vmatpush1.bf16.msra.mxu1 %v16199_v13  ;;  %v16298_v13 = vld [vmem:[#allocation7 + $0x480] ss:$48 sps:$4 sm:$0xff]  }
 0x87e   :  { %7063 = vmatprep.subr.bf16.mxu1 %v16204_v52  ;;  %v16214_v52 = vld [vmem:[#allocation13 + $0x388] ss:$16 sps:$4 sm:$0xff]   ;;  %9528 = vmatpush1.bf16.msra.mxu0 %v16298_v13  ;;  %v16243_v13 = vld [vmem:[#allocation7 + $0xd4] ss:$48 sps:$4 sm:$0xff]  }
 0x87f   :  { %9529 = vmatprep.subr.bf16.mxu0 %v16306_v54  ;;  %v16247_v54 = vld [vmem:[#allocation7 + $0x130] ss:$48 sps:$4 sm:$0xff]  }
 0x881   :  { %7064 = vmatpush1.bf16.msra.mxu1 %v16202_v36  ;;  %v16304_v36 = vld [vmem:[#allocation7 + $0x4e0] ss:$48 sps:$4 sm:$0xff]  }
 0x882   :  { %7065 = vmatprep.subr.bf16.mxu1 %v16207_v40  ;;  %v16217_v40 = vld [vmem:[#allocation13 + $0x3a8] ss:$16 sps:$4 sm:$0xff]   ;;  %9530 = vmatpush1.bf16.msra.mxu0 %v16304_v36  ;;  %v16255_v36 = vld [vmem:[#allocation7 + $0x194] ss:$48 sps:$4 sm:$0xff]  }
 0x883   :  { %9531 = vmatprep.subr.bf16.mxu0 %v16312_v49  ;;  %v16259_v49 = vld [vmem:[#allocation7 + $0x1f0] ss:$48 sps:$4 sm:$0xff]  }
 0x885   :  { %7066 = vmatpush1.bf16.msra.mxu1 %v16205_v38  ;;  %v16310_v38 = vld [vmem:[#allocation7 + $0x540] ss:$48 sps:$4 sm:$0xff]  }
 0x886   :  { %7067 = vmatprep.subr.bf16.mxu1 %v16210_v14  ;;  %v16220_v14 = vld [vmem:[#allocation13 + $0x3c8] ss:$16 sps:$4 sm:$0xff]   ;;  %9532 = vmatpush1.bf16.msra.mxu0 %v16310_v38  ;;  %v16265_v38 = vld [vmem:[#allocation7 + $0x250] ss:$48 sps:$4 sm:$0xff]  }
 0x887   :  { %9533 = vmatprep.subr.bf16.mxu0 %v16318_v7  ;;  %v16279_v7 = vld [vmem:[#allocation7 + $0x314] ss:$48 sps:$4 sm:$0xff]  }
 0x889   :  { %7068 = vmatpush1.bf16.msra.mxu1 %v16208_v23  ;;  %v16316_v23 = vld [vmem:[#allocation7 + $0x5a0] ss:$48 sps:$4 sm:$0xff]  }
 0x88a   :  { %7069 = vmatprep.subr.bf16.mxu1 %v16213_v62  ;;  %v16223_v62 = vld [vmem:[#allocation13 + $0x3e8] ss:$16 sps:$4 sm:$0xff]   ;;  %9534 = vmatpush1.bf16.msra.mxu0 %v16316_v23  ;;  %v16277_v23 = vld [vmem:[#allocation7 + $0x310] ss:$48 sps:$4 sm:$0xff]  }
 0x88b   :  { %9546 = vmatprep.subr.bf16.mxu0 %v16324_v27  ;;  %v16291_v27 = vld [vmem:[#allocation7 + $0x3d4] ss:$48 sps:$4 sm:$0xff]  }
 0x88d   :  { %7070 = vmatpush1.bf16.msra.mxu1 %v16211_v12  ;;  %v16229_v12 = vld [vmem:[#allocation7 + $0x10] ss:$48 sps:$4 sm:$0xff]  }
 0x88e   :  { %7071 = vmatprep.subr.bf16.mxu1 %v16216_v37  ;;  %v16237_v37 = vld [vmem:[#allocation7 + $0x74] ss:$48 sps:$4 sm:$0xff]  }
 0x891   :  { %7072 = vmatpush1.bf16.msra.mxu1 %v16214_v52  ;;  %v16241_v52 = vld [vmem:[#allocation7 + $0xd0] ss:$48 sps:$4 sm:$0xff]  }
 0x892   :  { %7073 = vmatprep.subr.bf16.mxu1 %v16219_v46  ;;  %v16249_v46 = vld [vmem:[#allocation7 + $0x134] ss:$48 sps:$4 sm:$0xff]  }
 0x895   :  { %7074 = vmatpush1.bf16.msra.mxu1 %v16217_v40  ;;  %v16253_v40 = vld [vmem:[#allocation7 + $0x190] ss:$48 sps:$4 sm:$0xff]  }
 0x896   :  { %7075 = vmatprep.subr.bf16.mxu1 %v16222_v57  ;;  %v16261_v57 = vld [vmem:[#allocation7 + $0x1f4] ss:$48 sps:$4 sm:$0xff]  }
 0x899   :  { %7076 = vmatpush1.bf16.msra.mxu1 %v16220_v14  ;;  %v16273_v14 = vld [vmem:[#allocation7 + $0x2b4] ss:$48 sps:$4 sm:$0xff]  }
 0x89a   :  { %7077 = vmatprep.subr.bf16.mxu1 %v16225_v15  ;;  %v16271_v15 = vld [vmem:[#allocation7 + $0x2b0] ss:$48 sps:$4 sm:$0xff]  }
 0x89d   :  { %7078 = vmatpush1.bf16.msra.mxu1 %v16223_v62  ;;  %v16285_v62 = vld [vmem:[#allocation7 + $0x374] ss:$48 sps:$4 sm:$0xff]  }
 0x89e   :  { %9675 = vmatprep.subr.bf16.mxu1 %v16231_v25  ;;  %v16283_v25 = vld [vmem:[#allocation7 + $0x370] ss:$48 sps:$4 sm:$0xff]  }
 0x8a0   :  { %7080 = vmatmul.mubr.bf16.vlgmr.msra.gmra.mrb[44].mxu1 %v18368_v18  ;;  %v16267_v18 = vld [vmem:[#allocation7 + $0x254] ss:$48 sps:$4 sm:$0xff]  }
 0x8a1   :  { %9676 = vmatpush1.bf16.msra.mxu1 %v16229_v12  ;;  %v16289_v12 = vld [vmem:[#allocation7 + $0x3d0] ss:$48 sps:$4 sm:$0xff]  }
 0x8a2   :  { %9677 = vmatprep.subr.bf16.mxu1 %v16237_v37  ;;  %v16297_v37 = vld [vmem:[#allocation7 + $0x434] ss:$48 sps:$4 sm:$0xff]  }
 0x8a5   :  { %9678 = vmatpush1.bf16.msra.mxu1 %v16235_v47  ;;  %v16295_v47 = vld [vmem:[#allocation7 + $0x430] ss:$48 sps:$4 sm:$0xff]  }
 0x8a6   :  { %9679 = vmatprep.subr.bf16.mxu1 %v16243_v13  ;;  %v16303_v13 = vld [vmem:[#allocation7 + $0x494] ss:$48 sps:$4 sm:$0xff]  }
 0x8a9   :  { %9680 = vmatpush1.bf16.msra.mxu1 %v16241_v52  ;;  %v16301_v52 = vld [vmem:[#allocation7 + $0x490] ss:$48 sps:$4 sm:$0xff]  }
 0x8aa   :  { %9681 = vmatprep.subr.bf16.mxu1 %v16249_v46  ;;  %v16309_v46 = vld [vmem:[#allocation7 + $0x4f4] ss:$48 sps:$4 sm:$0xff]  }
 0x8ad   :  { %9682 = vmatpush1.bf16.msra.mxu1 %v16247_v54  ;;  %v16307_v54 = vld [vmem:[#allocation7 + $0x4f0] ss:$48 sps:$4 sm:$0xff]  }
 0x8ae   :  { %9683 = vmatprep.subr.bf16.mxu1 %v16255_v36  ;;  %v16315_v36 = vld [vmem:[#allocation7 + $0x554] ss:$48 sps:$4 sm:$0xff]  }
 0x8b1   :  { %9684 = vmatpush1.bf16.msra.mxu1 %v16253_v40  ;;  %v16313_v40 = vld [vmem:[#allocation7 + $0x550] ss:$48 sps:$4 sm:$0xff]  }
 0x8b2   :  { %9685 = vmatprep.subr.bf16.mxu1 %v16261_v57  ;;  %v16321_v57 = vld [vmem:[#allocation7 + $0x5b4] ss:$48 sps:$4 sm:$0xff]  }
 0x8b5   :  { %9686 = vmatpush1.bf16.msra.mxu1 %v16259_v49  ;;  %v16319_v49 = vld [vmem:[#allocation7 + $0x5b0] ss:$48 sps:$4 sm:$0xff]  }
 0x8b6   :  { %9687 = vmatprep.subr.bf16.mxu1 %v16267_v18  ;;  %v16327_v18 = vld [vmem:[#allocation7 + $0x614] ss:$48 sps:$4 sm:$0xff]  }
 0x8b9   :  { %9688 = vmatpush1.bf16.msra.mxu1 %v16265_v38  ;;  %v18380_v38 = vld [vmem:[#allocation14] sm:$0xf] }
 0x8ba   :  { %9689 = vmatprep.subr.bf16.mxu1 %v16273_v14  ;;  %v18384_v14 = vrot.slane %v18380_v38, %v18004_v21 }
 0x8bd   :  { %9690 = vmatpush1.bf16.msra.mxu1 %v16271_v15  ;;  %v18388_v15 = vrot.slane %v18380_v38, %v18001_v19 }
 0x8be   :  { %9691 = vmatprep.subr.bf16.mxu1 %v16279_v7 }
 0x8c1   :  { %9692 = vmatpush1.bf16.msra.mxu1 %v16277_v23 }
 0x8c2   :  { %9693 = vmatprep.subr.bf16.mxu1 %v16285_v62 }
 0x8c5   :  { %9694 = vmatpush1.bf16.msra.mxu1 %v16283_v25 }
 0x8c6   :  { %9695 = vmatprep.subr.bf16.mxu1 %v16291_v27 }
 0x8c9   :  { %9696 = vmatpush1.bf16.msra.mxu1 %v16289_v12 }
 0x8ca   :  { %9697 = vmatprep.subr.bf16.mxu1 %v16297_v37 }
 0x8cd   :  { %9698 = vmatpush1.bf16.msra.mxu1 %v16295_v47 }
 0x8ce   :  { %9699 = vmatprep.subr.bf16.mxu1 %v16303_v13 }
 0x8d1   :  { %9700 = vmatpush1.bf16.msra.mxu1 %v16301_v52 }
 0x8d2   :  { %9701 = vmatprep.subr.bf16.mxu1 %v16309_v46 }
 0x8d5   :  { %9702 = vmatpush1.bf16.msra.mxu1 %v16307_v54 }
 0x8d6   :  { %9703 = vmatprep.subr.bf16.mxu1 %v16315_v36 }
 0x8d9   :  { %9704 = vmatpush1.bf16.msra.mxu1 %v16313_v40 }
 0x8da   :  { %9705 = vmatprep.subr.bf16.mxu1 %v16321_v57 }
 0x8dd   :  { %9706 = vmatpush1.bf16.msra.mxu1 %v16319_v49 }
 0x8de   :  { %9718 = vmatprep.subr.bf16.mxu1 %v16327_v18 }
 0x8f3   :  { %v6995_v7 = vpop.f32.mrb[40].mxu1 }
 0x8f4   :  { %v7111_v23 = vadd.f32 %v18384_v14, %v6995_v7  ;;  %v6997_v62 = vpop.f32.mrb[41].mxu1 }
 0x8f5   :  { %v7112_v25 = vadd.f32 %v18388_v15, %v6997_v62  ;;  %v6999_v27 = vpop.f32.mrb[42].mxu1 }
 0x8f6   :  { %v13923_v12 = vmul.f32 -1.442695, %v7111_v23  ;;  %v7115_v37 = vadd.f32 %v18384_v14, %v6999_v27  ;;  %v7001_v47 = vpop.f32.mrb[43].mxu1 }
 0x8f7   :  { %v13924_v13 = vmul.f32 -1.442695, %v7112_v25  ;;  %v7116_v52 = vadd.f32 %v18388_v15, %v7001_v47 }
 0x8f8   :  { %17186 = vpow2.f32 %v13923_v12  ;;  %v13927_v21 = vmul.f32 -1.442695, %v7115_v37 }
 0x8f9   :  { %17188 = vpow2.f32 %v13924_v13  ;;  %v13928_v46 = vmul.f32 -1.442695, %v7116_v52 }
 0x8fa   :  { %17190 = vpow2.f32 %v13927_v21 }
 0x8fb   :  { %17192 = vpow2.f32 %v13928_v46 }
 0x8fc   :  { %17194 = vtanh.f32 %v18321_v22 }
 0x8fd   :  { %17196 = vtanh.f32 %v18327_v30 }
 0x8fe   :  { %17198 = vtanh.f32 %v18324_v48 }
 0x8ff   :  { %17200 = vtanh.f32 %v18330_v1 }
 0x902   :  { %v17187_v19 = vpop.eup %17186 }
 0x903   :  { %v17189_v54 = vpop.eup %17188  ;;  %v7143_v36 = vadd.f32 1.0, %v17187_v19 }
 0x904   :  { %v17191_v40 = vpop.eup %17190  ;;  %v7144_v57 = vadd.f32 1.0, %v17189_v54 }
 0x905   :  { %v17193_v49 = vpop.eup %17192  ;;  %17202 = vrcp.f32 %v7143_v36  ;;  %v7147_v18 = vadd.f32 1.0, %v17191_v40 }
 0x906   :  { %17204 = vrcp.f32 %v7144_v57  ;;  %v7148_v7 = vadd.f32 1.0, %v17193_v49  ;;  %v17195_v23 = vpop.eup %17194 }
 0x907   :  { %17206 = vrcp.f32 %v7147_v18  ;;  %v17197_v22 = vpop.eup %17196 }
 0x908   :  { %17208 = vrcp.f32 %v7148_v7  ;;  %v17199_v62 = vpop.eup %17198 }
 0x909   :  { %v17201_v25 = vpop.eup %17200 }
 0x90f   :  { %v17203_v30 = vpop.eup %17202 }
 0x910   :  { %v17205_v27 = vpop.eup %17204  ;;  %v7175_v12 = vmul.f32 %v17203_v30, %v17195_v23  ;;  %v7179_v48 = vsub.f32 1.0, %v17203_v30  ;;  %v16337_v30 = vld [vmem:[#allocation7 + $0x6d0] ss:$48 sps:$4 sm:$0xff]  }
 0x911   :  { %v17207_v37 = vpop.eup %17206  ;;  %v7176_v47 = vmul.f32 %v17205_v27, %v17197_v22  ;;  %v7180_v13 = vsub.f32 1.0, %v17205_v27  ;;  %v16336_v22 = vld [vmem:[#allocation7 + $0x6c4] ss:$48 sps:$4 sm:$0xff]  }
 0x912   :  { %v17209_v1 = vpop.eup %17208  ;;  %v7183_v52 = vmul.f32 %v7179_v48, %v3198_v35  ;;  %v7177_v21 = vmul.f32 %v17207_v37, %v17199_v62  ;;  %v7181_v46 = vsub.f32 1.0, %v17207_v37  ;;  %v16325_v35 = vld [vmem:[#allocation7 + $0x610] ss:$48 sps:$4 sm:$0xff]   ;;  %v16339_v62 = vld [vmem:[#allocation7 + $0x6d4] ss:$48 sps:$4 sm:$0xff]  }
 0x913   :  { %v7184_v19 = vmul.f32 %v7180_v13, %v3199_v33  ;;  %v7178_v54 = vmul.f32 %v17209_v1, %v17201_v25  ;;  %v7182_v36 = vsub.f32 1.0, %v17209_v1  ;;  %v16322_v33 = vld [vmem:[#allocation7 + $0x600] ss:$48 sps:$4 sm:$0xff]   ;;  %v16342_v27 = vld [vmem:[#allocation7 + $0x724] ss:$48 sps:$4 sm:$0xff]  }
 0x914   :  { %v18402_v40 = vadd.f32 %v7183_v52, %v7175_v12  ;;  %v7185_v57 = vmul.f32 %v7181_v46, %v3200_v32  ;;  %v16333_v32 = vld [vmem:[#allocation7 + $0x674] ss:$48 sps:$4 sm:$0xff]   ;;  %v16334_v25 = vld [vmem:[#allocation7 + $0x6c0] ss:$48 sps:$4 sm:$0xff]  }
 0x915   :  { %v18406_v49 = vadd.f32 %v7184_v19, %v7176_v47  ;;  %v7186_v18 = vmul.f32 %v7182_v36, %v3201_v34  ;;  %v16331_v34 = vld [vmem:[#allocation7 + $0x670] ss:$48 sps:$4 sm:$0xff]   ;;  %v16345_v12 = vld [vmem:[#allocation7 + $0x734] ss:$48 sps:$4 sm:$0xff]  }
 0x916   :  { %v18410_v7 = vadd.f32 %v7185_v57, %v7177_v21  ;;  %v16340_v48 = vld [vmem:[#allocation7 + $0x720] ss:$48 sps:$4 sm:$0xff]   ;;  %v16348_v47 = vld [vmem:[#allocation7 + $0x784] ss:$48 sps:$4 sm:$0xff]  }
 0x917   :  { %v18412_v28 = vadd.f32 %v7186_v18, %v7178_v54  ;;  %v16343_v37 = vld [vmem:[#allocation7 + $0x730] ss:$48 sps:$4 sm:$0xff]   ;;  %v16351_v13 = vld [vmem:[#allocation7 + $0x794] ss:$48 sps:$4 sm:$0xff]  }
 0x918   :  { %v18420_v23 = vpack.c.bf16 %v18410_v7, %v18402_v40  ;;  %v16346_v1 = vld [vmem:[#allocation7 + $0x780] ss:$48 sps:$4 sm:$0xff]   ;;  %v16354_v21 = vld [vmem:[#allocation7 + $0x7e4] ss:$48 sps:$4 sm:$0xff]  }
 0x919   :  { %v18416_v26 = vpack.c.bf16 %v18412_v28, %v18406_v49  ;;  %v16349_v52 = vld [vmem:[#allocation7 + $0x790] ss:$48 sps:$4 sm:$0xff]   ;;  %v16357_v46 = vld [vmem:[#allocation7 + $0x7f4] ss:$48 sps:$4 sm:$0xff]  }
 0x91a   :  { %v16352_v19 = vld [vmem:[#allocation7 + $0x7e0] ss:$48 sps:$4 sm:$0xff]   ;;  %v16360_v36 = vld [vmem:[#allocation7 + $0x844] ss:$48 sps:$4 sm:$0xff]  }
 0x91b   :  { %9535 = vmatprep.mubr.bf16.mxu0 %v18416_v26  ;;  %9707 = vmatprep.mubr.bf16.mxu1 %v18416_v26  ;;  %v16355_v54 = vld [vmem:[#allocation7 + $0x7f0] ss:$48 sps:$4 sm:$0xff]   ;;  %v16363_v57 = vld [vmem:[#allocation7 + $0x854] ss:$48 sps:$4 sm:$0xff]  }
 0x91c   :  { %9536 = vmatmul.mubr.bf16.vlgmr.msra.gmra.mrb[4].mxu0 %v18420_v23  ;;  %9708 = vmatmul.mubr.bf16.vlgmr.msra.gmra.mrb[48].mxu1 %v18420_v23  ;;  %v16358_v18 = vld [vmem:[#allocation7 + $0x840] ss:$48 sps:$4 sm:$0xff]  }
 0x91d   :  { %9547 = vmatpush1.bf16.msra.mxu0 %v16322_v33  ;;  %9719 = vmatpush1.bf16.msra.mxu1 %v16325_v35  ;;  %v16361_v33 = vld [vmem:[#allocation7 + $0x850] ss:$48 sps:$4 sm:$0xff]   ;;  %v16366_v35 = vld [vmem:[#allocation7 + $0x8a4] ss:$48 sps:$4 sm:$0xff]  }
 0x91e   :  { %9548 = vmatprep.subr.bf16.mxu0 %v16330_v29  ;;  %9720 = vmatprep.subr.bf16.mxu1 %v16333_v32  ;;  %v16369_v29 = vld [vmem:[#allocation7 + $0x8b4] ss:$48 sps:$4 sm:$0xff]   ;;  %v16364_v32 = vld [vmem:[#allocation7 + $0x8a0] ss:$48 sps:$4 sm:$0xff]  }
 0x921   :  { %9549 = vmatpush1.bf16.msra.mxu0 %v16328_v31  ;;  %9721 = vmatpush1.bf16.msra.mxu1 %v16331_v34  ;;  %v16367_v31 = vld [vmem:[#allocation7 + $0x8b0] ss:$48 sps:$4 sm:$0xff]   ;;  %v16372_v34 = vld [vmem:[#allocation7 + $0x904] ss:$48 sps:$4 sm:$0xff]  }
 0x922   :  { %9550 = vmatprep.subr.bf16.mxu0 %v16336_v22  ;;  %9722 = vmatprep.subr.bf16.mxu1 %v16339_v62  ;;  %v16375_v22 = vld [vmem:[#allocation7 + $0x914] ss:$48 sps:$4 sm:$0xff]   ;;  %v16370_v62 = vld [vmem:[#allocation7 + $0x900] ss:$48 sps:$4 sm:$0xff]  }
 0x925   :  { %9551 = vmatpush1.bf16.msra.mxu0 %v16334_v25  ;;  %9723 = vmatpush1.bf16.msra.mxu1 %v16337_v30  ;;  %v16373_v25 = vld [vmem:[#allocation7 + $0x910] ss:$48 sps:$4 sm:$0xff]   ;;  %v16378_v30 = vld [vmem:[#allocation7 + $0x964] ss:$48 sps:$4 sm:$0xff]  }
 0x926   :  { %9552 = vmatprep.subr.bf16.mxu0 %v16342_v27  ;;  %9724 = vmatprep.subr.bf16.mxu1 %v16345_v12  ;;  %v16381_v27 = vld [vmem:[#allocation7 + $0x974] ss:$48 sps:$4 sm:$0xff]   ;;  %v16376_v12 = vld [vmem:[#allocation7 + $0x960] ss:$48 sps:$4 sm:$0xff]  }
 0x929   :  { %9553 = vmatpush1.bf16.msra.mxu0 %v16340_v48  ;;  %9725 = vmatpush1.bf16.msra.mxu1 %v16343_v37  ;;  %v16379_v48 = vld [vmem:[#allocation7 + $0x970] ss:$48 sps:$4 sm:$0xff]   ;;  %v16384_v37 = vld [vmem:[#allocation7 + $0x9c4] ss:$48 sps:$4 sm:$0xff]  }
 0x92a   :  { %9554 = vmatprep.subr.bf16.mxu0 %v16348_v47  ;;  %9726 = vmatprep.subr.bf16.mxu1 %v16351_v13  ;;  %v16387_v47 = vld [vmem:[#allocation7 + $0x9d4] ss:$48 sps:$4 sm:$0xff]   ;;  %v16382_v13 = vld [vmem:[#allocation7 + $0x9c0] ss:$48 sps:$4 sm:$0xff]  }
 0x92d   :  { %9555 = vmatpush1.bf16.msra.mxu0 %v16346_v1  ;;  %9727 = vmatpush1.bf16.msra.mxu1 %v16349_v52  ;;  %v16385_v1 = vld [vmem:[#allocation7 + $0x9d0] ss:$48 sps:$4 sm:$0xff]   ;;  %v16390_v52 = vld [vmem:[#allocation7 + $0xa24] ss:$48 sps:$4 sm:$0xff]  }
 0x92e   :  { %9556 = vmatprep.subr.bf16.mxu0 %v16354_v21  ;;  %9728 = vmatprep.subr.bf16.mxu1 %v16357_v46  ;;  %v16393_v21 = vld [vmem:[#allocation7 + $0xa34] ss:$48 sps:$4 sm:$0xff]   ;;  %v16388_v46 = vld [vmem:[#allocation7 + $0xa20] ss:$48 sps:$4 sm:$0xff]  }
 0x931   :  { %9557 = vmatpush1.bf16.msra.mxu0 %v16352_v19  ;;  %9729 = vmatpush1.bf16.msra.mxu1 %v16355_v54  ;;  %v16391_v19 = vld [vmem:[#allocation7 + $0xa30] ss:$48 sps:$4 sm:$0xff]   ;;  %v16396_v54 = vld [vmem:[#allocation7 + $0xa84] ss:$48 sps:$4 sm:$0xff]  }
 0x932   :  { %9558 = vmatprep.subr.bf16.mxu0 %v16360_v36  ;;  %9730 = vmatprep.subr.bf16.mxu1 %v16363_v57  ;;  %v16399_v36 = vld [vmem:[#allocation7 + $0xa94] ss:$48 sps:$4 sm:$0xff]   ;;  %v16394_v57 = vld [vmem:[#allocation7 + $0xa80] ss:$48 sps:$4 sm:$0xff]  }
 0x935   :  { %9559 = vmatpush1.bf16.msra.mxu0 %v16358_v18  ;;  %9731 = vmatpush1.bf16.msra.mxu1 %v16361_v33  ;;  %v16397_v18 = vld [vmem:[#allocation7 + $0xa90] ss:$48 sps:$4 sm:$0xff]   ;;  %v16402_v33 = vld [vmem:[#allocation7 + $0xae4] ss:$48 sps:$4 sm:$0xff]  }
 0x936   :  { %9560 = vmatprep.subr.bf16.mxu0 %v16366_v35  ;;  %9732 = vmatprep.subr.bf16.mxu1 %v16369_v29  ;;  %v16405_v35 = vld [vmem:[#allocation7 + $0xaf4] ss:$48 sps:$4 sm:$0xff]   ;;  %v16400_v29 = vld [vmem:[#allocation7 + $0xae0] ss:$48 sps:$4 sm:$0xff]  }
 0x939   :  { %9561 = vmatpush1.bf16.msra.mxu0 %v16364_v32  ;;  %9733 = vmatpush1.bf16.msra.mxu1 %v16367_v31  ;;  %v16403_v32 = vld [vmem:[#allocation7 + $0xaf0] ss:$48 sps:$4 sm:$0xff]   ;;  %v16408_v31 = vld [vmem:[#allocation7 + $0xb44] ss:$48 sps:$4 sm:$0xff]  }
 0x93a   :  { %9562 = vmatprep.subr.bf16.mxu0 %v16372_v34  ;;  %9734 = vmatprep.subr.bf16.mxu1 %v16375_v22  ;;  %v16411_v34 = vld [vmem:[#allocation7 + $0xb54] ss:$48 sps:$4 sm:$0xff]   ;;  %v16406_v22 = vld [vmem:[#allocation7 + $0xb40] ss:$48 sps:$4 sm:$0xff]  }
 0x93d   :  { %9563 = vmatpush1.bf16.msra.mxu0 %v16370_v62  ;;  %9735 = vmatpush1.bf16.msra.mxu1 %v16373_v25  ;;  %v16409_v62 = vld [vmem:[#allocation7 + $0xb50] ss:$48 sps:$4 sm:$0xff]   ;;  %v16414_v25 = vld [vmem:[#allocation7 + $0xba4] ss:$48 sps:$4 sm:$0xff]  }
 0x93e   :  { %9564 = vmatprep.subr.bf16.mxu0 %v16378_v30  ;;  %9736 = vmatprep.subr.bf16.mxu1 %v16381_v27  ;;  %v16417_v30 = vld [vmem:[#allocation7 + $0xbb4] ss:$48 sps:$4 sm:$0xff]   ;;  %v16412_v27 = vld [vmem:[#allocation7 + $0xba0] ss:$48 sps:$4 sm:$0xff]  }
 0x941   :  { %9565 = vmatpush1.bf16.msra.mxu0 %v16376_v12  ;;  %9737 = vmatpush1.bf16.msra.mxu1 %v16379_v48  ;;  %v16415_v12 = vld [vmem:[#allocation7 + $0xbb0] ss:$48 sps:$4 sm:$0xff]   ;;  %v16420_v48 = vld [vmem:[#allocation7 + $0xc] ss:$48 sps:$4 sm:$0xff]  }
 0x942   :  { %9566 = vmatprep.subr.bf16.mxu0 %v16384_v37  ;;  %9738 = vmatprep.subr.bf16.mxu1 %v16387_v47  ;;  %v16423_v37 = vld [vmem:[#allocation7 + $0x24] ss:$48 sps:$4 sm:$0xff]   ;;  %v18428_v47 = vrot.slane %v18380_v38, %v18113_v53 }
 0x945   :  { %9567 = vmatpush1.bf16.msra.mxu0 %v16382_v13  ;;  %9739 = vmatpush1.bf16.msra.mxu1 %v16385_v1  ;;  %v18432_v13 = vrot.slane %v18380_v38, %v18116_v55 }
 0x946   :  { %9568 = vmatprep.subr.bf16.mxu0 %v16390_v52  ;;  %9740 = vmatprep.subr.bf16.mxu1 %v16393_v21 }
 0x949   :  { %9569 = vmatpush1.bf16.msra.mxu0 %v16388_v46  ;;  %9741 = vmatpush1.bf16.msra.mxu1 %v16391_v19 }
 0x94a   :  { %9570 = vmatprep.subr.bf16.mxu0 %v16396_v54  ;;  %9742 = vmatprep.subr.bf16.mxu1 %v16399_v36 }
 0x94d   :  { %9571 = vmatpush1.bf16.msra.mxu0 %v16394_v57  ;;  %9743 = vmatpush1.bf16.msra.mxu1 %v16397_v18 }
 0x94e   :  { %9572 = vmatprep.subr.bf16.mxu0 %v16402_v33  ;;  %9744 = vmatprep.subr.bf16.mxu1 %v16405_v35 }
 0x951   :  { %9573 = vmatpush1.bf16.msra.mxu0 %v16400_v29  ;;  %9745 = vmatpush1.bf16.msra.mxu1 %v16403_v32 }
 0x952   :  { %9574 = vmatprep.subr.bf16.mxu0 %v16408_v31  ;;  %9746 = vmatprep.subr.bf16.mxu1 %v16411_v34 }
 0x955   :  { %9575 = vmatpush1.bf16.msra.mxu0 %v16406_v22  ;;  %9747 = vmatpush1.bf16.msra.mxu1 %v16409_v62 }
 0x956   :  { %9576 = vmatprep.subr.bf16.mxu0 %v16414_v25  ;;  %9748 = vmatprep.subr.bf16.mxu1 %v16417_v30 }
 0x959   :  { %9577 = vmatpush1.bf16.msra.mxu0 %v16412_v27  ;;  %9749 = vmatpush1.bf16.msra.mxu1 %v16415_v12 }
 0x95a   :  { %9589 = vmatprep.subr.bf16.mxu0 %v16420_v48  ;;  %9847 = vmatprep.subr.bf16.mxu1 %v16423_v37 }
 0x973   :  { %v7081_v1 = vpop.f32.mrb[44].mxu1 }
 0x974   :  { %v7113_v52 = vadd.f32 %v18428_v47, %v7081_v1  ;;  %v7083_v21 = vpop.f32.mrb[45].mxu1 }
 0x975   :  { %v7114_v46 = vadd.f32 %v18432_v13, %v7083_v21  ;;  %v7085_v19 = vpop.f32.mrb[46].mxu1 }
 0x976   :  { %v13925_v54 = vmul.f32 -1.442695, %v7113_v52  ;;  %v7117_v36 = vadd.f32 %v18428_v47, %v7085_v19  ;;  %v7087_v57 = vpop.f32.mrb[47].mxu1  ;;  %v16421_v19 = vld [vmem:[#allocation7 + $0x20] ss:$48 sps:$4 sm:$0xff]  }
 0x977   :  { %v13926_v18 = vmul.f32 -1.442695, %v7114_v46  ;;  %v7118_v33 = vadd.f32 %v18432_v13, %v7087_v57  ;;  %v16418_v46 = vld [vmem:[#allocation7 + $0x8] ss:$48 sps:$4 sm:$0xff]   ;;  %v16429_v57 = vld [vmem:[#allocation7 + $0x84] ss:$48 sps:$4 sm:$0xff]  }
 0x978   :  { %17210 = vpow2.f32 %v13925_v54  ;;  %v13929_v53 = vmul.f32 -1.442695, %v7117_v36  ;;  %v16426_v36 = vld [vmem:[#allocation7 + $0x6c] ss:$48 sps:$4 sm:$0xff]  }
 0x979   :  { %17212 = vpow2.f32 %v13926_v18  ;;  %v13930_v35 = vmul.f32 -1.442695, %v7118_v33  ;;  %v16424_v18 = vld [vmem:[#allocation7 + $0x68] ss:$48 sps:$4 sm:$0xff]   ;;  %v16427_v33 = vld [vmem:[#allocation7 + $0x80] ss:$48 sps:$4 sm:$0xff]  }
 0x97a   :  { %17214 = vpow2.f32 %v13929_v53  ;;  %v16432_v53 = vld [vmem:[#allocation7 + $0xcc] ss:$48 sps:$4 sm:$0xff]  }
 0x97b   :  { %17216 = vpow2.f32 %v13930_v35  ;;  %v16435_v35 = vld [vmem:[#allocation7 + $0xe4] ss:$48 sps:$4 sm:$0xff]  }
 0x97c   :  { %17218 = vtanh.f32 %v18355_v58 }
 0x97d   :  { %17220 = vtanh.f32 %v18361_v50 }
 0x97e   :  { %17222 = vtanh.f32 %v18358_v56 }
 0x97f   :  { %17224 = vtanh.f32 %v18364_v2 }
 0x982   :  { %v17211_v55 = vpop.eup %17210 }
 0x983   :  { %v17213_v38 = vpop.eup %17212  ;;  %v7145_v29 = vadd.f32 1.0, %v17211_v55  ;;  %v16430_v55 = vld [vmem:[#allocation7 + $0xc8] ss:$48 sps:$4 sm:$0xff]  }
 0x984   :  { %v17215_v32 = vpop.eup %17214  ;;  %v7146_v31 = vadd.f32 1.0, %v17213_v38  ;;  %v16433_v38 = vld [vmem:[#allocation7 + $0xe0] ss:$48 sps:$4 sm:$0xff]  }
 0x985   :  { %v17217_v34 = vpop.eup %17216  ;;  %17226 = vrcp.f32 %v7145_v29  ;;  %v7149_v22 = vadd.f32 1.0, %v17215_v32  ;;  %v16438_v29 = vld [vmem:[#allocation7 + $0x12c] ss:$48 sps:$4 sm:$0xff]   ;;  %v16441_v32 = vld [vmem:[#allocation7 + $0x144] ss:$48 sps:$4 sm:$0xff]  }
 0x986   :  { %17228 = vrcp.f32 %v7146_v31  ;;  %v7150_v62 = vadd.f32 1.0, %v17217_v34  ;;  %v17219_v25 = vpop.eup %17218  ;;  %v16436_v31 = vld [vmem:[#allocation7 + $0x128] ss:$48 sps:$4 sm:$0xff]   ;;  %v16439_v34 = vld [vmem:[#allocation7 + $0x140] ss:$48 sps:$4 sm:$0xff]  }
 0x987   :  { %17230 = vrcp.f32 %v7149_v22  ;;  %v17221_v58 = vpop.eup %17220  ;;  %v16444_v22 = vld [vmem:[#allocation7 + $0x18c] ss:$48 sps:$4 sm:$0xff]  }
 0x988   :  { %17232 = vrcp.f32 %v7150_v62  ;;  %v17223_v30 = vpop.eup %17222  ;;  %v16447_v62 = vld [vmem:[#allocation7 + $0x1a4] ss:$48 sps:$4 sm:$0xff]  }
 0x989   :  { %v17225_v27 = vpop.eup %17224 }
 0x98f   :  { %v17227_v50 = vpop.eup %17226 }
 0x990   :  { %v17229_v12 = vpop.eup %17228  ;;  %v18442_v48 = vmul.f32 %v17227_v50, %v17219_v25  ;;  %v16442_v25 = vld [vmem:[#allocation7 + $0x188] ss:$48 sps:$4 sm:$0xff]  }
 0x991   :  { %v17231_v56 = vpop.eup %17230  ;;  %v18444_v37 = vmul.f32 %v17229_v12, %v17221_v58  ;;  %v16445_v58 = vld [vmem:[#allocation7 + $0x1a0] ss:$48 sps:$4 sm:$0xff]   ;;  %v16448_v50 = vld [vmem:[#allocation7 + $0x1e8] ss:$48 sps:$4 sm:$0xff]  }
 0x992   :  { %v17233_v2 = vpop.eup %17232  ;;  %v18446_v1 = vmul.f32 %v17231_v56, %v17223_v30  ;;  %v16450_v30 = vld [vmem:[#allocation7 + $0x1ec] ss:$48 sps:$4 sm:$0xff]   ;;  %v16451_v12 = vld [vmem:[#allocation7 + $0x200] ss:$48 sps:$4 sm:$0xff]  }
 0x993   :  { %v18448_v52 = vmul.f32 %v17233_v2, %v17225_v27  ;;  %v16453_v27 = vld [vmem:[#allocation7 + $0x204] ss:$48 sps:$4 sm:$0xff]   ;;  %v16456_v56 = vld [vmem:[#allocation7 + $0x24c] ss:$48 sps:$4 sm:$0xff]  }
 0x994   :  { %v18456_v54 = vpack.c.bf16 %v18446_v1, %v18442_v48  ;;  %v16459_v2 = vld [vmem:[#allocation7 + $0x264] ss:$48 sps:$4 sm:$0xff]  }
 0x995   :  { %v18452_v21 = vpack.c.bf16 %v18448_v52, %v18444_v37 }
 0x997   :  { %9578 = vmatprep.mubr.bf16.mxu0 %v18452_v21  ;;  %9750 = vmatprep.mubr.bf16.mxu1 %v18452_v21 }
 0x998   :  { %9579 = vmatmul.mubr.bf16.vlgmr.msra.gmra.mrb[4].mxu0 %v18456_v54  ;;  %9751 = vmatmul.mubr.bf16.vlgmr.msra.gmra.mrb[48].mxu1 %v18456_v54 }
 0x999   :  { %9590 = vmatpush1.bf16.msra.mxu0 %v16418_v46  ;;  %9848 = vmatpush1.bf16.msra.mxu1 %v16421_v19  ;;  %v16454_v46 = vld [vmem:[#allocation7 + $0x248] ss:$48 sps:$4 sm:$0xff]   ;;  %v16457_v19 = vld [vmem:[#allocation7 + $0x260] ss:$48 sps:$4 sm:$0xff]  }
 0x99a   :  { %9621 = vmatprep.mubr.bf16.mxu0 %v18416_v26  ;;  %9879 = vmatprep.mubr.bf16.mxu1 %v18416_v26 }
 0x99b   :  { %9591 = vmatprep.subr.bf16.mxu0 %v16426_v36  ;;  %9849 = vmatprep.subr.bf16.mxu1 %v16429_v57  ;;  %v16462_v36 = vld [vmem:[#allocation7 + $0x2ac] ss:$48 sps:$4 sm:$0xff]   ;;  %v16465_v57 = vld [vmem:[#allocation7 + $0x2c4] ss:$48 sps:$4 sm:$0xff]  }
 0x99d   :  { %9592 = vmatpush1.bf16.msra.mxu0 %v16424_v18  ;;  %9850 = vmatpush1.bf16.msra.mxu1 %v16427_v33  ;;  %v16460_v18 = vld [vmem:[#allocation7 + $0x2a8] ss:$48 sps:$4 sm:$0xff]   ;;  %v16463_v33 = vld [vmem:[#allocation7 + $0x2c0] ss:$48 sps:$4 sm:$0xff]  }
 0x99e   :  { %9593 = vmatprep.subr.bf16.mxu0 %v16432_v53  ;;  %9851 = vmatprep.subr.bf16.mxu1 %v16435_v35  ;;  %v16468_v53 = vld [vmem:[#allocation7 + $0x30c] ss:$48 sps:$4 sm:$0xff]   ;;  %v16471_v35 = vld [vmem:[#allocation7 + $0x324] ss:$48 sps:$4 sm:$0xff]  }
 0x9a1   :  { %9594 = vmatpush1.bf16.msra.mxu0 %v16430_v55  ;;  %9852 = vmatpush1.bf16.msra.mxu1 %v16433_v38  ;;  %v16466_v55 = vld [vmem:[#allocation7 + $0x308] ss:$48 sps:$4 sm:$0xff]   ;;  %v16469_v38 = vld [vmem:[#allocation7 + $0x320] ss:$48 sps:$4 sm:$0xff]  }
 0x9a2   :  { %9595 = vmatprep.subr.bf16.mxu0 %v16438_v29  ;;  %9853 = vmatprep.subr.bf16.mxu1 %v16441_v32  ;;  %v16474_v29 = vld [vmem:[#allocation7 + $0x36c] ss:$48 sps:$4 sm:$0xff]   ;;  %v16477_v32 = vld [vmem:[#allocation7 + $0x384] ss:$48 sps:$4 sm:$0xff]  }
 0x9a5   :  { %9596 = vmatpush1.bf16.msra.mxu0 %v16436_v31  ;;  %9854 = vmatpush1.bf16.msra.mxu1 %v16439_v34  ;;  %v16472_v31 = vld [vmem:[#allocation7 + $0x368] ss:$48 sps:$4 sm:$0xff]   ;;  %v16475_v34 = vld [vmem:[#allocation7 + $0x380] ss:$48 sps:$4 sm:$0xff]  }
 0x9a6   :  { %9597 = vmatprep.subr.bf16.mxu0 %v16444_v22  ;;  %9855 = vmatprep.subr.bf16.mxu1 %v16447_v62  ;;  %v16480_v22 = vld [vmem:[#allocation7 + $0x3cc] ss:$48 sps:$4 sm:$0xff]   ;;  %v16483_v62 = vld [vmem:[#allocation7 + $0x3e4] ss:$48 sps:$4 sm:$0xff]  }
 0x9a9   :  { %9598 = vmatpush1.bf16.msra.mxu0 %v16442_v25  ;;  %9856 = vmatpush1.bf16.msra.mxu1 %v16445_v58  ;;  %v16478_v25 = vld [vmem:[#allocation7 + $0x3c8] ss:$48 sps:$4 sm:$0xff]   ;;  %v16481_v58 = vld [vmem:[#allocation7 + $0x3e0] ss:$48 sps:$4 sm:$0xff]  }
 0x9aa   :  { %9599 = vmatprep.subr.bf16.mxu0 %v16450_v30  ;;  %9857 = vmatprep.subr.bf16.mxu1 %v16453_v27  ;;  %v16486_v30 = vld [vmem:[#allocation7 + $0x42c] ss:$48 sps:$4 sm:$0xff]   ;;  %v16489_v27 = vld [vmem:[#allocation7 + $0x444] ss:$48 sps:$4 sm:$0xff]  }
 0x9ad   :  { %9600 = vmatpush1.bf16.msra.mxu0 %v16448_v50  ;;  %9858 = vmatpush1.bf16.msra.mxu1 %v16451_v12  ;;  %v16484_v50 = vld [vmem:[#allocation7 + $0x428] ss:$48 sps:$4 sm:$0xff]   ;;  %v16487_v12 = vld [vmem:[#allocation7 + $0x440] ss:$48 sps:$4 sm:$0xff]  }
 0x9ae   :  { %9601 = vmatprep.subr.bf16.mxu0 %v16456_v56  ;;  %9859 = vmatprep.subr.bf16.mxu1 %v16459_v2  ;;  %v16492_v56 = vld [vmem:[#allocation7 + $0x48c] ss:$48 sps:$4 sm:$0xff]   ;;  %v16495_v2 = vld [vmem:[#allocation7 + $0x4a4] ss:$48 sps:$4 sm:$0xff]  }
 0x9b1   :  { %9602 = vmatpush1.bf16.msra.mxu0 %v16454_v46  ;;  %9860 = vmatpush1.bf16.msra.mxu1 %v16457_v19  ;;  %v16490_v46 = vld [vmem:[#allocation7 + $0x488] ss:$48 sps:$4 sm:$0xff]   ;;  %v16493_v19 = vld [vmem:[#allocation7 + $0x4a0] ss:$48 sps:$4 sm:$0xff]  }
 0x9b2   :  { %9603 = vmatprep.subr.bf16.mxu0 %v16462_v36  ;;  %9861 = vmatprep.subr.bf16.mxu1 %v16465_v57  ;;  %v16498_v36 = vld [vmem:[#allocation7 + $0x4ec] ss:$48 sps:$4 sm:$0xff]   ;;  %v16501_v57 = vld [vmem:[#allocation7 + $0x504] ss:$48 sps:$4 sm:$0xff]  }
 0x9b5   :  { %9604 = vmatpush1.bf16.msra.mxu0 %v16460_v18  ;;  %9862 = vmatpush1.bf16.msra.mxu1 %v16463_v33  ;;  %v16496_v18 = vld [vmem:[#allocation7 + $0x4e8] ss:$48 sps:$4 sm:$0xff]   ;;  %v16499_v33 = vld [vmem:[#allocation7 + $0x500] ss:$48 sps:$4 sm:$0xff]  }
 0x9b6   :  { %9605 = vmatprep.subr.bf16.mxu0 %v16468_v53  ;;  %9863 = vmatprep.subr.bf16.mxu1 %v16471_v35  ;;  %v16504_v53 = vld [vmem:[#allocation7 + $0x54c] ss:$48 sps:$4 sm:$0xff]   ;;  %v16507_v35 = vld [vmem:[#allocation7 + $0x564] ss:$48 sps:$4 sm:$0xff]  }
 0x9b9   :  { %9606 = vmatpush1.bf16.msra.mxu0 %v16466_v55  ;;  %9864 = vmatpush1.bf16.msra.mxu1 %v16469_v38  ;;  %v16502_v55 = vld [vmem:[#allocation7 + $0x548] ss:$48 sps:$4 sm:$0xff]   ;;  %v16505_v38 = vld [vmem:[#allocation7 + $0x560] ss:$48 sps:$4 sm:$0xff]  }
 0x9ba   :  { %9607 = vmatprep.subr.bf16.mxu0 %v16474_v29  ;;  %9865 = vmatprep.subr.bf16.mxu1 %v16477_v32  ;;  %v16510_v29 = vld [vmem:[#allocation7 + $0x5ac] ss:$48 sps:$4 sm:$0xff]   ;;  %v16513_v32 = vld [vmem:[#allocation7 + $0x5c4] ss:$48 sps:$4 sm:$0xff]  }
 0x9bd   :  { %9608 = vmatpush1.bf16.msra.mxu0 %v16472_v31  ;;  %9866 = vmatpush1.bf16.msra.mxu1 %v16475_v34  ;;  %v16508_v31 = vld [vmem:[#allocation7 + $0x5a8] ss:$48 sps:$4 sm:$0xff]   ;;  %v16511_v34 = vld [vmem:[#allocation7 + $0x5c0] ss:$48 sps:$4 sm:$0xff]  }
 0x9be   :  { %9609 = vmatprep.subr.bf16.mxu0 %v16480_v22  ;;  %9867 = vmatprep.subr.bf16.mxu1 %v16483_v62  ;;  %v16516_v22 = vld [vmem:[#allocation7 + $0x60c] ss:$48 sps:$4 sm:$0xff]   ;;  %v16519_v62 = vld [vmem:[#allocation7 + $0x624] ss:$48 sps:$4 sm:$0xff]  }
 0x9c1   :  { %9610 = vmatpush1.bf16.msra.mxu0 %v16478_v25  ;;  %9868 = vmatpush1.bf16.msra.mxu1 %v16481_v58  ;;  %v16514_v25 = vld [vmem:[#allocation7 + $0x608] ss:$48 sps:$4 sm:$0xff]   ;;  %v16517_v58 = vld [vmem:[#allocation7 + $0x620] ss:$48 sps:$4 sm:$0xff]  }
 0x9c2   :  { %9611 = vmatprep.subr.bf16.mxu0 %v16486_v30  ;;  %9869 = vmatprep.subr.bf16.mxu1 %v16489_v27  ;;  %v16522_v30 = vld [vmem:[#allocation7 + $0x66c] ss:$48 sps:$4 sm:$0xff]   ;;  %v16525_v27 = vld [vmem:[#allocation7 + $0x684] ss:$48 sps:$4 sm:$0xff]  }
 0x9c5   :  { %9612 = vmatpush1.bf16.msra.mxu0 %v16484_v50  ;;  %9870 = vmatpush1.bf16.msra.mxu1 %v16487_v12  ;;  %v16520_v50 = vld [vmem:[#allocation7 + $0x668] ss:$48 sps:$4 sm:$0xff]   ;;  %v16523_v12 = vld [vmem:[#allocation7 + $0x680] ss:$48 sps:$4 sm:$0xff]  }
 0x9c6   :  { %9613 = vmatprep.subr.bf16.mxu0 %v16492_v56  ;;  %9871 = vmatprep.subr.bf16.mxu1 %v16495_v2  ;;  %v16528_v56 = vld [vmem:[#allocation7 + $0x6cc] ss:$48 sps:$4 sm:$0xff]   ;;  %v16531_v2 = vld [vmem:[#allocation7 + $0x6e4] ss:$48 sps:$4 sm:$0xff]  }
 0x9c9   :  { %9614 = vmatpush1.bf16.msra.mxu0 %v16490_v46  ;;  %9872 = vmatpush1.bf16.msra.mxu1 %v16493_v19  ;;  %v16526_v46 = vld [vmem:[#allocation7 + $0x6c8] ss:$48 sps:$4 sm:$0xff]   ;;  %v16529_v19 = vld [vmem:[#allocation7 + $0x6e0] ss:$48 sps:$4 sm:$0xff]  }
 0x9ca   :  { %9615 = vmatprep.subr.bf16.mxu0 %v16498_v36  ;;  %9873 = vmatprep.subr.bf16.mxu1 %v16501_v57  ;;  %v16534_v36 = vld [vmem:[#allocation7 + $0x72c] ss:$48 sps:$4 sm:$0xff]   ;;  %v16537_v57 = vld [vmem:[#allocation7 + $0x744] ss:$48 sps:$4 sm:$0xff]  }
 0x9cd   :  { %9616 = vmatpush1.bf16.msra.mxu0 %v16496_v18  ;;  %9874 = vmatpush1.bf16.msra.mxu1 %v16499_v33  ;;  %v16532_v18 = vld [vmem:[#allocation7 + $0x728] ss:$48 sps:$4 sm:$0xff]   ;;  %v16535_v33 = vld [vmem:[#allocation7 + $0x740] ss:$48 sps:$4 sm:$0xff]  }
 0x9ce   :  { %9617 = vmatprep.subr.bf16.mxu0 %v16504_v53  ;;  %9875 = vmatprep.subr.bf16.mxu1 %v16507_v35  ;;  %v16540_v53 = vld [vmem:[#allocation7 + $0x78c] ss:$48 sps:$4 sm:$0xff]   ;;  %v16543_v35 = vld [vmem:[#allocation7 + $0x7a4] ss:$48 sps:$4 sm:$0xff]  }
 0x9d1   :  { %9618 = vmatpush1.bf16.msra.mxu0 %v16502_v55  ;;  %9876 = vmatpush1.bf16.msra.mxu1 %v16505_v38  ;;  %v16538_v55 = vld [vmem:[#allocation7 + $0x788] ss:$48 sps:$4 sm:$0xff]   ;;  %v16541_v38 = vld [vmem:[#allocation7 + $0x7a0] ss:$48 sps:$4 sm:$0xff]  }
 0x9d2   :  { %9619 = vmatprep.subr.bf16.mxu0 %v16510_v29  ;;  %9877 = vmatprep.subr.bf16.mxu1 %v16513_v32  ;;  %v16546_v29 = vld [vmem:[#allocation7 + $0x7ec] ss:$48 sps:$4 sm:$0xff]   ;;  %v16549_v32 = vld [vmem:[#allocation7 + $0x804] ss:$48 sps:$4 sm:$0xff]  }
 0x9d5   :  { %9620 = vmatpush1.bf16.msra.mxu0 %v16508_v31  ;;  %9878 = vmatpush1.bf16.msra.mxu1 %v16511_v34  ;;  %v16544_v31 = vld [vmem:[#allocation7 + $0x7e8] ss:$48 sps:$4 sm:$0xff]   ;;  %v16547_v34 = vld [vmem:[#allocation7 + $0x800] ss:$48 sps:$4 sm:$0xff]  }
 0x9d6   :  { %9632 = vmatprep.subr.bf16.mxu0 %v16516_v22  ;;  %9890 = vmatprep.subr.bf16.mxu1 %v16519_v62  ;;  %v16552_v22 = vld [vmem:[#allocation7 + $0x84c] ss:$48 sps:$4 sm:$0xff]   ;;  %v16555_v62 = vld [vmem:[#allocation7 + $0x864] ss:$48 sps:$4 sm:$0xff]  }
 0x9d8   :  { %9622 = vmatmul.mubr.bf16.vlgmr.msra.gmra.mrb[8].mxu0 %v18420_v23  ;;  %9880 = vmatmul.mubr.bf16.vlgmr.msra.gmra.mrb[52].mxu1 %v18420_v23 }
 0x9d9   :  { %9633 = vmatpush1.bf16.msra.mxu0 %v16514_v25  ;;  %9664 = vmatprep.mubr.bf16.mxu0 %v18452_v21  ;;  %v16550_v25 = vld [vmem:[#allocation7 + $0x848] ss:$48 sps:$4 sm:$0xff]  }
 0x9da   :  { %9891 = vmatpush1.bf16.msra.mxu1 %v16517_v58  ;;  %9922 = vmatprep.mubr.bf16.mxu1 %v18452_v21  ;;  %v16553_v58 = vld [vmem:[#allocation7 + $0x860] ss:$48 sps:$4 sm:$0xff]  }
 0x9db   :  { %9634 = vmatprep.subr.bf16.mxu0 %v16522_v30  ;;  %9892 = vmatprep.subr.bf16.mxu1 %v16525_v27  ;;  %v16558_v30 = vld [vmem:[#allocation7 + $0x8ac] ss:$48 sps:$4 sm:$0xff]   ;;  %v16561_v27 = vld [vmem:[#allocation7 + $0x8c4] ss:$48 sps:$4 sm:$0xff]  }
 0x9dd   :  { %9635 = vmatpush1.bf16.msra.mxu0 %v16520_v50  ;;  %v16556_v50 = vld [vmem:[#allocation7 + $0x8a8] ss:$48 sps:$4 sm:$0xff]  }
 0x9de   :  { %9893 = vmatpush1.bf16.msra.mxu1 %v16523_v12  ;;  %9636 = vmatprep.subr.bf16.mxu0 %v16528_v56  ;;  %v16559_v12 = vld [vmem:[#allocation7 + $0x8c0] ss:$48 sps:$4 sm:$0xff]   ;;  %v16564_v56 = vld [vmem:[#allocation7 + $0x90c] ss:$48 sps:$4 sm:$0xff]  }
 0x9df   :  { %9894 = vmatprep.subr.bf16.mxu1 %v16531_v2  ;;  %v16567_v2 = vld [vmem:[#allocation7 + $0x924] ss:$48 sps:$4 sm:$0xff]  }
 0x9e1   :  { %9637 = vmatpush1.bf16.msra.mxu0 %v16526_v46  ;;  %v16562_v46 = vld [vmem:[#allocation7 + $0x908] ss:$48 sps:$4 sm:$0xff]  }
 0x9e2   :  { %9895 = vmatpush1.bf16.msra.mxu1 %v16529_v19  ;;  %9638 = vmatprep.subr.bf16.mxu0 %v16534_v36  ;;  %v16565_v19 = vld [vmem:[#allocation7 + $0x920] ss:$48 sps:$4 sm:$0xff]   ;;  %v16570_v36 = vld [vmem:[#allocation7 + $0x96c] ss:$48 sps:$4 sm:$0xff]  }
 0x9e3   :  { %9896 = vmatprep.subr.bf16.mxu1 %v16537_v57  ;;  %v16573_v57 = vld [vmem:[#allocation7 + $0x984] ss:$48 sps:$4 sm:$0xff]  }
 0x9e5   :  { %9639 = vmatpush1.bf16.msra.mxu0 %v16532_v18  ;;  %v16568_v18 = vld [vmem:[#allocation7 + $0x968] ss:$48 sps:$4 sm:$0xff]  }
 0x9e6   :  { %9897 = vmatpush1.bf16.msra.mxu1 %v16535_v33  ;;  %9640 = vmatprep.subr.bf16.mxu0 %v16540_v53  ;;  %v16571_v33 = vld [vmem:[#allocation7 + $0x980] ss:$48 sps:$4 sm:$0xff]   ;;  %v16576_v53 = vld [vmem:[#allocation7 + $0x9cc] ss:$48 sps:$4 sm:$0xff]  }
 0x9e7   :  { %9898 = vmatprep.subr.bf16.mxu1 %v16543_v35  ;;  %v16579_v35 = vld [vmem:[#allocation7 + $0x9e4] ss:$48 sps:$4 sm:$0xff]  }
 0x9e9   :  { %9641 = vmatpush1.bf16.msra.mxu0 %v16538_v55  ;;  %v16574_v55 = vld [vmem:[#allocation7 + $0x9c8] ss:$48 sps:$4 sm:$0xff]  }
 0x9ea   :  { %9899 = vmatpush1.bf16.msra.mxu1 %v16541_v38  ;;  %9642 = vmatprep.subr.bf16.mxu0 %v16546_v29  ;;  %v16577_v38 = vld [vmem:[#allocation7 + $0x9e0] ss:$48 sps:$4 sm:$0xff]   ;;  %v16582_v29 = vld [vmem:[#allocation7 + $0xa2c] ss:$48 sps:$4 sm:$0xff]  }
 0x9eb   :  { %9900 = vmatprep.subr.bf16.mxu1 %v16549_v32  ;;  %v16585_v32 = vld [vmem:[#allocation7 + $0xa44] ss:$48 sps:$4 sm:$0xff]  }
 0x9ed   :  { %9643 = vmatpush1.bf16.msra.mxu0 %v16544_v31  ;;  %v16580_v31 = vld [vmem:[#allocation7 + $0xa28] ss:$48 sps:$4 sm:$0xff]  }
 0x9ee   :  { %9901 = vmatpush1.bf16.msra.mxu1 %v16547_v34  ;;  %9644 = vmatprep.subr.bf16.mxu0 %v16552_v22  ;;  %v16583_v34 = vld [vmem:[#allocation7 + $0xa40] ss:$48 sps:$4 sm:$0xff]   ;;  %v16588_v22 = vld [vmem:[#allocation7 + $0xa8c] ss:$48 sps:$4 sm:$0xff]  }
 0x9ef   :  { %9902 = vmatprep.subr.bf16.mxu1 %v16555_v62  ;;  %v16591_v62 = vld [vmem:[#allocation7 + $0xaa4] ss:$48 sps:$4 sm:$0xff]  }
 0x9f1   :  { %9645 = vmatpush1.bf16.msra.mxu0 %v16550_v25  ;;  %v16586_v25 = vld [vmem:[#allocation7 + $0xa88] ss:$48 sps:$4 sm:$0xff]  }
 0x9f2   :  { %9903 = vmatpush1.bf16.msra.mxu1 %v16553_v58  ;;  %9646 = vmatprep.subr.bf16.mxu0 %v16558_v30  ;;  %v16589_v58 = vld [vmem:[#allocation7 + $0xaa0] ss:$48 sps:$4 sm:$0xff]   ;;  %v16594_v30 = vld [vmem:[#allocation7 + $0xaec] ss:$48 sps:$4 sm:$0xff]  }
 0x9f3   :  { %9904 = vmatprep.subr.bf16.mxu1 %v16561_v27  ;;  %v16597_v27 = vld [vmem:[#allocation7 + $0xb04] ss:$48 sps:$4 sm:$0xff]  }
 0x9f5   :  { %9647 = vmatpush1.bf16.msra.mxu0 %v16556_v50  ;;  %v16592_v50 = vld [vmem:[#allocation7 + $0xae8] ss:$48 sps:$4 sm:$0xff]  }
 0x9f6   :  { %9905 = vmatpush1.bf16.msra.mxu1 %v16559_v12  ;;  %9648 = vmatprep.subr.bf16.mxu0 %v16564_v56  ;;  %v16595_v12 = vld [vmem:[#allocation7 + $0xb00] ss:$48 sps:$4 sm:$0xff]   ;;  %v16600_v56 = vld [vmem:[#allocation7 + $0xb4c] ss:$48 sps:$4 sm:$0xff]  }
 0x9f7   :  { %9906 = vmatprep.subr.bf16.mxu1 %v16567_v2  ;;  %v16603_v2 = vld [vmem:[#allocation7 + $0xb64] ss:$48 sps:$4 sm:$0xff]  }
 0x9f9   :  { %9649 = vmatpush1.bf16.msra.mxu0 %v16562_v46  ;;  %v16598_v46 = vld [vmem:[#allocation7 + $0xb48] ss:$48 sps:$4 sm:$0xff]  }
 0x9fa   :  { %9907 = vmatpush1.bf16.msra.mxu1 %v16565_v19  ;;  %9650 = vmatprep.subr.bf16.mxu0 %v16570_v36  ;;  %v16601_v19 = vld [vmem:[#allocation7 + $0xb60] ss:$48 sps:$4 sm:$0xff]   ;;  %v16606_v36 = vld [vmem:[#allocation7 + $0xbac] ss:$48 sps:$4 sm:$0xff]  }
 0x9fb   :  { %9908 = vmatprep.subr.bf16.mxu1 %v16573_v57  ;;  %v16609_v57 = vld [vmem:[#allocation7 + $0xbc4] ss:$48 sps:$4 sm:$0xff]  }
 0x9fd   :  { %9651 = vmatpush1.bf16.msra.mxu0 %v16568_v18  ;;  %v16604_v18 = vld [vmem:[#allocation7 + $0xba8] ss:$48 sps:$4 sm:$0xff]  }
 0x9fe   :  { %9909 = vmatpush1.bf16.msra.mxu1 %v16571_v33  ;;  %9652 = vmatprep.subr.bf16.mxu0 %v16576_v53  ;;  %v16607_v33 = vld [vmem:[#allocation7 + $0xbc0] ss:$48 sps:$4 sm:$0xff]   ;;  %v16612_v53 = vld [vmem:[#allocation7 + $0x1c] ss:$48 sps:$4 sm:$0xff]  }
 0x9ff   :  { %9910 = vmatprep.subr.bf16.mxu1 %v16579_v35  ;;  %v16610_v35 = vld [vmem:[#allocation7 + $0x18] ss:$48 sps:$4 sm:$0xff]  }
 0xa01   :  { %9653 = vmatpush1.bf16.msra.mxu0 %v16574_v55  ;;  %v16615_v55 = vld [vmem:[#allocation7 + $0x7c] ss:$48 sps:$4 sm:$0xff]  }
 0xa02   :  { %9911 = vmatpush1.bf16.msra.mxu1 %v16577_v38  ;;  %9654 = vmatprep.subr.bf16.mxu0 %v16582_v29  ;;  %v16613_v38 = vld [vmem:[#allocation7 + $0x78] ss:$48 sps:$4 sm:$0xff]   ;;  %v16618_v29 = vld [vmem:[#allocation7 + $0xdc] ss:$48 sps:$4 sm:$0xff]  }
 0xa03   :  { %9912 = vmatprep.subr.bf16.mxu1 %v16585_v32  ;;  %v16616_v32 = vld [vmem:[#allocation7 + $0xd8] ss:$48 sps:$4 sm:$0xff]  }
 0xa05   :  { %9655 = vmatpush1.bf16.msra.mxu0 %v16580_v31  ;;  %v16621_v31 = vld [vmem:[#allocation7 + $0x13c] ss:$48 sps:$4 sm:$0xff]  }
 0xa06   :  { %9913 = vmatpush1.bf16.msra.mxu1 %v16583_v34  ;;  %9656 = vmatprep.subr.bf16.mxu0 %v16588_v22  ;;  %v16619_v34 = vld [vmem:[#allocation7 + $0x138] ss:$48 sps:$4 sm:$0xff]   ;;  %v16624_v22 = vld [vmem:[#allocation7 + $0x19c] ss:$48 sps:$4 sm:$0xff]  }
 0xa07   :  { %9914 = vmatprep.subr.bf16.mxu1 %v16591_v62  ;;  %v16622_v62 = vld [vmem:[#allocation7 + $0x198] ss:$48 sps:$4 sm:$0xff]  }
 0xa09   :  { %9657 = vmatpush1.bf16.msra.mxu0 %v16586_v25  ;;  %v16627_v25 = vld [vmem:[#allocation7 + $0x1fc] ss:$48 sps:$4 sm:$0xff]  }
 0xa0a   :  { %9915 = vmatpush1.bf16.msra.mxu1 %v16589_v58  ;;  %9658 = vmatprep.subr.bf16.mxu0 %v16594_v30  ;;  %v16625_v58 = vld [vmem:[#allocation7 + $0x1f8] ss:$48 sps:$4 sm:$0xff]   ;;  %v16630_v30 = vld [vmem:[#allocation7 + $0x25c] ss:$48 sps:$4 sm:$0xff]  }
 0xa0b   :  { %9916 = vmatprep.subr.bf16.mxu1 %v16597_v27  ;;  %v16628_v27 = vld [vmem:[#allocation7 + $0x258] ss:$48 sps:$4 sm:$0xff]  }
 0xa0d   :  { %9659 = vmatpush1.bf16.msra.mxu0 %v16592_v50  ;;  %v16633_v50 = vld [vmem:[#allocation7 + $0x2bc] ss:$48 sps:$4 sm:$0xff]  }
 0xa0e   :  { %9917 = vmatpush1.bf16.msra.mxu1 %v16595_v12  ;;  %9660 = vmatprep.subr.bf16.mxu0 %v16600_v56  ;;  %v16631_v12 = vld [vmem:[#allocation7 + $0x2b8] ss:$48 sps:$4 sm:$0xff]   ;;  %v16636_v56 = vld [vmem:[#allocation7 + $0x31c] ss:$48 sps:$4 sm:$0xff]  }
 0xa0f   :  { %9918 = vmatprep.subr.bf16.mxu1 %v16603_v2  ;;  %v16634_v2 = vld [vmem:[#allocation7 + $0x318] ss:$48 sps:$4 sm:$0xff]  }
 0xa11   :  { %9661 = vmatpush1.bf16.msra.mxu0 %v16598_v46  ;;  %v16639_v46 = vld [vmem:[#allocation7 + $0x37c] ss:$48 sps:$4 sm:$0xff]  }
 0xa12   :  { %9919 = vmatpush1.bf16.msra.mxu1 %v16601_v19  ;;  %9662 = vmatprep.subr.bf16.mxu0 %v16606_v36  ;;  %v16637_v19 = vld [vmem:[#allocation7 + $0x378] ss:$48 sps:$4 sm:$0xff]   ;;  %v16642_v36 = vld [vmem:[#allocation7 + $0x3dc] ss:$48 sps:$4 sm:$0xff]  }
 0xa13   :  { %9920 = vmatprep.subr.bf16.mxu1 %v16609_v57  ;;  %v16640_v57 = vld [vmem:[#allocation7 + $0x3d8] ss:$48 sps:$4 sm:$0xff]  }
 0xa15   :  { %9663 = vmatpush1.bf16.msra.mxu0 %v16604_v18  ;;  %v16645_v18 = vld [vmem:[#allocation7 + $0x43c] ss:$48 sps:$4 sm:$0xff]  }
 0xa16   :  { %9921 = vmatpush1.bf16.msra.mxu1 %v16607_v33  ;;  %9761 = vmatprep.subr.bf16.mxu0 %v16612_v53  ;;  %v16643_v33 = vld [vmem:[#allocation7 + $0x438] ss:$48 sps:$4 sm:$0xff]   ;;  %v16648_v53 = vld [vmem:[#allocation7 + $0x49c] ss:$48 sps:$4 sm:$0xff]  }
 0xa18   :  { %9665 = vmatmul.mubr.bf16.vlgmr.msra.gmra.mrb[8].mxu0 %v18456_v54 }
 0xa19   :  { %9923 = vmatmul.mubr.bf16.vlgmr.msra.gmra.mrb[52].mxu1 %v18456_v54  ;;  %9762 = vmatpush1.bf16.msra.mxu0 %v16610_v35  ;;  %v16646_v35 = vld [vmem:[#allocation7 + $0x498] ss:$48 sps:$4 sm:$0xff]  }
 0xa1a   :  { %9793 = vmatprep.mubr.bf16.mxu0 %v18416_v26  ;;  %9763 = vmatprep.subr.bf16.mxu0 %v16615_v55  ;;  %v16651_v55 = vld [vmem:[#allocation7 + $0x4fc] ss:$48 sps:$4 sm:$0xff]  }
 0xa1b   :  { %10083 = vmatprep.mubr.f32.mxu1 %v17661_v5 }
 0xa1d   :  { %9764 = vmatpush1.bf16.msra.mxu0 %v16613_v38  ;;  %v16649_v38 = vld [vmem:[#allocation7 + $0x4f8] ss:$48 sps:$4 sm:$0xff]  }
 0xa1e   :  { %9765 = vmatprep.subr.bf16.mxu0 %v16618_v29  ;;  %v16654_v29 = vld [vmem:[#allocation7 + $0x55c] ss:$48 sps:$4 sm:$0xff]  }
 0xa21   :  { %9766 = vmatpush1.bf16.msra.mxu0 %v16616_v32  ;;  %v16652_v32 = vld [vmem:[#allocation7 + $0x558] ss:$48 sps:$4 sm:$0xff]  }
 0xa22   :  { %9767 = vmatprep.subr.bf16.mxu0 %v16621_v31  ;;  %v16657_v31 = vld [vmem:[#allocation7 + $0x5bc] ss:$48 sps:$4 sm:$0xff]  }
 0xa25   :  { %9768 = vmatpush1.bf16.msra.mxu0 %v16619_v34  ;;  %v16655_v34 = vld [vmem:[#allocation7 + $0x5b8] ss:$48 sps:$4 sm:$0xff]  }
 0xa26   :  { %9769 = vmatprep.subr.bf16.mxu0 %v16624_v22  ;;  %v16660_v22 = vld [vmem:[#allocation7 + $0x61c] ss:$48 sps:$4 sm:$0xff]  }
 0xa29   :  { %9770 = vmatpush1.bf16.msra.mxu0 %v16622_v62  ;;  %v16658_v62 = vld [vmem:[#allocation7 + $0x618] ss:$48 sps:$4 sm:$0xff]  }
 0xa2a   :  { %9771 = vmatprep.subr.bf16.mxu0 %v16627_v25  ;;  %v16663_v25 = vld [vmem:[#allocation7 + $0x67c] ss:$48 sps:$4 sm:$0xff]  }
 0xa2d   :  { %9772 = vmatpush1.bf16.msra.mxu0 %v16625_v58  ;;  %v16661_v58 = vld [vmem:[#allocation7 + $0x678] ss:$48 sps:$4 sm:$0xff]  }
 0xa2e   :  { %9773 = vmatprep.subr.bf16.mxu0 %v16630_v30  ;;  %v16666_v30 = vld [vmem:[#allocation7 + $0x6dc] ss:$48 sps:$4 sm:$0xff]  }
 0xa31   :  { %9774 = vmatpush1.bf16.msra.mxu0 %v16628_v27  ;;  %v16664_v27 = vld [vmem:[#allocation7 + $0x6d8] ss:$48 sps:$4 sm:$0xff]  }
 0xa32   :  { %9775 = vmatprep.subr.bf16.mxu0 %v16633_v50  ;;  %v16669_v50 = vld [vmem:[#allocation7 + $0x73c] ss:$48 sps:$4 sm:$0xff]  }
 0xa35   :  { %9776 = vmatpush1.bf16.msra.mxu0 %v16631_v12  ;;  %v16667_v12 = vld [vmem:[#allocation7 + $0x738] ss:$48 sps:$4 sm:$0xff]  }
 0xa36   :  { %9777 = vmatprep.subr.bf16.mxu0 %v16636_v56  ;;  %v16672_v56 = vld [vmem:[#allocation7 + $0x79c] ss:$48 sps:$4 sm:$0xff]  }
 0xa39   :  { %9778 = vmatpush1.bf16.msra.mxu0 %v16634_v2  ;;  %v16670_v2 = vld [vmem:[#allocation7 + $0x798] ss:$48 sps:$4 sm:$0xff]  }
 0xa3a   :  { %9779 = vmatprep.subr.bf16.mxu0 %v16639_v46  ;;  %v16675_v46 = vld [vmem:[#allocation7 + $0x7fc] ss:$48 sps:$4 sm:$0xff]  }
 0xa3d   :  { %9780 = vmatpush1.bf16.msra.mxu0 %v16637_v19  ;;  %v16673_v19 = vld [vmem:[#allocation7 + $0x7f8] ss:$48 sps:$4 sm:$0xff]  }
 0xa3e   :  { %9781 = vmatprep.subr.bf16.mxu0 %v16642_v36  ;;  %v16678_v36 = vld [vmem:[#allocation7 + $0x85c] ss:$48 sps:$4 sm:$0xff]  }
 0xa41   :  { %9782 = vmatpush1.bf16.msra.mxu0 %v16640_v57 }
 0xa42   :  { %9783 = vmatprep.subr.bf16.mxu0 %v16645_v18 }
 0xa45   :  { %9784 = vmatpush1.bf16.msra.mxu0 %v16643_v33 }
 0xa46   :  { %9785 = vmatprep.subr.bf16.mxu0 %v16648_v53 }
 0xa49   :  { %9786 = vmatpush1.bf16.msra.mxu0 %v16646_v35 }
 0xa4a   :  { %9787 = vmatprep.subr.bf16.mxu0 %v16651_v55 }
 0xa4d   :  { %9788 = vmatpush1.bf16.msra.mxu0 %v16649_v38  ;;  %v16676_v38 = vld [vmem:[#allocation7 + $0x858] ss:$48 sps:$4 sm:$0xff]  }
 0xa4e   :  { %9789 = vmatprep.subr.bf16.mxu0 %v16654_v29 }
 0xa51   :  { %9790 = vmatpush1.bf16.msra.mxu0 %v16652_v32 }
 0xa52   :  { %9791 = vmatprep.subr.bf16.mxu0 %v16657_v31 }
 0xa55   :  { %9792 = vmatpush1.bf16.msra.mxu0 %v16655_v34 }
 0xa56   :  { %9804 = vmatprep.subr.bf16.mxu0 %v16660_v22 }
 0xa58   :  { %9794 = vmatmul.mubr.bf16.vlgmr.msra.gmra.mrb[12].mxu0 %v18420_v23 }
 0xa59   :  { %9805 = vmatpush1.bf16.msra.mxu0 %v16658_v62  ;;  %9836 = vmatprep.mubr.bf16.mxu0 %v18452_v21 }
 0xa5a   :  { %9806 = vmatprep.subr.bf16.mxu0 %v16663_v25  ;;  %v16681_v25 = vld [vmem:[#allocation7 + $0x8bc] ss:$48 sps:$4 sm:$0xff]  }
 0xa5d   :  { %9807 = vmatpush1.bf16.msra.mxu0 %v16661_v58 }
 0xa5e   :  { %9808 = vmatprep.subr.bf16.mxu0 %v16666_v30 }
 0xa61   :  { %9809 = vmatpush1.bf16.msra.mxu0 %v16664_v27 }
 0xa62   :  { %9810 = vmatprep.subr.bf16.mxu0 %v16669_v50 }
 0xa65   :  { %9811 = vmatpush1.bf16.msra.mxu0 %v16667_v12 }
 0xa66   :  { %9812 = vmatprep.subr.bf16.mxu0 %v16672_v56 }
 0xa69   :  { %9813 = vmatpush1.bf16.msra.mxu0 %v16670_v2  ;;  %v16679_v2 = vld [vmem:[#allocation7 + $0x8b8] ss:$48 sps:$4 sm:$0xff]  }
 0xa6a   :  { %9814 = vmatprep.subr.bf16.mxu0 %v16675_v46  ;;  %v16684_v46 = vld [vmem:[#allocation7 + $0x91c] ss:$48 sps:$4 sm:$0xff]  }
 0xa6b   :  { %v9580_v57 = vpop.f32.mrb[4].mxu0  ;;  %v9752_v18 = vpop.f32.mrb[48].mxu1 }
 0xa6c   :  { %v9582_v33 = vpop.f32.mrb[5].mxu0  ;;  %v9754_v53 = vpop.f32.mrb[49].mxu1  ;;  %v18475_v29 = vadd.f32 %v9580_v57, %v18066_v51  ;;  %v14797_v32 = vadd.f32 %v9752_v18, %v18156_v43  ;;  %v16688_v57 = vld [vmem:[#allocation7 + $0x9d8] ss:$48 sps:$4 sm:$0xff]   ;;  %v16693_v18 = vld [vmem:[#allocation7 + $0xa3c] ss:$48 sps:$4 sm:$0xff]  }
 0xa6d   :  { %9815 = vmatpush1.bf16.msra.mxu0 %v16673_v19  ;;  %v9584_v35 = vpop.f32.mrb[6].mxu0  ;;  %v9756_v55 = vpop.f32.mrb[50].mxu1  ;;  %v18483_v58 = vadd.f32 %v9582_v33, %v18070_v41  ;;  %v14798_v30 = vadd.f32 %v9754_v53, %v18159_v45  ;;  %v16682_v19 = vld [vmem:[#allocation7 + $0x918] ss:$48 sps:$4 sm:$0xff]   ;;  %v16696_v53 = vld [vmem:[#allocation7 + $0xa9c] ss:$48 sps:$4 sm:$0xff]  }
 0xa6e   :  { %v18479_v31 = vadd.f32 %v9584_v35, %v18066_v51  ;;  %v14799_v34 = vadd.f32 %v9756_v55, %v18156_v43  ;;  %v9586_v22 = vpop.f32.mrb[7].mxu0  ;;  %v9758_v62 = vpop.f32.mrb[51].mxu1  ;;  %9816 = vmatprep.subr.bf16.mxu0 %v16678_v36  ;;  %v16690_v36 = vld [vmem:[#allocation7 + $0x9dc] ss:$48 sps:$4 sm:$0xff]   ;;  %v16691_v33 = vld [vmem:[#allocation7 + $0xa38] ss:$48 sps:$4 sm:$0xff]  }
 0xa6f   :  { %v18487_v27 = vadd.f32 %v9586_v22, %v18070_v41  ;;  %v14800_v50 = vadd.f32 %v9758_v62, %v18159_v45  ;;  %v16687_v41 = vld [vmem:[#allocation7 + $0x97c] ss:$48 sps:$4 sm:$0xff]   ;;  %v16685_v45 = vld [vmem:[#allocation7 + $0x978] ss:$48 sps:$4 sm:$0xff]  }
 0xa70   :  { %v14699_v51 = vpack.c.bf16 %v18479_v31, %v18475_v29  ;;  %v14691_v12 = vpack.c.bf16 %v14799_v34, %v14797_v32  ;;  %v16694_v35 = vld [vmem:[#allocation7 + $0xa98] ss:$48 sps:$4 sm:$0xff]   ;;  %v16699_v55 = vld [vmem:[#allocation7 + $0xafc] ss:$48 sps:$4 sm:$0xff]  }
 0xa71   :  { %v14697_v43 = vpack.c.bf16 %v18487_v27, %v18483_v58  ;;  %v14689_v56 = vpack.c.bf16 %v14800_v50, %v14798_v30  ;;  %9817 = vmatpush1.bf16.msra.mxu0 %v16676_v38  ;;  %v16697_v38 = vld [vmem:[#allocation7 + $0xaf8] ss:$48 sps:$4 sm:$0xff]   ;;  %v16702_v32 = vld [vmem:[#allocation7 + $0xb5c] ss:$48 sps:$4 sm:$0xff]  }
 0xa72   :  { %9818 = vmatprep.subr.bf16.mxu0 %v16681_v25  ;;  %v16700_v34 = vld [vmem:[#allocation7 + $0xb58] ss:$48 sps:$4 sm:$0xff]   ;;  %v16705_v22 = vld [vmem:[#allocation7 + $0xbbc] ss:$48 sps:$4 sm:$0xff]  }
 0xa73   :  { %14690 = vmatprep.subr.bf16.mxu1 %v14689_v56  ;;  %v16703_v62 = vld [vmem:[#allocation7 + $0xbb8] ss:$48 sps:$4 sm:$0xff]   ;;  %v16708_v25 = vld [vmem:[#allocation7 + $0x2c] ss:$48 sps:$4 sm:$0xff]  }
 0xa74   :  { %14692 = vmatpush1.bf16.msra.mxu1 %v14691_v12  ;;  %v16706_v30 = vld [vmem:[#allocation7 + $0x28] ss:$48 sps:$4 sm:$0xff]   ;;  %v16711_v50 = vld [vmem:[#allocation7 + $0x8c] ss:$48 sps:$4 sm:$0xff]  }
 0xa75   :  { %9819 = vmatpush1.bf16.msra.mxu0 %v16679_v2  ;;  %v16709_v12 = vld [vmem:[#allocation7 + $0x88] ss:$48 sps:$4 sm:$0xff]   ;;  %v16714_v56 = vld [vmem:[#allocation7 + $0xec] ss:$48 sps:$4 sm:$0xff]  }
 0xa76   :  { %9820 = vmatprep.subr.bf16.mxu0 %v16684_v46  ;;  %v16712_v2 = vld [vmem:[#allocation7 + $0xe8] ss:$48 sps:$4 sm:$0xff]   ;;  %v16717_v46 = vld [vmem:[#allocation7 + $0x14c] ss:$48 sps:$4 sm:$0xff]  }
 0xa77   :  { %14315 = vmatmul.mubr.msk.f32.vlgmr.msra.gmra.mrb[56].mxu1 %vm4680_vm4, %v18173_v20  ;;  %v16882_v58 = vld [vmem:[#allocation10 + $0x34c] ss:$16 sps:$4 sm:$0xff]  }
 0xa78   :  { %10089 = vmatprep.mubr.f32.mxu1 %v17661_v5  ;;  %v16885_v29 = vld [vmem:[#allocation10 + $0x36c] ss:$16 sps:$4 sm:$0xff]  }
 0xa79   :  { %9821 = vmatpush1.bf16.msra.mxu0 %v16682_v19  ;;  %v16715_v19 = vld [vmem:[#allocation7 + $0x148] ss:$48 sps:$4 sm:$0xff]  }
 0xa7a   :  { %9822 = vmatprep.subr.bf16.mxu0 %v16687_v41  ;;  %v16720_v41 = vld [vmem:[#allocation7 + $0x1ac] ss:$48 sps:$4 sm:$0xff]   ;;  %v16888_v27 = vld [vmem:[#allocation10 + $0x38c] ss:$16 sps:$4 sm:$0xff]  }
 0xa7b   :  { %14316 = vmatmul.mubr.msk.f32.gmra.mrb[58].mxu1 %vm4680_vm4, %v18183_v6 }
 0xa7c   :  { %10160 = vmatprep.mubr.f32.mxu1 %v17661_v5 }
 0xa7d   :  { %9823 = vmatpush1.bf16.msra.mxu0 %v16685_v45  ;;  %v16718_v45 = vld [vmem:[#allocation7 + $0x1a8] ss:$48 sps:$4 sm:$0xff]  }
 0xa7e   :  { %9824 = vmatprep.subr.bf16.mxu0 %v16690_v36  ;;  %v16723_v36 = vld [vmem:[#allocation7 + $0x20c] ss:$48 sps:$4 sm:$0xff]  }
 0xa81   :  { %9825 = vmatpush1.bf16.msra.mxu0 %v16688_v57  ;;  %v16721_v57 = vld [vmem:[#allocation7 + $0x208] ss:$48 sps:$4 sm:$0xff]  }
 0xa82   :  { %9826 = vmatprep.subr.bf16.mxu0 %v16693_v18  ;;  %v16726_v18 = vld [vmem:[#allocation7 + $0x26c] ss:$48 sps:$4 sm:$0xff]  }
 0xa85   :  { %9827 = vmatpush1.bf16.msra.mxu0 %v16691_v33  ;;  %v16724_v33 = vld [vmem:[#allocation7 + $0x268] ss:$48 sps:$4 sm:$0xff]  }
 0xa86   :  { %9828 = vmatprep.subr.bf16.mxu0 %v16696_v53  ;;  %v16729_v53 = vld [vmem:[#allocation7 + $0x2cc] ss:$48 sps:$4 sm:$0xff]  }
 0xa89   :  { %9829 = vmatpush1.bf16.msra.mxu0 %v16694_v35  ;;  %v16727_v35 = vld [vmem:[#allocation7 + $0x2c8] ss:$48 sps:$4 sm:$0xff]  }
 0xa8a   :  { %9830 = vmatprep.subr.bf16.mxu0 %v16699_v55  ;;  %v16732_v55 = vld [vmem:[#allocation7 + $0x32c] ss:$48 sps:$4 sm:$0xff]  }
 0xa8d   :  { %9831 = vmatpush1.bf16.msra.mxu0 %v16697_v38  ;;  %v16730_v38 = vld [vmem:[#allocation7 + $0x328] ss:$48 sps:$4 sm:$0xff]  }
 0xa8e   :  { %9832 = vmatprep.subr.bf16.mxu0 %v16702_v32  ;;  %v16735_v32 = vld [vmem:[#allocation7 + $0x38c] ss:$48 sps:$4 sm:$0xff]  }
 0xa91   :  { %9833 = vmatpush1.bf16.msra.mxu0 %v16700_v34  ;;  %v16733_v34 = vld [vmem:[#allocation7 + $0x388] ss:$48 sps:$4 sm:$0xff]  }
 0xa92   :  { %9834 = vmatprep.subr.bf16.mxu0 %v16705_v22  ;;  %v16738_v22 = vld [vmem:[#allocation7 + $0x3ec] ss:$48 sps:$4 sm:$0xff]  }
 0xa95   :  { %9835 = vmatpush1.bf16.msra.mxu0 %v16703_v62  ;;  %v16736_v62 = vld [vmem:[#allocation7 + $0x3e8] ss:$48 sps:$4 sm:$0xff]  }
 0xa96   :  { %9933 = vmatprep.subr.bf16.mxu0 %v16708_v25  ;;  %v16741_v25 = vld [vmem:[#allocation7 + $0x44c] ss:$48 sps:$4 sm:$0xff]  }
 0xa98   :  { %9837 = vmatmul.mubr.bf16.vlgmr.msra.gmra.mrb[12].mxu0 %v18456_v54 }
 0xa99   :  { %9934 = vmatpush1.bf16.msra.mxu0 %v16706_v30  ;;  %9965 = vmatprep.mubr.bf16.mxu0 %v18416_v26  ;;  %v16739_v30 = vld [vmem:[#allocation7 + $0x448] ss:$48 sps:$4 sm:$0xff]  }
 0xa9a   :  { %9935 = vmatprep.subr.bf16.mxu0 %v16711_v50  ;;  %v16744_v50 = vld [vmem:[#allocation7 + $0x4ac] ss:$48 sps:$4 sm:$0xff]  }
 0xa9d   :  { %9936 = vmatpush1.bf16.msra.mxu0 %v16709_v12  ;;  %v16742_v12 = vld [vmem:[#allocation7 + $0x4a8] ss:$48 sps:$4 sm:$0xff]  }
 0xa9e   :  { %9937 = vmatprep.subr.bf16.mxu0 %v16714_v56  ;;  %v16747_v56 = vld [vmem:[#allocation7 + $0x50c] ss:$48 sps:$4 sm:$0xff]  }
 0xaa1   :  { %9938 = vmatpush1.bf16.msra.mxu0 %v16712_v2  ;;  %v16745_v2 = vld [vmem:[#allocation7 + $0x508] ss:$48 sps:$4 sm:$0xff]  }
 0xaa2   :  { %9939 = vmatprep.subr.bf16.mxu0 %v16717_v46  ;;  %v16750_v46 = vld [vmem:[#allocation7 + $0x56c] ss:$48 sps:$4 sm:$0xff]  }
 0xaa5   :  { %9940 = vmatpush1.bf16.msra.mxu0 %v16715_v19  ;;  %v16748_v19 = vld [vmem:[#allocation7 + $0x568] ss:$48 sps:$4 sm:$0xff]  }
 0xaa6   :  { %9941 = vmatprep.subr.bf16.mxu0 %v16720_v41  ;;  %v16753_v41 = vld [vmem:[#allocation7 + $0x5cc] ss:$48 sps:$4 sm:$0xff]  }
 0xaa9   :  { %9942 = vmatpush1.bf16.msra.mxu0 %v16718_v45  ;;  %v16751_v45 = vld [vmem:[#allocation7 + $0x5c8] ss:$48 sps:$4 sm:$0xff]  }
 0xaaa   :  { %9943 = vmatprep.subr.bf16.mxu0 %v16723_v36  ;;  %v16756_v36 = vld [vmem:[#allocation7 + $0x62c] ss:$48 sps:$4 sm:$0xff]  }
 0xaad   :  { %9944 = vmatpush1.bf16.msra.mxu0 %v16721_v57  ;;  %v16754_v57 = vld [vmem:[#allocation7 + $0x628] ss:$48 sps:$4 sm:$0xff]  }
 0xaae   :  { %9945 = vmatprep.subr.bf16.mxu0 %v16726_v18  ;;  %v16759_v18 = vld [vmem:[#allocation7 + $0x68c] ss:$48 sps:$4 sm:$0xff]  }
 0xab1   :  { %9946 = vmatpush1.bf16.msra.mxu0 %v16724_v33  ;;  %v16757_v33 = vld [vmem:[#allocation7 + $0x688] ss:$48 sps:$4 sm:$0xff]  }
 0xab2   :  { %9947 = vmatprep.subr.bf16.mxu0 %v16729_v53  ;;  %v16762_v53 = vld [vmem:[#allocation7 + $0x6ec] ss:$48 sps:$4 sm:$0xff]  }
 0xab5   :  { %9948 = vmatpush1.bf16.msra.mxu0 %v16727_v35  ;;  %v16760_v35 = vld [vmem:[#allocation7 + $0x6e8] ss:$48 sps:$4 sm:$0xff]  }
 0xab6   :  { %9949 = vmatprep.subr.bf16.mxu0 %v16732_v55  ;;  %v16765_v55 = vld [vmem:[#allocation7 + $0x74c] ss:$48 sps:$4 sm:$0xff]  }
 0xab9   :  { %9950 = vmatpush1.bf16.msra.mxu0 %v16730_v38  ;;  %v16763_v38 = vld [vmem:[#allocation7 + $0x748] ss:$48 sps:$4 sm:$0xff]  }
 0xaba   :  { %9951 = vmatprep.subr.bf16.mxu0 %v16735_v32  ;;  %v16768_v32 = vld [vmem:[#allocation7 + $0x7ac] ss:$48 sps:$4 sm:$0xff]  }
 0xabd   :  { %9952 = vmatpush1.bf16.msra.mxu0 %v16733_v34  ;;  %v16766_v34 = vld [vmem:[#allocation7 + $0x7a8] ss:$48 sps:$4 sm:$0xff]  }
 0xabe   :  { %9953 = vmatprep.subr.bf16.mxu0 %v16738_v22  ;;  %v16771_v22 = vld [vmem:[#allocation7 + $0x80c] ss:$48 sps:$4 sm:$0xff]  }
 0xac1   :  { %9954 = vmatpush1.bf16.msra.mxu0 %v16736_v62  ;;  %v16769_v62 = vld [vmem:[#allocation7 + $0x808] ss:$48 sps:$4 sm:$0xff]  }
 0xac2   :  { %9955 = vmatprep.subr.bf16.mxu0 %v16741_v25  ;;  %v16774_v25 = vld [vmem:[#allocation7 + $0x86c] ss:$48 sps:$4 sm:$0xff]  }
 0xac5   :  { %9956 = vmatpush1.bf16.msra.mxu0 %v16739_v30 }
 0xac6   :  { %9957 = vmatprep.subr.bf16.mxu0 %v16744_v50 }
 0xac9   :  { %9958 = vmatpush1.bf16.msra.mxu0 %v16742_v12 }
 0xaca   :  { %9959 = vmatprep.subr.bf16.mxu0 %v16747_v56 }
 0xacd   :  { %9960 = vmatpush1.bf16.msra.mxu0 %v16745_v2 }
 0xace   :  { %9961 = vmatprep.subr.bf16.mxu0 %v16750_v46  ;;  %v16772_v46 = vld [vmem:[#allocation7 + $0x868] ss:$48 sps:$4 sm:$0xff]  }
 0xad1   :  { %9962 = vmatpush1.bf16.msra.mxu0 %v16748_v19 }
 0xad2   :  { %9963 = vmatprep.subr.bf16.mxu0 %v16753_v41 }
 0xad5   :  { %9964 = vmatpush1.bf16.msra.mxu0 %v16751_v45 }
 0xad6   :  { %9976 = vmatprep.subr.bf16.mxu0 %v16756_v36 }
 0xad8   :  { %9966 = vmatmul.mubr.bf16.vlgmr.msra.gmra.mrb[16].mxu0 %v18420_v23 }
 0xad9   :  { %9977 = vmatpush1.bf16.msra.mxu0 %v16754_v57  ;;  %10008 = vmatprep.mubr.bf16.mxu0 %v18452_v21  ;;  %v16777_v57 = vld [vmem:[#allocation7 + $0x8cc] ss:$48 sps:$4 sm:$0xff]  }
 0xada   :  { %9978 = vmatprep.subr.bf16.mxu0 %v16759_v18 }
 0xadd   :  { %9979 = vmatpush1.bf16.msra.mxu0 %v16757_v33 }
 0xade   :  { %9980 = vmatprep.subr.bf16.mxu0 %v16762_v53 }
 0xae1   :  { %9981 = vmatpush1.bf16.msra.mxu0 %v16760_v35 }
 0xae2   :  { %9982 = vmatprep.subr.bf16.mxu0 %v16765_v55 }
 0xae5   :  { %9983 = vmatpush1.bf16.msra.mxu0 %v16763_v38 }
 0xae6   :  { %9984 = vmatprep.subr.bf16.mxu0 %v16768_v32 }
 0xae9   :  { %9985 = vmatpush1.bf16.msra.mxu0 %v16766_v34 }
 0xaea   :  { %9986 = vmatprep.subr.bf16.mxu0 %v16771_v22  ;;  %v16775_v22 = vld [vmem:[#allocation7 + $0x8c8] ss:$48 sps:$4 sm:$0xff]  }
 0xaeb   :  { %v9666_v30 = vpop.f32.mrb[8].mxu0 }
 0xaec   :  { %v9924_v50 = vpop.f32.mrb[52].mxu1  ;;  %v9668_v12 = vpop.f32.mrb[9].mxu0  ;;  %v18505_v19 = vadd.f32 %v9666_v30, %v18120_v17  ;;  %v16783_v30 = vld [vmem:[#allocation7 + $0x98c] ss:$48 sps:$4 sm:$0xff]  }
 0xaed   :  { %v9926_v56 = vpop.f32.mrb[53].mxu1  ;;  %v9670_v2 = vpop.f32.mrb[10].mxu0  ;;  %9987 = vmatpush1.bf16.msra.mxu0 %v16769_v62  ;;  %v18511_v18 = vadd.f32 %v9924_v50, %v18242_v61  ;;  %v18514_v33 = vadd.f32 %v9668_v12, %v18127_v8  ;;  %v16780_v62 = vld [vmem:[#allocation7 + $0x92c] ss:$48 sps:$4 sm:$0xff]   ;;  %v16784_v12 = vld [vmem:[#allocation7 + $0x9e8] ss:$48 sps:$4 sm:$0xff]  }
 0xaee   :  { %v18508_v41 = vadd.f32 %v9670_v2, %v18120_v17  ;;  %v9928_v45 = vpop.f32.mrb[54].mxu1  ;;  %v9672_v36 = vpop.f32.mrb[11].mxu0  ;;  %9988 = vmatprep.subr.bf16.mxu0 %v16774_v25  ;;  %v18523_v17 = vadd.f32 %v9926_v56, %v18245_v63  ;;  %v16778_v25 = vld [vmem:[#allocation7 + $0x928] ss:$48 sps:$4 sm:$0xff]   ;;  %v16786_v50 = vld [vmem:[#allocation7 + $0x9ec] ss:$48 sps:$4 sm:$0xff]  }
 0xaef   :  { %v18517_v53 = vadd.f32 %v9928_v45, %v18242_v61  ;;  %v18520_v35 = vadd.f32 %v9672_v36, %v18127_v8  ;;  %v9930_v55 = vpop.f32.mrb[55].mxu1  ;;  %v16789_v56 = vld [vmem:[#allocation7 + $0xa4c] ss:$48 sps:$4 sm:$0xff]   ;;  %v16787_v2 = vld [vmem:[#allocation7 + $0xa48] ss:$48 sps:$4 sm:$0xff]  }
 0xaf0   :  { %v14703_v38 = vpack.c.bf16 %v18508_v41, %v18505_v19  ;;  %v18528_v32 = vadd.f32 %v9930_v55, %v18245_v63  ;;  %v16781_v63 = vld [vmem:[#allocation7 + $0x988] ss:$48 sps:$4 sm:$0xff]   ;;  %v16795_v36 = vld [vmem:[#allocation7 + $0xb0c] ss:$48 sps:$4 sm:$0xff]   ;;  %v16889_v41 = vld [vmem:[#allocation10 + $0x3a8] ss:$16 sps:$4 sm:$0xff]  }
 0xaf1   :  { %v14701_v61 = vpack.c.bf16 %v18520_v35, %v18514_v33  ;;  %9989 = vmatpush1.bf16.msra.mxu0 %v16772_v46  ;;  %v16792_v46 = vld [vmem:[#allocation7 + $0xaac] ss:$48 sps:$4 sm:$0xff]   ;;  %v16790_v45 = vld [vmem:[#allocation7 + $0xaa8] ss:$48 sps:$4 sm:$0xff]   ;;  %v18926_v19 = vpack.c.bf16 %v18517_v53, %v18511_v18  ;;  %v16892_v35 = vld [vmem:[#allocation10 + $0x3c8] ss:$16 sps:$4 sm:$0xff]  }
 0xaf2   :  { %9990 = vmatprep.subr.bf16.mxu0 %v16777_v57  ;;  %v16793_v57 = vld [vmem:[#allocation7 + $0xb08] ss:$48 sps:$4 sm:$0xff]   ;;  %v16798_v55 = vld [vmem:[#allocation7 + $0xb6c] ss:$48 sps:$4 sm:$0xff]   ;;  %v18925_v31 = vpack.c.bf16 %v18528_v32, %v18523_v17 }
 0xaf3   :  { %v16876_v8 = vld [vmem:[#allocation10 + $0x30c] ss:$16 sps:$4 sm:$0xff]   ;;  %v16900_v18 = vld [vmem:[#allocation13 + $0x40c] ss:$16 sps:$4 sm:$0xff]  }
 0xaf4   :  { %v16894_v33 = vld [vmem:[#allocation10 + $0x3cc] ss:$16 sps:$4 sm:$0xff]   ;;  %v16903_v53 = vld [vmem:[#allocation13 + $0x42c] ss:$16 sps:$4 sm:$0xff]  }
 0xaf5   :  { %9991 = vmatpush1.bf16.msra.mxu0 %v16775_v22  ;;  %v16796_v22 = vld [vmem:[#allocation7 + $0xb68] ss:$48 sps:$4 sm:$0xff]   ;;  %v16906_v32 = vld [vmem:[#allocation13 + $0x44c] ss:$16 sps:$4 sm:$0xff]  }
 0xaf6   :  { %9992 = vmatprep.subr.bf16.mxu0 %v16780_v62  ;;  %v16801_v62 = vld [vmem:[#allocation7 + $0xbcc] ss:$48 sps:$4 sm:$0xff]   ;;  %v16897_v17 = vld [vmem:[#allocation10 + $0x3ec] ss:$16 sps:$4 sm:$0xff]  }
 0xaf9   :  { %9993 = vmatpush1.bf16.msra.mxu0 %v16778_v25  ;;  %v16799_v25 = vld [vmem:[#allocation7 + $0xbc8] ss:$48 sps:$4 sm:$0xff]  }
 0xafa   :  { %9994 = vmatprep.subr.bf16.mxu0 %v16783_v30  ;;  %v16804_v30 = vld [vmem:[#allocation10 + $0xc] ss:$16 sps:$4 sm:$0xff]  }
 0xafd   :  { %9995 = vmatpush1.bf16.msra.mxu0 %v16781_v63  ;;  %v16802_v63 = vld [vmem:[#allocation10 + $0x8] ss:$16 sps:$4 sm:$0xff]  }
 0xafe   :  { %9996 = vmatprep.subr.bf16.mxu0 %v16786_v50  ;;  %v16807_v50 = vld [vmem:[#allocation10 + $0x2c] ss:$16 sps:$4 sm:$0xff]  }
 0xb01   :  { %9997 = vmatpush1.bf16.msra.mxu0 %v16784_v12  ;;  %v16805_v12 = vld [vmem:[#allocation10 + $0x28] ss:$16 sps:$4 sm:$0xff]  }
 0xb02   :  { %9998 = vmatprep.subr.bf16.mxu0 %v16789_v56  ;;  %v16810_v56 = vld [vmem:[#allocation10 + $0x4c] ss:$16 sps:$4 sm:$0xff]  }
 0xb05   :  { %9999 = vmatpush1.bf16.msra.mxu0 %v16787_v2  ;;  %v16808_v2 = vld [vmem:[#allocation10 + $0x48] ss:$16 sps:$4 sm:$0xff]  }
 0xb06   :  { %10000 = vmatprep.subr.bf16.mxu0 %v16792_v46  ;;  %v16813_v46 = vld [vmem:[#allocation10 + $0x6c] ss:$16 sps:$4 sm:$0xff]  }
 0xb09   :  { %10001 = vmatpush1.bf16.msra.mxu0 %v16790_v45  ;;  %v16811_v45 = vld [vmem:[#allocation10 + $0x68] ss:$16 sps:$4 sm:$0xff]  }
 0xb0a   :  { %10002 = vmatprep.subr.bf16.mxu0 %v16795_v36  ;;  %v16816_v36 = vld [vmem:[#allocation10 + $0x8c] ss:$16 sps:$4 sm:$0xff]  }
 0xb0d   :  { %10003 = vmatpush1.bf16.msra.mxu0 %v16793_v57  ;;  %v16814_v57 = vld [vmem:[#allocation10 + $0x88] ss:$16 sps:$4 sm:$0xff]  }
 0xb0e   :  { %10004 = vmatprep.subr.bf16.mxu0 %v16798_v55  ;;  %v16819_v55 = vld [vmem:[#allocation10 + $0xac] ss:$16 sps:$4 sm:$0xff]  }
 0xb11   :  { %10005 = vmatpush1.bf16.msra.mxu0 %v16796_v22  ;;  %v16817_v22 = vld [vmem:[#allocation10 + $0xa8] ss:$16 sps:$4 sm:$0xff]  }
 0xb12   :  { %10006 = vmatprep.subr.bf16.mxu0 %v16801_v62  ;;  %v16822_v62 = vld [vmem:[#allocation10 + $0xcc] ss:$16 sps:$4 sm:$0xff]  }
 0xb15   :  { %10007 = vmatpush1.bf16.msra.mxu0 %v16799_v25  ;;  %v16820_v25 = vld [vmem:[#allocation10 + $0xc8] ss:$16 sps:$4 sm:$0xff]  }
 0xb16   :  { %11343 = vmatprep.subr.bf16.mxu0 %v16804_v30  ;;  %v16825_v30 = vld [vmem:[#allocation10 + $0xec] ss:$16 sps:$4 sm:$0xff]  }
 0xb18   :  { %10009 = vmatmul.mubr.bf16.vlgmr.msra.gmra.mrb[16].mxu0 %v18456_v54 }
 0xb19   :  { %11344 = vmatpush1.bf16.msra.mxu0 %v16802_v63  ;;  %11375 = vmatprep.mubr.bf16.mxu0 %v18416_v26  ;;  %v16823_v63 = vld [vmem:[#allocation10 + $0xe8] ss:$16 sps:$4 sm:$0xff]  }
 0xb1a   :  { %11345 = vmatprep.subr.bf16.mxu0 %v16807_v50  ;;  %v16828_v50 = vld [vmem:[#allocation10 + $0x10c] ss:$16 sps:$4 sm:$0xff]  }
 0xb1d   :  { %11346 = vmatpush1.bf16.msra.mxu0 %v16805_v12  ;;  %v16826_v12 = vld [vmem:[#allocation10 + $0x108] ss:$16 sps:$4 sm:$0xff]  }
 0xb1e   :  { %11347 = vmatprep.subr.bf16.mxu0 %v16810_v56  ;;  %v16831_v56 = vld [vmem:[#allocation10 + $0x12c] ss:$16 sps:$4 sm:$0xff]  }
 0xb21   :  { %11348 = vmatpush1.bf16.msra.mxu0 %v16808_v2  ;;  %v16829_v2 = vld [vmem:[#allocation10 + $0x128] ss:$16 sps:$4 sm:$0xff]  }
 0xb22   :  { %11349 = vmatprep.subr.bf16.mxu0 %v16813_v46  ;;  %v16834_v46 = vld [vmem:[#allocation10 + $0x14c] ss:$16 sps:$4 sm:$0xff]  }
 0xb25   :  { %11350 = vmatpush1.bf16.msra.mxu0 %v16811_v45  ;;  %v16832_v45 = vld [vmem:[#allocation10 + $0x148] ss:$16 sps:$4 sm:$0xff]  }
 0xb26   :  { %11351 = vmatprep.subr.bf16.mxu0 %v16816_v36  ;;  %v16837_v36 = vld [vmem:[#allocation10 + $0x16c] ss:$16 sps:$4 sm:$0xff]  }
 0xb29   :  { %11352 = vmatpush1.bf16.msra.mxu0 %v16814_v57  ;;  %v16835_v57 = vld [vmem:[#allocation10 + $0x168] ss:$16 sps:$4 sm:$0xff]  }
 0xb2a   :  { %11353 = vmatprep.subr.bf16.mxu0 %v16819_v55  ;;  %v16840_v55 = vld [vmem:[#allocation10 + $0x18c] ss:$16 sps:$4 sm:$0xff]  }
 0xb2d   :  { %11354 = vmatpush1.bf16.msra.mxu0 %v16817_v22  ;;  %v16838_v22 = vld [vmem:[#allocation10 + $0x188] ss:$16 sps:$4 sm:$0xff]  }
 0xb2e   :  { %11355 = vmatprep.subr.bf16.mxu0 %v16822_v62  ;;  %v16843_v62 = vld [vmem:[#allocation10 + $0x1ac] ss:$16 sps:$4 sm:$0xff]  }
 0xb31   :  { %11356 = vmatpush1.bf16.msra.mxu0 %v16820_v25  ;;  %v16841_v25 = vld [vmem:[#allocation10 + $0x1a8] ss:$16 sps:$4 sm:$0xff]  }
 0xb32   :  { %11357 = vmatprep.subr.bf16.mxu0 %v16825_v30  ;;  %v16846_v30 = vld [vmem:[#allocation10 + $0x1cc] ss:$16 sps:$4 sm:$0xff]  }
 0xb35   :  { %11358 = vmatpush1.bf16.msra.mxu0 %v16823_v63  ;;  %v16844_v63 = vld [vmem:[#allocation10 + $0x1c8] ss:$16 sps:$4 sm:$0xff]  }
 0xb36   :  { %11359 = vmatprep.subr.bf16.mxu0 %v16828_v50  ;;  %v16849_v50 = vld [vmem:[#allocation10 + $0x1ec] ss:$16 sps:$4 sm:$0xff]  }
 0xb39   :  { %11360 = vmatpush1.bf16.msra.mxu0 %v16826_v12  ;;  %v16847_v12 = vld [vmem:[#allocation10 + $0x1e8] ss:$16 sps:$4 sm:$0xff]  }
 0xb3a   :  { %11361 = vmatprep.subr.bf16.mxu0 %v16831_v56  ;;  %v16852_v56 = vld [vmem:[#allocation10 + $0x20c] ss:$16 sps:$4 sm:$0xff]  }
 0xb3d   :  { %11362 = vmatpush1.bf16.msra.mxu0 %v16829_v2  ;;  %v16850_v2 = vld [vmem:[#allocation10 + $0x208] ss:$16 sps:$4 sm:$0xff]  }
 0xb3e   :  { %11363 = vmatprep.subr.bf16.mxu0 %v16834_v46  ;;  %v16855_v46 = vld [vmem:[#allocation10 + $0x22c] ss:$16 sps:$4 sm:$0xff]  }
 0xb41   :  { %11364 = vmatpush1.bf16.msra.mxu0 %v16832_v45  ;;  %v16853_v45 = vld [vmem:[#allocation10 + $0x228] ss:$16 sps:$4 sm:$0xff]  }
 0xb42   :  { %11365 = vmatprep.subr.bf16.mxu0 %v16837_v36  ;;  %v16858_v36 = vld [vmem:[#allocation10 + $0x24c] ss:$16 sps:$4 sm:$0xff]  }
 0xb45   :  { %11366 = vmatpush1.bf16.msra.mxu0 %v16835_v57  ;;  %v16856_v57 = vld [vmem:[#allocation10 + $0x248] ss:$16 sps:$4 sm:$0xff]  }
 0xb46   :  { %11367 = vmatprep.subr.bf16.mxu0 %v16840_v55  ;;  %v16861_v55 = vld [vmem:[#allocation10 + $0x26c] ss:$16 sps:$4 sm:$0xff]  }
 0xb49   :  { %11368 = vmatpush1.bf16.msra.mxu0 %v16838_v22  ;;  %v16859_v22 = vld [vmem:[#allocation10 + $0x268] ss:$16 sps:$4 sm:$0xff]  }
 0xb4a   :  { %11369 = vmatprep.subr.bf16.mxu0 %v16843_v62  ;;  %v16864_v62 = vld [vmem:[#allocation10 + $0x28c] ss:$16 sps:$4 sm:$0xff]  }
 0xb4d   :  { %11370 = vmatpush1.bf16.msra.mxu0 %v16841_v25  ;;  %v16862_v25 = vld [vmem:[#allocation10 + $0x288] ss:$16 sps:$4 sm:$0xff]  }
 0xb4e   :  { %11371 = vmatprep.subr.bf16.mxu0 %v16846_v30  ;;  %v16867_v30 = vld [vmem:[#allocation10 + $0x2ac] ss:$16 sps:$4 sm:$0xff]  }
 0xb51   :  { %11372 = vmatpush1.bf16.msra.mxu0 %v16844_v63  ;;  %v16865_v63 = vld [vmem:[#allocation10 + $0x2a8] ss:$16 sps:$4 sm:$0xff]  }
 0xb52   :  { %11373 = vmatprep.subr.bf16.mxu0 %v16849_v50  ;;  %v16870_v50 = vld [vmem:[#allocation10 + $0x2cc] ss:$16 sps:$4 sm:$0xff]  }
 0xb55   :  { %11374 = vmatpush1.bf16.msra.mxu0 %v16847_v12 }
 0xb56   :  { %11386 = vmatprep.subr.bf16.mxu0 %v16852_v56 }
 0xb58   :  { %11376 = vmatmul.mubr.bf16.vlgmr.msra.gmra.mrb[20].mxu0 %v18420_v23 }
 0xb59   :  { %11387 = vmatpush1.bf16.msra.mxu0 %v16850_v2  ;;  %11418 = vmatprep.mubr.bf16.mxu0 %v18452_v21 }
 0xb5a   :  { %11388 = vmatprep.subr.bf16.mxu0 %v16855_v46  ;;  %v16868_v46 = vld [vmem:[#allocation10 + $0x2c8] ss:$16 sps:$4 sm:$0xff]  }
 0xb5d   :  { %11389 = vmatpush1.bf16.msra.mxu0 %v16853_v45 }
 0xb5e   :  { %11390 = vmatprep.subr.bf16.mxu0 %v16858_v36 }
 0xb61   :  { %11391 = vmatpush1.bf16.msra.mxu0 %v16856_v57 }
 0xb62   :  { %11392 = vmatprep.subr.bf16.mxu0 %v16861_v55  ;;  %v16873_v55 = vld [vmem:[#allocation10 + $0x2ec] ss:$16 sps:$4 sm:$0xff]  }
 0xb65   :  { %11393 = vmatpush1.bf16.msra.mxu0 %v16859_v22 }
 0xb66   :  { %11394 = vmatprep.subr.bf16.mxu0 %v16864_v62 }
 0xb69   :  { %11395 = vmatpush1.bf16.msra.mxu0 %v16862_v25 }
 0xb6a   :  { %11396 = vmatprep.subr.bf16.mxu0 %v16867_v30  ;;  %v16871_v30 = vld [vmem:[#allocation10 + $0x2e8] ss:$16 sps:$4 sm:$0xff]  }
 0xb6b   :  { %v9838_v12 = vpop.f32.mrb[12].mxu0 }
 0xb6c   :  { %v9840_v56 = vpop.f32.mrb[13].mxu0  ;;  %v14801_v45 = vadd.f32 %v9838_v12, %v18192_v39  ;;  %v16910_v12 = vld [vmem:[#allocation13 + $0x488] ss:$16 sps:$4 sm:$0xff]  }
 0xb6d   :  { %v9842_v2 = vpop.f32.mrb[14].mxu0  ;;  %11397 = vmatpush1.bf16.msra.mxu0 %v16865_v63  ;;  %v14802_v22 = vadd.f32 %v9840_v56, %v18195_v42  ;;  %v16879_v63 = vld [vmem:[#allocation10 + $0x32c] ss:$16 sps:$4 sm:$0xff]   ;;  %v16915_v56 = vld [vmem:[#allocation13 + $0x4ac] ss:$16 sps:$4 sm:$0xff]  }
 0xb6e   :  { %v14803_v36 = vadd.f32 %v9842_v2, %v18192_v39  ;;  %v9844_v57 = vpop.f32.mrb[15].mxu0  ;;  %11398 = vmatprep.subr.bf16.mxu0 %v16870_v50  ;;  %v16874_v39 = vld [vmem:[#allocation10 + $0x308] ss:$16 sps:$4 sm:$0xff]   ;;  %v16912_v50 = vld [vmem:[#allocation13 + $0x48c] ss:$16 sps:$4 sm:$0xff]  }
 0xb6f   :  { %v14804_v62 = vadd.f32 %v9844_v57, %v18195_v42  ;;  %v16877_v42 = vld [vmem:[#allocation10 + $0x328] ss:$16 sps:$4 sm:$0xff]   ;;  %v16913_v2 = vld [vmem:[#allocation13 + $0x4a8] ss:$16 sps:$4 sm:$0xff]  }
 0xb70   :  { %v14695_v25 = vpack.c.bf16 %v14803_v36, %v14801_v45  ;;  %v16916_v45 = vld [vmem:[#allocation13 + $0x4c8] ss:$16 sps:$4 sm:$0xff]   ;;  %v16921_v36 = vld [vmem:[#allocation13 + $0x4ec] ss:$16 sps:$4 sm:$0xff]  }
 0xb71   :  { %v14693_v34 = vpack.c.bf16 %v14804_v62, %v14802_v22  ;;  %11399 = vmatpush1.bf16.msra.mxu0 %v16868_v46  ;;  %v16918_v46 = vld [vmem:[#allocation13 + $0x4cc] ss:$16 sps:$4 sm:$0xff]   ;;  %v16919_v57 = vld [vmem:[#allocation13 + $0x4e8] ss:$16 sps:$4 sm:$0xff]  }
 0xb72   :  { %11400 = vmatprep.subr.bf16.mxu0 %v16873_v55  ;;  %v16924_v55 = vld [vmem:[#allocation13 + $0x50c] ss:$16 sps:$4 sm:$0xff]   ;;  %v16922_v22 = vld [vmem:[#allocation13 + $0x508] ss:$16 sps:$4 sm:$0xff]  }
 0xb73   :  { %14694 = vmatprep.subr.bf16.mxu1 %v14693_v34  ;;  %v16904_v34 = vld [vmem:[#allocation13 + $0x448] ss:$16 sps:$4 sm:$0xff]   ;;  %v16927_v62 = vld [vmem:[#allocation13 + $0x52c] ss:$16 sps:$4 sm:$0xff]  }
 0xb74   :  { %14696 = vmatpush1.bf16.msra.mxu1 %v14695_v25  ;;  %v16925_v25 = vld [vmem:[#allocation13 + $0x528] ss:$16 sps:$4 sm:$0xff]  }
 0xb75   :  { %14698 = vmatprep.subr.bf16.mxu1 %v14697_v43  ;;  %11401 = vmatpush1.bf16.msra.mxu0 %v16871_v30  ;;  %v16891_v43 = vld [vmem:[#allocation10 + $0x3ac] ss:$16 sps:$4 sm:$0xff]   ;;  %v16930_v30 = vld [vmem:[#allocation13 + $0x54c] ss:$16 sps:$4 sm:$0xff]  }
 0xb76   :  { %11402 = vmatprep.subr.bf16.mxu0 %v16876_v8  ;;  %v16907_v8 = vld [vmem:[#allocation13 + $0x468] ss:$16 sps:$4 sm:$0xff]  }
 0xb77   :  { %14317 = vmatmul.mubr.msk.f32.vlgmr.msra.gmra.mrb[60].mxu1 %vm4680_vm4, %v18173_v20  ;;  %v16880_v20 = vld [vmem:[#allocation10 + $0x348] ss:$16 sps:$4 sm:$0xff]  }
 0xb78   :  { %14700 = vmatpush1.bf16.msra.mxu1 %v14699_v51  ;;  %10166 = vmatprep.mubr.f32.mxu1 %v17661_v5  ;;  %v16886_v51 = vld [vmem:[#allocation10 + $0x388] ss:$16 sps:$4 sm:$0xff]  }
 0xb79   :  { %14702 = vmatprep.subr.bf16.mxu1 %v14701_v61  ;;  %11403 = vmatpush1.bf16.msra.mxu0 %v16874_v39  ;;  %v16909_v61 = vld [vmem:[#allocation13 + $0x46c] ss:$16 sps:$4 sm:$0xff]   ;;  %v16928_v39 = vld [vmem:[#allocation13 + $0x548] ss:$16 sps:$4 sm:$0xff]  }
 0xb7a   :  { %11404 = vmatprep.subr.bf16.mxu0 %v16879_v63  ;;  %v16933_v63 = vld [vmem:[#allocation13 + $0x56c] ss:$16 sps:$4 sm:$0xff]  }
 0xb7b   :  { %14318 = vmatmul.mubr.msk.f32.gmra.mrb[62].mxu1 %vm4680_vm4, %v18183_v6  ;;  %v16883_v6 = vld [vmem:[#allocation10 + $0x368] ss:$16 sps:$4 sm:$0xff]  }
 0xb7c   :  { %10237 = vmatprep.mubr.f32.mxu1 %v17661_v5 }
 0xb7d   :  { %11405 = vmatpush1.bf16.msra.mxu0 %v16877_v42  ;;  %v16931_v42 = vld [vmem:[#allocation13 + $0x568] ss:$16 sps:$4 sm:$0xff]  }
 0xb7e   :  { %11406 = vmatprep.subr.bf16.mxu0 %v16882_v58  ;;  %v16936_v58 = vld [vmem:[#allocation13 + $0x58c] ss:$16 sps:$4 sm:$0xff]  }
 0xb7f   :  { %14319 = vmatmul.mubr.msk.f32.vlgmr.msra.gmra.mrb[56].mxu1 %vm4680_vm4, %v18218_v60 }
 0xb80   :  { %14704 = vmatpush1.bf16.msra.mxu1 %v14703_v38  ;;  %10243 = vmatprep.mubr.f32.mxu1 %v17661_v5  ;;  %v16901_v38 = vld [vmem:[#allocation13 + $0x428] ss:$16 sps:$4 sm:$0xff]  }
 0xb81   :  { %14706 = vmatprep.subr.bf16.mxu1 %v18925_v31  ;;  %11407 = vmatpush1.bf16.msra.mxu0 %v16880_v20  ;;  %v16934_v20 = vld [vmem:[#allocation13 + $0x588] ss:$16 sps:$4 sm:$0xff]  }
 0xb82   :  { %11408 = vmatprep.subr.bf16.mxu0 %v16885_v29  ;;  %v16939_v29 = vld [vmem:[#allocation13 + $0x5ac] ss:$16 sps:$4 sm:$0xff]   ;;  %v16937_v31 = vld [vmem:[#allocation13 + $0x5a8] ss:$16 sps:$4 sm:$0xff]  }
 0xb83   :  { %14320 = vmatmul.mubr.msk.f32.gmra.mrb[58].mxu1 %vm4680_vm4, %v18226_v16 }
 0xb84   :  { %10314 = vmatprep.mubr.f32.mxu1 %v17661_v5 }
 0xb85   :  { %11409 = vmatpush1.bf16.msra.mxu0 %v16883_v6  ;;  %v16942_v6 = vld [vmem:[#allocation13 + $0x5cc] ss:$16 sps:$4 sm:$0xff]  }
 0xb86   :  { %11410 = vmatprep.subr.bf16.mxu0 %v16888_v27  ;;  %v16940_v27 = vld [vmem:[#allocation13 + $0x5c8] ss:$16 sps:$4 sm:$0xff]  }
 0xb87   :  { %14321 = vmatmul.mubr.msk.f32.vlgmr.msra.gmra.mrb[60].mxu1 %vm4680_vm4, %v18218_v60  ;;  %v16895_v60 = vld [vmem:[#allocation10 + $0x3e8] ss:$16 sps:$4 sm:$0xff]  }
 0xb88   :  { %14708 = vmatpush1.bf16.msra.mxu1 %v18926_v19  ;;  %10320 = vmatprep.mubr.f32.mxu1 %v17661_v5  ;;  %v16948_v19 = vld [vmem:[#allocation13 + $0x60c] ss:$16 sps:$4 sm:$0xff]  }
 0xb89   :  { %11411 = vmatpush1.bf16.msra.mxu0 %v16886_v51  ;;  %v16945_v51 = vld [vmem:[#allocation13 + $0x5ec] ss:$16 sps:$4 sm:$0xff]  }
 0xb8a   :  { %11412 = vmatprep.subr.bf16.mxu0 %v16891_v43  ;;  %v16943_v43 = vld [vmem:[#allocation13 + $0x5e8] ss:$16 sps:$4 sm:$0xff]  }
 0xb8b   :  { %14322 = vmatmul.mubr.msk.f32.gmra.mrb[62].mxu1 %vm4680_vm4, %v18226_v16  ;;  %v16898_v16 = vld [vmem:[#allocation13 + $0x408] ss:$16 sps:$4 sm:$0xff]  }
 0xb8c   :  { %10391 = vmatprep.mubr.f32.mxu1 %v17661_v5 }
 0xb8d   :  { %11413 = vmatpush1.bf16.msra.mxu0 %v16889_v41  ;;  %v16946_v41 = vld [vmem:[#allocation13 + $0x608] ss:$16 sps:$4 sm:$0xff]  }
 0xb8e   :  { %11414 = vmatprep.subr.bf16.mxu0 %v16894_v33  ;;  %v16951_v33 = vld [vmem:[#allocation13 + $0x62c] ss:$16 sps:$4 sm:$0xff]  }
 0xb8f   :  { %14323 = vmatmul.mubr.msk.f32.vlgmr.msra.gmra.mrb[56].mxu1 %vm4680_vm4, %v18254_v4 }
 0xb90   :  { %10397 = vmatprep.mubr.f32.mxu1 %v17661_v5 }
 0xb91   :  { %11415 = vmatpush1.bf16.msra.mxu0 %v16892_v35  ;;  %v16949_v35 = vld [vmem:[#allocation13 + $0x628] ss:$16 sps:$4 sm:$0xff]  }
 0xb92   :  { %11416 = vmatprep.subr.bf16.mxu0 %v16897_v17  ;;  %v16954_v17 = vld [vmem:[#allocation13 + $0x64c] ss:$16 sps:$4 sm:$0xff]  }
 0xb93   :  { %14324 = vmatmul.mubr.msk.f32.gmra.mrb[58].mxu1 %vm4680_vm4, %v18261_v9 }
 0xb94   :  { %10468 = vmatprep.mubr.f32.mxu1 %v17661_v5 }
 0xb95   :  { %11417 = vmatpush1.bf16.msra.mxu0 %v16895_v60  ;;  %v16952_v60 = vld [vmem:[#allocation13 + $0x648] ss:$16 sps:$4 sm:$0xff]  }
 0xb96   :  { %12303 = vmatprep.subr.bf16.mxu0 %v16900_v18  ;;  %v16957_v18 = vld [vmem:[#allocation13 + $0x66c] ss:$16 sps:$4 sm:$0xff]  }
 0xb98   :  { %11419 = vmatmul.mubr.bf16.vlgmr.msra.gmra.mrb[20].mxu0 %v18456_v54 }
 0xb99   :  { %12304 = vmatpush1.bf16.msra.mxu0 %v16898_v16  ;;  %12335 = vmatprep.mubr.bf16.mxu0 %v18416_v26  ;;  %v16955_v16 = vld [vmem:[#allocation13 + $0x668] ss:$16 sps:$4 sm:$0xff]  }
 0xb9a   :  { %12305 = vmatprep.subr.bf16.mxu0 %v16903_v53  ;;  %v16960_v53 = vld [vmem:[#allocation13 + $0x68c] ss:$16 sps:$4 sm:$0xff]  }
 0xb9d   :  { %12306 = vmatpush1.bf16.msra.mxu0 %v16901_v38  ;;  %v16958_v38 = vld [vmem:[#allocation13 + $0x688] ss:$16 sps:$4 sm:$0xff]  }
 0xb9e   :  { %12307 = vmatprep.subr.bf16.mxu0 %v16906_v32  ;;  %v16963_v32 = vld [vmem:[#allocation13 + $0x6ac] ss:$16 sps:$4 sm:$0xff]  }
 0xba1   :  { %12308 = vmatpush1.bf16.msra.mxu0 %v16904_v34  ;;  %v16961_v34 = vld [vmem:[#allocation13 + $0x6a8] ss:$16 sps:$4 sm:$0xff]  }
 0xba2   :  { %12309 = vmatprep.subr.bf16.mxu0 %v16909_v61  ;;  %v16966_v61 = vld [vmem:[#allocation13 + $0x6cc] ss:$16 sps:$4 sm:$0xff]  }
 0xba5   :  { %12310 = vmatpush1.bf16.msra.mxu0 %v16907_v8 }
 0xba6   :  { %12311 = vmatprep.subr.bf16.mxu0 %v16912_v50 }
 0xba9   :  { %12312 = vmatpush1.bf16.msra.mxu0 %v16910_v12 }
 0xbaa   :  { %12313 = vmatprep.subr.bf16.mxu0 %v16915_v56  ;;  %v16964_v56 = vld [vmem:[#allocation13 + $0x6c8] ss:$16 sps:$4 sm:$0xff]  }
 0xbad   :  { %12314 = vmatpush1.bf16.msra.mxu0 %v16913_v2 }
 0xbae   :  { %12315 = vmatprep.subr.bf16.mxu0 %v16918_v46 }
 0xbb1   :  { %12316 = vmatpush1.bf16.msra.mxu0 %v16916_v45 }
 0xbb2   :  { %12317 = vmatprep.subr.bf16.mxu0 %v16921_v36  ;;  %v16969_v36 = vld [vmem:[#allocation13 + $0x6ec] ss:$16 sps:$4 sm:$0xff]  }
 0xbb5   :  { %12318 = vmatpush1.bf16.msra.mxu0 %v16919_v57 }
 0xbb6   :  { %12319 = vmatprep.subr.bf16.mxu0 %v16924_v55 }
 0xbb9   :  { %12320 = vmatpush1.bf16.msra.mxu0 %v16922_v22 }
 0xbba   :  { %12321 = vmatprep.subr.bf16.mxu0 %v16927_v62 }
 0xbbd   :  { %12322 = vmatpush1.bf16.msra.mxu0 %v16925_v25  ;;  %v16967_v25 = vld [vmem:[#allocation13 + $0x6e8] ss:$16 sps:$4 sm:$0xff]  }
 0xbbe   :  { %12323 = vmatprep.subr.bf16.mxu0 %v16930_v30  ;;  %v16972_v30 = vld [vmem:[#allocation10 + $0x4] ss:$16 sps:$4 sm:$0xff]  }
 0xbc1   :  { %12324 = vmatpush1.bf16.msra.mxu0 %v16928_v39  ;;  %v16975_v39 = vld [vmem:[#allocation13 + $0x70c] ss:$16 sps:$4 sm:$0xff]  }
 0xbc2   :  { %12325 = vmatprep.subr.bf16.mxu0 %v16933_v63  ;;  %v16970_v63 = vld [vmem:[#allocation10] ss:$16 sps:$4 sm:$0xff]  }
 0xbc5   :  { %12326 = vmatpush1.bf16.msra.mxu0 %v16931_v42  ;;  %v16978_v42 = vld [vmem:[#allocation10 + $0x24] ss:$16 sps:$4 sm:$0xff]  }
 0xbc6   :  { %12327 = vmatprep.subr.bf16.mxu0 %v16936_v58  ;;  %v16981_v58 = vld [vmem:[#allocation13 + $0x72c] ss:$16 sps:$4 sm:$0xff]  }
 0xbc9   :  { %12328 = vmatpush1.bf16.msra.mxu0 %v16934_v20  ;;  %v16979_v20 = vld [vmem:[#allocation13 + $0x728] ss:$16 sps:$4 sm:$0xff]  }
 0xbca   :  { %12329 = vmatprep.subr.bf16.mxu0 %v16939_v29  ;;  %v16984_v29 = vld [vmem:[#allocation10 + $0x44] ss:$16 sps:$4 sm:$0xff]  }
 0xbcd   :  { %12330 = vmatpush1.bf16.msra.mxu0 %v16937_v31  ;;  %v16987_v31 = vld [vmem:[#allocation13 + $0x74c] ss:$16 sps:$4 sm:$0xff]  }
 0xbce   :  { %12331 = vmatprep.subr.bf16.mxu0 %v16942_v6  ;;  %v16982_v6 = vld [vmem:[#allocation10 + $0x40] ss:$16 sps:$4 sm:$0xff]  }
 0xbd1   :  { %12332 = vmatpush1.bf16.msra.mxu0 %v16940_v27  ;;  %v16990_v27 = vld [vmem:[#allocation10 + $0x64] ss:$16 sps:$4 sm:$0xff]  }
 0xbd2   :  { %12333 = vmatprep.subr.bf16.mxu0 %v16945_v51  ;;  %v16993_v51 = vld [vmem:[#allocation13 + $0x76c] ss:$16 sps:$4 sm:$0xff]  }
 0xbd5   :  { %12334 = vmatpush1.bf16.msra.mxu0 %v16943_v43  ;;  %v16988_v43 = vld [vmem:[#allocation10 + $0x60] ss:$16 sps:$4 sm:$0xff]  }
 0xbd6   :  { %12346 = vmatprep.subr.bf16.mxu0 %v16948_v19  ;;  %v16991_v19 = vld [vmem:[#allocation13 + $0x768] ss:$16 sps:$4 sm:$0xff]  }
 0xbd8   :  { %12336 = vmatmul.mubr.bf16.vlgmr.msra.gmra.mrb[24].mxu0 %v18420_v23 }
 0xbd9   :  { %12347 = vmatpush1.bf16.msra.mxu0 %v16946_v41  ;;  %12378 = vmatprep.mubr.bf16.mxu0 %v18452_v21  ;;  %v16996_v41 = vld [vmem:[#allocation10 + $0x84] ss:$16 sps:$4 sm:$0xff]  }
 0xbda   :  { %12348 = vmatprep.subr.bf16.mxu0 %v16951_v33  ;;  %v16999_v33 = vld [vmem:[#allocation13 + $0x78c] ss:$16 sps:$4 sm:$0xff]  }
 0xbdd   :  { %12349 = vmatpush1.bf16.msra.mxu0 %v16949_v35  ;;  %v16997_v35 = vld [vmem:[#allocation13 + $0x788] ss:$16 sps:$4 sm:$0xff]  }
 0xbde   :  { %12350 = vmatprep.subr.bf16.mxu0 %v16954_v17  ;;  %v17002_v17 = vld [vmem:[#allocation10 + $0xa4] ss:$16 sps:$4 sm:$0xff]  }
 0xbe1   :  { %12351 = vmatpush1.bf16.msra.mxu0 %v16952_v60  ;;  %v17005_v60 = vld [vmem:[#allocation13 + $0x7ac] ss:$16 sps:$4 sm:$0xff]  }
 0xbe2   :  { %12352 = vmatprep.subr.bf16.mxu0 %v16957_v18  ;;  %v17000_v18 = vld [vmem:[#allocation10 + $0xa0] ss:$16 sps:$4 sm:$0xff]  }
 0xbe5   :  { %12353 = vmatpush1.bf16.msra.mxu0 %v16955_v16  ;;  %v17003_v16 = vld [vmem:[#allocation13 + $0x7a8] ss:$16 sps:$4 sm:$0xff]  }
 0xbe6   :  { %12354 = vmatprep.subr.bf16.mxu0 %v16960_v53  ;;  %v17008_v53 = vld [vmem:[#allocation10 + $0xc4] ss:$16 sps:$4 sm:$0xff]  }
 0xbe9   :  { %12355 = vmatpush1.bf16.msra.mxu0 %v16958_v38  ;;  %v17011_v38 = vld [vmem:[#allocation13 + $0x7cc] ss:$16 sps:$4 sm:$0xff]  }
 0xbea   :  { %12356 = vmatprep.subr.bf16.mxu0 %v16963_v32  ;;  %v17006_v32 = vld [vmem:[#allocation10 + $0xc0] ss:$16 sps:$4 sm:$0xff]  }
 0xbeb   :  { %v10010_v8 = vpop.f32.mrb[16].mxu0 }
 0xbec   :  { %v10012_v50 = vpop.f32.mrb[17].mxu0  ;;  %v14809_v2 = vadd.f32 %v10010_v8, %v18268_v3  ;;  %v17017_v8 = vld [vmem:[#allocation13 + $0x7ec] ss:$16 sps:$4 sm:$0xff]  }
 0xbed   :  { %v10014_v12 = vpop.f32.mrb[18].mxu0  ;;  %12357 = vmatpush1.bf16.msra.mxu0 %v16961_v34  ;;  %v14810_v57 = vadd.f32 %v10012_v50, %v18271_v44  ;;  %v17009_v34 = vld [vmem:[#allocation13 + $0x7c8] ss:$16 sps:$4 sm:$0xff]   ;;  %v17012_v50 = vld [vmem:[#allocation10 + $0xe0] ss:$16 sps:$4 sm:$0xff]  }
 0xbee   :  { %v14811_v46 = vadd.f32 %v10014_v12, %v18268_v3  ;;  %v10016_v45 = vpop.f32.mrb[19].mxu0  ;;  %12358 = vmatprep.subr.bf16.mxu0 %v16966_v61  ;;  %v16973_v3 = vld [vmem:[#allocation13 + $0x708] ss:$16 sps:$4 sm:$0xff]   ;;  %v17014_v61 = vld [vmem:[#allocation10 + $0xe4] ss:$16 sps:$4 sm:$0xff]  }
 0xbef   :  { %v14812_v55 = vadd.f32 %v10016_v45, %v18271_v44  ;;  %v16976_v44 = vld [vmem:[#allocation10 + $0x20] ss:$16 sps:$4 sm:$0xff]   ;;  %v17015_v12 = vld [vmem:[#allocation13 + $0x7e8] ss:$16 sps:$4 sm:$0xff]  }
 0xbf0   :  { %v14711_v22 = vpack.c.bf16 %v14811_v46, %v14809_v2  ;;  %v17018_v2 = vld [vmem:[#allocation10 + $0x100] ss:$16 sps:$4 sm:$0xff]   ;;  %v17023_v46 = vld [vmem:[#allocation10 + $0x124] ss:$16 sps:$4 sm:$0xff]  }
 0xbf1   :  { %v14709_v62 = vpack.c.bf16 %v14812_v55, %v14810_v57  ;;  %12359 = vmatpush1.bf16.msra.mxu0 %v16964_v56  ;;  %v17020_v56 = vld [vmem:[#allocation10 + $0x104] ss:$16 sps:$4 sm:$0xff]   ;;  %v17286_v45 = vld [vmem:[#allocation13 + $0xc] ss:$16 sps:$4 sm:$0xff]   ;;  %v17287_v55 = vld [vmem:[#allocation13 + $0x8] ss:$16 sps:$4 sm:$0xff]  }
 0xbf2   :  { %12360 = vmatprep.subr.bf16.mxu0 %v16969_v36  ;;  %v17021_v36 = vld [vmem:[#allocation10 + $0x120] ss:$16 sps:$4 sm:$0xff]   ;;  %v17026_v57 = vld [vmem:[#allocation10 + $0x144] ss:$16 sps:$4 sm:$0xff]  }
 0xbf3   :  { %14710 = vmatprep.subr.bf16.mxu1 %v14709_v62  ;;  %v17024_v62 = vld [vmem:[#allocation10 + $0x140] ss:$16 sps:$4 sm:$0xff]  }
 0xbf4   :  { %14712 = vmatpush1.bf16.msra.mxu1 %v14711_v22  ;;  %v17288_v22 = vld [vmem:[#allocation13 + $0x2c] ss:$16 sps:$4 sm:$0xff]  }
 0xbf5   :  { %12361 = vmatpush1.bf16.msra.mxu0 %v16967_v25  ;;  %11257 = vmatprep.subr.bf16.mxu1 %v16972_v30  ;;  %v17029_v25 = vld [vmem:[#allocation10 + $0x164] ss:$16 sps:$4 sm:$0xff]   ;;  %v17289_v30 = vld [vmem:[#allocation13 + $0x28] ss:$16 sps:$4 sm:$0xff]  }
 0xbf6   :  { %12362 = vmatprep.subr.bf16.mxu0 %v16975_v39  ;;  %v17290_v39 = vld [vmem:[#allocation13 + $0x4c] ss:$16 sps:$4 sm:$0xff]  }
 0xbf7   :  { %14325 = vmatmul.mubr.msk.f32.vlgmr.msra.gmra.mrb[60].mxu1 %vm4680_vm4, %v18254_v4  ;;  %v16985_v4 = vld [vmem:[#allocation13 + $0x748] ss:$16 sps:$4 sm:$0xff]  }
 0xbf8   :  { %11258 = vmatpush1.bf16.msra.mxu1 %v16970_v63  ;;  %10474 = vmatprep.mubr.f32.mxu1 %v17661_v5  ;;  %v17027_v63 = vld [vmem:[#allocation10 + $0x160] ss:$16 sps:$4 sm:$0xff]  }
 0xbf9   :  { %12363 = vmatpush1.bf16.msra.mxu0 %v16973_v3  ;;  %11259 = vmatprep.subr.bf16.mxu1 %v16978_v42  ;;  %v17032_v3 = vld [vmem:[#allocation10 + $0x184] ss:$16 sps:$4 sm:$0xff]   ;;  %v17291_v42 = vld [vmem:[#allocation13 + $0x48] ss:$16 sps:$4 sm:$0xff]  }
 0xbfa   :  { %12364 = vmatprep.subr.bf16.mxu0 %v16981_v58  ;;  %v17292_v58 = vld [vmem:[#allocation13 + $0x6c] ss:$16 sps:$4 sm:$0xff]  }
 0xbfb   :  { %14326 = vmatmul.mubr.msk.f32.gmra.mrb[62].mxu1 %vm4680_vm4, %v18261_v9  ;;  %v16994_v9 = vld [vmem:[#allocation10 + $0x80] ss:$16 sps:$4 sm:$0xff]  }
 0xbfc   :  { %11260 = vmatpush1.bf16.msra.mxu1 %v16976_v44  ;;  %11289 = vmatprep.mubr.bf16.mxu1 %v18416_v26  ;;  %v17030_v44 = vld [vmem:[#allocation10 + $0x180] ss:$16 sps:$4 sm:$0xff]  }
 0xbfd   :  { %12365 = vmatpush1.bf16.msra.mxu0 %v16979_v20  ;;  %11261 = vmatprep.subr.bf16.mxu1 %v16984_v29  ;;  %v17035_v20 = vld [vmem:[#allocation10 + $0x1a4] ss:$16 sps:$4 sm:$0xff]   ;;  %v17293_v29 = vld [vmem:[#allocation13 + $0x68] ss:$16 sps:$4 sm:$0xff]  }
 0xbfe   :  { %12366 = vmatprep.subr.bf16.mxu0 %v16987_v31  ;;  %v17294_v31 = vld [vmem:[#allocation13 + $0x8c] ss:$16 sps:$4 sm:$0xff]  }
 0xc00   :  { %11262 = vmatpush1.bf16.msra.mxu1 %v16982_v6  ;;  %v17033_v6 = vld [vmem:[#allocation10 + $0x1a0] ss:$16 sps:$4 sm:$0xff]  }
 0xc01   :  { %12367 = vmatpush1.bf16.msra.mxu0 %v16985_v4  ;;  %11263 = vmatprep.subr.bf16.mxu1 %v16990_v27  ;;  %v17038_v4 = vld [vmem:[#allocation10 + $0x1c4] ss:$16 sps:$4 sm:$0xff]   ;;  %v17295_v27 = vld [vmem:[#allocation13 + $0x88] ss:$16 sps:$4 sm:$0xff]  }
 0xc02   :  { %12368 = vmatprep.subr.bf16.mxu0 %v16993_v51  ;;  %v17296_v51 = vld [vmem:[#allocation13 + $0xac] ss:$16 sps:$4 sm:$0xff]  }
 0xc04   :  { %11264 = vmatpush1.bf16.msra.mxu1 %v16988_v43  ;;  %v17036_v43 = vld [vmem:[#allocation10 + $0x1c0] ss:$16 sps:$4 sm:$0xff]  }
 0xc05   :  { %12369 = vmatpush1.bf16.msra.mxu0 %v16991_v19  ;;  %11265 = vmatprep.subr.bf16.mxu1 %v16996_v41  ;;  %v17041_v19 = vld [vmem:[#allocation10 + $0x1e4] ss:$16 sps:$4 sm:$0xff]   ;;  %v17297_v41 = vld [vmem:[#allocation13 + $0xa8] ss:$16 sps:$4 sm:$0xff]  }
 0xc06   :  { %12370 = vmatprep.subr.bf16.mxu0 %v16999_v33  ;;  %v17298_v33 = vld [vmem:[#allocation13 + $0xcc] ss:$16 sps:$4 sm:$0xff]  }
 0xc08   :  { %11266 = vmatpush1.bf16.msra.mxu1 %v16994_v9  ;;  %v17039_v9 = vld [vmem:[#allocation10 + $0x1e0] ss:$16 sps:$4 sm:$0xff]  }
 0xc09   :  { %12371 = vmatpush1.bf16.msra.mxu0 %v16997_v35  ;;  %11267 = vmatprep.subr.bf16.mxu1 %v17002_v17  ;;  %v17044_v35 = vld [vmem:[#allocation10 + $0x204] ss:$16 sps:$4 sm:$0xff]   ;;  %v17299_v17 = vld [vmem:[#allocation13 + $0xc8] ss:$16 sps:$4 sm:$0xff]  }
 0xc0a   :  { %12372 = vmatprep.subr.bf16.mxu0 %v17005_v60  ;;  %v17300_v60 = vld [vmem:[#allocation13 + $0xec] ss:$16 sps:$4 sm:$0xff]  }
 0xc0c   :  { %11268 = vmatpush1.bf16.msra.mxu1 %v17000_v18  ;;  %v17042_v18 = vld [vmem:[#allocation10 + $0x200] ss:$16 sps:$4 sm:$0xff]  }
 0xc0d   :  { %12373 = vmatpush1.bf16.msra.mxu0 %v17003_v16  ;;  %11269 = vmatprep.subr.bf16.mxu1 %v17008_v53  ;;  %v17047_v16 = vld [vmem:[#allocation10 + $0x224] ss:$16 sps:$4 sm:$0xff]   ;;  %v17301_v53 = vld [vmem:[#allocation13 + $0xe8] ss:$16 sps:$4 sm:$0xff]  }
 0xc0e   :  { %12374 = vmatprep.subr.bf16.mxu0 %v17011_v38  ;;  %v17302_v38 = vld [vmem:[#allocation13 + $0x10c] ss:$16 sps:$4 sm:$0xff]  }
 0xc10   :  { %11270 = vmatpush1.bf16.msra.mxu1 %v17006_v32  ;;  %v17045_v32 = vld [vmem:[#allocation10 + $0x220] ss:$16 sps:$4 sm:$0xff]  }
 0xc11   :  { %12375 = vmatpush1.bf16.msra.mxu0 %v17009_v34  ;;  %11271 = vmatprep.subr.bf16.mxu1 %v17014_v61  ;;  %v17050_v34 = vld [vmem:[#allocation10 + $0x244] ss:$16 sps:$4 sm:$0xff]   ;;  %v17303_v61 = vld [vmem:[#allocation13 + $0x108] ss:$16 sps:$4 sm:$0xff]  }
 0xc12   :  { %12376 = vmatprep.subr.bf16.mxu0 %v17017_v8  ;;  %v17304_v8 = vld [vmem:[#allocation13 + $0x12c] ss:$16 sps:$4 sm:$0xff]  }
 0xc14   :  { %11272 = vmatpush1.bf16.msra.mxu1 %v17012_v50  ;;  %v17048_v50 = vld [vmem:[#allocation10 + $0x240] ss:$16 sps:$4 sm:$0xff]  }
 0xc15   :  { %12377 = vmatpush1.bf16.msra.mxu0 %v17015_v12  ;;  %11273 = vmatprep.subr.bf16.mxu1 %v17020_v56  ;;  %v17053_v12 = vld [vmem:[#allocation10 + $0x264] ss:$16 sps:$4 sm:$0xff]   ;;  %v17305_v56 = vld [vmem:[#allocation13 + $0x128] ss:$16 sps:$4 sm:$0xff]  }
 0xc16   :  { %12475 = vmatprep.subr.bf16.mxu0 %v17286_v45  ;;  %v17056_v45 = vld [vmem:[#allocation10 + $0x284] ss:$16 sps:$4 sm:$0xff]  }
 0xc18   :  { %11274 = vmatpush1.bf16.msra.mxu1 %v17018_v2  ;;  %12379 = vmatmul.mubr.bf16.vlgmr.msra.gmra.mrb[24].mxu0 %v18456_v54  ;;  %v17306_v2 = vld [vmem:[#allocation13 + $0x14c] ss:$16 sps:$4 sm:$0xff]  }
 0xc19   :  { %11275 = vmatprep.subr.bf16.mxu1 %v17023_v46  ;;  %12476 = vmatpush1.bf16.msra.mxu0 %v17287_v55  ;;  %v17051_v46 = vld [vmem:[#allocation10 + $0x260] ss:$16 sps:$4 sm:$0xff]  }
 0xc1a   :  { %12477 = vmatprep.subr.bf16.mxu0 %v17288_v22  ;;  %v17054_v55 = vld [vmem:[#allocation10 + $0x280] ss:$16 sps:$4 sm:$0xff]   ;;  %v17059_v22 = vld [vmem:[#allocation10 + $0x2a4] ss:$16 sps:$4 sm:$0xff]  }
 0xc1c   :  { %11276 = vmatpush1.bf16.msra.mxu1 %v17021_v36  ;;  %v17307_v36 = vld [vmem:[#allocation13 + $0x148] ss:$16 sps:$4 sm:$0xff]  }
 0xc1d   :  { %11277 = vmatprep.subr.bf16.mxu1 %v17026_v57  ;;  %12478 = vmatpush1.bf16.msra.mxu0 %v17289_v30  ;;  %v17308_v57 = vld [vmem:[#allocation13 + $0x16c] ss:$16 sps:$4 sm:$0xff]  }
 0xc1e   :  { %12479 = vmatprep.subr.bf16.mxu0 %v17290_v39  ;;  %v17057_v30 = vld [vmem:[#allocation10 + $0x2a0] ss:$16 sps:$4 sm:$0xff]   ;;  %v17062_v39 = vld [vmem:[#allocation10 + $0x2c4] ss:$16 sps:$4 sm:$0xff]  }
 0xc20   :  { %11278 = vmatpush1.bf16.msra.mxu1 %v17024_v62  ;;  %v17309_v62 = vld [vmem:[#allocation13 + $0x168] ss:$16 sps:$4 sm:$0xff]  }
 0xc21   :  { %11279 = vmatprep.subr.bf16.mxu1 %v17029_v25  ;;  %12480 = vmatpush1.bf16.msra.mxu0 %v17291_v42  ;;  %v17310_v25 = vld [vmem:[#allocation13 + $0x18c] ss:$16 sps:$4 sm:$0xff]  }
 0xc22   :  { %12481 = vmatprep.subr.bf16.mxu0 %v17292_v58  ;;  %v17060_v42 = vld [vmem:[#allocation10 + $0x2c0] ss:$16 sps:$4 sm:$0xff]   ;;  %v17065_v58 = vld [vmem:[#allocation10 + $0x2e4] ss:$16 sps:$4 sm:$0xff]  }
 0xc24   :  { %11280 = vmatpush1.bf16.msra.mxu1 %v17027_v63  ;;  %v17311_v63 = vld [vmem:[#allocation13 + $0x188] ss:$16 sps:$4 sm:$0xff]  }
 0xc25   :  { %11281 = vmatprep.subr.bf16.mxu1 %v17032_v3  ;;  %12482 = vmatpush1.bf16.msra.mxu0 %v17293_v29  ;;  %v17312_v3 = vld [vmem:[#allocation13 + $0x1ac] ss:$16 sps:$4 sm:$0xff]  }
 0xc26   :  { %12483 = vmatprep.subr.bf16.mxu0 %v17294_v31  ;;  %v17063_v29 = vld [vmem:[#allocation10 + $0x2e0] ss:$16 sps:$4 sm:$0xff]   ;;  %v17068_v31 = vld [vmem:[#allocation10 + $0x304] ss:$16 sps:$4 sm:$0xff]  }
 0xc28   :  { %11282 = vmatpush1.bf16.msra.mxu1 %v17030_v44  ;;  %v17313_v44 = vld [vmem:[#allocation13 + $0x1a8] ss:$16 sps:$4 sm:$0xff]  }
 0xc29   :  { %11283 = vmatprep.subr.bf16.mxu1 %v17035_v20  ;;  %12484 = vmatpush1.bf16.msra.mxu0 %v17295_v27  ;;  %v17314_v20 = vld [vmem:[#allocation13 + $0x1cc] ss:$16 sps:$4 sm:$0xff]  }
 0xc2a   :  { %12485 = vmatprep.subr.bf16.mxu0 %v17296_v51  ;;  %v17066_v27 = vld [vmem:[#allocation10 + $0x300] ss:$16 sps:$4 sm:$0xff]   ;;  %v17071_v51 = vld [vmem:[#allocation10 + $0x324] ss:$16 sps:$4 sm:$0xff]  }
 0xc2c   :  { %11284 = vmatpush1.bf16.msra.mxu1 %v17033_v6  ;;  %v17315_v6 = vld [vmem:[#allocation13 + $0x1c8] ss:$16 sps:$4 sm:$0xff]  }
 0xc2d   :  { %11285 = vmatprep.subr.bf16.mxu1 %v17038_v4  ;;  %12486 = vmatpush1.bf16.msra.mxu0 %v17297_v41  ;;  %v17316_v4 = vld [vmem:[#allocation13 + $0x1ec] ss:$16 sps:$4 sm:$0xff]  }
 0xc2e   :  { %12487 = vmatprep.subr.bf16.mxu0 %v17298_v33  ;;  %v17069_v41 = vld [vmem:[#allocation10 + $0x320] ss:$16 sps:$4 sm:$0xff]   ;;  %v17074_v33 = vld [vmem:[#allocation10 + $0x344] ss:$16 sps:$4 sm:$0xff]  }
 0xc30   :  { %11286 = vmatpush1.bf16.msra.mxu1 %v17036_v43  ;;  %v17317_v43 = vld [vmem:[#allocation13 + $0x1e8] ss:$16 sps:$4 sm:$0xff]  }
 0xc31   :  { %11287 = vmatprep.subr.bf16.mxu1 %v17041_v19  ;;  %12488 = vmatpush1.bf16.msra.mxu0 %v17299_v17  ;;  %v17318_v19 = vld [vmem:[#allocation13 + $0x20c] ss:$16 sps:$4 sm:$0xff]  }
 0xc32   :  { %12489 = vmatprep.subr.bf16.mxu0 %v17300_v60  ;;  %v17075_v17 = vld [vmem:[#allocation10 + $0x360] ss:$16 sps:$4 sm:$0xff]   ;;  %v17080_v60 = vld [vmem:[#allocation10 + $0x384] ss:$16 sps:$4 sm:$0xff]  }
 0xc34   :  { %11288 = vmatpush1.bf16.msra.mxu1 %v17039_v9  ;;  %v17072_v9 = vld [vmem:[#allocation10 + $0x340] ss:$16 sps:$4 sm:$0xff]  }
 0xc35   :  { %11300 = vmatprep.subr.bf16.mxu1 %v17044_v35  ;;  %12490 = vmatpush1.bf16.msra.mxu0 %v17301_v53  ;;  %v17077_v35 = vld [vmem:[#allocation10 + $0x364] ss:$16 sps:$4 sm:$0xff]   ;;  %v17078_v53 = vld [vmem:[#allocation10 + $0x380] ss:$16 sps:$4 sm:$0xff]  }
 0xc36   :  { %12491 = vmatprep.subr.bf16.mxu0 %v17302_v38  ;;  %v17083_v38 = vld [vmem:[#allocation10 + $0x3a4] ss:$16 sps:$4 sm:$0xff]  }
 0xc37   :  { %11290 = vmatmul.mubr.bf16.vlgmr.msra.gmra.mrb[64].mxu1 %v18420_v23 }
 0xc38   :  { %11301 = vmatpush1.bf16.msra.mxu1 %v17042_v18  ;;  %11332 = vmatprep.mubr.bf16.mxu1 %v18452_v21 }
 0xc39   :  { %11302 = vmatprep.subr.bf16.mxu1 %v17047_v16  ;;  %12492 = vmatpush1.bf16.msra.mxu0 %v17303_v61  ;;  %v17081_v61 = vld [vmem:[#allocation10 + $0x3a0] ss:$16 sps:$4 sm:$0xff]  }
 0xc3a   :  { %12493 = vmatprep.subr.bf16.mxu0 %v17304_v8  ;;  %v17086_v8 = vld [vmem:[#allocation10 + $0x3c4] ss:$16 sps:$4 sm:$0xff]  }
 0xc3c   :  { %11303 = vmatpush1.bf16.msra.mxu1 %v17045_v32 }
 0xc3d   :  { %11304 = vmatprep.subr.bf16.mxu1 %v17050_v34  ;;  %12494 = vmatpush1.bf16.msra.mxu0 %v17305_v56  ;;  %v17084_v56 = vld [vmem:[#allocation10 + $0x3c0] ss:$16 sps:$4 sm:$0xff]  }
 0xc3e   :  { %12495 = vmatprep.subr.bf16.mxu0 %v17306_v2 }
 0xc40   :  { %11305 = vmatpush1.bf16.msra.mxu1 %v17048_v50 }
 0xc41   :  { %11306 = vmatprep.subr.bf16.mxu1 %v17053_v12  ;;  %12496 = vmatpush1.bf16.msra.mxu0 %v17307_v36  ;;  %v17087_v36 = vld [vmem:[#allocation10 + $0x3e0] ss:$16 sps:$4 sm:$0xff]  }
 0xc42   :  { %12497 = vmatprep.subr.bf16.mxu0 %v17308_v57  ;;  %v17092_v57 = vld [vmem:[#allocation13 + $0x404] ss:$16 sps:$4 sm:$0xff]  }
 0xc44   :  { %11307 = vmatpush1.bf16.msra.mxu1 %v17051_v46  ;;  %v17089_v46 = vld [vmem:[#allocation10 + $0x3e4] ss:$16 sps:$4 sm:$0xff]  }
 0xc45   :  { %11308 = vmatprep.subr.bf16.mxu1 %v17056_v45  ;;  %12498 = vmatpush1.bf16.msra.mxu0 %v17309_v62  ;;  %v17093_v62 = vld [vmem:[#allocation13 + $0x420] ss:$16 sps:$4 sm:$0xff]  }
 0xc46   :  { %12499 = vmatprep.subr.bf16.mxu0 %v17310_v25  ;;  %v17098_v25 = vld [vmem:[#allocation13 + $0x444] ss:$16 sps:$4 sm:$0xff]  }
 0xc48   :  { %11309 = vmatpush1.bf16.msra.mxu1 %v17054_v55  ;;  %v17090_v55 = vld [vmem:[#allocation13 + $0x400] ss:$16 sps:$4 sm:$0xff]  }
 0xc49   :  { %11310 = vmatprep.subr.bf16.mxu1 %v17059_v22  ;;  %12500 = vmatpush1.bf16.msra.mxu0 %v17311_v63  ;;  %v17095_v22 = vld [vmem:[#allocation13 + $0x424] ss:$16 sps:$4 sm:$0xff]   ;;  %v17099_v63 = vld [vmem:[#allocation13 + $0x460] ss:$16 sps:$4 sm:$0xff]  }
 0xc4a   :  { %12501 = vmatprep.subr.bf16.mxu0 %v17312_v3  ;;  %v17104_v3 = vld [vmem:[#allocation13 + $0x484] ss:$16 sps:$4 sm:$0xff]  }
 0xc4c   :  { %11311 = vmatpush1.bf16.msra.mxu1 %v17057_v30  ;;  %v17096_v30 = vld [vmem:[#allocation13 + $0x440] ss:$16 sps:$4 sm:$0xff]  }
 0xc4d   :  { %11312 = vmatprep.subr.bf16.mxu1 %v17062_v39  ;;  %12502 = vmatpush1.bf16.msra.mxu0 %v17313_v44  ;;  %v17101_v39 = vld [vmem:[#allocation13 + $0x464] ss:$16 sps:$4 sm:$0xff]   ;;  %v17105_v44 = vld [vmem:[#allocation13 + $0x4a0] ss:$16 sps:$4 sm:$0xff]  }
 0xc4e   :  { %12503 = vmatprep.subr.bf16.mxu0 %v17314_v20  ;;  %v17110_v20 = vld [vmem:[#allocation13 + $0x4c4] ss:$16 sps:$4 sm:$0xff]  }
 0xc50   :  { %11313 = vmatpush1.bf16.msra.mxu1 %v17060_v42  ;;  %v17102_v42 = vld [vmem:[#allocation13 + $0x480] ss:$16 sps:$4 sm:$0xff]  }
 0xc51   :  { %11314 = vmatprep.subr.bf16.mxu1 %v17065_v58  ;;  %12504 = vmatpush1.bf16.msra.mxu0 %v17315_v6  ;;  %v17107_v58 = vld [vmem:[#allocation13 + $0x4a4] ss:$16 sps:$4 sm:$0xff]  }
 0xc52   :  { %12505 = vmatprep.subr.bf16.mxu0 %v17316_v4  ;;  %v17116_v6 = vld [vmem:[#allocation13 + $0x504] ss:$16 sps:$4 sm:$0xff]   ;;  %v17114_v4 = vld [vmem:[#allocation13 + $0x500] ss:$16 sps:$4 sm:$0xff]  }
 0xc54   :  { %11315 = vmatpush1.bf16.msra.mxu1 %v17063_v29  ;;  %v17113_v29 = vld [vmem:[#allocation13 + $0x4e4] ss:$16 sps:$4 sm:$0xff]  }
 0xc55   :  { %11316 = vmatprep.subr.bf16.mxu1 %v17068_v31  ;;  %12506 = vmatpush1.bf16.msra.mxu0 %v17317_v43  ;;  %v17111_v31 = vld [vmem:[#allocation13 + $0x4e0] ss:$16 sps:$4 sm:$0xff]   ;;  %v17122_v43 = vld [vmem:[#allocation13 + $0x544] ss:$16 sps:$4 sm:$0xff]  }
 0xc56   :  { %12518 = vmatprep.subr.bf16.mxu0 %v17318_v19  ;;  %v17120_v19 = vld [vmem:[#allocation13 + $0x540] ss:$16 sps:$4 sm:$0xff]  }
 0xc58   :  { %11317 = vmatpush1.bf16.msra.mxu1 %v17066_v27  ;;  %v17119_v27 = vld [vmem:[#allocation13 + $0x524] ss:$16 sps:$4 sm:$0xff]  }
 0xc59   :  { %11318 = vmatprep.subr.bf16.mxu1 %v17071_v51  ;;  %v17117_v51 = vld [vmem:[#allocation13 + $0x520] ss:$16 sps:$4 sm:$0xff]  }
 0xc5c   :  { %11319 = vmatpush1.bf16.msra.mxu1 %v17069_v41  ;;  %v17125_v41 = vld [vmem:[#allocation13 + $0x564] ss:$16 sps:$4 sm:$0xff]  }
 0xc5d   :  { %11320 = vmatprep.subr.bf16.mxu1 %v17074_v33  ;;  %v17123_v33 = vld [vmem:[#allocation13 + $0x560] ss:$16 sps:$4 sm:$0xff]  }
 0xc60   :  { %11321 = vmatpush1.bf16.msra.mxu1 %v17072_v9  ;;  %v17128_v9 = vld [vmem:[#allocation13 + $0x584] ss:$16 sps:$4 sm:$0xff]  }
 0xc61   :  { %11322 = vmatprep.subr.bf16.mxu1 %v17077_v35  ;;  %v17126_v35 = vld [vmem:[#allocation13 + $0x580] ss:$16 sps:$4 sm:$0xff]  }
 0xc62   :  { %v18603_v18 = vpop.f32.mrb[56].mxu1 }
 0xc63   :  { %v18605_v16 = vpop.f32.mrb[57].mxu1 }
 0xc64   :  { %11323 = vmatpush1.bf16.msra.mxu1 %v17075_v17  ;;  %v17131_v17 = vld [vmem:[#allocation13 + $0x5a4] ss:$16 sps:$4 sm:$0xff]  }
 0xc65   :  { %11324 = vmatprep.subr.bf16.mxu1 %v17080_v60  ;;  %v17129_v60 = vld [vmem:[#allocation13 + $0x5a0] ss:$16 sps:$4 sm:$0xff]  }
 0xc66   :  { %v18607_v32 = vpop.f32.mrb[58].mxu1 }
 0xc67   :  { %v18609_v34 = vpop.f32.mrb[59].mxu1 }
 0xc68   :  { %11325 = vmatpush1.bf16.msra.mxu1 %v17078_v53  ;;  %v17134_v53 = vld [vmem:[#allocation13 + $0x5c4] ss:$16 sps:$4 sm:$0xff]  }
 0xc69   :  { %11326 = vmatprep.subr.bf16.mxu1 %v17083_v38  ;;  %v17132_v38 = vld [vmem:[#allocation13 + $0x5c0] ss:$16 sps:$4 sm:$0xff]  }
 0xc6b   :  { %v18611_v50 = vpop.f32.mrb[20].mxu0 }
 0xc6c   :  { %11327 = vmatpush1.bf16.msra.mxu1 %v17081_v61  ;;  %v18613_v12 = vpop.f32.mrb[21].mxu0  ;;  %v17137_v61 = vld [vmem:[#allocation13 + $0x5e4] ss:$16 sps:$4 sm:$0xff]  }
 0xc6d   :  { %v18615_v2 = vpop.f32.mrb[22].mxu0  ;;  %11328 = vmatprep.subr.bf16.mxu1 %v17086_v8  ;;  %v17135_v8 = vld [vmem:[#allocation13 + $0x5e0] ss:$16 sps:$4 sm:$0xff]  }
 0xc6e   :  { %v18617_v45 = vpop.f32.mrb[23].mxu0 }
 0xc70   :  { %11329 = vmatpush1.bf16.msra.mxu1 %v17084_v56  ;;  %v17140_v56 = vld [vmem:[#allocation13 + $0x604] ss:$16 sps:$4 sm:$0xff]  }
 0xc71   :  { %11330 = vmatprep.subr.bf16.mxu1 %v17089_v46  ;;  %v17138_v46 = vld [vmem:[#allocation13 + $0x600] ss:$16 sps:$4 sm:$0xff]  }
 0xc74   :  { %11331 = vmatpush1.bf16.msra.mxu1 %v17087_v36  ;;  %v17143_v36 = vld [vmem:[#allocation13 + $0x624] ss:$16 sps:$4 sm:$0xff]  }
 0xc75   :  { %12217 = vmatprep.subr.bf16.mxu1 %v17092_v57  ;;  %v17141_v57 = vld [vmem:[#allocation13 + $0x620] ss:$16 sps:$4 sm:$0xff]  }
 0xc77   :  { %11333 = vmatmul.mubr.bf16.vlgmr.msra.gmra.mrb[64].mxu1 %v18456_v54 }
 0xc78   :  { %12218 = vmatpush1.bf16.msra.mxu1 %v17090_v55  ;;  %12249 = vmatprep.mubr.bf16.mxu1 %v18416_v26  ;;  %v17108_v26 = vld [vmem:[#allocation13 + $0x4c0] ss:$16 sps:$4 sm:$0xff]   ;;  %v17146_v55 = vld [vmem:[#allocation13 + $0x644] ss:$16 sps:$4 sm:$0xff]  }
 0xc79   :  { %12219 = vmatprep.subr.bf16.mxu1 %v17095_v22  ;;  %v17144_v22 = vld [vmem:[#allocation13 + $0x640] ss:$16 sps:$4 sm:$0xff]  }
 0xc7c   :  { %12220 = vmatpush1.bf16.msra.mxu1 %v17093_v62  ;;  %v17149_v62 = vld [vmem:[#allocation13 + $0x664] ss:$16 sps:$4 sm:$0xff]  }
 0xc7d   :  { %12221 = vmatprep.subr.bf16.mxu1 %v17098_v25  ;;  %v17147_v25 = vld [vmem:[#allocation13 + $0x660] ss:$16 sps:$4 sm:$0xff]  }
 0xc80   :  { %12222 = vmatpush1.bf16.msra.mxu1 %v17096_v30  ;;  %v17152_v30 = vld [vmem:[#allocation13 + $0x684] ss:$16 sps:$4 sm:$0xff]  }
 0xc81   :  { %12223 = vmatprep.subr.bf16.mxu1 %v17101_v39  ;;  %v17150_v39 = vld [vmem:[#allocation13 + $0x680] ss:$16 sps:$4 sm:$0xff]  }
 0xc84   :  { %12224 = vmatpush1.bf16.msra.mxu1 %v17099_v63  ;;  %v17155_v63 = vld [vmem:[#allocation13 + $0x6a4] ss:$16 sps:$4 sm:$0xff]  }
 0xc85   :  { %12225 = vmatprep.subr.bf16.mxu1 %v17104_v3  ;;  %v17158_v3 = vld [vmem:[#allocation13 + $0x6c4] ss:$16 sps:$4 sm:$0xff]  }
 0xc88   :  { %12226 = vmatpush1.bf16.msra.mxu1 %v17102_v42 }
 0xc89   :  { %12227 = vmatprep.subr.bf16.mxu1 %v17107_v58 }
 0xc8c   :  { %12228 = vmatpush1.bf16.msra.mxu1 %v17105_v44 }
 0xc8d   :  { %12229 = vmatprep.subr.bf16.mxu1 %v17110_v20  ;;  %v17156_v20 = vld [vmem:[#allocation13 + $0x6c0] ss:$16 sps:$4 sm:$0xff]  }
 0xc90   :  { %12230 = vmatpush1.bf16.msra.mxu1 %v17108_v26  ;;  %v17161_v26 = vld [vmem:[#allocation13 + $0x6e4] ss:$16 sps:$4 sm:$0xff]  }
 0xc91   :  { %12231 = vmatprep.subr.bf16.mxu1 %v17113_v29 }
 0xc94   :  { %12232 = vmatpush1.bf16.msra.mxu1 %v17111_v31 }
 0xc95   :  { %12233 = vmatprep.subr.bf16.mxu1 %v17116_v6 }
 0xc98   :  { %12234 = vmatpush1.bf16.msra.mxu1 %v17114_v4 }
 0xc99   :  { %12235 = vmatprep.subr.bf16.mxu1 %v17119_v27  ;;  %v17159_v27 = vld [vmem:[#allocation13 + $0x6e0] ss:$16 sps:$4 sm:$0xff]  }
 0xc9c   :  { %12236 = vmatpush1.bf16.msra.mxu1 %v17117_v51 }
 0xc9d   :  { %12237 = vmatprep.subr.bf16.mxu1 %v17122_v43 }
 0xca0   :  { %12238 = vmatpush1.bf16.msra.mxu1 %v17120_v19 }
 0xca1   :  { %12239 = vmatprep.subr.bf16.mxu1 %v17125_v41 }
 0xca4   :  { %12240 = vmatpush1.bf16.msra.mxu1 %v17123_v33  ;;  %v17165_v33 = vld [vmem:[#allocation13 + $0x720] ss:$16 sps:$4 sm:$0xff]  }
 0xca5   :  { %12241 = vmatprep.subr.bf16.mxu1 %v17128_v9  ;;  %v17170_v9 = vld [vmem:[#allocation13 + $0x744] ss:$16 sps:$4 sm:$0xff]  }
 0xca8   :  { %12242 = vmatpush1.bf16.msra.mxu1 %v17126_v35  ;;  %v17168_v35 = vld [vmem:[#allocation13 + $0x740] ss:$16 sps:$4 sm:$0xff]  }
 0xca9   :  { %12243 = vmatprep.subr.bf16.mxu1 %v17131_v17  ;;  %v17171_v17 = vld [vmem:[#allocation13 + $0x760] ss:$16 sps:$4 sm:$0xff]  }
 0xcac   :  { %12244 = vmatpush1.bf16.msra.mxu1 %v17129_v60  ;;  %v17176_v60 = vld [vmem:[#allocation13 + $0x784] ss:$16 sps:$4 sm:$0xff]  }
 0xcad   :  { %12245 = vmatprep.subr.bf16.mxu1 %v17134_v53  ;;  %v17174_v53 = vld [vmem:[#allocation13 + $0x780] ss:$16 sps:$4 sm:$0xff]  }
 0xcb0   :  { %12246 = vmatpush1.bf16.msra.mxu1 %v17132_v38  ;;  %v17179_v38 = vld [vmem:[#allocation13 + $0x7a4] ss:$16 sps:$4 sm:$0xff]  }
 0xcb1   :  { %12247 = vmatprep.subr.bf16.mxu1 %v17137_v61  ;;  %v17177_v61 = vld [vmem:[#allocation13 + $0x7a0] ss:$16 sps:$4 sm:$0xff]  }
 0xcb4   :  { %12248 = vmatpush1.bf16.msra.mxu1 %v17135_v8  ;;  %v17182_v8 = vld [vmem:[#allocation13 + $0x7c4] ss:$16 sps:$4 sm:$0xff]  }
 0xcb5   :  { %12260 = vmatprep.subr.bf16.mxu1 %v17140_v56  ;;  %v17180_v56 = vld [vmem:[#allocation13 + $0x7c0] ss:$16 sps:$4 sm:$0xff]  }
 0xcb7   :  { %12250 = vmatmul.mubr.bf16.vlgmr.msra.gmra.mrb[68].mxu1 %v18420_v23  ;;  %v17153_v23 = vld [vmem:[#allocation13 + $0x6a0] ss:$16 sps:$4 sm:$0xff]  }
 0xcb8   :  { %12261 = vmatpush1.bf16.msra.mxu1 %v17138_v46  ;;  %12292 = vmatprep.mubr.bf16.mxu1 %v18452_v21  ;;  %v17185_v46 = vld [vmem:[#allocation13 + $0x7e4] ss:$16 sps:$4 sm:$0xff]  }
 0xcb9   :  { %12262 = vmatprep.subr.bf16.mxu1 %v17143_v36  ;;  %v17183_v36 = vld [vmem:[#allocation13 + $0x7e0] ss:$16 sps:$4 sm:$0xff]  }
 0xcbc   :  { %12263 = vmatpush1.bf16.msra.mxu1 %v17141_v57  ;;  %v17319_v57 = vld [vmem:[#allocation13 + $0x4] ss:$16 sps:$4 sm:$0xff]  }
 0xcbd   :  { %12264 = vmatprep.subr.bf16.mxu1 %v17146_v55  ;;  %v17320_v55 = vld [vmem:[#allocation13] ss:$16 sps:$4 sm:$0xff]  }
 0xcc0   :  { %12265 = vmatpush1.bf16.msra.mxu1 %v17144_v22  ;;  %v17321_v22 = vld [vmem:[#allocation13 + $0x24] ss:$16 sps:$4 sm:$0xff]  }
 0xcc1   :  { %12266 = vmatprep.subr.bf16.mxu1 %v17149_v62  ;;  %v17322_v62 = vld [vmem:[#allocation13 + $0x20] ss:$16 sps:$4 sm:$0xff]  }
 0xcc4   :  { %12267 = vmatpush1.bf16.msra.mxu1 %v17147_v25  ;;  %v17323_v25 = vld [vmem:[#allocation13 + $0x44] ss:$16 sps:$4 sm:$0xff]  }
 0xcc5   :  { %12268 = vmatprep.subr.bf16.mxu1 %v17152_v30  ;;  %v17324_v30 = vld [vmem:[#allocation13 + $0x40] ss:$16 sps:$4 sm:$0xff]  }
 0xcc8   :  { %12269 = vmatpush1.bf16.msra.mxu1 %v17150_v39  ;;  %v17325_v39 = vld [vmem:[#allocation13 + $0x64] ss:$16 sps:$4 sm:$0xff]  }
 0xcc9   :  { %12270 = vmatprep.subr.bf16.mxu1 %v17155_v63  ;;  %v17326_v63 = vld [vmem:[#allocation13 + $0x60] ss:$16 sps:$4 sm:$0xff]  }
 0xcca   :  { %v10470_v21 = vpop.f32.mrb[60].mxu1 }
 0xccb   :  { %v11431_v42 = vadd.f32 %v18611_v50, %v10470_v21  ;;  %v10472_v58 = vpop.f32.mrb[61].mxu1  ;;  %v17329_v21 = vld [vmem:[#allocation13 + $0xa4] ss:$16 sps:$4 sm:$0xff]  }
 0xccc   :  { %v11432_v44 = vadd.f32 %v18613_v12, %v10472_v58  ;;  %12271 = vmatpush1.bf16.msra.mxu1 %v17153_v23  ;;  %v17164_v12 = vld [vmem:[#allocation13 + $0x704] ss:$16 sps:$4 sm:$0xff]   ;;  %v17332_v58 = vld [vmem:[#allocation13 + $0xc0] ss:$16 sps:$4 sm:$0xff]  }
 0xccd   :  { %12272 = vmatprep.subr.bf16.mxu1 %v17158_v3  ;;  %v18628_v51 = vadd.f32 %v11431_v42, %v18345_v10  ;;  %v17327_v23 = vld [vmem:[#allocation13 + $0x84] ss:$16 sps:$4 sm:$0xff]   ;;  %v17328_v3 = vld [vmem:[#allocation13 + $0x80] ss:$16 sps:$4 sm:$0xff]  }
 0xcce   :  { %v10476_v29 = vpop.f32.mrb[62].mxu1  ;;  %v18634_v43 = vadd.f32 %v11432_v44, %v18350_v0  ;;  %v17331_v42 = vld [vmem:[#allocation13 + $0xc4] ss:$16 sps:$4 sm:$0xff]  }
 0xccf   :  { %v11435_v31 = vadd.f32 %v18615_v2, %v10476_v29  ;;  %v10478_v6 = vpop.f32.mrb[63].mxu1  ;;  %v17333_v44 = vld [vmem:[#allocation13 + $0xe4] ss:$16 sps:$4 sm:$0xff]   ;;  %v17336_v29 = vld [vmem:[#allocation13 + $0x100] ss:$16 sps:$4 sm:$0xff]   ;;  %17234 = vtanh.f32 %v18628_v51 }
 0xcd0   :  { %v11436_v4 = vadd.f32 %v18617_v45, %v10478_v6  ;;  %12273 = vmatpush1.bf16.msra.mxu1 %v17156_v20  ;;  %v17162_v45 = vld [vmem:[#allocation13 + $0x700] ss:$16 sps:$4 sm:$0xff]   ;;  %17236 = vtanh.f32 %v18634_v43 }
 0xcd1   :  { %v18631_v50 = vadd.f32 %v11435_v31, %v18345_v10  ;;  %12274 = vmatprep.subr.bf16.mxu1 %v17161_v26  ;;  %v17167_v10 = vld [vmem:[#allocation13 + $0x724] ss:$16 sps:$4 sm:$0xff]   ;;  %v17334_v20 = vld [vmem:[#allocation13 + $0xe0] ss:$16 sps:$4 sm:$0xff]  }
 0xcd2   :  { %v18637_v19 = vadd.f32 %v11436_v4, %v18350_v0  ;;  %v17173_v0 = vld [vmem:[#allocation13 + $0x764] ss:$16 sps:$4 sm:$0xff]   ;;  %v17338_v6 = vld [vmem:[#allocation13 + $0x120] ss:$16 sps:$4 sm:$0xff]  }
 0xcd3   :  { %v18641_v2 = vpack.c.bf16 %v18631_v50, %v18628_v51  ;;  %v17335_v26 = vld [vmem:[#allocation13 + $0x104] ss:$16 sps:$4 sm:$0xff]   ;;  %17238 = vtanh.f32 %v18631_v50 }
 0xcd4   :  { %12275 = vmatpush1.bf16.msra.mxu1 %v17159_v27  ;;  %v18645_v41 = vpack.c.bf16 %v18637_v19, %v18634_v43  ;;  %v17337_v31 = vld [vmem:[#allocation13 + $0x124] ss:$16 sps:$4 sm:$0xff]   ;;  %v17340_v27 = vld [vmem:[#allocation13 + $0x140] ss:$16 sps:$4 sm:$0xff]  }
 0xcd5   :  { %12276 = vmatprep.subr.bf16.mxu1 %v17164_v12  ;;  %v17339_v4 = vld [vmem:[#allocation13 + $0x144] ss:$16 sps:$4 sm:$0xff]  }
 0xcd6   :  { %v17341_v12 = vld [vmem:[#allocation13 + $0x164] ss:$16 sps:$4 sm:$0xff]  }
 0xcd8   :  { %12277 = vmatpush1.bf16.msra.mxu1 %v17162_v45  ;;  %v17342_v45 = vld [vmem:[#allocation13 + $0x160] ss:$16 sps:$4 sm:$0xff]  }
 0xcd9   :  { %12278 = vmatprep.subr.bf16.mxu1 %v17167_v10  ;;  %v17343_v10 = vld [vmem:[#allocation13 + $0x184] ss:$16 sps:$4 sm:$0xff]  }
 0xcdc   :  { %12279 = vmatpush1.bf16.msra.mxu1 %v17165_v33  ;;  %v17344_v33 = vld [vmem:[#allocation13 + $0x180] ss:$16 sps:$4 sm:$0xff]  }
 0xcdd   :  { %12280 = vmatprep.subr.bf16.mxu1 %v17170_v9  ;;  %v17345_v9 = vld [vmem:[#allocation13 + $0x1a4] ss:$16 sps:$4 sm:$0xff]  }
 0xce0   :  { %12281 = vmatpush1.bf16.msra.mxu1 %v17168_v35  ;;  %v17346_v35 = vld [vmem:[#allocation13 + $0x1a0] ss:$16 sps:$4 sm:$0xff]  }
 0xce1   :  { %12282 = vmatprep.subr.bf16.mxu1 %v17173_v0  ;;  %v17347_v0 = vld [vmem:[#allocation13 + $0x1c4] ss:$16 sps:$4 sm:$0xff]  }
 0xce4   :  { %12283 = vmatpush1.bf16.msra.mxu1 %v17171_v17  ;;  %v17348_v17 = vld [vmem:[#allocation13 + $0x1c0] ss:$16 sps:$4 sm:$0xff]  }
 0xce5   :  { %12284 = vmatprep.subr.bf16.mxu1 %v17176_v60  ;;  %v17349_v60 = vld [vmem:[#allocation13 + $0x1e4] ss:$16 sps:$4 sm:$0xff]  }
 0xce8   :  { %12285 = vmatpush1.bf16.msra.mxu1 %v17174_v53  ;;  %v17350_v53 = vld [vmem:[#allocation13 + $0x1e0] ss:$16 sps:$4 sm:$0xff]  }
 0xce9   :  { %12286 = vmatprep.subr.bf16.mxu1 %v17179_v38  ;;  %v17351_v38 = vld [vmem:[#allocation13 + $0x204] ss:$16 sps:$4 sm:$0xff]  }
 0xcec   :  { %12287 = vmatpush1.bf16.msra.mxu1 %v17177_v61 }
 0xced   :  { %12288 = vmatprep.subr.bf16.mxu1 %v17182_v8 }
 0xcf0   :  { %12289 = vmatpush1.bf16.msra.mxu1 %v17180_v56 }
 0xcf1   :  { %12290 = vmatprep.subr.bf16.mxu1 %v17185_v46 }
 0xcf4   :  { %12291 = vmatpush1.bf16.msra.mxu1 %v17183_v36 }
 0xcf5   :  { %12389 = vmatprep.subr.bf16.mxu1 %v17319_v57 }
 0xcf7   :  { %12293 = vmatmul.mubr.bf16.vlgmr.msra.gmra.mrb[68].mxu1 %v18456_v54  ;;  %v17330_v54 = vld [vmem:[#allocation13 + $0xa0] ss:$16 sps:$4 sm:$0xff]  }
 0xcf8   :  { %12390 = vmatpush1.bf16.msra.mxu1 %v17320_v55 }
 0xcf9   :  { %12391 = vmatprep.subr.bf16.mxu1 %v17321_v22 }
 0xcfc   :  { %12392 = vmatpush1.bf16.msra.mxu1 %v17322_v62 }
 0xcfd   :  { %12393 = vmatprep.subr.bf16.mxu1 %v17323_v25 }
 0xd00   :  { %12394 = vmatpush1.bf16.msra.mxu1 %v17324_v30 }
 0xd01   :  { %12395 = vmatprep.subr.bf16.mxu1 %v17325_v39  ;;  %v17355_v39 = vld [vmem:[#allocation13 + $0x22c] ss:$16 sps:$4 sm:$0xff]  }
 0xd04   :  { %12396 = vmatpush1.bf16.msra.mxu1 %v17326_v63  ;;  %v17356_v63 = vld [vmem:[#allocation13 + $0x220] ss:$16 sps:$4 sm:$0xff]  }
 0xd05   :  { %12397 = vmatprep.subr.bf16.mxu1 %v17327_v23  ;;  %v17357_v23 = vld [vmem:[#allocation13 + $0x228] ss:$16 sps:$4 sm:$0xff]  }
 0xd08   :  { %12398 = vmatpush1.bf16.msra.mxu1 %v17328_v3  ;;  %v17358_v3 = vld [vmem:[#allocation13 + $0x244] ss:$16 sps:$4 sm:$0xff]  }
 0xd09   :  { %12399 = vmatprep.subr.bf16.mxu1 %v17329_v21  ;;  %v17359_v21 = vld [vmem:[#allocation13 + $0x24c] ss:$16 sps:$4 sm:$0xff]  }
 0xd0c   :  { %12400 = vmatpush1.bf16.msra.mxu1 %v17330_v54  ;;  %v17360_v54 = vld [vmem:[#allocation13 + $0x240] ss:$16 sps:$4 sm:$0xff]  }
 0xd0d   :  { %12401 = vmatprep.subr.bf16.mxu1 %v17331_v42  ;;  %v17361_v42 = vld [vmem:[#allocation13 + $0x248] ss:$16 sps:$4 sm:$0xff]  }
 0xd10   :  { %12402 = vmatpush1.bf16.msra.mxu1 %v17332_v58  ;;  %v17362_v58 = vld [vmem:[#allocation13 + $0x264] ss:$16 sps:$4 sm:$0xff]  }
 0xd11   :  { %12403 = vmatprep.subr.bf16.mxu1 %v17333_v44  ;;  %v17363_v44 = vld [vmem:[#allocation13 + $0x26c] ss:$16 sps:$4 sm:$0xff]  }
 0xd14   :  { %12404 = vmatpush1.bf16.msra.mxu1 %v17334_v20  ;;  %v17365_v20 = vld [vmem:[#allocation13 + $0x268] ss:$16 sps:$4 sm:$0xff]  }
 0xd15   :  { %12405 = vmatprep.subr.bf16.mxu1 %v17335_v26  ;;  %v17366_v26 = vld [vmem:[#allocation13 + $0x284] ss:$16 sps:$4 sm:$0xff]  }
 0xd18   :  { %12406 = vmatpush1.bf16.msra.mxu1 %v17336_v29  ;;  %v17367_v29 = vld [vmem:[#allocation13 + $0x28c] ss:$16 sps:$4 sm:$0xff]  }
 0xd19   :  { %12407 = vmatprep.subr.bf16.mxu1 %v17337_v31  ;;  %v17368_v31 = vld [vmem:[#allocation13 + $0x280] ss:$16 sps:$4 sm:$0xff]  }
 0xd1c   :  { %12408 = vmatpush1.bf16.msra.mxu1 %v17338_v6  ;;  %v17369_v6 = vld [vmem:[#allocation13 + $0x288] ss:$16 sps:$4 sm:$0xff]  }
 0xd1d   :  { %12409 = vmatprep.subr.bf16.mxu1 %v17339_v4  ;;  %v17370_v4 = vld [vmem:[#allocation13 + $0x2a4] ss:$16 sps:$4 sm:$0xff]  }
 0xd20   :  { %12410 = vmatpush1.bf16.msra.mxu1 %v17340_v27  ;;  %v17371_v27 = vld [vmem:[#allocation13 + $0x2ac] ss:$16 sps:$4 sm:$0xff]  }
 0xd21   :  { %12411 = vmatprep.subr.bf16.mxu1 %v17341_v12  ;;  %v17372_v12 = vld [vmem:[#allocation13 + $0x2a0] ss:$16 sps:$4 sm:$0xff]  }
 0xd24   :  { %12412 = vmatpush1.bf16.msra.mxu1 %v17342_v45  ;;  %v17373_v45 = vld [vmem:[#allocation13 + $0x2a8] ss:$16 sps:$4 sm:$0xff]  }
 0xd25   :  { %12413 = vmatprep.subr.bf16.mxu1 %v17343_v10  ;;  %v17374_v10 = vld [vmem:[#allocation13 + $0x2c4] ss:$16 sps:$4 sm:$0xff]  }
 0xd28   :  { %12414 = vmatpush1.bf16.msra.mxu1 %v17344_v33  ;;  %v17375_v33 = vld [vmem:[#allocation13 + $0x2cc] ss:$16 sps:$4 sm:$0xff]  }
 0xd29   :  { %12415 = vmatprep.subr.bf16.mxu1 %v17345_v9  ;;  %v17376_v9 = vld [vmem:[#allocation13 + $0x2c0] ss:$16 sps:$4 sm:$0xff]  }
 0xd2c   :  { %12416 = vmatpush1.bf16.msra.mxu1 %v17346_v35  ;;  %v17377_v35 = vld [vmem:[#allocation13 + $0x2c8] ss:$16 sps:$4 sm:$0xff]  }
 0xd2d   :  { %12417 = vmatprep.subr.bf16.mxu1 %v17347_v0  ;;  %v17378_v0 = vld [vmem:[#allocation13 + $0x2e4] ss:$16 sps:$4 sm:$0xff]  }
 0xd30   :  { %12418 = vmatpush1.bf16.msra.mxu1 %v17348_v17  ;;  %v17379_v17 = vld [vmem:[#allocation13 + $0x2ec] ss:$16 sps:$4 sm:$0xff]  }
 0xd31   :  { %12419 = vmatprep.subr.bf16.mxu1 %v17349_v60  ;;  %v17380_v60 = vld [vmem:[#allocation13 + $0x2e0] ss:$16 sps:$4 sm:$0xff]  }
 0xd34   :  { %12420 = vmatpush1.bf16.msra.mxu1 %v17350_v53  ;;  %v17381_v53 = vld [vmem:[#allocation13 + $0x2e8] ss:$16 sps:$4 sm:$0xff]  }
 0xd35   :  { %12432 = vmatprep.subr.bf16.mxu1 %v17351_v38  ;;  %v17382_v38 = vld [vmem:[#allocation13 + $0x304] ss:$16 sps:$4 sm:$0xff]  }
 0xd4a   :  { %v11334_v61 = vpop.f32.mrb[64].mxu1 }
 0xd4b   :  { %v11429_v8 = vadd.f32 %v11334_v61, %v18603_v18  ;;  %v11336_v56 = vpop.f32.mrb[65].mxu1  ;;  %v17383_v61 = vld [vmem:[#allocation13 + $0x30c] ss:$16 sps:$4 sm:$0xff]  }
 0xd4c   :  { %v11430_v46 = vadd.f32 %v11336_v56, %v18605_v16  ;;  %v11338_v36 = vpop.f32.mrb[66].mxu1  ;;  %v17385_v56 = vld [vmem:[#allocation13 + $0x308] ss:$16 sps:$4 sm:$0xff]  }
 0xd4d   :  { %v11433_v57 = vadd.f32 %v11338_v36, %v18607_v32  ;;  %v11340_v55 = vpop.f32.mrb[67].mxu1  ;;  %v18653_v62 = vadd.f32 %v11429_v8, %v18311_v24  ;;  %v17384_v8 = vld [vmem:[#allocation13 + $0x300] ss:$16 sps:$4 sm:$0xff]   ;;  %v17387_v36 = vld [vmem:[#allocation13 + $0x32c] ss:$16 sps:$4 sm:$0xff]  }
 0xd4e   :  { %v11434_v22 = vadd.f32 %v11340_v55, %v18609_v34  ;;  %v18659_v30 = vadd.f32 %v11430_v46, %v18316_v59  ;;  %v17352_v34 = vld [vmem:[#allocation13 + $0x200] ss:$16 sps:$4 sm:$0xff]   ;;  %v17386_v46 = vld [vmem:[#allocation13 + $0x324] ss:$16 sps:$4 sm:$0xff]   ;;  %v17389_v55 = vld [vmem:[#allocation13 + $0x328] ss:$16 sps:$4 sm:$0xff]  }
 0xd4f   :  { %v18656_v25 = vadd.f32 %v11433_v57, %v18311_v24  ;;  %v17353_v24 = vld [vmem:[#allocation13 + $0x208] ss:$16 sps:$4 sm:$0xff]   ;;  %v17388_v57 = vld [vmem:[#allocation13 + $0x320] ss:$16 sps:$4 sm:$0xff]  }
 0xd50   :  { %v18662_v18 = vadd.f32 %v11434_v22, %v18316_v59  ;;  %v17354_v59 = vld [vmem:[#allocation13 + $0x224] ss:$16 sps:$4 sm:$0xff]  }
 0xd51   :  { %v11445_v16 = vpack.c.bf16 %v18656_v25, %v18653_v62  ;;  %v17390_v22 = vld [vmem:[#allocation13 + $0x344] ss:$16 sps:$4 sm:$0xff]  }
 0xd52   :  { %v11446_v32 = vpack.c.bf16 %v18662_v18, %v18659_v30 }
 0xd54   :  { %12421 = vmatprep.mubr.bf16.mxu1 %v11446_v32  ;;  %12507 = vmatprep.mubr.bf16.mxu0 %v11446_v32  ;;  %v17392_v32 = vld [vmem:[#allocation13 + $0x340] ss:$16 sps:$4 sm:$0xff]  }
 0xd55   :  { %12422 = vmatmul.mubr.bf16.vlgmr.msra.gmra.mrb[68].mxu1 %v11445_v16  ;;  %12508 = vmatmul.mubr.bf16.vlgmr.msra.gmra.mrb[24].mxu0 %v11445_v16  ;;  %v17391_v16 = vld [vmem:[#allocation13 + $0x34c] ss:$16 sps:$4 sm:$0xff]  }
 0xd56   :  { %12433 = vmatpush1.bf16.msra.mxu1 %v17352_v34  ;;  %12519 = vmatpush1.bf16.msra.mxu0 %v17353_v24  ;;  %v17393_v34 = vld [vmem:[#allocation13 + $0x348] ss:$16 sps:$4 sm:$0xff]   ;;  %v17394_v24 = vld [vmem:[#allocation13 + $0x364] ss:$16 sps:$4 sm:$0xff]  }
 0xd57   :  { %12464 = vmatprep.mubr.bf16.mxu1 %v18645_v41  ;;  %12550 = vmatprep.mubr.bf16.mxu0 %v18645_v41  ;;  %v17364_v41 = vld [vmem:[#allocation13 + $0x260] ss:$16 sps:$4 sm:$0xff]  }
 0xd58   :  { %12434 = vmatprep.subr.bf16.mxu1 %v17354_v59  ;;  %12520 = vmatprep.subr.bf16.mxu0 %v17355_v39  ;;  %v17395_v59 = vld [vmem:[#allocation13 + $0x36c] ss:$16 sps:$4 sm:$0xff]   ;;  %v17396_v39 = vld [vmem:[#allocation13 + $0x360] ss:$16 sps:$4 sm:$0xff]  }
 0xd5a   :  { %12435 = vmatpush1.bf16.msra.mxu1 %v17356_v63  ;;  %12521 = vmatpush1.bf16.msra.mxu0 %v17357_v23  ;;  %v17397_v63 = vld [vmem:[#allocation13 + $0x368] ss:$16 sps:$4 sm:$0xff]   ;;  %v17398_v23 = vld [vmem:[#allocation13 + $0x384] ss:$16 sps:$4 sm:$0xff]  }
 0xd5b   :  { %12436 = vmatprep.subr.bf16.mxu1 %v17358_v3  ;;  %12522 = vmatprep.subr.bf16.mxu0 %v17359_v21  ;;  %v17399_v3 = vld [vmem:[#allocation13 + $0x38c] ss:$16 sps:$4 sm:$0xff]   ;;  %v17400_v21 = vld [vmem:[#allocation13 + $0x380] ss:$16 sps:$4 sm:$0xff]  }
 0xd5e   :  { %12437 = vmatpush1.bf16.msra.mxu1 %v17360_v54  ;;  %12523 = vmatpush1.bf16.msra.mxu0 %v17361_v42  ;;  %v17401_v54 = vld [vmem:[#allocation13 + $0x388] ss:$16 sps:$4 sm:$0xff]   ;;  %v17402_v42 = vld [vmem:[#allocation13 + $0x3a4] ss:$16 sps:$4 sm:$0xff]  }
 0xd5f   :  { %12438 = vmatprep.subr.bf16.mxu1 %v17362_v58  ;;  %12524 = vmatprep.subr.bf16.mxu0 %v17363_v44  ;;  %v17403_v58 = vld [vmem:[#allocation13 + $0x3ac] ss:$16 sps:$4 sm:$0xff]   ;;  %v17404_v44 = vld [vmem:[#allocation13 + $0x3a0] ss:$16 sps:$4 sm:$0xff]  }
 0xd62   :  { %12439 = vmatpush1.bf16.msra.mxu1 %v17364_v41  ;;  %12525 = vmatpush1.bf16.msra.mxu0 %v17365_v20  ;;  %v17405_v41 = vld [vmem:[#allocation13 + $0x3a8] ss:$16 sps:$4 sm:$0xff]   ;;  %v17406_v20 = vld [vmem:[#allocation13 + $0x3c4] ss:$16 sps:$4 sm:$0xff]  }
 0xd63   :  { %12440 = vmatprep.subr.bf16.mxu1 %v17366_v26  ;;  %12526 = vmatprep.subr.bf16.mxu0 %v17367_v29  ;;  %v17407_v26 = vld [vmem:[#allocation13 + $0x3cc] ss:$16 sps:$4 sm:$0xff]   ;;  %v17408_v29 = vld [vmem:[#allocation13 + $0x3c0] ss:$16 sps:$4 sm:$0xff]  }
 0xd66   :  { %12441 = vmatpush1.bf16.msra.mxu1 %v17368_v31  ;;  %12527 = vmatpush1.bf16.msra.mxu0 %v17369_v6  ;;  %v17409_v31 = vld [vmem:[#allocation13 + $0x3c8] ss:$16 sps:$4 sm:$0xff]   ;;  %v17410_v6 = vld [vmem:[#allocation13 + $0x3e4] ss:$16 sps:$4 sm:$0xff]  }
 0xd67   :  { %12442 = vmatprep.subr.bf16.mxu1 %v17370_v4  ;;  %12528 = vmatprep.subr.bf16.mxu0 %v17371_v27  ;;  %v17411_v4 = vld [vmem:[#allocation13 + $0x3ec] ss:$16 sps:$4 sm:$0xff]   ;;  %v17412_v27 = vld [vmem:[#allocation13 + $0x3e0] ss:$16 sps:$4 sm:$0xff]  }
 0xd6a   :  { %12443 = vmatpush1.bf16.msra.mxu1 %v17372_v12  ;;  %12529 = vmatpush1.bf16.msra.mxu0 %v17373_v45  ;;  %v17413_v12 = vld [vmem:[#allocation13 + $0x3e8] ss:$16 sps:$4 sm:$0xff]   ;;  %v12854_v45 = vld [vmem:[%s18920_s10 + $0x180] sm:$0xff] }
 0xd6b   :  { %12444 = vmatprep.subr.bf16.mxu1 %v17374_v10  ;;  %12530 = vmatprep.subr.bf16.mxu0 %v17375_v33  ;;  %v12855_v10 = vld [vmem:[%s18920_s10 + $0x188] sm:$0xff] }
 0xd6c   :  { %v14753_v33 = vpack.c.bf16 %v12855_v10, %v12854_v45 }
 0xd6e   :  { %12445 = vmatpush1.bf16.msra.mxu1 %v17376_v9  ;;  %12531 = vmatpush1.bf16.msra.mxu0 %v17377_v35  ;;  %v12838_v9 = vld [vmem:[%s18920_s10 + $0x100] sm:$0xff]  ;;  %v12839_v35 = vld [vmem:[%s18920_s10 + $0x108] sm:$0xff] }
 0xd6f   :  { %12446 = vmatprep.subr.bf16.mxu1 %v17378_v0  ;;  %12532 = vmatprep.subr.bf16.mxu0 %v17379_v17  ;;  %v12856_v0 = vld [vmem:[%s18920_s10 + $0x190] sm:$0xff]  ;;  %v12857_v17 = vld [vmem:[%s18920_s10 + $0x198] sm:$0xff] }
 0xd72   :  { %12447 = vmatpush1.bf16.msra.mxu1 %v17380_v60  ;;  %12533 = vmatpush1.bf16.msra.mxu0 %v17381_v53  ;;  %v12840_v60 = vld [vmem:[%s18920_s10 + $0x110] sm:$0xff]  ;;  %v14757_v53 = vpack.c.bf16 %v12857_v17, %v12856_v0 }
 0xd73   :  { %12448 = vmatprep.subr.bf16.mxu1 %v17382_v38  ;;  %12534 = vmatprep.subr.bf16.mxu0 %v17383_v61  ;;  %v12841_v38 = vld [vmem:[%s18920_s10 + $0x118] sm:$0xff] }
 0xd74   :  { %v14759_v61 = vpack.c.bf16 %v12841_v38, %v12840_v60 }
 0xd76   :  { %12449 = vmatpush1.bf16.msra.mxu1 %v17384_v8  ;;  %12535 = vmatpush1.bf16.msra.mxu0 %v17385_v56  ;;  %v12858_v8 = vld [vmem:[%s18920_s10 + $0x1a0] sm:$0xff]  ;;  %v12859_v56 = vld [vmem:[%s18920_s10 + $0x1a8] sm:$0xff] }
 0xd77   :  { %12450 = vmatprep.subr.bf16.mxu1 %v17386_v46  ;;  %12536 = vmatprep.subr.bf16.mxu0 %v17387_v36  ;;  %v12842_v46 = vld [vmem:[%s18920_s10 + $0x120] sm:$0xff]  ;;  %v14761_v36 = vpack.c.bf16 %v12859_v56, %v12858_v8 }
 0xd7a   :  { %12451 = vmatpush1.bf16.msra.mxu1 %v17388_v57  ;;  %12537 = vmatpush1.bf16.msra.mxu0 %v17389_v55  ;;  %v12843_v57 = vld [vmem:[%s18920_s10 + $0x128] sm:$0xff] }
 0xd7b   :  { %12452 = vmatprep.subr.bf16.mxu1 %v17390_v22  ;;  %12538 = vmatprep.subr.bf16.mxu0 %v17391_v16  ;;  %v14763_v55 = vpack.c.bf16 %v12843_v57, %v12842_v46  ;;  %v12860_v22 = vld [vmem:[%s18920_s10 + $0x1b0] sm:$0xff]  ;;  %v12861_v16 = vld [vmem:[%s18920_s10 + $0x1b8] sm:$0xff] }
 0xd7e   :  { %12453 = vmatpush1.bf16.msra.mxu1 %v17392_v32  ;;  %12539 = vmatpush1.bf16.msra.mxu0 %v17393_v34  ;;  %v12844_v32 = vld [vmem:[%s18920_s10 + $0x130] sm:$0xff]  ;;  %v14765_v34 = vpack.c.bf16 %v12861_v16, %v12860_v22 }
 0xd7f   :  { %12454 = vmatprep.subr.bf16.mxu1 %v17394_v24  ;;  %12540 = vmatprep.subr.bf16.mxu0 %v17395_v59  ;;  %v12845_v24 = vld [vmem:[%s18920_s10 + $0x138] sm:$0xff] }
 0xd80   :  { %v14767_v59 = vpack.c.bf16 %v12845_v24, %v12844_v32 }
 0xd82   :  { %12455 = vmatpush1.bf16.msra.mxu1 %v17396_v39  ;;  %12541 = vmatpush1.bf16.msra.mxu0 %v17397_v63  ;;  %v12862_v39 = vld [vmem:[%s18920_s10 + $0x1c0] sm:$0xff]  ;;  %v12863_v63 = vld [vmem:[%s18920_s10 + $0x1c8] sm:$0xff] }
 0xd83   :  { %12456 = vmatprep.subr.bf16.mxu1 %v17398_v23  ;;  %12542 = vmatprep.subr.bf16.mxu0 %v17399_v3  ;;  %v12846_v23 = vld [vmem:[%s18920_s10 + $0x140] sm:$0xff]  ;;  %v14769_v3 = vpack.c.bf16 %v12863_v63, %v12862_v39 }
 0xd86   :  { %12457 = vmatpush1.bf16.msra.mxu1 %v17400_v21  ;;  %12543 = vmatpush1.bf16.msra.mxu0 %v17401_v54  ;;  %v12847_v21 = vld [vmem:[%s18920_s10 + $0x148] sm:$0xff] }
 0xd87   :  { %12458 = vmatprep.subr.bf16.mxu1 %v17402_v42  ;;  %12544 = vmatprep.subr.bf16.mxu0 %v17403_v58  ;;  %v14771_v54 = vpack.c.bf16 %v12847_v21, %v12846_v23  ;;  %v12864_v42 = vld [vmem:[%s18920_s10 + $0x1d0] sm:$0xff]  ;;  %v12865_v58 = vld [vmem:[%s18920_s10 + $0x1d8] sm:$0xff] }
 0xd8a   :  { %12459 = vmatpush1.bf16.msra.mxu1 %v17404_v44  ;;  %12545 = vmatpush1.bf16.msra.mxu0 %v17405_v41  ;;  %v12848_v44 = vld [vmem:[%s18920_s10 + $0x150] sm:$0xff]  ;;  %v14773_v41 = vpack.c.bf16 %v12865_v58, %v12864_v42 }
 0xd8b   :  { %12460 = vmatprep.subr.bf16.mxu1 %v17406_v20  ;;  %12546 = vmatprep.subr.bf16.mxu0 %v17407_v26  ;;  %v12849_v20 = vld [vmem:[%s18920_s10 + $0x158] sm:$0xff] }
 0xd8c   :  { %v14775_v26 = vpack.c.bf16 %v12849_v20, %v12848_v44 }
 0xd8e   :  { %12461 = vmatpush1.bf16.msra.mxu1 %v17408_v29  ;;  %12547 = vmatpush1.bf16.msra.mxu0 %v17409_v31  ;;  %v12866_v29 = vld [vmem:[%s18920_s10 + $0x1e0] sm:$0xff]  ;;  %v12867_v31 = vld [vmem:[%s18920_s10 + $0x1e8] sm:$0xff] }
 0xd8f   :  { %12462 = vmatprep.subr.bf16.mxu1 %v17410_v6  ;;  %12548 = vmatprep.subr.bf16.mxu0 %v17411_v4  ;;  %v12850_v6 = vld [vmem:[%s18920_s10 + $0x160] sm:$0xff]  ;;  %v14777_v4 = vpack.c.bf16 %v12867_v31, %v12866_v29 }
 0xd92   :  { %12463 = vmatpush1.bf16.msra.mxu1 %v17412_v27  ;;  %12549 = vmatpush1.bf16.msra.mxu0 %v17413_v12  ;;  %v12851_v27 = vld [vmem:[%s18920_s10 + $0x168] sm:$0xff] }
 0xd93   :  { %14754 = vmatprep.subr.bf16.mxu0 %v14753_v33  ;;  %v14779_v12 = vpack.c.bf16 %v12851_v27, %v12850_v6 }
 0xd95   :  { %12465 = vmatmul.mubr.bf16.vlgmr.msra.gmra.mrb[68].mxu1 %v18641_v2  ;;  %12551 = vmatmul.mubr.bf16.vlgmr.msra.gmra.mrb[24].mxu0 %v18641_v2  ;;  %v14755_v2 = vpack.c.bf16 %v12839_v35, %v12838_v9 }
 0xd96   :  { %12728 = vmatprep.mubr.f32.mxu1 %v17661_v5 }
 0xd97   :  { %14756 = vmatpush3.bf16.msra.mxu0 %v14755_v2 }
 0xd98   :  { %14758 = vmatprep.subr.bf16.mxu0 %v14757_v53 }
 0xd9b   :  { %14760 = vmatpush3.bf16.msra.mxu0 %v14759_v61 }
 0xd9c   :  { %14762 = vmatprep.subr.bf16.mxu0 %v14761_v36 }
 0xd9f   :  { %14764 = vmatpush3.bf16.msra.mxu0 %v14763_v55 }
 0xda0   :  { %14766 = vmatprep.subr.bf16.mxu0 %v14765_v34 }
 0xda3   :  { %14768 = vmatpush3.bf16.msra.mxu0 %v14767_v59 }
 0xda4   :  { %14770 = vmatprep.subr.bf16.mxu0 %v14769_v3 }
 0xda7   :  { %14772 = vmatpush3.bf16.msra.mxu0 %v14771_v54 }
 0xda8   :  { %14774 = vmatprep.subr.bf16.mxu0 %v14773_v41 }
 0xdab   :  { %14776 = vmatpush3.bf16.msra.mxu0 %v14775_v26 }
 0xdac   :  { %14778 = vmatprep.subr.bf16.mxu0 %v14777_v4 }
 0xdaf   :  { %14780 = vmatpush3.bf16.msra.mxu0 %v14779_v12 }
 0xe68   :  { %v12466_v45 = vpop.f32.mrb[68].mxu1  ;;  %v12552_v10 = vpop.f32.mrb[24].mxu0 }
 0xe69   :  { %v12561_v33 = vadd.f32 %v12466_v45, %v18384_v14  ;;  %v12563_v9 = vadd.f32 %v12552_v10, %v18428_v47  ;;  %v12468_v35 = vpop.f32.mrb[69].mxu1  ;;  %v12554_v2 = vpop.f32.mrb[25].mxu0 }
 0xe6a   :  { %v12562_v0 = vadd.f32 %v12468_v35, %v18388_v15  ;;  %v12564_v17 = vadd.f32 %v12554_v2, %v18432_v13  ;;  %v12470_v60 = vpop.f32.mrb[70].mxu1  ;;  %v12556_v53 = vpop.f32.mrb[26].mxu0 }
 0xe6b   :  { %v14583_v38 = vmul.f32 -1.442695, %v12561_v33  ;;  %v14585_v51 = vmul.f32 -1.442695, %v12563_v9  ;;  %v12565_v61 = vadd.f32 %v12470_v60, %v18384_v14  ;;  %v12567_v43 = vadd.f32 %v12556_v53, %v18428_v47  ;;  %v12472_v8 = vpop.f32.mrb[71].mxu1  ;;  %v12558_v56 = vpop.f32.mrb[27].mxu0 }
 0xe6c   :  { %v14584_v46 = vmul.f32 -1.442695, %v12562_v0  ;;  %v14586_v36 = vmul.f32 -1.442695, %v12564_v17  ;;  %v12566_v57 = vadd.f32 %v12472_v8, %v18388_v15  ;;  %v12568_v50 = vadd.f32 %v12558_v56, %v18432_v13  ;;  %v17235_v14 = vpop.eup %17234 }
 0xe6d   :  { %17240 = vpow2.f32 %v14583_v38  ;;  %v14587_v55 = vmul.f32 -1.442695, %v12565_v61  ;;  %v14589_v22 = vmul.f32 -1.442695, %v12567_v43  ;;  %v17237_v47 = vpop.eup %17236 }
 0xe6e   :  { %17242 = vpow2.f32 %v14585_v51  ;;  %v14588_v16 = vmul.f32 -1.442695, %v12566_v57  ;;  %v14590_v32 = vmul.f32 -1.442695, %v12568_v50  ;;  %v17239_v34 = vpop.eup %17238 }
 0xe6f   :  { %17244 = vpow2.f32 %v14584_v46 }
 0xe70   :  { %17246 = vpow2.f32 %v14586_v36 }
 0xe71   :  { %17248 = vpow2.f32 %v14587_v55 }
 0xe72   :  { %17250 = vpow2.f32 %v14589_v22 }
 0xe73   :  { %17252 = vpow2.f32 %v14588_v16 }
 0xe74   :  { %17254 = vpow2.f32 %v14590_v32 }
 0xe75   :  { %17256 = vtanh.f32 %v18637_v19 }
 0xe76   :  { %17258 = vtanh.f32 %v18653_v62 }
 0xe77   :  { %v17241_v15 = vpop.eup %17240  ;;  %17260 = vtanh.f32 %v18659_v30 }
 0xe78   :  { %v17243_v13 = vpop.eup %17242  ;;  %17262 = vtanh.f32 %v18656_v25  ;;  %v12593_v24 = vadd.f32 1.0, %v17241_v15 }
 0xe79   :  { %v17245_v59 = vpop.eup %17244  ;;  %17264 = vtanh.f32 %v18662_v18  ;;  %v12595_v39 = vadd.f32 1.0, %v17243_v13 }
 0xe7a   :  { %v17247_v63 = vpop.eup %17246  ;;  %17266 = vrcp.f32 %v12593_v24  ;;  %v12594_v23 = vadd.f32 1.0, %v17245_v59 }
 0xe7b   :  { %v17249_v3 = vpop.eup %17248  ;;  %17268 = vrcp.f32 %v12595_v39  ;;  %v12596_v21 = vadd.f32 1.0, %v17247_v63  ;;  %v14591_v39 = vsel %vm18130_vm0, 1.0, %v17661_v5 }
 0xe7c   :  { %v17251_v19 = vpop.eup %17250  ;;  %17270 = vrcp.f32 %v12594_v23  ;;  %v12597_v62 = vadd.f32 1.0, %v17249_v3 }
 0xe7d   :  { %v17253_v54 = vpop.eup %17252  ;;  %17272 = vrcp.f32 %v12596_v21  ;;  %v12599_v30 = vadd.f32 1.0, %v17251_v19  ;;  %v12807_v21 = vld [vmem:[%s18920_s10 + $0x8] sm:$0xff]  ;;  %v12824_v19 = vld [vmem:[%s18920_s10 + $0x90] sm:$0xff] }
 0xe7e   :  { %v17255_v42 = vpop.eup %17254  ;;  %17274 = vrcp.f32 %v12597_v62  ;;  %v12598_v25 = vadd.f32 1.0, %v17253_v54  ;;  %v12825_v62 = vld [vmem:[%s18920_s10 + $0x98] sm:$0xff]  ;;  %v14723_v54 = vpack.c.bf16 %v12807_v21, %v12806_v11 }
 0xe7f   :  { %v17257_v58 = vpop.eup %17256  ;;  %17276 = vrcp.f32 %v12599_v30  ;;  %v12600_v44 = vadd.f32 1.0, %v17255_v42  ;;  %v14725_v30 = vpack.c.bf16 %v12825_v62, %v12824_v19  ;;  %v12808_v42 = vld [vmem:[%s18920_s10 + $0x10] sm:$0xff] }
 0xe80   :  { %v17259_v18 = vpop.eup %17258  ;;  %17278 = vrcp.f32 %v12598_v25  ;;  %v12809_v25 = vld [vmem:[%s18920_s10 + $0x18] sm:$0xff] }
 0xe81   :  { %v17261_v41 = vpop.eup %17260  ;;  %17280 = vrcp.f32 %v12600_v44  ;;  %v12827_v44 = vld [vmem:[%s18920_s10 + $0xa8] sm:$0xff] }
 0xe82   :  { %v17263_v20 = vpop.eup %17262 }
 0xe83   :  { %v17265_v26 = vpop.eup %17264 }
 0xe84   :  { %v17267_v29 = vpop.eup %17266 }
 0xe85   :  { %v17269_v31 = vpop.eup %17268  ;;  %v12625_v6 = vmul.f32 %v17267_v29, %v17259_v18  ;;  %v12633_v4 = vsub.f32 1.0, %v17267_v29  ;;  %v12829_v29 = vld [vmem:[%s18920_s10 + $0xb8] sm:$0xff] }
 0xe86   :  { %v17271_v27 = vpop.eup %17270  ;;  %v12627_v12 = vmul.f32 %v17269_v31, %v17235_v14  ;;  %v12635_v45 = vsub.f32 1.0, %v17269_v31 }
 0xe87   :  { %v17273_v10 = vpop.eup %17272  ;;  %v12626_v33 = vmul.f32 %v17271_v27, %v17261_v41  ;;  %v12634_v9 = vsub.f32 1.0, %v17271_v27  ;;  %v12641_v35 = vmul.f32 %v12633_v4, %v18402_v40  ;;  %v12810_v41 = vld [vmem:[%s18920_s10 + $0x20] sm:$0xff]  ;;  %v12812_v4 = vld [vmem:[%s18920_s10 + $0x30] sm:$0xff]  ;;  %v12813_v27 = vld [vmem:[%s18920_s10 + $0x38] sm:$0xff] }
 0xe88   :  { %v17275_v2 = vpop.eup %17274  ;;  %v12628_v0 = vmul.f32 %v17273_v10, %v17237_v47  ;;  %v12636_v17 = vsub.f32 1.0, %v17273_v10  ;;  %v12643_v60 = vmul.f32 %v12635_v45, %v18442_v48  ;;  %v12831_v45 = vld [vmem:[%s18920_s10 + $0xc8] sm:$0xff]  ;;  %v14735_v10 = vpack.c.bf16 %v12813_v27, %v12812_v4 }
 0xe89   :  { %v17277_v53 = vpop.eup %17276  ;;  %v12642_v38 = vmul.f32 %v12634_v9, %v18406_v49  ;;  %v12629_v51 = vmul.f32 %v17275_v2, %v17263_v20  ;;  %v12637_v61 = vsub.f32 1.0, %v17275_v2  ;;  %v12649_v43 = vadd.f32 %v12641_v35, %v12625_v6  ;;  %v12811_v20 = vld [vmem:[%s18920_s10 + $0x28] sm:$0xff]  ;;  %v12814_v9 = vld [vmem:[%s18920_s10 + $0x40] sm:$0xff]  ;;  %v12832_v2 = vld [vmem:[%s18920_s10 + $0xd0] sm:$0xff] }
 0xe8a   :  { %v17279_v8 = vpop.eup %17278  ;;  %v12644_v56 = vmul.f32 %v12636_v17, %v18444_v37  ;;  %v12631_v46 = vmul.f32 %v17277_v53, %v17239_v34  ;;  %v12639_v36 = vsub.f32 1.0, %v17277_v53  ;;  %v12651_v57 = vadd.f32 %v12643_v60, %v12627_v12  ;;  %v12830_v12 = vld [vmem:[%s18920_s10 + $0xc0] sm:$0xff]  ;;  %v12815_v35 = vld [vmem:[%s18920_s10 + $0x48] sm:$0xff]  ;;  %v12816_v53 = vld [vmem:[%s18920_s10 + $0x50] sm:$0xff] }
 0xe8b   :  { %v17281_v50 = vpop.eup %17280  ;;  %v12630_v55 = vmul.f32 %v17279_v8, %v17265_v26  ;;  %v12638_v40 = vsub.f32 1.0, %v17279_v8  ;;  %v12650_v22 = vadd.f32 %v12642_v38, %v12626_v33  ;;  %v12645_v16 = vmul.f32 %v12637_v61, %v18410_v7  ;;  %v12828_v26 = vld [vmem:[%s18920_s10 + $0xb0] sm:$0xff]  ;;  %v12817_v38 = vld [vmem:[%s18920_s10 + $0x58] sm:$0xff]  ;;  %v12835_v61 = vld [vmem:[%s18920_s10 + $0xe8] sm:$0xff] }
 0xe8c   :  { %v12632_v32 = vmul.f32 %v17281_v50, %v17257_v58  ;;  %v12640_v48 = vsub.f32 1.0, %v17281_v50  ;;  %v12652_v14 = vadd.f32 %v12644_v56, %v12628_v0  ;;  %v12647_v49 = vmul.f32 %v12639_v36, %v18446_v1  ;;  %v12822_v1 = vld [vmem:[%s18920_s10 + $0x80] sm:$0xff]  ;;  %v12833_v0 = vld [vmem:[%s18920_s10 + $0xd8] sm:$0xff]  ;;  %v12836_v36 = vld [vmem:[%s18920_s10 + $0xf0] sm:$0xff] }
 0xe8d   :  { %v12646_v47 = vmul.f32 %v12638_v40, %v18412_v28  ;;  %v12653_v15 = vadd.f32 %v12645_v16, %v12629_v51  ;;  %v12823_v28 = vld [vmem:[%s18920_s10 + $0x88] sm:$0xff]  ;;  %v12826_v58 = vld [vmem:[%s18920_s10 + $0xa0] sm:$0xff]  ;;  %v14731_v31 = vpack.c.bf16 %v12811_v20, %v12810_v41  ;;  %v14733_v6 = vpack.c.bf16 %v12829_v29, %v12828_v26  ;;  %v12820_v40 = vld [vmem:[%s18920_s10 + $0x70] sm:$0xff] }
 0xe8e   :  { %v12648_v13 = vmul.f32 %v12640_v48, %v18448_v52  ;;  %v12655_v37 = vadd.f32 %v12647_v49, %v12631_v46  ;;  %v12660_v52 = vmul.f32 0.125, %v14591_v39  ;;  %v14721_v3 = vpack.c.bf16 %v12823_v28, %v12822_v1  ;;  %v12834_v51 = vld [vmem:[%s18920_s10 + $0xe0] sm:$0xff]  ;;  %v12819_v46 = vld [vmem:[%s18920_s10 + $0x68] sm:$0xff]  ;;  %v12869_v48 = vld [vmem:[%s18920_s10 + $0x1f8] sm:$0xff] }
 0xe8f   :  { %v12654_v34 = vadd.f32 %v12646_v47, %v12630_v55  ;;  %v14715_v24 = vpack.c.bf16 %v12653_v15, %v12649_v43  ;;  %v14729_v18 = vpack.c.bf16 %v12827_v44, %v12826_v58  ;;  %v14737_v33 = vpack.c.bf16 %v12831_v45, %v12830_v12  ;;  %v12818_v56 = vld [vmem:[%s18920_s10 + $0x60] sm:$0xff]  ;;  %v12852_v49 = vld [vmem:[%s18920_s10 + $0x170] sm:$0xff]  ;;  %v12853_v47 = vld [vmem:[%s18920_s10 + $0x178] sm:$0xff] }
 0xe90   :  { %v12656_v59 = vadd.f32 %v12648_v13, %v12632_v32  ;;  %v14719_v63 = vpack.c.bf16 %v12655_v37, %v12651_v57  ;;  %v14739_v17 = vpack.c.bf16 %v12815_v35, %v12814_v9  ;;  %v14741_v60 = vpack.c.bf16 %v12833_v0, %v12832_v2  ;;  %v12837_v57 = vld [vmem:[%s18920_s10 + $0xf8] sm:$0xff]  ;;  %v12868_v32 = vld [vmem:[%s18920_s10 + $0x1f0] sm:$0xff] }
 0xe91   :  { %v14713_v7 = vpack.c.bf16 %v12654_v34, %v12650_v22  ;;  %v14743_v43 = vpack.c.bf16 %v12817_v38, %v12816_v53  ;;  %v14745_v8 = vpack.c.bf16 %v12835_v61, %v12834_v51  ;;  %v14747_v50 = vpack.c.bf16 %v12819_v46, %v12818_v56  ;;  %v12821_v22 = vld [vmem:[%s18920_s10 + $0x78] sm:$0xff]  ;;  %s17662_s10 = smov [#allocation17]  }
 0xe92   :  { %v14717_v23 = vpack.c.bf16 %v12656_v59, %v12652_v14  ;;  %v14749_v55 = vpack.c.bf16 %v12837_v57, %v12836_v36  ;;  %v14751_v16 = vpack.c.bf16 %v12821_v22, %v12820_v40  ;;  %v14781_v14 = vpack.c.bf16 %v12869_v48, %v12868_v32  ;;  %s13036_s21 = sshll.u32 %s17662_s10, 4  ;;  %s13037_s21 = int_to_ptr.vmem [resolvable:$true] %s13036_s21 }
 0xe93   :  { %14714 = vmatprep.subr.bf16.mxu1 %v14713_v7  ;;  %v14783_v15 = vpack.c.bf16 %v12853_v47, %v12852_v49  ;;  %v14594_v7 = vld [vmem:[#allocation16] ss:$0 sm:$0xff]  ;;  %s17612_s23 = scalar_lea.vmem %s13037_s21, 32  ;;  %p17617_p3 = scmp.lt.s32.totalorder %s13037_s21, %s13037_s21 }
 0xe94   :  { %14716 = vmatpush1.bf16.msra.mxu1 %v14715_v24  ;;  %14782 = vmatprep.subr.bf16.mxu0 %v14781_v14  ;;  %p17613_p2 = scmp.ne.s32.totalorder %s13037_s21, %s17612_s23  ;;  %p17618_p4 = scmp.lt.s32.totalorder %s17612_s23, %s17612_s23 }
 0xe95   :  { %14718 = vmatprep.subr.bf16.mxu1 %v14717_v23  ;;  %14784 = vmatpush3.bf16.msra.mxu0 %v14783_v15 }
 0xe96   :  { %p17619_p5 = por %p17618_p4, %p17617_p3 }
 0xe97   :  { %14592 = vmatmul.mubr.msk.f32.vlgmr.msra.gmra.mrb[72].mxu1 %vm4680_vm4, %v12660_v52 }
 0xe98   :  { %14720 = vmatpush1.bf16.msra.mxu1 %v14719_v63  ;;  %12799 = vmatprep.mubr.f32.mxu1 %v17661_v5  ;;  %v14727_v5 = vpack.c.bf16 %v12809_v25, %v12808_v42  ;;  %p17620_p6 = pnand %p17619_p5, %p17613_p2 }
 0xe99   :  { %14722 = vmatprep.subr.bf16.mxu1 %v14721_v3 }
 0xe9b   :  { %14593 = vmatmul.mubr.msk.f32.vlgmr.msra.gmra.mrb[74].mxu1 %vm4680_vm4, %v12660_v52 }
 0xe9c   :  { %14724 = vmatpush3.bf16.msra.mxu1 %v14723_v54 }
 0xe9d   :  { %14726 = vmatprep.subr.bf16.mxu1 %v14725_v30 }
 0xea0   :  { %14728 = vmatpush3.bf16.msra.mxu1 %v14727_v5 }
 0xea1   :  { %14730 = vmatprep.subr.bf16.mxu1 %v14729_v18 }
 0xea4   :  { %14732 = vmatpush3.bf16.msra.mxu1 %v14731_v31 }
 0xea5   :  { %14734 = vmatprep.subr.bf16.mxu1 %v14733_v6 }
 0xea8   :  { %14736 = vmatpush3.bf16.msra.mxu1 %v14735_v10 }
 0xea9   :  { %14738 = vmatprep.subr.bf16.mxu1 %v14737_v33 }
 0xeac   :  { %14740 = vmatpush3.bf16.msra.mxu1 %v14739_v17 }
 0xead   :  { %14742 = vmatprep.subr.bf16.mxu1 %v14741_v60 }
 0xeb0   :  { %14744 = vmatpush3.bf16.msra.mxu1 %v14743_v43 }
 0xeb1   :  { %14746 = vmatprep.subr.bf16.mxu1 %v14745_v8 }
 0xeb4   :  { %14748 = vmatpush3.bf16.msra.mxu1 %v14747_v50 }
 0xeb5   :  { %14750 = vmatprep.subr.bf16.mxu1 %v14749_v55 }
 0xeb8   :  { %14752 = vmatpush3.bf16.msra.mxu1 %v14751_v16 }
 0xf6a   :  { %v12730_v13 = vpop.f32.mrb[72].mxu1 }
 0xf6b   :  { %v12732_v37 = vpop.f32.mrb[73].mxu1 }
 0xf6c   :  { %12941 = vmatprep.mubr.f32.mxu1 %v12732_v37 }
 0xf6d   :  { %12942 = vmatmul.mubr.f32.vlgmr.msra.gmra.mrb[76].mxu1 %v12730_v13 }
 0xf6e   :  { %v12801_v34 = vpop.f32.mrb[74].mxu1 }
 0xf6f   :  { %v12803_v24 = vpop.f32.mrb[75].mxu1 }
 0xf70   :  { %13011 = vmatprep.mubr.f32.mxu0 %v12803_v24 }
 0xf71   :  { %13012 = vmatmul.mubr.f32.vlgmr.msra.gmra.mrb[28].mxu0 %v12801_v34 }
0x1040   :  { %v14627_v59 = vpop.f32.mrb[76].mxu1 }
0x1041   :  { %v14628_v39 = vpop.f32.mrb[77].mxu1 }
0x1042   :  { %v14629_v63 = vadd.f32 %v14628_v39, %v14627_v59 }
0x1044   :  { %v14662_v23 = vpop.f32.mrb[28].mxu0  ;;  %v12944_v28 = vadd.f32 %v14629_v63, %v14594_v7 }
0x1045   :  { %v14663_v1 = vpop.f32.mrb[29].mxu0 }
0x1046   :  { %v14664_v52 = vadd.f32 %v14663_v1, %v14662_v23 }
0x1048   :  { %v13014_v3 = vadd.f32 %v14664_v52, %v12944_v28 }
0x104a   :  { %v13018_v11 = vsel %vm13017_vm5, %v13014_v3, -inf }
0x104b   :  { %13019 = vmax.xlane.f32.xlu0 %v13018_v11 }
0x10d8   :  { %v13020_v21 = vpop.xlane.xlu0 %13019 }
0x10d9   :  { %v13021_v19 = vsub.f32 %v13014_v3, %v13020_v21 }
0x10db   :  { %v13022_v62 = vmul.f32 1.442695, %v13021_v19 }
0x10dd   :  { %17282 = vpow2.f32 %v13022_v62 }
0x10e7   :  { %v17283_v54 = vpop.eup %17282 }
0x10e8   :  { %v13024_v30 = vsel %vm13017_vm5, %v17283_v54, 0.0 }
0x10e9   :  { %13025 = vadd.xlane.f32.xlu1 %v13024_v30 }
0x1176   :  { %v13026_v42 = vpop.xlane.xlu1 %13025 }
0x1177   :  { %17284 = vrcp.f32 %v13026_v42 }
0x1181   :  { %v17285_v25 = vpop.eup %17284 }
0x1182   :  { %v13028_v58 = vmul.f32 %v17285_v25, %v17283_v54 }
0x1184   :  { %13029 = vst.msk [vmem:[#allocation17] sm:$0x3] %vm13017_vm5, %v13028_v58 }
0x1185   :  { %17623 = shalt.err (!%p17620_p6)
}
0x1186   :  { %s17624_s22 = scalar_lea.hbm %s18922_s12, 32 }
0x1187   :  { %p17625_p7 = scmp.ne.s32.totalorder %s18922_s12, %s17624_s22  ;;  %p17628_p8 = scmp.lt.u32.totalorder %s17624_s22, %s18922_s12 }
0x1189   :  { %p17630_p9 = pnand %p17628_p8, %p17625_p7 }
0x118b   :  { %17633 = shalt.err (!%p17630_p9)
}
0x118c   :  { %13039 = dma.vmem_to_hbm [thread:$0]  %s13037_s21, 32, %s18922_s12, [#allocation4]  }
0x118d   :  { %17644 = dma.done.wait [#allocation4], 32  }
0x118e   :  { %17645 = vsyncadd [#allocation4], 4294967264 }
0x118f   :  { %13043 = vsyncpa [#allocation3], 1 }
0x1190   :  { %13044 = vsyncpa [#allocation6], 1 }
0x1191   :  { %13045 = vsyncpa [#allocation9], 1 }
0x1192   :  { %13046 = vsyncpa [#allocation12], 1 }
0x1193   :  { %13047 = vsyncpa [#allocation15], 1 }
0x1194   :  { %13048 = vsyncpa [#allocation4], 1 }

</bundles_post_ra>
